<compile_context>
chip_gen: v6e
topology: v6e:2x2x1
jax: 0.10.0
libtpu: 0.0.40
codegen_flags: <defaults>
</compile_context>

<pallas_src>
import functools

import jax
import jax.numpy as jnp
from jax.experimental import pallas as pl
from jax.experimental.pallas import tpu as pltpu

VMEM_LIMIT = 32 * 1024 * 1024   # working sets are tiny; 32 MiB is safe on v5e/v6e/v7x
LN_EPS = 1e-5                   # PyTorch nn.LayerNorm default


# ----------------------------------------------------------------------------- helpers

def _round_up(x, m):
    return (x + m - 1) // m * m


def _pick_tile(size, candidates):
    for c in candidates:
        if size % c == 0:
            return c
    return size


def _gelu(x):
    # TODO(synk): PyTorch nn.GELU default is the exact erf form; tanh approximation used here.
    return 0.5 * x * (1.0 + jnp.tanh(0.7978845608028654 * (x + 0.044715 * x * x * x)))


def _layernorm(x, g, b, eps):
    mu = jnp.mean(x, axis=-1, keepdims=True)
    var = jnp.mean((x - mu) ** 2, axis=-1, keepdims=True)
    return (x - mu) * jax.lax.rsqrt(var + eps) * g + b


# ----------------------------------------------------- fused transformer stack (all blocks + final LN)

def _vit_stack_kernel(tok_ref, ln1g_ref, ln1b_ref, wqkv_ref, bqkv_ref, wo_ref, bo_ref,
                      ln2g_ref, ln2b_ref, w1_ref, b1_ref, w2_ref, b2_ref,
                      lnfg_ref, lnfb_ref, hid_ref, fin_ref, acc_ref, *, heads, eps):
    l = pl.program_id(1)

    @pl.when(l == 0)
    def _():
        acc_ref[...] = tok_ref[0]

    x = acc_ref[...]                                  # (Nt, D) f32 residual stream
    Nt, D = x.shape
    Dh = D // heads
    scale = 1.0 / float(Dh) ** 0.5

    # ---- attention sublayer: LN1 + QKV + batched-head SDPA + out proj + residual
    h = _layernorm(x, ln1g_ref[0], ln1b_ref[0], eps)
    qkv = jnp.dot(h.astype(jnp.bfloat16), wqkv_ref[0],
                  preferred_element_type=jnp.float32) + bqkv_ref[0]        # (Nt, 3D)
    qh = jnp.stack([qkv[:, hd * Dh:(hd + 1) * Dh] for hd in range(heads)], axis=0)
    kh = jnp.stack([qkv[:, D + hd * Dh:D + (hd + 1) * Dh] for hd in range(heads)], axis=0)
    vh = jnp.stack([qkv[:, 2 * D + hd * Dh:2 * D + (hd + 1) * Dh] for hd in range(heads)], axis=0)
    s = jnp.einsum('hqd,hkd->hqk', qh.astype(jnp.bfloat16), kh.astype(jnp.bfloat16),
                   preferred_element_type=jnp.float32) * scale             # (heads, Nt, Nt)
    s = s - jnp.max(s, axis=-1, keepdims=True)
    p = jnp.exp(s)
    p = p / jnp.sum(p, axis=-1, keepdims=True)
    o = jnp.einsum('hqk,hkd->hqd', p.astype(jnp.bfloat16), vh.astype(jnp.bfloat16),
                   preferred_element_type=jnp.float32)                     # (heads, Nt, Dh)
    o = jnp.concatenate([o[hd] for hd in range(heads)], axis=-1)           # (Nt, D)
    x = x + jnp.dot(o.astype(jnp.bfloat16), wo_ref[0],
                    preferred_element_type=jnp.float32) + bo_ref[0]

    # ---- MLP sublayer: LN2 + W1 + GELU + W2 + residual
    h = _layernorm(x, ln2g_ref[0], ln2b_ref[0], eps)
    h1 = jnp.dot(h.astype(jnp.bfloat16), w1_ref[0],
                 preferred_element_type=jnp.float32) + b1_ref[0]
    h1 = _gelu(h1)
    x = x + jnp.dot(h1.astype(jnp.bfloat16), w2_ref[0],
                    preferred_element_type=jnp.float32) + b2_ref[0]

    acc_ref[...] = x
    hid_ref[0, 0] = x

    @pl.when(l == pl.num_programs(1) - 1)
    def _():
        fin_ref[0] = _layernorm(x, lnfg_ref[...], lnfb_ref[...], eps)


def vit_stack(tokens, st, heads):
    """Run the whole stack of pre-norm transformer blocks + final LayerNorm in one pallas_call.

    tokens: (B, Nt, D) f32.  st: dict of depth-stacked block params (weights bf16) + lnf.
    Returns (final (B, Nt, D) f32, hiddens (depth, B, Nt, D) f32)."""
    B, Nt, D = tokens.shape
    depth = st["wqkv"].shape[0]
    Hm = st["w1"].shape[2]

    hiddens, final = pl.pallas_call(
        functools.partial(_vit_stack_kernel, heads=heads, eps=LN_EPS),
        out_shape=(jax.ShapeDtypeStruct((depth, B, Nt, D), jnp.float32),
                   jax.ShapeDtypeStruct((B, Nt, D), jnp.float32)),
        grid=(B, depth),
        in_specs=[
            pl.BlockSpec((1, Nt, D), lambda b, l: (b, 0, 0)),          # tokens (resident per b)
            pl.BlockSpec((1, 1, D), lambda b, l: (l, 0, 0)),           # ln1_g
            pl.BlockSpec((1, 1, D), lambda b, l: (l, 0, 0)),           # ln1_b
            pl.BlockSpec((1, D, 3 * D), lambda b, l: (l, 0, 0)),       # wqkv (bf16)
            pl.BlockSpec((1, 1, 3 * D), lambda b, l: (l, 0, 0)),       # bqkv
            pl.BlockSpec((1, D, D), lambda b, l: (l, 0, 0)),           # wo (bf16)
            pl.BlockSpec((1, 1, D), lambda b, l: (l, 0, 0)),           # bo
            pl.BlockSpec((1, 1, D), lambda b, l: (l, 0, 0)),           # ln2_g
            pl.BlockSpec((1, 1, D), lambda b, l: (l, 0, 0)),           # ln2_b
            pl.BlockSpec((1, D, Hm), lambda b, l: (l, 0, 0)),          # w1 (bf16)
            pl.BlockSpec((1, 1, Hm), lambda b, l: (l, 0, 0)),          # b1
            pl.BlockSpec((1, Hm, D), lambda b, l: (l, 0, 0)),          # w2 (bf16)
            pl.BlockSpec((1, 1, D), lambda b, l: (l, 0, 0)),           # b2
            pl.BlockSpec((1, D), lambda b, l: (0, 0)),                 # lnf_g
            pl.BlockSpec((1, D), lambda b, l: (0, 0)),                 # lnf_b
        ],
        out_specs=(
            pl.BlockSpec((1, 1, Nt, D), lambda b, l: (l, b, 0, 0)),    # per-block hidden states
            pl.BlockSpec((1, Nt, D), lambda b, l: (b, 0, 0)),          # final (post-LN), resident
        ),
        scratch_shapes=[pltpu.VMEM((Nt, D), jnp.float32)],
        compiler_params=pltpu.CompilerParams(
            dimension_semantics=("parallel", "arbitrary"),
            vmem_limit_bytes=VMEM_LIMIT),
    )(tokens, st["ln1_g"], st["ln1_b"], st["wqkv"], st["bqkv"], st["wo"], st["bo"],
      st["ln2_g"], st["ln2_b"], st["w1"], st["b1"], st["w2"], st["b2"],
      st["lnf_g"], st["lnf_b"])
    return final, hiddens


# ----------------------------------------------------------------------------- small row-tiled linear

def _linear_kernel(x_ref, w_ref, b_ref, o_ref, *, act):
    y = jnp.dot(x_ref[...].astype(jnp.bfloat16), w_ref[...],
                preferred_element_type=jnp.float32) + b_ref[...]
    if act == "gelu":
        y = _gelu(y)
    elif act == "relu":
        y = jnp.maximum(y, 0.0)
    o_ref[...] = y


def linear(x, w_bf16, b_row, act=None):
    """x: (M, K) f32, w_bf16: (K, N) bf16 (pre-cast at init), b_row: (1, N) f32 -> (M, N) f32."""
    M, K = x.shape
    N = w_bf16.shape[1]
    Mp = _round_up(M, 8)
    xp = jnp.pad(x, ((0, Mp - M), (0, 0))) if Mp != M else x
    # keep >= 2 grid steps where possible so the parallel axis feeds both TCs on v7x
    cands = tuple(c for c in (256, 128, 64, 32, 16, 8) if c * 2 <= Mp) or (Mp,)
    tm = _pick_tile(Mp, cands)
    out = pl.pallas_call(
        functools.partial(_linear_kernel, act=act),
        out_shape=jax.ShapeDtypeStruct((Mp, N), jnp.float32),
        grid=(Mp // tm,),
        in_specs=[
            pl.BlockSpec((tm, K), lambda i: (i, 0)),
            pl.BlockSpec((K, N), lambda i: (0, 0)),
            pl.BlockSpec((1, N), lambda i: (0, 0)),
        ],
        out_specs=pl.BlockSpec((tm, N), lambda i: (i, 0)),
        compiler_params=pltpu.CompilerParams(
            dimension_semantics=("parallel",), vmem_limit_bytes=VMEM_LIMIT),
    )(xp, w_bf16, b_row)
    return out[:M] if Mp != M else out


# ------------------------------------------------- 3x3 conv (banded weights, 3 dots, optional fused proj)

def _conv3x3_kernel(x_ref, w_ref, b_ref, o_ref, *, H, act):
    x = x_ref[0]                                                   # (H+2, (W+2)*C) f32
    acc = jnp.dot(x[0:H].astype(jnp.bfloat16), w_ref[0], preferred_element_type=jnp.float32)
    acc = acc + jnp.dot(x[1:H + 1].astype(jnp.bfloat16), w_ref[1], preferred_element_type=jnp.float32)
    acc = acc + jnp.dot(x[2:H + 2].astype(jnp.bfloat16), w_ref[2], preferred_element_type=jnp.float32)
    y = acc + b_ref[...]
    if act == "relu":
        y = jnp.maximum(y, 0.0)
    o_ref[0] = y


def _conv3x3_proj_kernel(x_ref, w_ref, b_ref, pw_ref, pb_ref, o_ref, *, H, act):
    x = x_ref[0]
    acc = jnp.dot(x[0:H].astype(jnp.bfloat16), w_ref[0], preferred_element_type=jnp.float32)
    acc = acc + jnp.dot(x[1:H + 1].astype(jnp.bfloat16), w_ref[1], preferred_element_type=jnp.float32)
    acc = acc + jnp.dot(x[2:H + 2].astype(jnp.bfloat16), w_ref[2], preferred_element_type=jnp.float32)
    y = acc + b_ref[...]
    if act == "relu":
        y = jnp.maximum(y, 0.0)
    # fused per-pixel output projection (block-diagonal kron(I_W, proj_w)), avoids a padded GEMM
    o_ref[0] = jnp.dot(y.astype(jnp.bfloat16), pw_ref[...],
                       preferred_element_type=jnp.float32) + pb_ref[...]


def _pack_conv3x3(w, b, C, Cout, W, proj_w=None, proj_b=None):
    """Pack (9*C, Cout) tap-major 3x3 weights into 3 banded block-Toeplitz matrices
    ((W+2)*C, W*Cout) — built ONCE at init so the forward does no weight prep."""
    ker = w.reshape(3, 3, C, Cout)
    wband = jnp.zeros((3, (W + 2) * C, W * Cout), jnp.float32)
    for dx in range(3):
        for wo in range(W):
            wband = wband.at[:, (wo + dx) * C:(wo + dx + 1) * C,
                             wo * Cout:(wo + 1) * Cout].set(ker[:, dx])
    cv = dict(wband=wband.astype(jnp.bfloat16),
              b=jnp.tile(b, W).reshape(1, W * Cout).astype(jnp.float32))
    if proj_w is not None:
        Cp = proj_w.shape[1]
        cv["proj_w"] = jnp.kron(jnp.eye(W, dtype=jnp.float32), proj_w).astype(jnp.bfloat16)
        cv["proj_b"] = jnp.tile(proj_b, W).reshape(1, W * Cp).astype(jnp.float32)
    return cv


def conv3x3(x_nhwc, cv, act="relu"):
    """3x3 conv (pad=1, stride=1) with pre-packed banded weights; optional fused 1x1 projection."""
    B, H, W, C = x_nhwc.shape
    Cout = cv["wband"].shape[2] // W
    Krow = (W + 2) * C
    xp = jnp.pad(x_nhwc, ((0, 0), (1, 1), (1, 1), (0, 0))).reshape(B, H + 2, Krow)
    has_proj = "proj_w" in cv
    out_cols = cv["proj_w"].shape[1] if has_proj else W * Cout

    in_specs = [
        pl.BlockSpec((1, H + 2, Krow), lambda i: (i, 0, 0)),
        pl.BlockSpec((3, Krow, W * Cout), lambda i: (0, 0, 0)),
        pl.BlockSpec((1, W * Cout), lambda i: (0, 0)),
    ]
    args = [xp, cv["wband"], cv["b"]]
    if has_proj:
        kern = functools.partial(_conv3x3_proj_kernel, H=H, act=act)
        in_specs += [pl.BlockSpec((W * Cout, out_cols), lambda i: (0, 0)),
                     pl.BlockSpec((1, out_cols), lambda i: (0, 0))]
        args += [cv["proj_w"], cv["proj_b"]]
    else:
        kern = functools.partial(_conv3x3_kernel, H=H, act=act)

    out = pl.pallas_call(
        kern,
        out_shape=jax.ShapeDtypeStruct((B, H, out_cols), jnp.float32),
        grid=(B,),
        in_specs=in_specs,
        out_specs=pl.BlockSpec((1, H, out_cols), lambda i: (i, 0, 0)),
        compiler_params=pltpu.CompilerParams(
            dimension_semantics=("parallel",), vmem_limit_bytes=VMEM_LIMIT),
    )(*args)
    return out.reshape(B, H, W, out_cols // W)


def deconv2x2(x_nhwc, w_bf16, b_row):
    """ConvTranspose2d(kernel=2, stride=2) as per-pixel linear + depth-to-space.
    TODO(synk): weight layout assumed (Cin, 4*Cout) with row-major 2x2 sub-pixel ordering."""
    B, H, W, C = x_nhwc.shape
    Cout = w_bf16.shape[1] // 4
    y = linear(x_nhwc.reshape(B * H * W, C), w_bf16, b_row)
    y = y.reshape(B, H, W, 2, 2, Cout)
    return jnp.transpose(y, (0, 1, 3, 2, 4, 5)).reshape(B, 2 * H, 2 * W, Cout)


# ----------------------------------------------------------------------------- fused MAE prediction + MSE

def _pred_mse_kernel(x_ref, w_ref, b_ref, t_ref, pred_ref, sse_ref):
    @pl.when(pl.program_id(0) == 0)
    def _():
        sse_ref[0, 0] = jnp.float32(0.0)

    p = jnp.dot(x_ref[...].astype(jnp.bfloat16), w_ref[...],
                preferred_element_type=jnp.float32) + b_ref[...]
    pred_ref[...] = p
    d = p - t_ref[...]
    sse_ref[0, 0] += jnp.sum(d * d)


def pred_and_mse(x, w_bf16, b_row, target):
    """Linear prediction head fused with the MSE reduction (SMEM scalar accumulator)."""
    M, K = x.shape
    Pout = w_bf16.shape[1]
    tm = _pick_tile(M, (128, 64, 32, 16, 8))
    pred, sse = pl.pallas_call(
        _pred_mse_kernel,
        out_shape=(jax.ShapeDtypeStruct((M, Pout), jnp.float32),
                   jax.ShapeDtypeStruct((1, 1), jnp.float32)),
        grid=(M // tm,),
        in_specs=[
            pl.BlockSpec((tm, K), lambda i: (i, 0)),
            pl.BlockSpec((K, Pout), lambda i: (0, 0)),
            pl.BlockSpec((1, Pout), lambda i: (0, 0)),
            pl.BlockSpec((tm, Pout), lambda i: (i, 0)),
        ],
        out_specs=(pl.BlockSpec((tm, Pout), lambda i: (i, 0)),
                   pl.BlockSpec(memory_space=pltpu.MemorySpace.SMEM)),
        compiler_params=pltpu.CompilerParams(
            dimension_semantics=("arbitrary",), vmem_limit_bytes=VMEM_LIMIT),
    )(x, w_bf16, b_row, target)
    return pred, sse[0, 0] / (M * Pout)


# ----------------------------------------------------------------------------- model glue (JAX)

def patchify(x_nchw, P):
    B, C, H, W = x_nchw.shape
    x = x_nchw.reshape(B, C, H // P, P, W // P, P)
    x = jnp.transpose(x, (0, 2, 4, 3, 5, 1))  # B, Hp, Wp, P, P, C
    return x.reshape(B, (H // P) * (W // P), P * P * C)


def mae_forward(X, enc, mae, key, P, masking_ratio, heads, dec_heads):
    B, C, H, W = X.shape
    patches = patchify(X, P)                  # (B, N, P*P*C)
    N = patches.shape[1]
    n_mask = int(masking_ratio * N)
    perm = jax.vmap(lambda k: jax.random.permutation(k, N))(jax.random.split(key, B))
    mask_idx, keep_idx = perm[:, :n_mask], perm[:, n_mask:]
    keep_patches = jnp.take_along_axis(patches, keep_idx[:, :, None], axis=1)
    mask_patches = jnp.take_along_axis(patches, mask_idx[:, :, None], axis=1)

    D = enc["patch_w"].shape[1]
    tok = linear(keep_patches.reshape(-1, keep_patches.shape[-1]),
                 enc["patch_w"], enc["patch_b"]).reshape(B, -1, D)
    tok = tok + enc["pos_emb"][keep_idx]
    enc_out, _ = vit_stack(tok, enc["stack"], heads)

    dd = mae["enc2dec_w"].shape[1]
    dec_keep = linear(enc_out.reshape(-1, D), mae["enc2dec_w"], mae["enc2dec_b"]).reshape(B, -1, dd)
    dec_keep = dec_keep + mae["dec_pos"][keep_idx]
    mask_tok = jnp.broadcast_to(mae["mask_token"], (B, n_mask, dd)) + mae["dec_pos"][mask_idx]
    x = jnp.concatenate([dec_keep, mask_tok], axis=1)
    x, _ = vit_stack(x, mae["dec_stack"], dec_heads)          # includes decoder final LN
    masked_dec = x[:, -n_mask:, :]
    pred, recon_loss = pred_and_mse(masked_dec.reshape(-1, dd), mae["pred_w"], mae["pred_b"],
                                    mask_patches.reshape(-1, mask_patches.shape[-1]))
    return recon_loss, pred.reshape(B, n_mask, -1)


def unetr_forward(X, enc, seg, P, heads):
    B, C, H, W = X.shape
    x_nhwc = jnp.transpose(X, (0, 2, 3, 1))
    patches = patchify(X, P)
    D = enc["patch_w"].shape[1]
    tok = linear(patches.reshape(-1, patches.shape[-1]), enc["patch_w"], enc["patch_b"]).reshape(B, -1, D)
    tok = tok + enc["pos_emb"][None]
    final, hiddens = vit_stack(tok, enc["stack"], heads)      # hiddens: (depth, B, N, D)

    Hp, Wp = H // P, W // P
    depth = hiddens.shape[0]
    z_last = final.reshape(B, Hp, Wp, D)
    z_mid = hiddens[depth // 2 - 1].reshape(B, Hp, Wp, D)

    d2 = deconv2x2(z_last, seg["dec_a_w"], seg["dec_a_b"])            # (B, 2Hp, 2Wp, 16)
    s2 = deconv2x2(z_mid, seg["dec_skip_w"], seg["dec_skip_b"])       # (B, 2Hp, 2Wp, 16)
    m = jnp.concatenate([d2, s2], axis=-1)
    m = conv3x3(m, seg["conv_mid"], act="relu")                       # 16 ch
    d1 = deconv2x2(m, seg["dec_b_w"], seg["dec_b_b"])                 # (B, H, W, 8)
    s1 = conv3x3(x_nhwc, seg["conv_in"], act="relu")                  # (B, H, W, 8)
    u = jnp.concatenate([d1, s1], axis=-1)
    logits = conv3x3(u, seg["conv_out"], act="relu")                  # fused 8->out_ch projection
    return jnp.transpose(logits, (0, 3, 1, 2))  # NCHW like PyTorch


def joint_model_forward(X, params, key, P, masking_ratio, heads, dec_heads):
    recon_loss, reconstruction_output = mae_forward(
        X, params["enc"], params["mae"], key, P, masking_ratio, heads, dec_heads)
    segmentation_output = unetr_forward(X, params["enc"], params["seg"], P, heads)
    return segmentation_output, recon_loss, reconstruction_output


# ----------------------------------------------------------------------------- deterministic init (pre-packed)

def init_params(key, C, H, P, D, depth, dec_dim, dec_depth, out_ch):
    keys = iter(jax.random.split(key, 512))

    def nrm(shape, s=0.02):
        return s * jax.random.normal(next(keys), shape, jnp.float32)

    N = (H // P) ** 2
    Wimg = H   # square images
    Wp = H // P

    def block_params(dim, mlp):
        return dict(
            ln1_g=jnp.ones((1, dim), jnp.float32), ln1_b=jnp.zeros((1, dim), jnp.float32),
            wqkv=nrm((dim, 3 * dim)), bqkv=jnp.zeros((1, 3 * dim), jnp.float32),
            wo=nrm((dim, dim)), bo=jnp.zeros((1, dim), jnp.float32),
            ln2_g=jnp.ones((1, dim), jnp.float32), ln2_b=jnp.zeros((1, dim), jnp.float32),
            w1=nrm((dim, mlp)), b1=jnp.zeros((1, mlp), jnp.float32),
            w2=nrm((mlp, dim)), b2=jnp.zeros((1, dim), jnp.float32),
        )

    def make_stack(dim, mlp, depth_):
        blocks = [block_params(dim, mlp) for _ in range(depth_)]
        st = {k: jnp.stack([blk[k] for blk in blocks], axis=0) for k in blocks[0]}
        for k in ("wqkv", "wo", "w1", "w2"):        # pre-cast matmul weights to bf16 once
            st[k] = st[k].astype(jnp.bfloat16)
        st["lnf_g"] = jnp.ones((1, dim), jnp.float32)
        st["lnf_b"] = jnp.zeros((1, dim), jnp.float32)
        return st

    enc = dict(
        patch_w=nrm((P * P * C, D)).astype(jnp.bfloat16),
        patch_b=jnp.zeros((1, D), jnp.float32),
        pos_emb=nrm((N, D)),
        stack=make_stack(D, 4 * D, depth),
    )
    mae = dict(
        enc2dec_w=nrm((D, dec_dim)).astype(jnp.bfloat16),
        enc2dec_b=jnp.zeros((1, dec_dim), jnp.float32),
        mask_token=nrm((dec_dim,)),
        dec_pos=nrm((N, dec_dim)),
        dec_stack=make_stack(dec_dim, 4 * dec_dim, dec_depth),
        pred_w=nrm((dec_dim, P * P * C)).astype(jnp.bfloat16),
        pred_b=jnp.zeros((1, P * P * C), jnp.float32),
    )
    seg = dict(
        dec_a_w=nrm((D, 4 * 16)).astype(jnp.bfloat16),
        dec_a_b=jnp.zeros((1, 4 * 16), jnp.float32),
        dec_skip_w=nrm((D, 4 * 16)).astype(jnp.bfloat16),
        dec_skip_b=jnp.zeros((1, 4 * 16), jnp.float32),
        conv_mid=_pack_conv3x3(nrm((9 * 32, 16)), jnp.zeros((16,), jnp.float32),
                               C=32, Cout=16, W=2 * Wp),
        dec_b_w=nrm((16, 4 * 8)).astype(jnp.bfloat16),
        dec_b_b=jnp.zeros((1, 4 * 8), jnp.float32),
        conv_in=_pack_conv3x3(nrm((9 * C, 8)), jnp.zeros((8,), jnp.float32),
                              C=C, Cout=8, W=Wimg),
        conv_out=_pack_conv3x3(nrm((9 * 16, 8)), jnp.zeros((8,), jnp.float32),
                               C=16, Cout=8, W=Wimg,
                               proj_w=nrm((8, out_ch)), proj_b=jnp.zeros((out_ch,), jnp.float32)),
    )
    return dict(enc=enc, mae=mae, seg=seg)


# ----------------------------------------------------------------------------- main

if __name__ == "__main__":
    key = jax.random.PRNGKey(0)
    k_param, k_data, k_mask = jax.random.split(key, 3)

    B, C, H, W = 2, 4, 16, 16          # input image (NCHW, like PyTorch)
    P = 4                              # patch size
    D, depth, heads = 32, 4, 4         # encoder width / depth / heads
    dec_dim, dec_depth, dec_heads = 16, 1, 2
    masking_ratio = 0.5
    out_ch = 3

    params = init_params(k_param, C, H, P, D, depth, dec_dim, dec_depth, out_ch)
    X = jax.random.normal(k_data, (B, C, H, W), jnp.float32)

    fwd = jax.jit(functools.partial(
        joint_model_forward, P=P, masking_ratio=masking_ratio, heads=heads, dec_heads=dec_heads))
    seg_out, recon_loss, recon_out = fwd(X, params, k_mask)
    jax.block_until_ready((seg_out, recon_loss, recon_out))

    N = (H // P) * (W // P)
    n_mask = int(masking_ratio * N)
    assert seg_out.shape == (B, out_ch, H, W)
    assert recon_loss.shape == ()
    assert recon_out.shape == (B, n_mask, P * P * C)
    assert jnp.isfinite(recon_loss) and bool(jnp.all(jnp.isfinite(seg_out)))
    print("KERNEL_OK")
</pallas_src>

<mosaic_0001>
module attributes {stable_mosaic.version = 11 : i64} {
  func.func @_linear_kernel(%arg0: i32, %arg1: memref<8x64xf32, #tpu.memory_space<vmem>>, %arg2: memref<64x32xbf16, #tpu.memory_space<vmem>>, %arg3: memref<1x32xf32, #tpu.memory_space<vmem>>, %arg4: memref<8x32xf32, #tpu.memory_space<vmem>>) attributes {dimension_semantics = [#tpu.dimension_semantics<parallel>], iteration_bounds = array<i64: 2>, scalar_prefetch = 0 : i64, scratch_operands = 0 : i64, tpu.core_type = #tpu.core_type<tc>, window_params = [{transform_indices = @transform_0, window_bounds = array<i64: 8, 64>}, {pipeline_mode = #tpu.pipeline_mode<synchronous>, transform_indices = @transform_1, window_bounds = array<i64: 64, 32>}, {pipeline_mode = #tpu.pipeline_mode<synchronous>, transform_indices = @transform_2, window_bounds = array<i64: 1, 32>}, {transform_indices = @transform_3, window_bounds = array<i64: 8, 32>}]} {
    %c0 = arith.constant 0 : index
    %c0_0 = arith.constant 0 : index
    %0 = vector.load %arg1[%c0, %c0_0] : memref<8x64xf32, #tpu.memory_space<vmem>>, vector<8x64xf32>
    %1 = arith.truncf %0 : vector<8x64xf32> to vector<8x64xbf16>
    %c0_1 = arith.constant 0 : index
    %c0_2 = arith.constant 0 : index
    %2 = vector.load %arg2[%c0_1, %c0_2] : memref<64x32xbf16, #tpu.memory_space<vmem>>, vector<64x32xbf16>
    %cst = arith.constant dense<0.000000e+00> : vector<8x32xf32>
    %3 = tpu.matmul %1, %2, %cst {dimension_numbers = #tpu.dot_dimension_numbers<[1], [0], [0], [1], [0, 0, 1, 1], [], []>} : vector<8x64xbf16>, vector<64x32xbf16>, vector<8x32xf32> -> vector<8x32xf32>
    %c0_3 = arith.constant 0 : index
    %c0_4 = arith.constant 0 : index
    %4 = vector.load %arg3[%c0_3, %c0_4] : memref<1x32xf32, #tpu.memory_space<vmem>>, vector<1x32xf32>
    %5 = vector.broadcast %4 : vector<1x32xf32> to vector<8x32xf32>
    %6 = arith.addf %3, %5 : vector<8x32xf32>
    %c0_5 = arith.constant 0 : index
    %c0_6 = arith.constant 0 : index
    %7 = vector.load %arg4[%c0_5, %c0_6] : memref<8x32xf32, #tpu.memory_space<vmem>>, vector<8x32xf32>
    tpu.vector_store %arg4[%c0_5, %c0_6], %6 {strides = array<i32>} : memref<8x32xf32, #tpu.memory_space<vmem>>, vector<8x32xf32>,
    return
  }
  func.func @transform_0(%arg0: i32) -> (i32, i32) {
    %c0_i32 = arith.constant 0 : i32
    %c0_i32_0 = arith.constant 0 : i32
    return %arg0, %c0_i32 : i32, i32
  }
  func.func @transform_1(%arg0: i32) -> (i32, i32) {
    %c0_i32 = arith.constant 0 : i32
    %c0_i32_0 = arith.constant 0 : i32
    %c0_i32_1 = arith.constant 0 : i32
    return %c0_i32, %c0_i32_0 : i32, i32
  }
  func.func @transform_2(%arg0: i32) -> (i32, i32) {
    %c0_i32 = arith.constant 0 : i32
    %c0_i32_0 = arith.constant 0 : i32
    %c0_i32_1 = arith.constant 0 : i32
    return %c0_i32, %c0_i32_0 : i32, i32
  }
  func.func @transform_3(%arg0: i32) -> (i32, i32) {
    %c0_i32 = arith.constant 0 : i32
    %c0_i32_0 = arith.constant 0 : i32
    return %arg0, %c0_i32 : i32, i32
  }
}

module attributes {stable_mosaic.version = 11 : i64} {
  func.func @_linear_kernel(%arg0: i32, %arg1: memref<8x32xf32, #tpu.memory_space<vmem>>, %arg2: memref<32x16xbf16, #tpu.memory_space<vmem>>, %arg3: memref<1x16xf32, #tpu.memory_space<vmem>>, %arg4: memref<8x16xf32, #tpu.memory_space<vmem>>) attributes {dimension_semantics = [#tpu.dimension_semantics<parallel>], iteration_bounds = array<i64: 2>, scalar_prefetch = 0 : i64, scratch_operands = 0 : i64, tpu.core_type = #tpu.core_type<tc>, window_params = [{transform_indices = @transform_0, window_bounds = array<i64: 8, 32>}, {pipeline_mode = #tpu.pipeline_mode<synchronous>, transform_indices = @transform_1, window_bounds = array<i64: 32, 16>}, {pipeline_mode = #tpu.pipeline_mode<synchronous>, transform_indices = @transform_2, window_bounds = array<i64: 1, 16>}, {transform_indices = @transform_3, window_bounds = array<i64: 8, 16>}]} {
    %c0 = arith.constant 0 : index
    %c0_0 = arith.constant 0 : index
    %0 = vector.load %arg1[%c0, %c0_0] : memref<8x32xf32, #tpu.memory_space<vmem>>, vector<8x32xf32>
    %1 = arith.truncf %0 : vector<8x32xf32> to vector<8x32xbf16>
    %c0_1 = arith.constant 0 : index
    %c0_2 = arith.constant 0 : index
    %2 = vector.load %arg2[%c0_1, %c0_2] : memref<32x16xbf16, #tpu.memory_space<vmem>>, vector<32x16xbf16>
    %cst = arith.constant dense<0.000000e+00> : vector<8x16xf32>
    %3 = tpu.matmul %1, %2, %cst {dimension_numbers = #tpu.dot_dimension_numbers<[1], [0], [0], [1], [0, 0, 1, 1], [], []>} : vector<8x32xbf16>, vector<32x16xbf16>, vector<8x16xf32> -> vector<8x16xf32>
    %c0_3 = arith.constant 0 : index
    %c0_4 = arith.constant 0 : index
    %4 = vector.load %arg3[%c0_3, %c0_4] : memref<1x16xf32, #tpu.memory_space<vmem>>, vector<1x16xf32>
    %5 = vector.broadcast %4 : vector<1x16xf32> to vector<8x16xf32>
    %6 = arith.addf %3, %5 : vector<8x16xf32>
    %c0_5 = arith.constant 0 : index
    %c0_6 = arith.constant 0 : index
    %7 = vector.load %arg4[%c0_5, %c0_6] : memref<8x16xf32, #tpu.memory_space<vmem>>, vector<8x16xf32>
    tpu.vector_store %arg4[%c0_5, %c0_6], %6 {strides = array<i32>} : memref<8x16xf32, #tpu.memory_space<vmem>>, vector<8x16xf32>,
    return
  }
  func.func @transform_0(%arg0: i32) -> (i32, i32) {
    %c0_i32 = arith.constant 0 : i32
    %c0_i32_0 = arith.constant 0 : i32
    return %arg0, %c0_i32 : i32, i32
  }
  func.func @transform_1(%arg0: i32) -> (i32, i32) {
    %c0_i32 = arith.constant 0 : i32
    %c0_i32_0 = arith.constant 0 : i32
    %c0_i32_1 = arith.constant 0 : i32
    return %c0_i32, %c0_i32_0 : i32, i32
  }
  func.func @transform_2(%arg0: i32) -> (i32, i32) {
    %c0_i32 = arith.constant 0 : i32
    %c0_i32_0 = arith.constant 0 : i32
    %c0_i32_1 = arith.constant 0 : i32
    return %c0_i32, %c0_i32_0 : i32, i32
  }
  func.func @transform_3(%arg0: i32) -> (i32, i32) {
    %c0_i32 = arith.constant 0 : i32
    %c0_i32_0 = arith.constant 0 : i32
    return %arg0, %c0_i32 : i32, i32
  }
}

module attributes {stable_mosaic.version = 11 : i64} {
  func.func @_vit_stack_kernel(%arg0: i32, %arg1: i32, %arg2: memref<1x8x32xf32, #tpu.memory_space<vmem>>, %arg3: memref<1x1x32xf32, #tpu.memory_space<vmem>>, %arg4: memref<1x1x32xf32, #tpu.memory_space<vmem>>, %arg5: memref<1x32x96xbf16, #tpu.memory_space<vmem>>, %arg6: memref<1x1x96xf32, #tpu.memory_space<vmem>>, %arg7: memref<1x32x32xbf16, #tpu.memory_space<vmem>>, %arg8: memref<1x1x32xf32, #tpu.memory_space<vmem>>, %arg9: memref<1x1x32xf32, #tpu.memory_space<vmem>>, %arg10: memref<1x1x32xf32, #tpu.memory_space<vmem>>, %arg11: memref<1x32x128xbf16, #tpu.memory_space<vmem>>, %arg12: memref<1x1x128xf32, #tpu.memory_space<vmem>>, %arg13: memref<1x128x32xbf16, #tpu.memory_space<vmem>>, %arg14: memref<1x1x32xf32, #tpu.memory_space<vmem>>, %arg15: memref<1x32xf32, #tpu.memory_space<vmem>>, %arg16: memref<1x32xf32, #tpu.memory_space<vmem>>, %arg17: memref<1x1x8x32xf32, #tpu.memory_space<vmem>>, %arg18: memref<1x8x32xf32, #tpu.memory_space<vmem>>, %arg19: memref<8x32xf32, #tpu.memory_space<vmem>>) attributes {dimension_semantics = [#tpu.dimension_semantics<parallel>, #tpu.dimension_semantics<arbitrary>], iteration_bounds = array<i64: 2, 4>, scalar_prefetch = 0 : i64, scratch_operands = 1 : i64, tpu.core_type = #tpu.core_type<tc>, window_params = [{transform_indices = @transform_0, window_bounds = array<i64: 1, 8, 32>}, {transform_indices = @transform_1, window_bounds = array<i64: 1, 1, 32>}, {transform_indices = @transform_2, window_bounds = array<i64: 1, 1, 32>}, {transform_indices = @transform_3, window_bounds = array<i64: 1, 32, 96>}, {transform_indices = @transform_4, window_bounds = array<i64: 1, 1, 96>}, {transform_indices = @transform_5, window_bounds = array<i64: 1, 32, 32>}, {transform_indices = @transform_6, window_bounds = array<i64: 1, 1, 32>}, {transform_indices = @transform_7, window_bounds = array<i64: 1, 1, 32>}, {transform_indices = @transform_8, window_bounds = array<i64: 1, 1, 32>}, {transform_indices = @transform_9, window_bounds = array<i64: 1, 32, 128>}, {transform_indices = @transform_10, window_bounds = array<i64: 1, 1, 128>}, {transform_indices = @transform_11, window_bounds = array<i64: 1, 128, 32>}, {transform_indices = @transform_12, window_bounds = array<i64: 1, 1, 32>}, {pipeline_mode = #tpu.pipeline_mode<synchronous>, transform_indices = @transform_13, window_bounds = array<i64: 1, 32>}, {pipeline_mode = #tpu.pipeline_mode<synchronous>, transform_indices = @transform_14, window_bounds = array<i64: 1, 32>}, {transform_indices = @transform_15, window_bounds = array<i64: 1, 1, 8, 32>}, {transform_indices = @transform_16, window_bounds = array<i64: 1, 8, 32>}]} {
    %c0_i32 = arith.constant 0 : i32
    %0 = arith.cmpi eq, %arg1, %c0_i32 : i32
    %1 = arith.extui %0 : i1 to i32
    %c0_i32_0 = arith.constant 0 : i32
    %2 = arith.cmpi ne, %1, %c0_i32_0 : i32
    scf.if %2 {
      %c0_67 = arith.constant 0 : index
      %c0_68 = arith.constant 0 : index
      %c0_69 = arith.constant 0 : index
      %163 = vector.load %arg2[%c0_67, %c0_68, %c0_69] : memref<1x8x32xf32, #tpu.memory_space<vmem>>, vector<1x8x32xf32>
      %164 = vector.shape_cast %163 : vector<1x8x32xf32> to vector<8x32xf32>
      %c0_70 = arith.constant 0 : index
      %c0_71 = arith.constant 0 : index
      %165 = vector.load %arg19[%c0_70, %c0_71] : memref<8x32xf32, #tpu.memory_space<vmem>>, vector<8x32xf32>
      tpu.vector_store %arg19[%c0_70, %c0_71], %164 {strides = array<i32>} : memref<8x32xf32, #tpu.memory_space<vmem>>, vector<8x32xf32>,
    } else {
    }
    %c0 = arith.constant 0 : index
    %c0_1 = arith.constant 0 : index
    %3 = vector.load %arg19[%c0, %c0_1] : memref<8x32xf32, #tpu.memory_space<vmem>>, vector<8x32xf32>
    %c0_2 = arith.constant 0 : index
    %c0_3 = arith.constant 0 : index
    %c0_4 = arith.constant 0 : index
    %4 = vector.load %arg3[%c0_2, %c0_3, %c0_4] : memref<1x1x32xf32, #tpu.memory_space<vmem>>, vector<1x1x32xf32>
    %5 = vector.shape_cast %4 : vector<1x1x32xf32> to vector<1x32xf32>
    %c0_5 = arith.constant 0 : index
    %c0_6 = arith.constant 0 : index
    %c0_7 = arith.constant 0 : index
    %6 = vector.load %arg4[%c0_5, %c0_6, %c0_7] : memref<1x1x32xf32, #tpu.memory_space<vmem>>, vector<1x1x32xf32>
    %7 = vector.shape_cast %6 : vector<1x1x32xf32> to vector<1x32xf32>
    %cst = arith.constant dense<0.000000e+00> : vector<8xf32>
    %8 = vector.multi_reduction <add>, %3, %cst [1] : vector<8x32xf32> to vector<8xf32>
    %9 = vector.shape_cast %8 : vector<8xf32> to vector<8x1xf32>
    %cst_8 = arith.constant 3.200000e+01 : f32
    %10 = vector.broadcast %cst_8 : f32 to vector<8x1xf32>
    %11 = arith.divf %9, %10 : vector<8x1xf32>
    %12 = vector.broadcast %11 : vector<8x1xf32> to vector<8x32xf32>
    %13 = arith.subf %3, %12 : vector<8x32xf32>
    %14 = arith.mulf %13, %13 : vector<8x32xf32>
    %cst_9 = arith.constant dense<0.000000e+00> : vector<8xf32>
    %15 = vector.multi_reduction <add>, %14, %cst_9 [1] : vector<8x32xf32> to vector<8xf32>
    %16 = vector.shape_cast %15 : vector<8xf32> to vector<8x1xf32>
    %cst_10 = arith.constant 3.200000e+01 : f32
    %17 = vector.broadcast %cst_10 : f32 to vector<8x1xf32>
    %18 = arith.divf %16, %17 : vector<8x1xf32>
    %19 = vector.broadcast %11 : vector<8x1xf32> to vector<8x32xf32>
    %20 = arith.subf %3, %19 : vector<8x32xf32>
    %cst_11 = arith.constant 9.99999974E-6 : f32
    %21 = vector.broadcast %cst_11 : f32 to vector<8x1xf32>
    %22 = arith.addf %18, %21 : vector<8x1xf32>
    %23 = math.rsqrt %22 : vector<8x1xf32>
    %24 = vector.broadcast %23 : vector<8x1xf32> to vector<8x32xf32>
    %25 = arith.mulf %20, %24 : vector<8x32xf32>
    %26 = vector.broadcast %5 : vector<1x32xf32> to vector<8x32xf32>
    %27 = arith.mulf %25, %26 : vector<8x32xf32>
    %28 = vector.broadcast %7 : vector<1x32xf32> to vector<8x32xf32>
    %29 = arith.addf %27, %28 : vector<8x32xf32>
    %30 = arith.truncf %29 : vector<8x32xf32> to vector<8x32xbf16>
    %c0_12 = arith.constant 0 : index
    %c0_13 = arith.constant 0 : index
    %c0_14 = arith.constant 0 : index
    %31 = vector.load %arg5[%c0_12, %c0_13, %c0_14] : memref<1x32x96xbf16, #tpu.memory_space<vmem>>, vector<1x32x96xbf16>
    %32 = vector.shape_cast %31 : vector<1x32x96xbf16> to vector<32x96xbf16>
    %cst_15 = arith.constant dense<0.000000e+00> : vector<8x96xf32>
    %33 = tpu.matmul %30, %32, %cst_15 {dimension_numbers = #tpu.dot_dimension_numbers<[1], [0], [0], [1], [0, 0, 1, 1], [], []>} : vector<8x32xbf16>, vector<32x96xbf16>, vector<8x96xf32> -> vector<8x96xf32>
    %c0_16 = arith.constant 0 : index
    %c0_17 = arith.constant 0 : index
    %c0_18 = arith.constant 0 : index
    %34 = vector.load %arg6[%c0_16, %c0_17, %c0_18] : memref<1x1x96xf32, #tpu.memory_space<vmem>>, vector<1x1x96xf32>
    %35 = vector.shape_cast %34 : vector<1x1x96xf32> to vector<1x96xf32>
    %36 = vector.broadcast %35 : vector<1x96xf32> to vector<8x96xf32>
    %37 = arith.addf %33, %36 : vector<8x96xf32>
    %38 = vector.extract_strided_slice %37 {offsets = [0, 0], sizes = [8, 8], strides = [1, 1]} : vector<8x96xf32> to vector<8x8xf32>
    %39 = vector.extract_strided_slice %37 {offsets = [0, 8], sizes = [8, 8], strides = [1, 1]} : vector<8x96xf32> to vector<8x8xf32>
    %40 = vector.extract_strided_slice %37 {offsets = [0, 16], sizes = [8, 8], strides = [1, 1]} : vector<8x96xf32> to vector<8x8xf32>
    %41 = vector.extract_strided_slice %37 {offsets = [0, 24], sizes = [8, 8], strides = [1, 1]} : vector<8x96xf32> to vector<8x8xf32>
    %42 = vector.shape_cast %38 : vector<8x8xf32> to vector<1x8x8xf32>
    %43 = vector.shape_cast %39 : vector<8x8xf32> to vector<1x8x8xf32>
    %44 = vector.shape_cast %40 : vector<8x8xf32> to vector<1x8x8xf32>
    %45 = vector.shape_cast %41 : vector<8x8xf32> to vector<1x8x8xf32>
    %46 = tpu.concatenate %42, %43, %44, %45 in 0 : vector<1x8x8xf32>, vector<1x8x8xf32>, vector<1x8x8xf32>, vector<1x8x8xf32> -> vector<4x8x8xf32>
    %47 = vector.extract_strided_slice %37 {offsets = [0, 32], sizes = [8, 8], strides = [1, 1]} : vector<8x96xf32> to vector<8x8xf32>
    %48 = vector.extract_strided_slice %37 {offsets = [0, 40], sizes = [8, 8], strides = [1, 1]} : vector<8x96xf32> to vector<8x8xf32>
    %49 = vector.extract_strided_slice %37 {offsets = [0, 48], sizes = [8, 8], strides = [1, 1]} : vector<8x96xf32> to vector<8x8xf32>
    %50 = vector.extract_strided_slice %37 {offsets = [0, 56], sizes = [8, 8], strides = [1, 1]} : vector<8x96xf32> to vector<8x8xf32>
    %51 = vector.shape_cast %47 : vector<8x8xf32> to vector<1x8x8xf32>
    %52 = vector.shape_cast %48 : vector<8x8xf32> to vector<1x8x8xf32>
    %53 = vector.shape_cast %49 : vector<8x8xf32> to vector<1x8x8xf32>
    %54 = vector.shape_cast %50 : vector<8x8xf32> to vector<1x8x8xf32>
    %55 = tpu.concatenate %51, %52, %53, %54 in 0 : vector<1x8x8xf32>, vector<1x8x8xf32>, vector<1x8x8xf32>, vector<1x8x8xf32> -> vector<4x8x8xf32>
    %56 = vector.extract_strided_slice %37 {offsets = [0, 64], sizes = [8, 8], strides = [1, 1]} : vector<8x96xf32> to vector<8x8xf32>
    %57 = vector.extract_strided_slice %37 {offsets = [0, 72], sizes = [8, 8], strides = [1, 1]} : vector<8x96xf32> to vector<8x8xf32>
    %58 = vector.extract_strided_slice %37 {offsets = [0, 80], sizes = [8, 8], strides = [1, 1]} : vector<8x96xf32> to vector<8x8xf32>
    %59 = vector.extract_strided_slice %37 {offsets = [0, 88], sizes = [8, 8], strides = [1, 1]} : vector<8x96xf32> to vector<8x8xf32>
    %60 = vector.shape_cast %56 : vector<8x8xf32> to vector<1x8x8xf32>
    %61 = vector.shape_cast %57 : vector<8x8xf32> to vector<1x8x8xf32>
    %62 = vector.shape_cast %58 : vector<8x8xf32> to vector<1x8x8xf32>
    %63 = vector.shape_cast %59 : vector<8x8xf32> to vector<1x8x8xf32>
    %64 = tpu.concatenate %60, %61, %62, %63 in 0 : vector<1x8x8xf32>, vector<1x8x8xf32>, vector<1x8x8xf32>, vector<1x8x8xf32> -> vector<4x8x8xf32>
    %65 = arith.truncf %46 : vector<4x8x8xf32> to vector<4x8x8xbf16>
    %66 = arith.truncf %55 : vector<4x8x8xf32> to vector<4x8x8xbf16>
    "tpu.trace_start"() <{level = 10 : i32, message = "hqd,hkd->hqk"}> : () -> ()
    %cst_19 = arith.constant dense<0.000000e+00> : vector<4x8x8xf32>
    %67 = tpu.matmul %65, %66, %cst_19 {dimension_numbers = #tpu.dot_dimension_numbers<[2], [2], [1], [1], [0, 0, 0, 1, 1, 1], [0], [0]>} : vector<4x8x8xbf16>, vector<4x8x8xbf16>, vector<4x8x8xf32> -> vector<4x8x8xf32>
    "tpu.trace_stop"() : () -> ()
    %cst_20 = arith.constant 0.353553385 : f32
    %68 = vector.broadcast %cst_20 : f32 to vector<4x8x8xf32>
    %69 = arith.mulf %67, %68 : vector<4x8x8xf32>
    %cst_21 = arith.constant dense<0xFF800000> : vector<4x8xf32>
    %70 = vector.multi_reduction <maximumf>, %69, %cst_21 [2] : vector<4x8x8xf32> to vector<4x8xf32>
    %71 = vector.shape_cast %70 : vector<4x8xf32> to vector<4x8x1xf32>
    %72 = vector.broadcast %71 : vector<4x8x1xf32> to vector<4x8x8xf32>
    %73 = arith.subf %69, %72 : vector<4x8x8xf32>
    %74 = math.exp %73 : vector<4x8x8xf32>
    %cst_22 = arith.constant dense<0.000000e+00> : vector<4x8xf32>
    %75 = vector.multi_reduction <add>, %74, %cst_22 [2] : vector<4x8x8xf32> to vector<4x8xf32>
    %76 = vector.shape_cast %75 : vector<4x8xf32> to vector<4x8x1xf32>
    %77 = vector.broadcast %76 : vector<4x8x1xf32> to vector<4x8x8xf32>
    %78 = arith.divf %74, %77 : vector<4x8x8xf32>
    %79 = arith.truncf %78 : vector<4x8x8xf32> to vector<4x8x8xbf16>
    %80 = arith.truncf %64 : vector<4x8x8xf32> to vector<4x8x8xbf16>
    "tpu.trace_start"() <{level = 10 : i32, message = "hqk,hkd->hqd"}> : () -> ()
    %cst_23 = arith.constant dense<0.000000e+00> : vector<4x8x8xf32>
    %81 = tpu.matmul %79, %80, %cst_23 {dimension_numbers = #tpu.dot_dimension_numbers<[2], [1], [1], [2], [0, 0, 0, 1, 1, 2], [0], [0]>} : vector<4x8x8xbf16>, vector<4x8x8xbf16>, vector<4x8x8xf32> -> vector<4x8x8xf32>
    "tpu.trace_stop"() : () -> ()
    %82 = vector.extract_strided_slice %81 {offsets = [0, 0, 0], sizes = [1, 8, 8], strides = [1, 1, 1]} : vector<4x8x8xf32> to vector<1x8x8xf32>
    %83 = vector.shape_cast %82 : vector<1x8x8xf32> to vector<8x8xf32>
    %84 = vector.extract_strided_slice %81 {offsets = [1, 0, 0], sizes = [1, 8, 8], strides = [1, 1, 1]} : vector<4x8x8xf32> to vector<1x8x8xf32>
    %85 = vector.shape_cast %84 : vector<1x8x8xf32> to vector<8x8xf32>
    %86 = vector.extract_strided_slice %81 {offsets = [2, 0, 0], sizes = [1, 8, 8], strides = [1, 1, 1]} : vector<4x8x8xf32> to vector<1x8x8xf32>
    %87 = vector.shape_cast %86 : vector<1x8x8xf32> to vector<8x8xf32>
    %88 = vector.extract_strided_slice %81 {offsets = [3, 0, 0], sizes = [1, 8, 8], strides = [1, 1, 1]} : vector<4x8x8xf32> to vector<1x8x8xf32>
    %89 = vector.shape_cast %88 : vector<1x8x8xf32> to vector<8x8xf32>
    %90 = tpu.concatenate %83, %85, %87, %89 in 1 : vector<8x8xf32>, vector<8x8xf32>, vector<8x8xf32>, vector<8x8xf32> -> vector<8x32xf32>
    %91 = arith.truncf %90 : vector<8x32xf32> to vector<8x32xbf16>
    %c0_24 = arith.constant 0 : index
    %c0_25 = arith.constant 0 : index
    %c0_26 = arith.constant 0 : index
    %92 = vector.load %arg7[%c0_24, %c0_25, %c0_26] : memref<1x32x32xbf16, #tpu.memory_space<vmem>>, vector<1x32x32xbf16>
    %93 = vector.shape_cast %92 : vector<1x32x32xbf16> to vector<32x32xbf16>
    %cst_27 = arith.constant dense<0.000000e+00> : vector<8x32xf32>
    %94 = tpu.matmul %91, %93, %cst_27 {dimension_numbers = #tpu.dot_dimension_numbers<[1], [0], [0], [1], [0, 0, 1, 1], [], []>} : vector<8x32xbf16>, vector<32x32xbf16>, vector<8x32xf32> -> vector<8x32xf32>
    %95 = arith.addf %3, %94 : vector<8x32xf32>
    %c0_28 = arith.constant 0 : index
    %c0_29 = arith.constant 0 : index
    %c0_30 = arith.constant 0 : index
    %96 = vector.load %arg8[%c0_28, %c0_29, %c0_30] : memref<1x1x32xf32, #tpu.memory_space<vmem>>, vector<1x1x32xf32>
    %97 = vector.shape_cast %96 : vector<1x1x32xf32> to vector<1x32xf32>
    %98 = vector.broadcast %97 : vector<1x32xf32> to vector<8x32xf32>
    %99 = arith.addf %95, %98 : vector<8x32xf32>
    %c0_31 = arith.constant 0 : index
    %c0_32 = arith.constant 0 : index
    %c0_33 = arith.constant 0 : index
    %100 = vector.load %arg9[%c0_31, %c0_32, %c0_33] : memref<1x1x32xf32, #tpu.memory_space<vmem>>, vector<1x1x32xf32>
    %101 = vector.shape_cast %100 : vector<1x1x32xf32> to vector<1x32xf32>
    %c0_34 = arith.constant 0 : index
    %c0_35 = arith.constant 0 : index
    %c0_36 = arith.constant 0 : index
    %102 = vector.load %arg10[%c0_34, %c0_35, %c0_36] : memref<1x1x32xf32, #tpu.memory_space<vmem>>, vector<1x1x32xf32>
    %103 = vector.shape_cast %102 : vector<1x1x32xf32> to vector<1x32xf32>
    %cst_37 = arith.constant dense<0.000000e+00> : vector<8xf32>
    %104 = vector.multi_reduction <add>, %99, %cst_37 [1] : vector<8x32xf32> to vector<8xf32>
    %105 = vector.shape_cast %104 : vector<8xf32> to vector<8x1xf32>
    %cst_38 = arith.constant 3.200000e+01 : f32
    %106 = vector.broadcast %cst_38 : f32 to vector<8x1xf32>
    %107 = arith.divf %105, %106 : vector<8x1xf32>
    %108 = vector.broadcast %107 : vector<8x1xf32> to vector<8x32xf32>
    %109 = arith.subf %99, %108 : vector<8x32xf32>
    %110 = arith.mulf %109, %109 : vector<8x32xf32>
    %cst_39 = arith.constant dense<0.000000e+00> : vector<8xf32>
    %111 = vector.multi_reduction <add>, %110, %cst_39 [1] : vector<8x32xf32> to vector<8xf32>
    %112 = vector.shape_cast %111 : vector<8xf32> to vector<8x1xf32>
    %cst_40 = arith.constant 3.200000e+01 : f32
    %113 = vector.broadcast %cst_40 : f32 to vector<8x1xf32>
    %114 = arith.divf %112, %113 : vector<8x1xf32>
    %115 = vector.broadcast %107 : vector<8x1xf32> to vector<8x32xf32>
    %116 = arith.subf %99, %115 : vector<8x32xf32>
    %cst_41 = arith.constant 9.99999974E-6 : f32
    %117 = vector.broadcast %cst_41 : f32 to vector<8x1xf32>
    %118 = arith.addf %114, %117 : vector<8x1xf32>
    %119 = math.rsqrt %118 : vector<8x1xf32>
    %120 = vector.broadcast %119 : vector<8x1xf32> to vector<8x32xf32>
    %121 = arith.mulf %116, %120 : vector<8x32xf32>
    %122 = vector.broadcast %101 : vector<1x32xf32> to vector<8x32xf32>
    %123 = arith.mulf %121, %122 : vector<8x32xf32>
    %124 = vector.broadcast %103 : vector<1x32xf32> to vector<8x32xf32>
    %125 = arith.addf %123, %124 : vector<8x32xf32>
    %126 = arith.truncf %125 : vector<8x32xf32> to vector<8x32xbf16>
    %c0_42 = arith.constant 0 : index
    %c0_43 = arith.constant 0 : index
    %c0_44 = arith.constant 0 : index
    %127 = vector.load %arg11[%c0_42, %c0_43, %c0_44] : memref<1x32x128xbf16, #tpu.memory_space<vmem>>, vector<1x32x128xbf16>
    %128 = vector.shape_cast %127 : vector<1x32x128xbf16> to vector<32x128xbf16>
    %cst_45 = arith.constant dense<0.000000e+00> : vector<8x128xf32>
    %129 = tpu.matmul %126, %128, %cst_45 {dimension_numbers = #tpu.dot_dimension_numbers<[1], [0], [0], [1], [0, 0, 1, 1], [], []>} : vector<8x32xbf16>, vector<32x128xbf16>, vector<8x128xf32> -> vector<8x128xf32>
    %c0_46 = arith.constant 0 : index
    %c0_47 = arith.constant 0 : index
    %c0_48 = arith.constant 0 : index
    %130 = vector.load %arg12[%c0_46, %c0_47, %c0_48] : memref<1x1x128xf32, #tpu.memory_space<vmem>>, vector<1x1x128xf32>
    %131 = vector.shape_cast %130 : vector<1x1x128xf32> to vector<1x128xf32>
    %132 = vector.broadcast %131 : vector<1x128xf32> to vector<8x128xf32>
    %133 = arith.addf %129, %132 : vector<8x128xf32>
    %cst_49 = arith.constant 5.000000e-01 : f32
    %134 = vector.broadcast %cst_49 : f32 to vector<8x128xf32>
    %135 = arith.mulf %134, %133 : vector<8x128xf32>
    %cst_50 = arith.constant 4.471500e-02 : f32
    %136 = vector.broadcast %cst_50 : f32 to vector<8x128xf32>
    %137 = arith.mulf %136, %133 : vector<8x128xf32>
    %138 = arith.mulf %137, %133 : vector<8x128xf32>
    %139 = arith.mulf %138, %133 : vector<8x128xf32>
    %140 = arith.addf %133, %139 : vector<8x128xf32>
    %cst_51 = arith.constant 0.797884583 : f32
    %141 = vector.broadcast %cst_51 : f32 to vector<8x128xf32>
    %142 = arith.mulf %141, %140 : vector<8x128xf32>
    %143 = math.tanh %142 : vector<8x128xf32>
    %cst_52 = arith.constant 1.000000e+00 : f32
    %144 = vector.broadcast %cst_52 : f32 to vector<8x128xf32>
    %145 = arith.addf %144, %143 : vector<8x128xf32>
    %146 = arith.mulf %135, %145 : vector<8x128xf32>
    %147 = arith.truncf %146 : vector<8x128xf32> to vector<8x128xbf16>
    %c0_53 = arith.constant 0 : index
    %c0_54 = arith.constant 0 : index
    %c0_55 = arith.constant 0 : index
    %148 = vector.load %arg13[%c0_53, %c0_54, %c0_55] : memref<1x128x32xbf16, #tpu.memory_space<vmem>>, vector<1x128x32xbf16>
    %149 = vector.shape_cast %148 : vector<1x128x32xbf16> to vector<128x32xbf16>
    %cst_56 = arith.constant dense<0.000000e+00> : vector<8x32xf32>
    %150 = tpu.matmul %147, %149, %cst_56 {dimension_numbers = #tpu.dot_dimension_numbers<[1], [0], [0], [1], [0, 0, 1, 1], [], []>} : vector<8x128xbf16>, vector<128x32xbf16>, vector<8x32xf32> -> vector<8x32xf32>
    %151 = arith.addf %99, %150 : vector<8x32xf32>
    %c0_57 = arith.constant 0 : index
    %c0_58 = arith.constant 0 : index
    %c0_59 = arith.constant 0 : index
    %152 = vector.load %arg14[%c0_57, %c0_58, %c0_59] : memref<1x1x32xf32, #tpu.memory_space<vmem>>, vector<1x1x32xf32>
    %153 = vector.shape_cast %152 : vector<1x1x32xf32> to vector<1x32xf32>
    %154 = vector.broadcast %153 : vector<1x32xf32> to vector<8x32xf32>
    %155 = arith.addf %151, %154 : vector<8x32xf32>
    %c0_60 = arith.constant 0 : index
    %c0_61 = arith.constant 0 : index
    %156 = vector.load %arg19[%c0_60, %c0_61] : memref<8x32xf32, #tpu.memory_space<vmem>>, vector<8x32xf32>
    tpu.vector_store %arg19[%c0_60, %c0_61], %155 {strides = array<i32>} : memref<8x32xf32, #tpu.memory_space<vmem>>, vector<8x32xf32>,
    %c0_62 = arith.constant 0 : index
    %c0_63 = arith.constant 0 : index
    %c0_64 = arith.constant 0 : index
    %c0_65 = arith.constant 0 : index
    %157 = vector.load %arg17[%c0_62, %c0_63, %c0_64, %c0_65] : memref<1x1x8x32xf32, #tpu.memory_space<vmem>>, vector<1x1x8x32xf32>
    %158 = vector.shape_cast %157 : vector<1x1x8x32xf32> to vector<8x32xf32>
    %159 = vector.shape_cast %155 : vector<8x32xf32> to vector<1x1x8x32xf32>
    tpu.vector_store %arg17[%c0_62, %c0_63, %c0_64, %c0_65], %159 {strides = array<i32>} : memref<1x1x8x32xf32, #tpu.memory_space<vmem>>, vector<1x1x8x32xf32>,
    %c3_i32 = arith.constant 3 : i32
    %160 = arith.cmpi eq, %arg1, %c3_i32 : i32
    %161 = arith.extui %160 : i1 to i32
    %c0_i32_66 = arith.constant 0 : i32
    %162 = arith.cmpi ne, %161, %c0_i32_66 : i32
    scf.if %162 {
      %c0_67 = arith.constant 0 : index
      %c0_68 = arith.constant 0 : index
      %163 = vector.load %arg15[%c0_67, %c0_68] : memref<1x32xf32, #tpu.memory_space<vmem>>, vector<1x32xf32>
      %c0_69 = arith.constant 0 : index
      %c0_70 = arith.constant 0 : index
      %164 = vector.load %arg16[%c0_69, %c0_70] : memref<1x32xf32, #tpu.memory_space<vmem>>, vector<1x32xf32>
      %cst_71 = arith.constant dense<0.000000e+00> : vector<8xf32>
      %165 = vector.multi_reduction <add>, %155, %cst_71 [1] : vector<8x32xf32> to vector<8xf32>
      %166 = vector.shape_cast %165 : vector<8xf32> to vector<8x1xf32>
      %cst_72 = arith.constant 3.200000e+01 : f32
      %167 = vector.broadcast %cst_72 : f32 to vector<8x1xf32>
      %168 = arith.divf %166, %167 : vector<8x1xf32>
      %169 = vector.broadcast %168 : vector<8x1xf32> to vector<8x32xf32>
      %170 = arith.subf %155, %169 : vector<8x32xf32>
      %171 = arith.mulf %170, %170 : vector<8x32xf32>
      %cst_73 = arith.constant dense<0.000000e+00> : vector<8xf32>
      %172 = vector.multi_reduction <add>, %171, %cst_73 [1] : vector<8x32xf32> to vector<8xf32>
      %173 = vector.shape_cast %172 : vector<8xf32> to vector<8x1xf32>
      %cst_74 = arith.constant 3.200000e+01 : f32
      %174 = vector.broadcast %cst_74 : f32 to vector<8x1xf32>
      %175 = arith.divf %173, %174 : vector<8x1xf32>
      %176 = vector.broadcast %168 : vector<8x1xf32> to vector<8x32xf32>
      %177 = arith.subf %155, %176 : vector<8x32xf32>
      %cst_75 = arith.constant 9.99999974E-6 : f32
      %178 = vector.broadcast %cst_75 : f32 to vector<8x1xf32>
      %179 = arith.addf %175, %178 : vector<8x1xf32>
      %180 = math.rsqrt %179 : vector<8x1xf32>
      %181 = vector.broadcast %180 : vector<8x1xf32> to vector<8x32xf32>
      %182 = arith.mulf %177, %181 : vector<8x32xf32>
      %183 = vector.broadcast %163 : vector<1x32xf32> to vector<8x32xf32>
      %184 = arith.mulf %182, %183 : vector<8x32xf32>
      %185 = vector.broadcast %164 : vector<1x32xf32> to vector<8x32xf32>
      %186 = arith.addf %184, %185 : vector<8x32xf32>
      %c0_76 = arith.constant 0 : index
      %c0_77 = arith.constant 0 : index
      %c0_78 = arith.constant 0 : index
      %187 = vector.load %arg18[%c0_76, %c0_77, %c0_78] : memref<1x8x32xf32, #tpu.memory_space<vmem>>, vector<1x8x32xf32>
      %188 = vector.shape_cast %187 : vector<1x8x32xf32> to vector<8x32xf32>
      %189 = vector.shape_cast %186 : vector<8x32xf32> to vector<1x8x32xf32>
      tpu.vector_store %arg18[%c0_76, %c0_77, %c0_78], %189 {strides = array<i32>} : memref<1x8x32xf32, #tpu.memory_space<vmem>>, vector<1x8x32xf32>,
    } else {
    }
    return
  }
  func.func @transform_0(%arg0: i32, %arg1: i32) -> (i32, i32, i32) {
    %c0_i32 = arith.constant 0 : i32
    %c0_i32_0 = arith.constant 0 : i32
    %c0_i32_1 = arith.constant 0 : i32
    return %arg0, %c0_i32, %c0_i32_0 : i32, i32, i32
  }
  func.func @transform_1(%arg0: i32, %arg1: i32) -> (i32, i32, i32) {
    %c0_i32 = arith.constant 0 : i32
    %c0_i32_0 = arith.constant 0 : i32
    %c0_i32_1 = arith.constant 0 : i32
    return %arg1, %c0_i32, %c0_i32_0 : i32, i32, i32
  }
  func.func @transform_2(%arg0: i32, %arg1: i32) -> (i32, i32, i32) {
    %c0_i32 = arith.constant 0 : i32
    %c0_i32_0 = arith.constant 0 : i32
    %c0_i32_1 = arith.constant 0 : i32
    return %arg1, %c0_i32, %c0_i32_0 : i32, i32, i32
  }
  func.func @transform_3(%arg0: i32, %arg1: i32) -> (i32, i32, i32) {
    %c0_i32 = arith.constant 0 : i32
    %c0_i32_0 = arith.constant 0 : i32
    %c0_i32_1 = arith.constant 0 : i32
    return %arg1, %c0_i32, %c0_i32_0 : i32, i32, i32
  }
  func.func @transform_4(%arg0: i32, %arg1: i32) -> (i32, i32, i32) {
    %c0_i32 = arith.constant 0 : i32
    %c0_i32_0 = arith.constant 0 : i32
    %c0_i32_1 = arith.constant 0 : i32
    return %arg1, %c0_i32, %c0_i32_0 : i32, i32, i32
  }
  func.func @transform_5(%arg0: i32, %arg1: i32) -> (i32, i32, i32) {
    %c0_i32 = arith.constant 0 : i32
    %c0_i32_0 = arith.constant 0 : i32
    %c0_i32_1 = arith.constant 0 : i32
    return %arg1, %c0_i32, %c0_i32_0 : i32, i32, i32
  }
  func.func @transform_6(%arg0: i32, %arg1: i32) -> (i32, i32, i32) {
    %c0_i32 = arith.constant 0 : i32
    %c0_i32_0 = arith.constant 0 : i32
    %c0_i32_1 = arith.constant 0 : i32
    return %arg1, %c0_i32, %c0_i32_0 : i32, i32, i32
  }
  func.func @transform_7(%arg0: i32, %arg1: i32) -> (i32, i32, i32) {
    %c0_i32 = arith.constant 0 : i32
    %c0_i32_0 = arith.constant 0 : i32
    %c0_i32_1 = arith.constant 0 : i32
    return %arg1, %c0_i32, %c0_i32_0 : i32, i32, i32
  }
  func.func @transform_8(%arg0: i32, %arg1: i32) -> (i32, i32, i32) {
    %c0_i32 = arith.constant 0 : i32
    %c0_i32_0 = arith.constant 0 : i32
    %c0_i32_1 = arith.constant 0 : i32
    return %arg1, %c0_i32, %c0_i32_0 : i32, i32, i32
  }
  func.func @transform_9(%arg0: i32, %arg1: i32) -> (i32, i32, i32) {
    %c0_i32 = arith.constant 0 : i32
    %c0_i32_0 = arith.constant 0 : i32
    %c0_i32_1 = arith.constant 0 : i32
    return %arg1, %c0_i32, %c0_i32_0 : i32, i32, i32
  }
  func.func @transform_10(%arg0: i32, %arg1: i32) -> (i32, i32, i32) {
    %c0_i32 = arith.constant 0 : i32
    %c0_i32_0 = arith.constant 0 : i32
    %c0_i32_1 = arith.constant 0 : i32
    return %arg1, %c0_i32, %c0_i32_0 : i32, i32, i32
  }
  func.func @transform_11(%arg0: i32, %arg1: i32) -> (i32, i32, i32) {
    %c0_i32 = arith.constant 0 : i32
    %c0_i32_0 = arith.constant 0 : i32
    %c0_i32_1 = arith.constant 0 : i32
    return %arg1, %c0_i32, %c0_i32_0 : i32, i32, i32
  }
  func.func @transform_12(%arg0: i32, %arg1: i32) -> (i32, i32, i32) {
    %c0_i32 = arith.constant 0 : i32
    %c0_i32_0 = arith.constant 0 : i32
    %c0_i32_1 = arith.constant 0 : i32
    return %arg1, %c0_i32, %c0_i32_0 : i32, i32, i32
  }
  func.func @transform_13(%arg0: i32, %arg1: i32) -> (i32, i32) {
    %c0_i32 = arith.constant 0 : i32
    %c0_i32_0 = arith.constant 0 : i32
    %c0_i32_1 = arith.constant 0 : i32
    return %c0_i32, %c0_i32_0 : i32, i32
  }
  func.func @transform_14(%arg0: i32, %arg1: i32) -> (i32, i32) {
    %c0_i32 = arith.constant 0 : i32
    %c0_i32_0 = arith.constant 0 : i32
    %c0_i32_1 = arith.constant 0 : i32
    return %c0_i32, %c0_i32_0 : i32, i32
  }
  func.func @transform_15(%arg0: i32, %arg1: i32) -> (i32, i32, i32, i32) {
    %c0_i32 = arith.constant 0 : i32
    %c0_i32_0 = arith.constant 0 : i32
    %c0_i32_1 = arith.constant 0 : i32
    return %arg1, %arg0, %c0_i32, %c0_i32_0 : i32, i32, i32, i32
  }
  func.func @transform_16(%arg0: i32, %arg1: i32) -> (i32, i32, i32) {
    %c0_i32 = arith.constant 0 : i32
    %c0_i32_0 = arith.constant 0 : i32
    %c0_i32_1 = arith.constant 0 : i32
    return %arg0, %c0_i32, %c0_i32_0 : i32, i32, i32
  }
}

module attributes {stable_mosaic.version = 11 : i64} {
  func.func @_pred_mse_kernel(%arg0: i32, %arg1: memref<16x16xf32, #tpu.memory_space<vmem>>, %arg2: memref<16x64xbf16, #tpu.memory_space<vmem>>, %arg3: memref<1x64xf32, #tpu.memory_space<vmem>>, %arg4: memref<16x64xf32, #tpu.memory_space<vmem>>, %arg5: memref<16x64xf32, #tpu.memory_space<vmem>>, %arg6: memref<1x1xf32, #tpu.memory_space<smem>>) attributes {dimension_semantics = [#tpu.dimension_semantics<arbitrary>], iteration_bounds = array<i64: 1>, scalar_prefetch = 0 : i64, scratch_operands = 0 : i64, tpu.core_type = #tpu.core_type<tc>, window_params = [{transform_indices = @transform_0, window_bounds = array<i64: 16, 16>}, {pipeline_mode = #tpu.pipeline_mode<synchronous>, transform_indices = @transform_1, window_bounds = array<i64: 16, 64>}, {pipeline_mode = #tpu.pipeline_mode<synchronous>, transform_indices = @transform_2, window_bounds = array<i64: 1, 64>}, {transform_indices = @transform_3, window_bounds = array<i64: 16, 64>}, {transform_indices = @transform_4, window_bounds = array<i64: 16, 64>}, {transform_indices = @transform_5, window_bounds = array<i64: 1, 1>}]} {
    %c0_i32 = arith.constant 0 : i32
    %0 = arith.cmpi eq, %arg0, %c0_i32 : i32
    %1 = arith.extui %0 : i1 to i32
    %c0_i32_0 = arith.constant 0 : i32
    %2 = arith.cmpi ne, %1, %c0_i32_0 : i32
    scf.if %2 {
      %cst_15 = arith.constant 0.000000e+00 : f32
      %c0_16 = arith.constant 0 : index
      %c0_17 = arith.constant 0 : index
      %21 = memref.load %arg6[%c0_16, %c0_17] : memref<1x1xf32, #tpu.memory_space<smem>>
      memref.store %cst_15, %arg6[%c0_16, %c0_17] : memref<1x1xf32, #tpu.memory_space<smem>>
    } else {
    }
    %c0 = arith.constant 0 : index
    %c0_1 = arith.constant 0 : index
    %3 = vector.load %arg1[%c0, %c0_1] : memref<16x16xf32, #tpu.memory_space<vmem>>, vector<16x16xf32>
    %4 = arith.truncf %3 : vector<16x16xf32> to vector<16x16xbf16>
    %c0_2 = arith.constant 0 : index
    %c0_3 = arith.constant 0 : index
    %5 = vector.load %arg2[%c0_2, %c0_3] : memref<16x64xbf16, #tpu.memory_space<vmem>>, vector<16x64xbf16>
    %cst = arith.constant dense<0.000000e+00> : vector<16x64xf32>
    %6 = tpu.matmul %4, %5, %cst {dimension_numbers = #tpu.dot_dimension_numbers<[1], [0], [0], [1], [0, 0, 1, 1], [], []>} : vector<16x16xbf16>, vector<16x64xbf16>, vector<16x64xf32> -> vector<16x64xf32>
    %c0_4 = arith.constant 0 : index
    %c0_5 = arith.constant 0 : index
    %7 = vector.load %arg3[%c0_4, %c0_5] : memref<1x64xf32, #tpu.memory_space<vmem>>, vector<1x64xf32>
    %8 = vector.broadcast %7 : vector<1x64xf32> to vector<16x64xf32>
    %9 = arith.addf %6, %8 : vector<16x64xf32>
    %c0_6 = arith.constant 0 : index
    %c0_7 = arith.constant 0 : index
    %10 = vector.load %arg5[%c0_6, %c0_7] : memref<16x64xf32, #tpu.memory_space<vmem>>, vector<16x64xf32>
    tpu.vector_store %arg5[%c0_6, %c0_7], %9 {strides = array<i32>} : memref<16x64xf32, #tpu.memory_space<vmem>>, vector<16x64xf32>,
    %c0_8 = arith.constant 0 : index
    %c0_9 = arith.constant 0 : index
    %11 = vector.load %arg4[%c0_8, %c0_9] : memref<16x64xf32, #tpu.memory_space<vmem>>, vector<16x64xf32>
    %12 = arith.subf %9, %11 : vector<16x64xf32>
    %c0_10 = arith.constant 0 : index
    %c0_11 = arith.constant 0 : index
    %13 = memref.load %arg6[%c0_10, %c0_11] : memref<1x1xf32, #tpu.memory_space<smem>>
    %14 = arith.mulf %12, %12 : vector<16x64xf32>
    %15 = vector.shape_cast %14 : vector<16x64xf32> to vector<1x16x64xf32>
    %cst_12 = arith.constant dense<0.000000e+00> : vector<1xf32>
    %16 = vector.multi_reduction <add>, %15, %cst_12 [1, 2] : vector<1x16x64xf32> to vector<1xf32>
    %17 = vector.shape_cast %16 : vector<1xf32> to vector<1x1x1xf32>
    %18 = vector.extract %17[0, 0, 0] : f32 from vector<1x1x1xf32>
    %19 = arith.addf %13, %18 : f32
    %c0_13 = arith.constant 0 : index
    %c0_14 = arith.constant 0 : index
    %20 = memref.load %arg6[%c0_13, %c0_14] : memref<1x1xf32, #tpu.memory_space<smem>>
    memref.store %19, %arg6[%c0_13, %c0_14] : memref<1x1xf32, #tpu.memory_space<smem>>
    return
  }
  func.func @transform_0(%arg0: i32) -> (i32, i32) {
    %c0_i32 = arith.constant 0 : i32
    %c0_i32_0 = arith.constant 0 : i32
    return %arg0, %c0_i32 : i32, i32
  }
  func.func @transform_1(%arg0: i32) -> (i32, i32) {
    %c0_i32 = arith.constant 0 : i32
    %c0_i32_0 = arith.constant 0 : i32
    %c0_i32_1 = arith.constant 0 : i32
    return %c0_i32, %c0_i32_0 : i32, i32
  }
  func.func @transform_2(%arg0: i32) -> (i32, i32) {
    %c0_i32 = arith.constant 0 : i32
    %c0_i32_0 = arith.constant 0 : i32
    %c0_i32_1 = arith.constant 0 : i32
    return %c0_i32, %c0_i32_0 : i32, i32
  }
  func.func @transform_3(%arg0: i32) -> (i32, i32) {
    %c0_i32 = arith.constant 0 : i32
    %c0_i32_0 = arith.constant 0 : i32
    return %arg0, %c0_i32 : i32, i32
  }
  func.func @transform_4(%arg0: i32) -> (i32, i32) {
    %c0_i32 = arith.constant 0 : i32
    %c0_i32_0 = arith.constant 0 : i32
    return %arg0, %c0_i32 : i32, i32
  }
  func.func @transform_5(%arg0: i32) -> (i32, i32) {
    %c0_i32 = arith.constant 0 : i32
    %c0_i32_0 = arith.constant 0 : i32
    %c0_i32_1 = arith.constant 0 : i32
    return %c0_i32, %c0_i32_0 : i32, i32
  }
}

module attributes {stable_mosaic.version = 11 : i64} {
  func.func @_vit_stack_kernel(%arg0: i32, %arg1: i32, %arg2: memref<1x16x16xf32, #tpu.memory_space<vmem>>, %arg3: memref<1x1x16xf32, #tpu.memory_space<vmem>>, %arg4: memref<1x1x16xf32, #tpu.memory_space<vmem>>, %arg5: memref<1x16x48xbf16, #tpu.memory_space<vmem>>, %arg6: memref<1x1x48xf32, #tpu.memory_space<vmem>>, %arg7: memref<1x16x16xbf16, #tpu.memory_space<vmem>>, %arg8: memref<1x1x16xf32, #tpu.memory_space<vmem>>, %arg9: memref<1x1x16xf32, #tpu.memory_space<vmem>>, %arg10: memref<1x1x16xf32, #tpu.memory_space<vmem>>, %arg11: memref<1x16x64xbf16, #tpu.memory_space<vmem>>, %arg12: memref<1x1x64xf32, #tpu.memory_space<vmem>>, %arg13: memref<1x64x16xbf16, #tpu.memory_space<vmem>>, %arg14: memref<1x1x16xf32, #tpu.memory_space<vmem>>, %arg15: memref<1x16xf32, #tpu.memory_space<vmem>>, %arg16: memref<1x16xf32, #tpu.memory_space<vmem>>, %arg17: memref<1x1x16x16xf32, #tpu.memory_space<vmem>>, %arg18: memref<1x16x16xf32, #tpu.memory_space<vmem>>, %arg19: memref<16x16xf32, #tpu.memory_space<vmem>>) attributes {dimension_semantics = [#tpu.dimension_semantics<parallel>, #tpu.dimension_semantics<arbitrary>], iteration_bounds = array<i64: 2, 1>, scalar_prefetch = 0 : i64, scratch_operands = 1 : i64, tpu.core_type = #tpu.core_type<tc>, window_params = [{transform_indices = @transform_0, window_bounds = array<i64: 1, 16, 16>}, {transform_indices = @transform_1, window_bounds = array<i64: 1, 1, 16>}, {transform_indices = @transform_2, window_bounds = array<i64: 1, 1, 16>}, {transform_indices = @transform_3, window_bounds = array<i64: 1, 16, 48>}, {transform_indices = @transform_4, window_bounds = array<i64: 1, 1, 48>}, {transform_indices = @transform_5, window_bounds = array<i64: 1, 16, 16>}, {transform_indices = @transform_6, window_bounds = array<i64: 1, 1, 16>}, {transform_indices = @transform_7, window_bounds = array<i64: 1, 1, 16>}, {transform_indices = @transform_8, window_bounds = array<i64: 1, 1, 16>}, {transform_indices = @transform_9, window_bounds = array<i64: 1, 16, 64>}, {transform_indices = @transform_10, window_bounds = array<i64: 1, 1, 64>}, {transform_indices = @transform_11, window_bounds = array<i64: 1, 64, 16>}, {transform_indices = @transform_12, window_bounds = array<i64: 1, 1, 16>}, {pipeline_mode = #tpu.pipeline_mode<synchronous>, transform_indices = @transform_13, window_bounds = array<i64: 1, 16>}, {pipeline_mode = #tpu.pipeline_mode<synchronous>, transform_indices = @transform_14, window_bounds = array<i64: 1, 16>}, {transform_indices = @transform_15, window_bounds = array<i64: 1, 1, 16, 16>}, {transform_indices = @transform_16, window_bounds = array<i64: 1, 16, 16>}]} {
    %c0_i32 = arith.constant 0 : i32
    %0 = arith.cmpi eq, %arg1, %c0_i32 : i32
    %1 = arith.extui %0 : i1 to i32
    %c0_i32_0 = arith.constant 0 : i32
    %2 = arith.cmpi ne, %1, %c0_i32_0 : i32
    scf.if %2 {
      %c0_68 = arith.constant 0 : index
      %c0_69 = arith.constant 0 : index
      %c0_70 = arith.constant 0 : index
      %147 = vector.load %arg2[%c0_68, %c0_69, %c0_70] : memref<1x16x16xf32, #tpu.memory_space<vmem>>, vector<1x16x16xf32>
      %148 = vector.shape_cast %147 : vector<1x16x16xf32> to vector<16x16xf32>
      %c0_71 = arith.constant 0 : index
      %c0_72 = arith.constant 0 : index
      %149 = vector.load %arg19[%c0_71, %c0_72] : memref<16x16xf32, #tpu.memory_space<vmem>>, vector<16x16xf32>
      tpu.vector_store %arg19[%c0_71, %c0_72], %148 {strides = array<i32>} : memref<16x16xf32, #tpu.memory_space<vmem>>, vector<16x16xf32>,
    } else {
    }
    %c0 = arith.constant 0 : index
    %c0_1 = arith.constant 0 : index
    %3 = vector.load %arg19[%c0, %c0_1] : memref<16x16xf32, #tpu.memory_space<vmem>>, vector<16x16xf32>
    %c0_2 = arith.constant 0 : index
    %c0_3 = arith.constant 0 : index
    %c0_4 = arith.constant 0 : index
    %4 = vector.load %arg3[%c0_2, %c0_3, %c0_4] : memref<1x1x16xf32, #tpu.memory_space<vmem>>, vector<1x1x16xf32>
    %5 = vector.shape_cast %4 : vector<1x1x16xf32> to vector<1x16xf32>
    %c0_5 = arith.constant 0 : index
    %c0_6 = arith.constant 0 : index
    %c0_7 = arith.constant 0 : index
    %6 = vector.load %arg4[%c0_5, %c0_6, %c0_7] : memref<1x1x16xf32, #tpu.memory_space<vmem>>, vector<1x1x16xf32>
    %7 = vector.shape_cast %6 : vector<1x1x16xf32> to vector<1x16xf32>
    %cst = arith.constant dense<0.000000e+00> : vector<16xf32>
    %8 = vector.multi_reduction <add>, %3, %cst [1] : vector<16x16xf32> to vector<16xf32>
    %9 = vector.shape_cast %8 : vector<16xf32> to vector<16x1xf32>
    %cst_8 = arith.constant 1.600000e+01 : f32
    %10 = vector.broadcast %cst_8 : f32 to vector<16x1xf32>
    %11 = arith.divf %9, %10 : vector<16x1xf32>
    %12 = vector.broadcast %11 : vector<16x1xf32> to vector<16x16xf32>
    %13 = arith.subf %3, %12 : vector<16x16xf32>
    %14 = arith.mulf %13, %13 : vector<16x16xf32>
    %cst_9 = arith.constant dense<0.000000e+00> : vector<16xf32>
    %15 = vector.multi_reduction <add>, %14, %cst_9 [1] : vector<16x16xf32> to vector<16xf32>
    %16 = vector.shape_cast %15 : vector<16xf32> to vector<16x1xf32>
    %cst_10 = arith.constant 1.600000e+01 : f32
    %17 = vector.broadcast %cst_10 : f32 to vector<16x1xf32>
    %18 = arith.divf %16, %17 : vector<16x1xf32>
    %19 = vector.broadcast %11 : vector<16x1xf32> to vector<16x16xf32>
    %20 = arith.subf %3, %19 : vector<16x16xf32>
    %cst_11 = arith.constant 9.99999974E-6 : f32
    %21 = vector.broadcast %cst_11 : f32 to vector<16x1xf32>
    %22 = arith.addf %18, %21 : vector<16x1xf32>
    %23 = math.rsqrt %22 : vector<16x1xf32>
    %24 = vector.broadcast %23 : vector<16x1xf32> to vector<16x16xf32>
    %25 = arith.mulf %20, %24 : vector<16x16xf32>
    %26 = vector.broadcast %5 : vector<1x16xf32> to vector<16x16xf32>
    %27 = arith.mulf %25, %26 : vector<16x16xf32>
    %28 = vector.broadcast %7 : vector<1x16xf32> to vector<16x16xf32>
    %29 = arith.addf %27, %28 : vector<16x16xf32>
    %30 = arith.truncf %29 : vector<16x16xf32> to vector<16x16xbf16>
    %c0_12 = arith.constant 0 : index
    %c0_13 = arith.constant 0 : index
    %c0_14 = arith.constant 0 : index
    %31 = vector.load %arg5[%c0_12, %c0_13, %c0_14] : memref<1x16x48xbf16, #tpu.memory_space<vmem>>, vector<1x16x48xbf16>
    %32 = vector.shape_cast %31 : vector<1x16x48xbf16> to vector<16x48xbf16>
    %cst_15 = arith.constant dense<0.000000e+00> : vector<16x48xf32>
    %33 = tpu.matmul %30, %32, %cst_15 {dimension_numbers = #tpu.dot_dimension_numbers<[1], [0], [0], [1], [0, 0, 1, 1], [], []>} : vector<16x16xbf16>, vector<16x48xbf16>, vector<16x48xf32> -> vector<16x48xf32>
    %c0_16 = arith.constant 0 : index
    %c0_17 = arith.constant 0 : index
    %c0_18 = arith.constant 0 : index
    %34 = vector.load %arg6[%c0_16, %c0_17, %c0_18] : memref<1x1x48xf32, #tpu.memory_space<vmem>>, vector<1x1x48xf32>
    %35 = vector.shape_cast %34 : vector<1x1x48xf32> to vector<1x48xf32>
    %36 = vector.broadcast %35 : vector<1x48xf32> to vector<16x48xf32>
    %37 = arith.addf %33, %36 : vector<16x48xf32>
    %38 = vector.extract_strided_slice %37 {offsets = [0, 0], sizes = [16, 8], strides = [1, 1]} : vector<16x48xf32> to vector<16x8xf32>
    %39 = vector.extract_strided_slice %37 {offsets = [0, 8], sizes = [16, 8], strides = [1, 1]} : vector<16x48xf32> to vector<16x8xf32>
    %40 = vector.shape_cast %38 : vector<16x8xf32> to vector<1x16x8xf32>
    %41 = vector.shape_cast %39 : vector<16x8xf32> to vector<1x16x8xf32>
    %42 = tpu.concatenate %40, %41 in 0 : vector<1x16x8xf32>, vector<1x16x8xf32> -> vector<2x16x8xf32>
    %43 = vector.extract_strided_slice %37 {offsets = [0, 16], sizes = [16, 8], strides = [1, 1]} : vector<16x48xf32> to vector<16x8xf32>
    %44 = vector.extract_strided_slice %37 {offsets = [0, 24], sizes = [16, 8], strides = [1, 1]} : vector<16x48xf32> to vector<16x8xf32>
    %45 = vector.shape_cast %43 : vector<16x8xf32> to vector<1x16x8xf32>
    %46 = vector.shape_cast %44 : vector<16x8xf32> to vector<1x16x8xf32>
    %47 = tpu.concatenate %45, %46 in 0 : vector<1x16x8xf32>, vector<1x16x8xf32> -> vector<2x16x8xf32>
    %48 = vector.extract_strided_slice %37 {offsets = [0, 32], sizes = [16, 8], strides = [1, 1]} : vector<16x48xf32> to vector<16x8xf32>
    %49 = vector.extract_strided_slice %37 {offsets = [0, 40], sizes = [16, 8], strides = [1, 1]} : vector<16x48xf32> to vector<16x8xf32>
    %50 = vector.shape_cast %48 : vector<16x8xf32> to vector<1x16x8xf32>
    %51 = vector.shape_cast %49 : vector<16x8xf32> to vector<1x16x8xf32>
    %52 = tpu.concatenate %50, %51 in 0 : vector<1x16x8xf32>, vector<1x16x8xf32> -> vector<2x16x8xf32>
    %53 = arith.truncf %42 : vector<2x16x8xf32> to vector<2x16x8xbf16>
    %54 = arith.truncf %47 : vector<2x16x8xf32> to vector<2x16x8xbf16>
    "tpu.trace_start"() <{level = 10 : i32, message = "hqd,hkd->hqk"}> : () -> ()
    %cst_19 = arith.constant dense<0.000000e+00> : vector<2x16x16xf32>
    %55 = tpu.matmul %53, %54, %cst_19 {dimension_numbers = #tpu.dot_dimension_numbers<[2], [2], [1], [1], [0, 0, 0, 1, 1, 1], [0], [0]>} : vector<2x16x8xbf16>, vector<2x16x8xbf16>, vector<2x16x16xf32> -> vector<2x16x16xf32>
    "tpu.trace_stop"() : () -> ()
    %cst_20 = arith.constant 0.353553385 : f32
    %56 = vector.broadcast %cst_20 : f32 to vector<2x16x16xf32>
    %57 = arith.mulf %55, %56 : vector<2x16x16xf32>
    %cst_21 = arith.constant dense<0xFF800000> : vector<2x16xf32>
    %58 = vector.multi_reduction <maximumf>, %57, %cst_21 [2] : vector<2x16x16xf32> to vector<2x16xf32>
    %59 = vector.shape_cast %58 : vector<2x16xf32> to vector<2x16x1xf32>
    %60 = vector.broadcast %59 : vector<2x16x1xf32> to vector<2x16x16xf32>
    %61 = arith.subf %57, %60 : vector<2x16x16xf32>
    %62 = math.exp %61 : vector<2x16x16xf32>
    %cst_22 = arith.constant dense<0.000000e+00> : vector<2x16xf32>
    %63 = vector.multi_reduction <add>, %62, %cst_22 [2] : vector<2x16x16xf32> to vector<2x16xf32>
    %64 = vector.shape_cast %63 : vector<2x16xf32> to vector<2x16x1xf32>
    %65 = vector.broadcast %64 : vector<2x16x1xf32> to vector<2x16x16xf32>
    %66 = arith.divf %62, %65 : vector<2x16x16xf32>
    %67 = arith.truncf %66 : vector<2x16x16xf32> to vector<2x16x16xbf16>
    %68 = arith.truncf %52 : vector<2x16x8xf32> to vector<2x16x8xbf16>
    "tpu.trace_start"() <{level = 10 : i32, message = "hqk,hkd->hqd"}> : () -> ()
    %cst_23 = arith.constant dense<0.000000e+00> : vector<2x16x8xf32>
    %69 = tpu.matmul %67, %68, %cst_23 {dimension_numbers = #tpu.dot_dimension_numbers<[2], [1], [1], [2], [0, 0, 0, 1, 1, 2], [0], [0]>} : vector<2x16x16xbf16>, vector<2x16x8xbf16>, vector<2x16x8xf32> -> vector<2x16x8xf32>
    "tpu.trace_stop"() : () -> ()
    %70 = vector.extract_strided_slice %69 {offsets = [0, 0, 0], sizes = [1, 16, 8], strides = [1, 1, 1]} : vector<2x16x8xf32> to vector<1x16x8xf32>
    %71 = vector.shape_cast %70 : vector<1x16x8xf32> to vector<16x8xf32>
    %72 = vector.extract_strided_slice %69 {offsets = [1, 0, 0], sizes = [1, 16, 8], strides = [1, 1, 1]} : vector<2x16x8xf32> to vector<1x16x8xf32>
    %73 = vector.shape_cast %72 : vector<1x16x8xf32> to vector<16x8xf32>
    %74 = tpu.concatenate %71, %73 in 1 : vector<16x8xf32>, vector<16x8xf32> -> vector<16x16xf32>
    %75 = arith.truncf %74 : vector<16x16xf32> to vector<16x16xbf16>
    %c0_24 = arith.constant 0 : index
    %c0_25 = arith.constant 0 : index
    %c0_26 = arith.constant 0 : index
    %76 = vector.load %arg7[%c0_24, %c0_25, %c0_26] : memref<1x16x16xbf16, #tpu.memory_space<vmem>>, vector<1x16x16xbf16>
    %77 = vector.shape_cast %76 : vector<1x16x16xbf16> to vector<16x16xbf16>
    %cst_27 = arith.constant dense<0.000000e+00> : vector<16x16xf32>
    %78 = tpu.matmul %75, %77, %cst_27 {dimension_numbers = #tpu.dot_dimension_numbers<[1], [0], [0], [1], [0, 0, 1, 1], [], []>} : vector<16x16xbf16>, vector<16x16xbf16>, vector<16x16xf32> -> vector<16x16xf32>
    %79 = arith.addf %3, %78 : vector<16x16xf32>
    %c0_28 = arith.constant 0 : index
    %c0_29 = arith.constant 0 : index
    %c0_30 = arith.constant 0 : index
    %80 = vector.load %arg8[%c0_28, %c0_29, %c0_30] : memref<1x1x16xf32, #tpu.memory_space<vmem>>, vector<1x1x16xf32>
    %81 = vector.shape_cast %80 : vector<1x1x16xf32> to vector<1x16xf32>
    %82 = vector.broadcast %81 : vector<1x16xf32> to vector<16x16xf32>
    %83 = arith.addf %79, %82 : vector<16x16xf32>
    %c0_31 = arith.constant 0 : index
    %c0_32 = arith.constant 0 : index
    %c0_33 = arith.constant 0 : index
    %84 = vector.load %arg9[%c0_31, %c0_32, %c0_33] : memref<1x1x16xf32, #tpu.memory_space<vmem>>, vector<1x1x16xf32>
    %85 = vector.shape_cast %84 : vector<1x1x16xf32> to vector<1x16xf32>
    %c0_34 = arith.constant 0 : index
    %c0_35 = arith.constant 0 : index
    %c0_36 = arith.constant 0 : index
    %86 = vector.load %arg10[%c0_34, %c0_35, %c0_36] : memref<1x1x16xf32, #tpu.memory_space<vmem>>, vector<1x1x16xf32>
    %87 = vector.shape_cast %86 : vector<1x1x16xf32> to vector<1x16xf32>
    %cst_37 = arith.constant dense<0.000000e+00> : vector<16xf32>
    %88 = vector.multi_reduction <add>, %83, %cst_37 [1] : vector<16x16xf32> to vector<16xf32>
    %89 = vector.shape_cast %88 : vector<16xf32> to vector<16x1xf32>
    %cst_38 = arith.constant 1.600000e+01 : f32
    %90 = vector.broadcast %cst_38 : f32 to vector<16x1xf32>
    %91 = arith.divf %89, %90 : vector<16x1xf32>
    %92 = vector.broadcast %91 : vector<16x1xf32> to vector<16x16xf32>
    %93 = arith.subf %83, %92 : vector<16x16xf32>
    %94 = arith.mulf %93, %93 : vector<16x16xf32>
    %cst_39 = arith.constant dense<0.000000e+00> : vector<16xf32>
    %95 = vector.multi_reduction <add>, %94, %cst_39 [1] : vector<16x16xf32> to vector<16xf32>
    %96 = vector.shape_cast %95 : vector<16xf32> to vector<16x1xf32>
    %cst_40 = arith.constant 1.600000e+01 : f32
    %97 = vector.broadcast %cst_40 : f32 to vector<16x1xf32>
    %98 = arith.divf %96, %97 : vector<16x1xf32>
    %99 = vector.broadcast %91 : vector<16x1xf32> to vector<16x16xf32>
    %100 = arith.subf %83, %99 : vector<16x16xf32>
    %cst_41 = arith.constant 9.99999974E-6 : f32
    %101 = vector.broadcast %cst_41 : f32 to vector<16x1xf32>
    %102 = arith.addf %98, %101 : vector<16x1xf32>
    %103 = math.rsqrt %102 : vector<16x1xf32>
    %104 = vector.broadcast %103 : vector<16x1xf32> to vector<16x16xf32>
    %105 = arith.mulf %100, %104 : vector<16x16xf32>
    %106 = vector.broadcast %85 : vector<1x16xf32> to vector<16x16xf32>
    %107 = arith.mulf %105, %106 : vector<16x16xf32>
    %108 = vector.broadcast %87 : vector<1x16xf32> to vector<16x16xf32>
    %109 = arith.addf %107, %108 : vector<16x16xf32>
    %110 = arith.truncf %109 : vector<16x16xf32> to vector<16x16xbf16>
    %c0_42 = arith.constant 0 : index
    %c0_43 = arith.constant 0 : index
    %c0_44 = arith.constant 0 : index
    %111 = vector.load %arg11[%c0_42, %c0_43, %c0_44] : memref<1x16x64xbf16, #tpu.memory_space<vmem>>, vector<1x16x64xbf16>
    %112 = vector.shape_cast %111 : vector<1x16x64xbf16> to vector<16x64xbf16>
    %cst_45 = arith.constant dense<0.000000e+00> : vector<16x64xf32>
    %113 = tpu.matmul %110, %112, %cst_45 {dimension_numbers = #tpu.dot_dimension_numbers<[1], [0], [0], [1], [0, 0, 1, 1], [], []>} : vector<16x16xbf16>, vector<16x64xbf16>, vector<16x64xf32> -> vector<16x64xf32>
    %c0_46 = arith.constant 0 : index
    %c0_47 = arith.constant 0 : index
    %c0_48 = arith.constant 0 : index
    %114 = vector.load %arg12[%c0_46, %c0_47, %c0_48] : memref<1x1x64xf32, #tpu.memory_space<vmem>>, vector<1x1x64xf32>
    %115 = vector.shape_cast %114 : vector<1x1x64xf32> to vector<1x64xf32>
    %116 = vector.broadcast %115 : vector<1x64xf32> to vector<16x64xf32>
    %117 = arith.addf %113, %116 : vector<16x64xf32>
    %cst_49 = arith.constant 5.000000e-01 : f32
    %118 = vector.broadcast %cst_49 : f32 to vector<16x64xf32>
    %119 = arith.mulf %118, %117 : vector<16x64xf32>
    %cst_50 = arith.constant 4.471500e-02 : f32
    %120 = vector.broadcast %cst_50 : f32 to vector<16x64xf32>
    %121 = arith.mulf %120, %117 : vector<16x64xf32>
    %122 = arith.mulf %121, %117 : vector<16x64xf32>
    %123 = arith.mulf %122, %117 : vector<16x64xf32>
    %124 = arith.addf %117, %123 : vector<16x64xf32>
    %cst_51 = arith.constant 0.797884583 : f32
    %125 = vector.broadcast %cst_51 : f32 to vector<16x64xf32>
    %126 = arith.mulf %125, %124 : vector<16x64xf32>
    %127 = math.tanh %126 : vector<16x64xf32>
    %cst_52 = arith.constant 1.000000e+00 : f32
    %128 = vector.broadcast %cst_52 : f32 to vector<16x64xf32>
    %129 = arith.addf %128, %127 : vector<16x64xf32>
    %130 = arith.mulf %119, %129 : vector<16x64xf32>
    %131 = arith.truncf %130 : vector<16x64xf32> to vector<16x64xbf16>
    %c0_53 = arith.constant 0 : index
    %c0_54 = arith.constant 0 : index
    %c0_55 = arith.constant 0 : index
    %132 = vector.load %arg13[%c0_53, %c0_54, %c0_55] : memref<1x64x16xbf16, #tpu.memory_space<vmem>>, vector<1x64x16xbf16>
    %133 = vector.shape_cast %132 : vector<1x64x16xbf16> to vector<64x16xbf16>
    %cst_56 = arith.constant dense<0.000000e+00> : vector<16x16xf32>
    %134 = tpu.matmul %131, %133, %cst_56 {dimension_numbers = #tpu.dot_dimension_numbers<[1], [0], [0], [1], [0, 0, 1, 1], [], []>} : vector<16x64xbf16>, vector<64x16xbf16>, vector<16x16xf32> -> vector<16x16xf32>
    %135 = arith.addf %83, %134 : vector<16x16xf32>
    %c0_57 = arith.constant 0 : index
    %c0_58 = arith.constant 0 : index
    %c0_59 = arith.constant 0 : index
    %136 = vector.load %arg14[%c0_57, %c0_58, %c0_59] : memref<1x1x16xf32, #tpu.memory_space<vmem>>, vector<1x1x16xf32>
    %137 = vector.shape_cast %136 : vector<1x1x16xf32> to vector<1x16xf32>
    %138 = vector.broadcast %137 : vector<1x16xf32> to vector<16x16xf32>
    %139 = arith.addf %135, %138 : vector<16x16xf32>
    %c0_60 = arith.constant 0 : index
    %c0_61 = arith.constant 0 : index
    %140 = vector.load %arg19[%c0_60, %c0_61] : memref<16x16xf32, #tpu.memory_space<vmem>>, vector<16x16xf32>
    tpu.vector_store %arg19[%c0_60, %c0_61], %139 {strides = array<i32>} : memref<16x16xf32, #tpu.memory_space<vmem>>, vector<16x16xf32>,
    %c0_62 = arith.constant 0 : index
    %c0_63 = arith.constant 0 : index
    %c0_64 = arith.constant 0 : index
    %c0_65 = arith.constant 0 : index
    %141 = vector.load %arg17[%c0_62, %c0_63, %c0_64, %c0_65] : memref<1x1x16x16xf32, #tpu.memory_space<vmem>>, vector<1x1x16x16xf32>
    %142 = vector.shape_cast %141 : vector<1x1x16x16xf32> to vector<16x16xf32>
    %143 = vector.shape_cast %139 : vector<16x16xf32> to vector<1x1x16x16xf32>
    tpu.vector_store %arg17[%c0_62, %c0_63, %c0_64, %c0_65], %143 {strides = array<i32>} : memref<1x1x16x16xf32, #tpu.memory_space<vmem>>, vector<1x1x16x16xf32>,
    %c0_i32_66 = arith.constant 0 : i32
    %144 = arith.cmpi eq, %arg1, %c0_i32_66 : i32
    %145 = arith.extui %144 : i1 to i32
    %c0_i32_67 = arith.constant 0 : i32
    %146 = arith.cmpi ne, %145, %c0_i32_67 : i32
    scf.if %146 {
      %c0_68 = arith.constant 0 : index
      %c0_69 = arith.constant 0 : index
      %147 = vector.load %arg15[%c0_68, %c0_69] : memref<1x16xf32, #tpu.memory_space<vmem>>, vector<1x16xf32>
      %c0_70 = arith.constant 0 : index
      %c0_71 = arith.constant 0 : index
      %148 = vector.load %arg16[%c0_70, %c0_71] : memref<1x16xf32, #tpu.memory_space<vmem>>, vector<1x16xf32>
      %cst_72 = arith.constant dense<0.000000e+00> : vector<16xf32>
      %149 = vector.multi_reduction <add>, %139, %cst_72 [1] : vector<16x16xf32> to vector<16xf32>
      %150 = vector.shape_cast %149 : vector<16xf32> to vector<16x1xf32>
      %cst_73 = arith.constant 1.600000e+01 : f32
      %151 = vector.broadcast %cst_73 : f32 to vector<16x1xf32>
      %152 = arith.divf %150, %151 : vector<16x1xf32>
      %153 = vector.broadcast %152 : vector<16x1xf32> to vector<16x16xf32>
      %154 = arith.subf %139, %153 : vector<16x16xf32>
      %155 = arith.mulf %154, %154 : vector<16x16xf32>
      %cst_74 = arith.constant dense<0.000000e+00> : vector<16xf32>
      %156 = vector.multi_reduction <add>, %155, %cst_74 [1] : vector<16x16xf32> to vector<16xf32>
      %157 = vector.shape_cast %156 : vector<16xf32> to vector<16x1xf32>
      %cst_75 = arith.constant 1.600000e+01 : f32
      %158 = vector.broadcast %cst_75 : f32 to vector<16x1xf32>
      %159 = arith.divf %157, %158 : vector<16x1xf32>
      %160 = vector.broadcast %152 : vector<16x1xf32> to vector<16x16xf32>
      %161 = arith.subf %139, %160 : vector<16x16xf32>
      %cst_76 = arith.constant 9.99999974E-6 : f32
      %162 = vector.broadcast %cst_76 : f32 to vector<16x1xf32>
      %163 = arith.addf %159, %162 : vector<16x1xf32>
      %164 = math.rsqrt %163 : vector<16x1xf32>
      %165 = vector.broadcast %164 : vector<16x1xf32> to vector<16x16xf32>
      %166 = arith.mulf %161, %165 : vector<16x16xf32>
      %167 = vector.broadcast %147 : vector<1x16xf32> to vector<16x16xf32>
      %168 = arith.mulf %166, %167 : vector<16x16xf32>
      %169 = vector.broadcast %148 : vector<1x16xf32> to vector<16x16xf32>
      %170 = arith.addf %168, %169 : vector<16x16xf32>
      %c0_77 = arith.constant 0 : index
      %c0_78 = arith.constant 0 : index
      %c0_79 = arith.constant 0 : index
      %171 = vector.load %arg18[%c0_77, %c0_78, %c0_79] : memref<1x16x16xf32, #tpu.memory_space<vmem>>, vector<1x16x16xf32>
      %172 = vector.shape_cast %171 : vector<1x16x16xf32> to vector<16x16xf32>
      %173 = vector.shape_cast %170 : vector<16x16xf32> to vector<1x16x16xf32>
      tpu.vector_store %arg18[%c0_77, %c0_78, %c0_79], %173 {strides = array<i32>} : memref<1x16x16xf32, #tpu.memory_space<vmem>>, vector<1x16x16xf32>,
    } else {
    }
    return
  }
  func.func @transform_0(%arg0: i32, %arg1: i32) -> (i32, i32, i32) {
    %c0_i32 = arith.constant 0 : i32
    %c0_i32_0 = arith.constant 0 : i32
    %c0_i32_1 = arith.constant 0 : i32
    return %arg0, %c0_i32, %c0_i32_0 : i32, i32, i32
  }
  func.func @transform_1(%arg0: i32, %arg1: i32) -> (i32, i32, i32) {
    %c0_i32 = arith.constant 0 : i32
    %c0_i32_0 = arith.constant 0 : i32
    %c0_i32_1 = arith.constant 0 : i32
    return %arg1, %c0_i32, %c0_i32_0 : i32, i32, i32
  }
  func.func @transform_2(%arg0: i32, %arg1: i32) -> (i32, i32, i32) {
    %c0_i32 = arith.constant 0 : i32
    %c0_i32_0 = arith.constant 0 : i32
    %c0_i32_1 = arith.constant 0 : i32
    return %arg1, %c0_i32, %c0_i32_0 : i32, i32, i32
  }
  func.func @transform_3(%arg0: i32, %arg1: i32) -> (i32, i32, i32) {
    %c0_i32 = arith.constant 0 : i32
    %c0_i32_0 = arith.constant 0 : i32
    %c0_i32_1 = arith.constant 0 : i32
    return %arg1, %c0_i32, %c0_i32_0 : i32, i32, i32
  }
  func.func @transform_4(%arg0: i32, %arg1: i32) -> (i32, i32, i32) {
    %c0_i32 = arith.constant 0 : i32
    %c0_i32_0 = arith.constant 0 : i32
    %c0_i32_1 = arith.constant 0 : i32
    return %arg1, %c0_i32, %c0_i32_0 : i32, i32, i32
  }
  func.func @transform_5(%arg0: i32, %arg1: i32) -> (i32, i32, i32) {
    %c0_i32 = arith.constant 0 : i32
    %c0_i32_0 = arith.constant 0 : i32
    %c0_i32_1 = arith.constant 0 : i32
    return %arg1, %c0_i32, %c0_i32_0 : i32, i32, i32
  }
  func.func @transform_6(%arg0: i32, %arg1: i32) -> (i32, i32, i32) {
    %c0_i32 = arith.constant 0 : i32
    %c0_i32_0 = arith.constant 0 : i32
    %c0_i32_1 = arith.constant 0 : i32
    return %arg1, %c0_i32, %c0_i32_0 : i32, i32, i32
  }
  func.func @transform_7(%arg0: i32, %arg1: i32) -> (i32, i32, i32) {
    %c0_i32 = arith.constant 0 : i32
    %c0_i32_0 = arith.constant 0 : i32
    %c0_i32_1 = arith.constant 0 : i32
    return %arg1, %c0_i32, %c0_i32_0 : i32, i32, i32
  }
  func.func @transform_8(%arg0: i32, %arg1: i32) -> (i32, i32, i32) {
    %c0_i32 = arith.constant 0 : i32
    %c0_i32_0 = arith.constant 0 : i32
    %c0_i32_1 = arith.constant 0 : i32
    return %arg1, %c0_i32, %c0_i32_0 : i32, i32, i32
  }
  func.func @transform_9(%arg0: i32, %arg1: i32) -> (i32, i32, i32) {
    %c0_i32 = arith.constant 0 : i32
    %c0_i32_0 = arith.constant 0 : i32
    %c0_i32_1 = arith.constant 0 : i32
    return %arg1, %c0_i32, %c0_i32_0 : i32, i32, i32
  }
  func.func @transform_10(%arg0: i32, %arg1: i32) -> (i32, i32, i32) {
    %c0_i32 = arith.constant 0 : i32
    %c0_i32_0 = arith.constant 0 : i32
    %c0_i32_1 = arith.constant 0 : i32
    return %arg1, %c0_i32, %c0_i32_0 : i32, i32, i32
  }
  func.func @transform_11(%arg0: i32, %arg1: i32) -> (i32, i32, i32) {
    %c0_i32 = arith.constant 0 : i32
    %c0_i32_0 = arith.constant 0 : i32
    %c0_i32_1 = arith.constant 0 : i32
    return %arg1, %c0_i32, %c0_i32_0 : i32, i32, i32
  }
  func.func @transform_12(%arg0: i32, %arg1: i32) -> (i32, i32, i32) {
    %c0_i32 = arith.constant 0 : i32
    %c0_i32_0 = arith.constant 0 : i32
    %c0_i32_1 = arith.constant 0 : i32
    return %arg1, %c0_i32, %c0_i32_0 : i32, i32, i32
  }
  func.func @transform_13(%arg0: i32, %arg1: i32) -> (i32, i32) {
    %c0_i32 = arith.constant 0 : i32
    %c0_i32_0 = arith.constant 0 : i32
    %c0_i32_1 = arith.constant 0 : i32
    return %c0_i32, %c0_i32_0 : i32, i32
  }
  func.func @transform_14(%arg0: i32, %arg1: i32) -> (i32, i32) {
    %c0_i32 = arith.constant 0 : i32
    %c0_i32_0 = arith.constant 0 : i32
    %c0_i32_1 = arith.constant 0 : i32
    return %c0_i32, %c0_i32_0 : i32, i32
  }
  func.func @transform_15(%arg0: i32, %arg1: i32) -> (i32, i32, i32, i32) {
    %c0_i32 = arith.constant 0 : i32
    %c0_i32_0 = arith.constant 0 : i32
    %c0_i32_1 = arith.constant 0 : i32
    return %arg1, %arg0, %c0_i32, %c0_i32_0 : i32, i32, i32, i32
  }
  func.func @transform_16(%arg0: i32, %arg1: i32) -> (i32, i32, i32) {
    %c0_i32 = arith.constant 0 : i32
    %c0_i32_0 = arith.constant 0 : i32
    %c0_i32_1 = arith.constant 0 : i32
    return %arg0, %c0_i32, %c0_i32_0 : i32, i32, i32
  }
}

module attributes {stable_mosaic.version = 11 : i64} {
  func.func @_linear_kernel(%arg0: i32, %arg1: memref<16x64xf32, #tpu.memory_space<vmem>>, %arg2: memref<64x32xbf16, #tpu.memory_space<vmem>>, %arg3: memref<1x32xf32, #tpu.memory_space<vmem>>, %arg4: memref<16x32xf32, #tpu.memory_space<vmem>>) attributes {dimension_semantics = [#tpu.dimension_semantics<parallel>], iteration_bounds = array<i64: 2>, scalar_prefetch = 0 : i64, scratch_operands = 0 : i64, tpu.core_type = #tpu.core_type<tc>, window_params = [{transform_indices = @transform_0, window_bounds = array<i64: 16, 64>}, {pipeline_mode = #tpu.pipeline_mode<synchronous>, transform_indices = @transform_1, window_bounds = array<i64: 64, 32>}, {pipeline_mode = #tpu.pipeline_mode<synchronous>, transform_indices = @transform_2, window_bounds = array<i64: 1, 32>}, {transform_indices = @transform_3, window_bounds = array<i64: 16, 32>}]} {
    %c0 = arith.constant 0 : index
    %c0_0 = arith.constant 0 : index
    %0 = vector.load %arg1[%c0, %c0_0] : memref<16x64xf32, #tpu.memory_space<vmem>>, vector<16x64xf32>
    %1 = arith.truncf %0 : vector<16x64xf32> to vector<16x64xbf16>
    %c0_1 = arith.constant 0 : index
    %c0_2 = arith.constant 0 : index
    %2 = vector.load %arg2[%c0_1, %c0_2] : memref<64x32xbf16, #tpu.memory_space<vmem>>, vector<64x32xbf16>
    %cst = arith.constant dense<0.000000e+00> : vector<16x32xf32>
    %3 = tpu.matmul %1, %2, %cst {dimension_numbers = #tpu.dot_dimension_numbers<[1], [0], [0], [1], [0, 0, 1, 1], [], []>} : vector<16x64xbf16>, vector<64x32xbf16>, vector<16x32xf32> -> vector<16x32xf32>
    %c0_3 = arith.constant 0 : index
    %c0_4 = arith.constant 0 : index
    %4 = vector.load %arg3[%c0_3, %c0_4] : memref<1x32xf32, #tpu.memory_space<vmem>>, vector<1x32xf32>
    %5 = vector.broadcast %4 : vector<1x32xf32> to vector<16x32xf32>
    %6 = arith.addf %3, %5 : vector<16x32xf32>
    %c0_5 = arith.constant 0 : index
    %c0_6 = arith.constant 0 : index
    %7 = vector.load %arg4[%c0_5, %c0_6] : memref<16x32xf32, #tpu.memory_space<vmem>>, vector<16x32xf32>
    tpu.vector_store %arg4[%c0_5, %c0_6], %6 {strides = array<i32>} : memref<16x32xf32, #tpu.memory_space<vmem>>, vector<16x32xf32>,
    return
  }
  func.func @transform_0(%arg0: i32) -> (i32, i32) {
    %c0_i32 = arith.constant 0 : i32
    %c0_i32_0 = arith.constant 0 : i32
    return %arg0, %c0_i32 : i32, i32
  }
  func.func @transform_1(%arg0: i32) -> (i32, i32) {
    %c0_i32 = arith.constant 0 : i32
    %c0_i32_0 = arith.constant 0 : i32
    %c0_i32_1 = arith.constant 0 : i32
    return %c0_i32, %c0_i32_0 : i32, i32
  }
  func.func @transform_2(%arg0: i32) -> (i32, i32) {
    %c0_i32 = arith.constant 0 : i32
    %c0_i32_0 = arith.constant 0 : i32
    %c0_i32_1 = arith.constant 0 : i32
    return %c0_i32, %c0_i32_0 : i32, i32
  }
  func.func @transform_3(%arg0: i32) -> (i32, i32) {
    %c0_i32 = arith.constant 0 : i32
    %c0_i32_0 = arith.constant 0 : i32
    return %arg0, %c0_i32 : i32, i32
  }
}

module attributes {stable_mosaic.version = 11 : i64} {
  func.func @_vit_stack_kernel(%arg0: i32, %arg1: i32, %arg2: memref<1x16x32xf32, #tpu.memory_space<vmem>>, %arg3: memref<1x1x32xf32, #tpu.memory_space<vmem>>, %arg4: memref<1x1x32xf32, #tpu.memory_space<vmem>>, %arg5: memref<1x32x96xbf16, #tpu.memory_space<vmem>>, %arg6: memref<1x1x96xf32, #tpu.memory_space<vmem>>, %arg7: memref<1x32x32xbf16, #tpu.memory_space<vmem>>, %arg8: memref<1x1x32xf32, #tpu.memory_space<vmem>>, %arg9: memref<1x1x32xf32, #tpu.memory_space<vmem>>, %arg10: memref<1x1x32xf32, #tpu.memory_space<vmem>>, %arg11: memref<1x32x128xbf16, #tpu.memory_space<vmem>>, %arg12: memref<1x1x128xf32, #tpu.memory_space<vmem>>, %arg13: memref<1x128x32xbf16, #tpu.memory_space<vmem>>, %arg14: memref<1x1x32xf32, #tpu.memory_space<vmem>>, %arg15: memref<1x32xf32, #tpu.memory_space<vmem>>, %arg16: memref<1x32xf32, #tpu.memory_space<vmem>>, %arg17: memref<1x1x16x32xf32, #tpu.memory_space<vmem>>, %arg18: memref<1x16x32xf32, #tpu.memory_space<vmem>>, %arg19: memref<16x32xf32, #tpu.memory_space<vmem>>) attributes {dimension_semantics = [#tpu.dimension_semantics<parallel>, #tpu.dimension_semantics<arbitrary>], iteration_bounds = array<i64: 2, 4>, scalar_prefetch = 0 : i64, scratch_operands = 1 : i64, tpu.core_type = #tpu.core_type<tc>, window_params = [{transform_indices = @transform_0, window_bounds = array<i64: 1, 16, 32>}, {transform_indices = @transform_1, window_bounds = array<i64: 1, 1, 32>}, {transform_indices = @transform_2, window_bounds = array<i64: 1, 1, 32>}, {transform_indices = @transform_3, window_bounds = array<i64: 1, 32, 96>}, {transform_indices = @transform_4, window_bounds = array<i64: 1, 1, 96>}, {transform_indices = @transform_5, window_bounds = array<i64: 1, 32, 32>}, {transform_indices = @transform_6, window_bounds = array<i64: 1, 1, 32>}, {transform_indices = @transform_7, window_bounds = array<i64: 1, 1, 32>}, {transform_indices = @transform_8, window_bounds = array<i64: 1, 1, 32>}, {transform_indices = @transform_9, window_bounds = array<i64: 1, 32, 128>}, {transform_indices = @transform_10, window_bounds = array<i64: 1, 1, 128>}, {transform_indices = @transform_11, window_bounds = array<i64: 1, 128, 32>}, {transform_indices = @transform_12, window_bounds = array<i64: 1, 1, 32>}, {pipeline_mode = #tpu.pipeline_mode<synchronous>, transform_indices = @transform_13, window_bounds = array<i64: 1, 32>}, {pipeline_mode = #tpu.pipeline_mode<synchronous>, transform_indices = @transform_14, window_bounds = array<i64: 1, 32>}, {transform_indices = @transform_15, window_bounds = array<i64: 1, 1, 16, 32>}, {transform_indices = @transform_16, window_bounds = array<i64: 1, 16, 32>}]} {
    %c0_i32 = arith.constant 0 : i32
    %0 = arith.cmpi eq, %arg1, %c0_i32 : i32
    %1 = arith.extui %0 : i1 to i32
    %c0_i32_0 = arith.constant 0 : i32
    %2 = arith.cmpi ne, %1, %c0_i32_0 : i32
    scf.if %2 {
      %c0_67 = arith.constant 0 : index
      %c0_68 = arith.constant 0 : index
      %c0_69 = arith.constant 0 : index
      %163 = vector.load %arg2[%c0_67, %c0_68, %c0_69] : memref<1x16x32xf32, #tpu.memory_space<vmem>>, vector<1x16x32xf32>
      %164 = vector.shape_cast %163 : vector<1x16x32xf32> to vector<16x32xf32>
      %c0_70 = arith.constant 0 : index
      %c0_71 = arith.constant 0 : index
      %165 = vector.load %arg19[%c0_70, %c0_71] : memref<16x32xf32, #tpu.memory_space<vmem>>, vector<16x32xf32>
      tpu.vector_store %arg19[%c0_70, %c0_71], %164 {strides = array<i32>} : memref<16x32xf32, #tpu.memory_space<vmem>>, vector<16x32xf32>,
    } else {
    }
    %c0 = arith.constant 0 : index
    %c0_1 = arith.constant 0 : index
    %3 = vector.load %arg19[%c0, %c0_1] : memref<16x32xf32, #tpu.memory_space<vmem>>, vector<16x32xf32>
    %c0_2 = arith.constant 0 : index
    %c0_3 = arith.constant 0 : index
    %c0_4 = arith.constant 0 : index
    %4 = vector.load %arg3[%c0_2, %c0_3, %c0_4] : memref<1x1x32xf32, #tpu.memory_space<vmem>>, vector<1x1x32xf32>
    %5 = vector.shape_cast %4 : vector<1x1x32xf32> to vector<1x32xf32>
    %c0_5 = arith.constant 0 : index
    %c0_6 = arith.constant 0 : index
    %c0_7 = arith.constant 0 : index
    %6 = vector.load %arg4[%c0_5, %c0_6, %c0_7] : memref<1x1x32xf32, #tpu.memory_space<vmem>>, vector<1x1x32xf32>
    %7 = vector.shape_cast %6 : vector<1x1x32xf32> to vector<1x32xf32>
    %cst = arith.constant dense<0.000000e+00> : vector<16xf32>
    %8 = vector.multi_reduction <add>, %3, %cst [1] : vector<16x32xf32> to vector<16xf32>
    %9 = vector.shape_cast %8 : vector<16xf32> to vector<16x1xf32>
    %cst_8 = arith.constant 3.200000e+01 : f32
    %10 = vector.broadcast %cst_8 : f32 to vector<16x1xf32>
    %11 = arith.divf %9, %10 : vector<16x1xf32>
    %12 = vector.broadcast %11 : vector<16x1xf32> to vector<16x32xf32>
    %13 = arith.subf %3, %12 : vector<16x32xf32>
    %14 = arith.mulf %13, %13 : vector<16x32xf32>
    %cst_9 = arith.constant dense<0.000000e+00> : vector<16xf32>
    %15 = vector.multi_reduction <add>, %14, %cst_9 [1] : vector<16x32xf32> to vector<16xf32>
    %16 = vector.shape_cast %15 : vector<16xf32> to vector<16x1xf32>
    %cst_10 = arith.constant 3.200000e+01 : f32
    %17 = vector.broadcast %cst_10 : f32 to vector<16x1xf32>
    %18 = arith.divf %16, %17 : vector<16x1xf32>
    %19 = vector.broadcast %11 : vector<16x1xf32> to vector<16x32xf32>
    %20 = arith.subf %3, %19 : vector<16x32xf32>
    %cst_11 = arith.constant 9.99999974E-6 : f32
    %21 = vector.broadcast %cst_11 : f32 to vector<16x1xf32>
    %22 = arith.addf %18, %21 : vector<16x1xf32>
    %23 = math.rsqrt %22 : vector<16x1xf32>
    %24 = vector.broadcast %23 : vector<16x1xf32> to vector<16x32xf32>
    %25 = arith.mulf %20, %24 : vector<16x32xf32>
    %26 = vector.broadcast %5 : vector<1x32xf32> to vector<16x32xf32>
    %27 = arith.mulf %25, %26 : vector<16x32xf32>
    %28 = vector.broadcast %7 : vector<1x32xf32> to vector<16x32xf32>
    %29 = arith.addf %27, %28 : vector<16x32xf32>
    %30 = arith.truncf %29 : vector<16x32xf32> to vector<16x32xbf16>
    %c0_12 = arith.constant 0 : index
    %c0_13 = arith.constant 0 : index
    %c0_14 = arith.constant 0 : index
    %31 = vector.load %arg5[%c0_12, %c0_13, %c0_14] : memref<1x32x96xbf16, #tpu.memory_space<vmem>>, vector<1x32x96xbf16>
    %32 = vector.shape_cast %31 : vector<1x32x96xbf16> to vector<32x96xbf16>
    %cst_15 = arith.constant dense<0.000000e+00> : vector<16x96xf32>
    %33 = tpu.matmul %30, %32, %cst_15 {dimension_numbers = #tpu.dot_dimension_numbers<[1], [0], [0], [1], [0, 0, 1, 1], [], []>} : vector<16x32xbf16>, vector<32x96xbf16>, vector<16x96xf32> -> vector<16x96xf32>
    %c0_16 = arith.constant 0 : index
    %c0_17 = arith.constant 0 : index
    %c0_18 = arith.constant 0 : index
    %34 = vector.load %arg6[%c0_16, %c0_17, %c0_18] : memref<1x1x96xf32, #tpu.memory_space<vmem>>, vector<1x1x96xf32>
    %35 = vector.shape_cast %34 : vector<1x1x96xf32> to vector<1x96xf32>
    %36 = vector.broadcast %35 : vector<1x96xf32> to vector<16x96xf32>
    %37 = arith.addf %33, %36 : vector<16x96xf32>
    %38 = vector.extract_strided_slice %37 {offsets = [0, 0], sizes = [16, 8], strides = [1, 1]} : vector<16x96xf32> to vector<16x8xf32>
    %39 = vector.extract_strided_slice %37 {offsets = [0, 8], sizes = [16, 8], strides = [1, 1]} : vector<16x96xf32> to vector<16x8xf32>
    %40 = vector.extract_strided_slice %37 {offsets = [0, 16], sizes = [16, 8], strides = [1, 1]} : vector<16x96xf32> to vector<16x8xf32>
    %41 = vector.extract_strided_slice %37 {offsets = [0, 24], sizes = [16, 8], strides = [1, 1]} : vector<16x96xf32> to vector<16x8xf32>
    %42 = vector.shape_cast %38 : vector<16x8xf32> to vector<1x16x8xf32>
    %43 = vector.shape_cast %39 : vector<16x8xf32> to vector<1x16x8xf32>
    %44 = vector.shape_cast %40 : vector<16x8xf32> to vector<1x16x8xf32>
    %45 = vector.shape_cast %41 : vector<16x8xf32> to vector<1x16x8xf32>
    %46 = tpu.concatenate %42, %43, %44, %45 in 0 : vector<1x16x8xf32>, vector<1x16x8xf32>, vector<1x16x8xf32>, vector<1x16x8xf32> -> vector<4x16x8xf32>
    %47 = vector.extract_strided_slice %37 {offsets = [0, 32], sizes = [16, 8], strides = [1, 1]} : vector<16x96xf32> to vector<16x8xf32>
    %48 = vector.extract_strided_slice %37 {offsets = [0, 40], sizes = [16, 8], strides = [1, 1]} : vector<16x96xf32> to vector<16x8xf32>
    %49 = vector.extract_strided_slice %37 {offsets = [0, 48], sizes = [16, 8], strides = [1, 1]} : vector<16x96xf32> to vector<16x8xf32>
    %50 = vector.extract_strided_slice %37 {offsets = [0, 56], sizes = [16, 8], strides = [1, 1]} : vector<16x96xf32> to vector<16x8xf32>
    %51 = vector.shape_cast %47 : vector<16x8xf32> to vector<1x16x8xf32>
    %52 = vector.shape_cast %48 : vector<16x8xf32> to vector<1x16x8xf32>
    %53 = vector.shape_cast %49 : vector<16x8xf32> to vector<1x16x8xf32>
    %54 = vector.shape_cast %50 : vector<16x8xf32> to vector<1x16x8xf32>
    %55 = tpu.concatenate %51, %52, %53, %54 in 0 : vector<1x16x8xf32>, vector<1x16x8xf32>, vector<1x16x8xf32>, vector<1x16x8xf32> -> vector<4x16x8xf32>
    %56 = vector.extract_strided_slice %37 {offsets = [0, 64], sizes = [16, 8], strides = [1, 1]} : vector<16x96xf32> to vector<16x8xf32>
    %57 = vector.extract_strided_slice %37 {offsets = [0, 72], sizes = [16, 8], strides = [1, 1]} : vector<16x96xf32> to vector<16x8xf32>
    %58 = vector.extract_strided_slice %37 {offsets = [0, 80], sizes = [16, 8], strides = [1, 1]} : vector<16x96xf32> to vector<16x8xf32>
    %59 = vector.extract_strided_slice %37 {offsets = [0, 88], sizes = [16, 8], strides = [1, 1]} : vector<16x96xf32> to vector<16x8xf32>
    %60 = vector.shape_cast %56 : vector<16x8xf32> to vector<1x16x8xf32>
    %61 = vector.shape_cast %57 : vector<16x8xf32> to vector<1x16x8xf32>
    %62 = vector.shape_cast %58 : vector<16x8xf32> to vector<1x16x8xf32>
    %63 = vector.shape_cast %59 : vector<16x8xf32> to vector<1x16x8xf32>
    %64 = tpu.concatenate %60, %61, %62, %63 in 0 : vector<1x16x8xf32>, vector<1x16x8xf32>, vector<1x16x8xf32>, vector<1x16x8xf32> -> vector<4x16x8xf32>
    %65 = arith.truncf %46 : vector<4x16x8xf32> to vector<4x16x8xbf16>
    %66 = arith.truncf %55 : vector<4x16x8xf32> to vector<4x16x8xbf16>
    "tpu.trace_start"() <{level = 10 : i32, message = "hqd,hkd->hqk"}> : () -> ()
    %cst_19 = arith.constant dense<0.000000e+00> : vector<4x16x16xf32>
    %67 = tpu.matmul %65, %66, %cst_19 {dimension_numbers = #tpu.dot_dimension_numbers<[2], [2], [1], [1], [0, 0, 0, 1, 1, 1], [0], [0]>} : vector<4x16x8xbf16>, vector<4x16x8xbf16>, vector<4x16x16xf32> -> vector<4x16x16xf32>
    "tpu.trace_stop"() : () -> ()
    %cst_20 = arith.constant 0.353553385 : f32
    %68 = vector.broadcast %cst_20 : f32 to vector<4x16x16xf32>
    %69 = arith.mulf %67, %68 : vector<4x16x16xf32>
    %cst_21 = arith.constant dense<0xFF800000> : vector<4x16xf32>
    %70 = vector.multi_reduction <maximumf>, %69, %cst_21 [2] : vector<4x16x16xf32> to vector<4x16xf32>
    %71 = vector.shape_cast %70 : vector<4x16xf32> to vector<4x16x1xf32>
    %72 = vector.broadcast %71 : vector<4x16x1xf32> to vector<4x16x16xf32>
    %73 = arith.subf %69, %72 : vector<4x16x16xf32>
    %74 = math.exp %73 : vector<4x16x16xf32>
    %cst_22 = arith.constant dense<0.000000e+00> : vector<4x16xf32>
    %75 = vector.multi_reduction <add>, %74, %cst_22 [2] : vector<4x16x16xf32> to vector<4x16xf32>
    %76 = vector.shape_cast %75 : vector<4x16xf32> to vector<4x16x1xf32>
    %77 = vector.broadcast %76 : vector<4x16x1xf32> to vector<4x16x16xf32>
    %78 = arith.divf %74, %77 : vector<4x16x16xf32>
    %79 = arith.truncf %78 : vector<4x16x16xf32> to vector<4x16x16xbf16>
    %80 = arith.truncf %64 : vector<4x16x8xf32> to vector<4x16x8xbf16>
    "tpu.trace_start"() <{level = 10 : i32, message = "hqk,hkd->hqd"}> : () -> ()
    %cst_23 = arith.constant dense<0.000000e+00> : vector<4x16x8xf32>
    %81 = tpu.matmul %79, %80, %cst_23 {dimension_numbers = #tpu.dot_dimension_numbers<[2], [1], [1], [2], [0, 0, 0, 1, 1, 2], [0], [0]>} : vector<4x16x16xbf16>, vector<4x16x8xbf16>, vector<4x16x8xf32> -> vector<4x16x8xf32>
    "tpu.trace_stop"() : () -> ()
    %82 = vector.extract_strided_slice %81 {offsets = [0, 0, 0], sizes = [1, 16, 8], strides = [1, 1, 1]} : vector<4x16x8xf32> to vector<1x16x8xf32>
    %83 = vector.shape_cast %82 : vector<1x16x8xf32> to vector<16x8xf32>
    %84 = vector.extract_strided_slice %81 {offsets = [1, 0, 0], sizes = [1, 16, 8], strides = [1, 1, 1]} : vector<4x16x8xf32> to vector<1x16x8xf32>
    %85 = vector.shape_cast %84 : vector<1x16x8xf32> to vector<16x8xf32>
    %86 = vector.extract_strided_slice %81 {offsets = [2, 0, 0], sizes = [1, 16, 8], strides = [1, 1, 1]} : vector<4x16x8xf32> to vector<1x16x8xf32>
    %87 = vector.shape_cast %86 : vector<1x16x8xf32> to vector<16x8xf32>
    %88 = vector.extract_strided_slice %81 {offsets = [3, 0, 0], sizes = [1, 16, 8], strides = [1, 1, 1]} : vector<4x16x8xf32> to vector<1x16x8xf32>
    %89 = vector.shape_cast %88 : vector<1x16x8xf32> to vector<16x8xf32>
    %90 = tpu.concatenate %83, %85, %87, %89 in 1 : vector<16x8xf32>, vector<16x8xf32>, vector<16x8xf32>, vector<16x8xf32> -> vector<16x32xf32>
    %91 = arith.truncf %90 : vector<16x32xf32> to vector<16x32xbf16>
    %c0_24 = arith.constant 0 : index
    %c0_25 = arith.constant 0 : index
    %c0_26 = arith.constant 0 : index
    %92 = vector.load %arg7[%c0_24, %c0_25, %c0_26] : memref<1x32x32xbf16, #tpu.memory_space<vmem>>, vector<1x32x32xbf16>
    %93 = vector.shape_cast %92 : vector<1x32x32xbf16> to vector<32x32xbf16>
    %cst_27 = arith.constant dense<0.000000e+00> : vector<16x32xf32>
    %94 = tpu.matmul %91, %93, %cst_27 {dimension_numbers = #tpu.dot_dimension_numbers<[1], [0], [0], [1], [0, 0, 1, 1], [], []>} : vector<16x32xbf16>, vector<32x32xbf16>, vector<16x32xf32> -> vector<16x32xf32>
    %95 = arith.addf %3, %94 : vector<16x32xf32>
    %c0_28 = arith.constant 0 : index
    %c0_29 = arith.constant 0 : index
    %c0_30 = arith.constant 0 : index
    %96 = vector.load %arg8[%c0_28, %c0_29, %c0_30] : memref<1x1x32xf32, #tpu.memory_space<vmem>>, vector<1x1x32xf32>
    %97 = vector.shape_cast %96 : vector<1x1x32xf32> to vector<1x32xf32>
    %98 = vector.broadcast %97 : vector<1x32xf32> to vector<16x32xf32>
    %99 = arith.addf %95, %98 : vector<16x32xf32>
    %c0_31 = arith.constant 0 : index
    %c0_32 = arith.constant 0 : index
    %c0_33 = arith.constant 0 : index
    %100 = vector.load %arg9[%c0_31, %c0_32, %c0_33] : memref<1x1x32xf32, #tpu.memory_space<vmem>>, vector<1x1x32xf32>
    %101 = vector.shape_cast %100 : vector<1x1x32xf32> to vector<1x32xf32>
    %c0_34 = arith.constant 0 : index
    %c0_35 = arith.constant 0 : index
    %c0_36 = arith.constant 0 : index
    %102 = vector.load %arg10[%c0_34, %c0_35, %c0_36] : memref<1x1x32xf32, #tpu.memory_space<vmem>>, vector<1x1x32xf32>
    %103 = vector.shape_cast %102 : vector<1x1x32xf32> to vector<1x32xf32>
    %cst_37 = arith.constant dense<0.000000e+00> : vector<16xf32>
    %104 = vector.multi_reduction <add>, %99, %cst_37 [1] : vector<16x32xf32> to vector<16xf32>
    %105 = vector.shape_cast %104 : vector<16xf32> to vector<16x1xf32>
    %cst_38 = arith.constant 3.200000e+01 : f32
    %106 = vector.broadcast %cst_38 : f32 to vector<16x1xf32>
    %107 = arith.divf %105, %106 : vector<16x1xf32>
    %108 = vector.broadcast %107 : vector<16x1xf32> to vector<16x32xf32>
    %109 = arith.subf %99, %108 : vector<16x32xf32>
    %110 = arith.mulf %109, %109 : vector<16x32xf32>
    %cst_39 = arith.constant dense<0.000000e+00> : vector<16xf32>
    %111 = vector.multi_reduction <add>, %110, %cst_39 [1] : vector<16x32xf32> to vector<16xf32>
    %112 = vector.shape_cast %111 : vector<16xf32> to vector<16x1xf32>
    %cst_40 = arith.constant 3.200000e+01 : f32
    %113 = vector.broadcast %cst_40 : f32 to vector<16x1xf32>
    %114 = arith.divf %112, %113 : vector<16x1xf32>
    %115 = vector.broadcast %107 : vector<16x1xf32> to vector<16x32xf32>
    %116 = arith.subf %99, %115 : vector<16x32xf32>
    %cst_41 = arith.constant 9.99999974E-6 : f32
    %117 = vector.broadcast %cst_41 : f32 to vector<16x1xf32>
    %118 = arith.addf %114, %117 : vector<16x1xf32>
    %119 = math.rsqrt %118 : vector<16x1xf32>
    %120 = vector.broadcast %119 : vector<16x1xf32> to vector<16x32xf32>
    %121 = arith.mulf %116, %120 : vector<16x32xf32>
    %122 = vector.broadcast %101 : vector<1x32xf32> to vector<16x32xf32>
    %123 = arith.mulf %121, %122 : vector<16x32xf32>
    %124 = vector.broadcast %103 : vector<1x32xf32> to vector<16x32xf32>
    %125 = arith.addf %123, %124 : vector<16x32xf32>
    %126 = arith.truncf %125 : vector<16x32xf32> to vector<16x32xbf16>
    %c0_42 = arith.constant 0 : index
    %c0_43 = arith.constant 0 : index
    %c0_44 = arith.constant 0 : index
    %127 = vector.load %arg11[%c0_42, %c0_43, %c0_44] : memref<1x32x128xbf16, #tpu.memory_space<vmem>>, vector<1x32x128xbf16>
    %128 = vector.shape_cast %127 : vector<1x32x128xbf16> to vector<32x128xbf16>
    %cst_45 = arith.constant dense<0.000000e+00> : vector<16x128xf32>
    %129 = tpu.matmul %126, %128, %cst_45 {dimension_numbers = #tpu.dot_dimension_numbers<[1], [0], [0], [1], [0, 0, 1, 1], [], []>} : vector<16x32xbf16>, vector<32x128xbf16>, vector<16x128xf32> -> vector<16x128xf32>
    %c0_46 = arith.constant 0 : index
    %c0_47 = arith.constant 0 : index
    %c0_48 = arith.constant 0 : index
    %130 = vector.load %arg12[%c0_46, %c0_47, %c0_48] : memref<1x1x128xf32, #tpu.memory_space<vmem>>, vector<1x1x128xf32>
    %131 = vector.shape_cast %130 : vector<1x1x128xf32> to vector<1x128xf32>
    %132 = vector.broadcast %131 : vector<1x128xf32> to vector<16x128xf32>
    %133 = arith.addf %129, %132 : vector<16x128xf32>
    %cst_49 = arith.constant 5.000000e-01 : f32
    %134 = vector.broadcast %cst_49 : f32 to vector<16x128xf32>
    %135 = arith.mulf %134, %133 : vector<16x128xf32>
    %cst_50 = arith.constant 4.471500e-02 : f32
    %136 = vector.broadcast %cst_50 : f32 to vector<16x128xf32>
    %137 = arith.mulf %136, %133 : vector<16x128xf32>
    %138 = arith.mulf %137, %133 : vector<16x128xf32>
    %139 = arith.mulf %138, %133 : vector<16x128xf32>
    %140 = arith.addf %133, %139 : vector<16x128xf32>
    %cst_51 = arith.constant 0.797884583 : f32
    %141 = vector.broadcast %cst_51 : f32 to vector<16x128xf32>
    %142 = arith.mulf %141, %140 : vector<16x128xf32>
    %143 = math.tanh %142 : vector<16x128xf32>
    %cst_52 = arith.constant 1.000000e+00 : f32
    %144 = vector.broadcast %cst_52 : f32 to vector<16x128xf32>
    %145 = arith.addf %144, %143 : vector<16x128xf32>
    %146 = arith.mulf %135, %145 : vector<16x128xf32>
    %147 = arith.truncf %146 : vector<16x128xf32> to vector<16x128xbf16>
    %c0_53 = arith.constant 0 : index
    %c0_54 = arith.constant 0 : index
    %c0_55 = arith.constant 0 : index
    %148 = vector.load %arg13[%c0_53, %c0_54, %c0_55] : memref<1x128x32xbf16, #tpu.memory_space<vmem>>, vector<1x128x32xbf16>
    %149 = vector.shape_cast %148 : vector<1x128x32xbf16> to vector<128x32xbf16>
    %cst_56 = arith.constant dense<0.000000e+00> : vector<16x32xf32>
    %150 = tpu.matmul %147, %149, %cst_56 {dimension_numbers = #tpu.dot_dimension_numbers<[1], [0], [0], [1], [0, 0, 1, 1], [], []>} : vector<16x128xbf16>, vector<128x32xbf16>, vector<16x32xf32> -> vector<16x32xf32>
    %151 = arith.addf %99, %150 : vector<16x32xf32>
    %c0_57 = arith.constant 0 : index
    %c0_58 = arith.constant 0 : index
    %c0_59 = arith.constant 0 : index
    %152 = vector.load %arg14[%c0_57, %c0_58, %c0_59] : memref<1x1x32xf32, #tpu.memory_space<vmem>>, vector<1x1x32xf32>
    %153 = vector.shape_cast %152 : vector<1x1x32xf32> to vector<1x32xf32>
    %154 = vector.broadcast %153 : vector<1x32xf32> to vector<16x32xf32>
    %155 = arith.addf %151, %154 : vector<16x32xf32>
    %c0_60 = arith.constant 0 : index
    %c0_61 = arith.constant 0 : index
    %156 = vector.load %arg19[%c0_60, %c0_61] : memref<16x32xf32, #tpu.memory_space<vmem>>, vector<16x32xf32>
    tpu.vector_store %arg19[%c0_60, %c0_61], %155 {strides = array<i32>} : memref<16x32xf32, #tpu.memory_space<vmem>>, vector<16x32xf32>,
    %c0_62 = arith.constant 0 : index
    %c0_63 = arith.constant 0 : index
    %c0_64 = arith.constant 0 : index
    %c0_65 = arith.constant 0 : index
    %157 = vector.load %arg17[%c0_62, %c0_63, %c0_64, %c0_65] : memref<1x1x16x32xf32, #tpu.memory_space<vmem>>, vector<1x1x16x32xf32>
    %158 = vector.shape_cast %157 : vector<1x1x16x32xf32> to vector<16x32xf32>
    %159 = vector.shape_cast %155 : vector<16x32xf32> to vector<1x1x16x32xf32>
    tpu.vector_store %arg17[%c0_62, %c0_63, %c0_64, %c0_65], %159 {strides = array<i32>} : memref<1x1x16x32xf32, #tpu.memory_space<vmem>>, vector<1x1x16x32xf32>,
    %c3_i32 = arith.constant 3 : i32
    %160 = arith.cmpi eq, %arg1, %c3_i32 : i32
    %161 = arith.extui %160 : i1 to i32
    %c0_i32_66 = arith.constant 0 : i32
    %162 = arith.cmpi ne, %161, %c0_i32_66 : i32
    scf.if %162 {
      %c0_67 = arith.constant 0 : index
      %c0_68 = arith.constant 0 : index
      %163 = vector.load %arg15[%c0_67, %c0_68] : memref<1x32xf32, #tpu.memory_space<vmem>>, vector<1x32xf32>
      %c0_69 = arith.constant 0 : index
      %c0_70 = arith.constant 0 : index
      %164 = vector.load %arg16[%c0_69, %c0_70] : memref<1x32xf32, #tpu.memory_space<vmem>>, vector<1x32xf32>
      %cst_71 = arith.constant dense<0.000000e+00> : vector<16xf32>
      %165 = vector.multi_reduction <add>, %155, %cst_71 [1] : vector<16x32xf32> to vector<16xf32>
      %166 = vector.shape_cast %165 : vector<16xf32> to vector<16x1xf32>
      %cst_72 = arith.constant 3.200000e+01 : f32
      %167 = vector.broadcast %cst_72 : f32 to vector<16x1xf32>
      %168 = arith.divf %166, %167 : vector<16x1xf32>
      %169 = vector.broadcast %168 : vector<16x1xf32> to vector<16x32xf32>
      %170 = arith.subf %155, %169 : vector<16x32xf32>
      %171 = arith.mulf %170, %170 : vector<16x32xf32>
      %cst_73 = arith.constant dense<0.000000e+00> : vector<16xf32>
      %172 = vector.multi_reduction <add>, %171, %cst_73 [1] : vector<16x32xf32> to vector<16xf32>
      %173 = vector.shape_cast %172 : vector<16xf32> to vector<16x1xf32>
      %cst_74 = arith.constant 3.200000e+01 : f32
      %174 = vector.broadcast %cst_74 : f32 to vector<16x1xf32>
      %175 = arith.divf %173, %174 : vector<16x1xf32>
      %176 = vector.broadcast %168 : vector<16x1xf32> to vector<16x32xf32>
      %177 = arith.subf %155, %176 : vector<16x32xf32>
      %cst_75 = arith.constant 9.99999974E-6 : f32
      %178 = vector.broadcast %cst_75 : f32 to vector<16x1xf32>
      %179 = arith.addf %175, %178 : vector<16x1xf32>
      %180 = math.rsqrt %179 : vector<16x1xf32>
      %181 = vector.broadcast %180 : vector<16x1xf32> to vector<16x32xf32>
      %182 = arith.mulf %177, %181 : vector<16x32xf32>
      %183 = vector.broadcast %163 : vector<1x32xf32> to vector<16x32xf32>
      %184 = arith.mulf %182, %183 : vector<16x32xf32>
      %185 = vector.broadcast %164 : vector<1x32xf32> to vector<16x32xf32>
      %186 = arith.addf %184, %185 : vector<16x32xf32>
      %c0_76 = arith.constant 0 : index
      %c0_77 = arith.constant 0 : index
      %c0_78 = arith.constant 0 : index
      %187 = vector.load %arg18[%c0_76, %c0_77, %c0_78] : memref<1x16x32xf32, #tpu.memory_space<vmem>>, vector<1x16x32xf32>
      %188 = vector.shape_cast %187 : vector<1x16x32xf32> to vector<16x32xf32>
      %189 = vector.shape_cast %186 : vector<16x32xf32> to vector<1x16x32xf32>
      tpu.vector_store %arg18[%c0_76, %c0_77, %c0_78], %189 {strides = array<i32>} : memref<1x16x32xf32, #tpu.memory_space<vmem>>, vector<1x16x32xf32>,
    } else {
    }
    return
  }
  func.func @transform_0(%arg0: i32, %arg1: i32) -> (i32, i32, i32) {
    %c0_i32 = arith.constant 0 : i32
    %c0_i32_0 = arith.constant 0 : i32
    %c0_i32_1 = arith.constant 0 : i32
    return %arg0, %c0_i32, %c0_i32_0 : i32, i32, i32
  }
  func.func @transform_1(%arg0: i32, %arg1: i32) -> (i32, i32, i32) {
    %c0_i32 = arith.constant 0 : i32
    %c0_i32_0 = arith.constant 0 : i32
    %c0_i32_1 = arith.constant 0 : i32
    return %arg1, %c0_i32, %c0_i32_0 : i32, i32, i32
  }
  func.func @transform_2(%arg0: i32, %arg1: i32) -> (i32, i32, i32) {
    %c0_i32 = arith.constant 0 : i32
    %c0_i32_0 = arith.constant 0 : i32
    %c0_i32_1 = arith.constant 0 : i32
    return %arg1, %c0_i32, %c0_i32_0 : i32, i32, i32
  }
  func.func @transform_3(%arg0: i32, %arg1: i32) -> (i32, i32, i32) {
    %c0_i32 = arith.constant 0 : i32
    %c0_i32_0 = arith.constant 0 : i32
    %c0_i32_1 = arith.constant 0 : i32
    return %arg1, %c0_i32, %c0_i32_0 : i32, i32, i32
  }
  func.func @transform_4(%arg0: i32, %arg1: i32) -> (i32, i32, i32) {
    %c0_i32 = arith.constant 0 : i32
    %c0_i32_0 = arith.constant 0 : i32
    %c0_i32_1 = arith.constant 0 : i32
    return %arg1, %c0_i32, %c0_i32_0 : i32, i32, i32
  }
  func.func @transform_5(%arg0: i32, %arg1: i32) -> (i32, i32, i32) {
    %c0_i32 = arith.constant 0 : i32
    %c0_i32_0 = arith.constant 0 : i32
    %c0_i32_1 = arith.constant 0 : i32
    return %arg1, %c0_i32, %c0_i32_0 : i32, i32, i32
  }
  func.func @transform_6(%arg0: i32, %arg1: i32) -> (i32, i32, i32) {
    %c0_i32 = arith.constant 0 : i32
    %c0_i32_0 = arith.constant 0 : i32
    %c0_i32_1 = arith.constant 0 : i32
    return %arg1, %c0_i32, %c0_i32_0 : i32, i32, i32
  }
  func.func @transform_7(%arg0: i32, %arg1: i32) -> (i32, i32, i32) {
    %c0_i32 = arith.constant 0 : i32
    %c0_i32_0 = arith.constant 0 : i32
    %c0_i32_1 = arith.constant 0 : i32
    return %arg1, %c0_i32, %c0_i32_0 : i32, i32, i32
  }
  func.func @transform_8(%arg0: i32, %arg1: i32) -> (i32, i32, i32) {
    %c0_i32 = arith.constant 0 : i32
    %c0_i32_0 = arith.constant 0 : i32
    %c0_i32_1 = arith.constant 0 : i32
    return %arg1, %c0_i32, %c0_i32_0 : i32, i32, i32
  }
  func.func @transform_9(%arg0: i32, %arg1: i32) -> (i32, i32, i32) {
    %c0_i32 = arith.constant 0 : i32
    %c0_i32_0 = arith.constant 0 : i32
    %c0_i32_1 = arith.constant 0 : i32
    return %arg1, %c0_i32, %c0_i32_0 : i32, i32, i32
  }
  func.func @transform_10(%arg0: i32, %arg1: i32) -> (i32, i32, i32) {
    %c0_i32 = arith.constant 0 : i32
    %c0_i32_0 = arith.constant 0 : i32
    %c0_i32_1 = arith.constant 0 : i32
    return %arg1, %c0_i32, %c0_i32_0 : i32, i32, i32
  }
  func.func @transform_11(%arg0: i32, %arg1: i32) -> (i32, i32, i32) {
    %c0_i32 = arith.constant 0 : i32
    %c0_i32_0 = arith.constant 0 : i32
    %c0_i32_1 = arith.constant 0 : i32
    return %arg1, %c0_i32, %c0_i32_0 : i32, i32, i32
  }
  func.func @transform_12(%arg0: i32, %arg1: i32) -> (i32, i32, i32) {
    %c0_i32 = arith.constant 0 : i32
    %c0_i32_0 = arith.constant 0 : i32
    %c0_i32_1 = arith.constant 0 : i32
    return %arg1, %c0_i32, %c0_i32_0 : i32, i32, i32
  }
  func.func @transform_13(%arg0: i32, %arg1: i32) -> (i32, i32) {
    %c0_i32 = arith.constant 0 : i32
    %c0_i32_0 = arith.constant 0 : i32
    %c0_i32_1 = arith.constant 0 : i32
    return %c0_i32, %c0_i32_0 : i32, i32
  }
  func.func @transform_14(%arg0: i32, %arg1: i32) -> (i32, i32) {
    %c0_i32 = arith.constant 0 : i32
    %c0_i32_0 = arith.constant 0 : i32
    %c0_i32_1 = arith.constant 0 : i32
    return %c0_i32, %c0_i32_0 : i32, i32
  }
  func.func @transform_15(%arg0: i32, %arg1: i32) -> (i32, i32, i32, i32) {
    %c0_i32 = arith.constant 0 : i32
    %c0_i32_0 = arith.constant 0 : i32
    %c0_i32_1 = arith.constant 0 : i32
    return %arg1, %arg0, %c0_i32, %c0_i32_0 : i32, i32, i32, i32
  }
  func.func @transform_16(%arg0: i32, %arg1: i32) -> (i32, i32, i32) {
    %c0_i32 = arith.constant 0 : i32
    %c0_i32_0 = arith.constant 0 : i32
    %c0_i32_1 = arith.constant 0 : i32
    return %arg0, %c0_i32, %c0_i32_0 : i32, i32, i32
  }
}

module attributes {stable_mosaic.version = 11 : i64} {
  func.func @_linear_kernel(%arg0: i32, %arg1: memref<16x32xf32, #tpu.memory_space<vmem>>, %arg2: memref<32x64xbf16, #tpu.memory_space<vmem>>, %arg3: memref<1x64xf32, #tpu.memory_space<vmem>>, %arg4: memref<16x64xf32, #tpu.memory_space<vmem>>) attributes {dimension_semantics = [#tpu.dimension_semantics<parallel>], iteration_bounds = array<i64: 2>, scalar_prefetch = 0 : i64, scratch_operands = 0 : i64, tpu.core_type = #tpu.core_type<tc>, window_params = [{transform_indices = @transform_0, window_bounds = array<i64: 16, 32>}, {pipeline_mode = #tpu.pipeline_mode<synchronous>, transform_indices = @transform_1, window_bounds = array<i64: 32, 64>}, {pipeline_mode = #tpu.pipeline_mode<synchronous>, transform_indices = @transform_2, window_bounds = array<i64: 1, 64>}, {transform_indices = @transform_3, window_bounds = array<i64: 16, 64>}]} {
    %c0 = arith.constant 0 : index
    %c0_0 = arith.constant 0 : index
    %0 = vector.load %arg1[%c0, %c0_0] : memref<16x32xf32, #tpu.memory_space<vmem>>, vector<16x32xf32>
    %1 = arith.truncf %0 : vector<16x32xf32> to vector<16x32xbf16>
    %c0_1 = arith.constant 0 : index
    %c0_2 = arith.constant 0 : index
    %2 = vector.load %arg2[%c0_1, %c0_2] : memref<32x64xbf16, #tpu.memory_space<vmem>>, vector<32x64xbf16>
    %cst = arith.constant dense<0.000000e+00> : vector<16x64xf32>
    %3 = tpu.matmul %1, %2, %cst {dimension_numbers = #tpu.dot_dimension_numbers<[1], [0], [0], [1], [0, 0, 1, 1], [], []>} : vector<16x32xbf16>, vector<32x64xbf16>, vector<16x64xf32> -> vector<16x64xf32>
    %c0_3 = arith.constant 0 : index
    %c0_4 = arith.constant 0 : index
    %4 = vector.load %arg3[%c0_3, %c0_4] : memref<1x64xf32, #tpu.memory_space<vmem>>, vector<1x64xf32>
    %5 = vector.broadcast %4 : vector<1x64xf32> to vector<16x64xf32>
    %6 = arith.addf %3, %5 : vector<16x64xf32>
    %c0_5 = arith.constant 0 : index
    %c0_6 = arith.constant 0 : index
    %7 = vector.load %arg4[%c0_5, %c0_6] : memref<16x64xf32, #tpu.memory_space<vmem>>, vector<16x64xf32>
    tpu.vector_store %arg4[%c0_5, %c0_6], %6 {strides = array<i32>} : memref<16x64xf32, #tpu.memory_space<vmem>>, vector<16x64xf32>,
    return
  }
  func.func @transform_0(%arg0: i32) -> (i32, i32) {
    %c0_i32 = arith.constant 0 : i32
    %c0_i32_0 = arith.constant 0 : i32
    return %arg0, %c0_i32 : i32, i32
  }
  func.func @transform_1(%arg0: i32) -> (i32, i32) {
    %c0_i32 = arith.constant 0 : i32
    %c0_i32_0 = arith.constant 0 : i32
    %c0_i32_1 = arith.constant 0 : i32
    return %c0_i32, %c0_i32_0 : i32, i32
  }
  func.func @transform_2(%arg0: i32) -> (i32, i32) {
    %c0_i32 = arith.constant 0 : i32
    %c0_i32_0 = arith.constant 0 : i32
    %c0_i32_1 = arith.constant 0 : i32
    return %c0_i32, %c0_i32_0 : i32, i32
  }
  func.func @transform_3(%arg0: i32) -> (i32, i32) {
    %c0_i32 = arith.constant 0 : i32
    %c0_i32_0 = arith.constant 0 : i32
    return %arg0, %c0_i32 : i32, i32
  }
}

module attributes {stable_mosaic.version = 11 : i64} {
  func.func @_conv3x3_kernel(%arg0: i32, %arg1: memref<1x10x320xf32, #tpu.memory_space<vmem>>, %arg2: memref<3x320x128xbf16, #tpu.memory_space<vmem>>, %arg3: memref<1x128xf32, #tpu.memory_space<vmem>>, %arg4: memref<1x8x128xf32, #tpu.memory_space<vmem>>) attributes {dimension_semantics = [#tpu.dimension_semantics<parallel>], iteration_bounds = array<i64: 2>, scalar_prefetch = 0 : i64, scratch_operands = 0 : i64, tpu.core_type = #tpu.core_type<tc>, window_params = [{transform_indices = @transform_0, window_bounds = array<i64: 1, 10, 320>}, {pipeline_mode = #tpu.pipeline_mode<synchronous>, transform_indices = @transform_1, window_bounds = array<i64: 3, 320, 128>}, {pipeline_mode = #tpu.pipeline_mode<synchronous>, transform_indices = @transform_2, window_bounds = array<i64: 1, 128>}, {transform_indices = @transform_3, window_bounds = array<i64: 1, 8, 128>}]} {
    %c0 = arith.constant 0 : index
    %c0_0 = arith.constant 0 : index
    %c0_1 = arith.constant 0 : index
    %0 = vector.load %arg1[%c0, %c0_0, %c0_1] : memref<1x10x320xf32, #tpu.memory_space<vmem>>, vector<1x10x320xf32>
    %1 = vector.shape_cast %0 : vector<1x10x320xf32> to vector<10x320xf32>
    %2 = vector.extract_strided_slice %1 {offsets = [0, 0], sizes = [8, 320], strides = [1, 1]} : vector<10x320xf32> to vector<8x320xf32>
    %3 = arith.truncf %2 : vector<8x320xf32> to vector<8x320xbf16>
    %c0_2 = arith.constant 0 : index
    %c0_3 = arith.constant 0 : index
    %c0_4 = arith.constant 0 : index
    %4 = vector.load %arg2[%c0_2, %c0_3, %c0_4] : memref<3x320x128xbf16, #tpu.memory_space<vmem>>, vector<1x320x128xbf16>
    %5 = vector.shape_cast %4 : vector<1x320x128xbf16> to vector<320x128xbf16>
    %cst = arith.constant dense<0.000000e+00> : vector<8x128xf32>
    %6 = tpu.matmul %3, %5, %cst {dimension_numbers = #tpu.dot_dimension_numbers<[1], [0], [0], [1], [0, 0, 1, 1], [], []>} : vector<8x320xbf16>, vector<320x128xbf16>, vector<8x128xf32> -> vector<8x128xf32>
    %7 = vector.extract_strided_slice %1 {offsets = [1, 0], sizes = [8, 320], strides = [1, 1]} : vector<10x320xf32> to vector<8x320xf32>
    %8 = arith.truncf %7 : vector<8x320xf32> to vector<8x320xbf16>
    %c1 = arith.constant 1 : index
    %c0_5 = arith.constant 0 : index
    %c0_6 = arith.constant 0 : index
    %9 = vector.load %arg2[%c1, %c0_5, %c0_6] : memref<3x320x128xbf16, #tpu.memory_space<vmem>>, vector<1x320x128xbf16>
    %10 = vector.shape_cast %9 : vector<1x320x128xbf16> to vector<320x128xbf16>
    %cst_7 = arith.constant dense<0.000000e+00> : vector<8x128xf32>
    %11 = tpu.matmul %8, %10, %cst_7 {dimension_numbers = #tpu.dot_dimension_numbers<[1], [0], [0], [1], [0, 0, 1, 1], [], []>} : vector<8x320xbf16>, vector<320x128xbf16>, vector<8x128xf32> -> vector<8x128xf32>
    %12 = arith.addf %6, %11 : vector<8x128xf32>
    %13 = vector.extract_strided_slice %1 {offsets = [2, 0], sizes = [8, 320], strides = [1, 1]} : vector<10x320xf32> to vector<8x320xf32>
    %14 = arith.truncf %13 : vector<8x320xf32> to vector<8x320xbf16>
    %c2 = arith.constant 2 : index
    %c0_8 = arith.constant 0 : index
    %c0_9 = arith.constant 0 : index
    %15 = vector.load %arg2[%c2, %c0_8, %c0_9] : memref<3x320x128xbf16, #tpu.memory_space<vmem>>, vector<1x320x128xbf16>
    %16 = vector.shape_cast %15 : vector<1x320x128xbf16> to vector<320x128xbf16>
    %cst_10 = arith.constant dense<0.000000e+00> : vector<8x128xf32>
    %17 = tpu.matmul %14, %16, %cst_10 {dimension_numbers = #tpu.dot_dimension_numbers<[1], [0], [0], [1], [0, 0, 1, 1], [], []>} : vector<8x320xbf16>, vector<320x128xbf16>, vector<8x128xf32> -> vector<8x128xf32>
    %18 = arith.addf %12, %17 : vector<8x128xf32>
    %c0_11 = arith.constant 0 : index
    %c0_12 = arith.constant 0 : index
    %19 = vector.load %arg3[%c0_11, %c0_12] : memref<1x128xf32, #tpu.memory_space<vmem>>, vector<1x128xf32>
    %20 = vector.broadcast %19 : vector<1x128xf32> to vector<8x128xf32>
    %21 = arith.addf %18, %20 : vector<8x128xf32>
    %cst_13 = arith.constant 0.000000e+00 : f32
    %22 = vector.broadcast %cst_13 : f32 to vector<8x128xf32>
    %23 = arith.maximumf %21, %22 : vector<8x128xf32>
    %c0_14 = arith.constant 0 : index
    %c0_15 = arith.constant 0 : index
    %c0_16 = arith.constant 0 : index
    %24 = vector.load %arg4[%c0_14, %c0_15, %c0_16] : memref<1x8x128xf32, #tpu.memory_space<vmem>>, vector<1x8x128xf32>
    %25 = vector.shape_cast %24 : vector<1x8x128xf32> to vector<8x128xf32>
    %26 = vector.shape_cast %23 : vector<8x128xf32> to vector<1x8x128xf32>
    tpu.vector_store %arg4[%c0_14, %c0_15, %c0_16], %26 {strides = array<i32>} : memref<1x8x128xf32, #tpu.memory_space<vmem>>, vector<1x8x128xf32>,
    return
  }
  func.func @transform_0(%arg0: i32) -> (i32, i32, i32) {
    %c0_i32 = arith.constant 0 : i32
    %c0_i32_0 = arith.constant 0 : i32
    %c0_i32_1 = arith.constant 0 : i32
    return %arg0, %c0_i32, %c0_i32_0 : i32, i32, i32
  }
  func.func @transform_1(%arg0: i32) -> (i32, i32, i32) {
    %c0_i32 = arith.constant 0 : i32
    %c0_i32_0 = arith.constant 0 : i32
    %c0_i32_1 = arith.constant 0 : i32
    %c0_i32_2 = arith.constant 0 : i32
    return %c0_i32, %c0_i32_0, %c0_i32_1 : i32, i32, i32
  }
  func.func @transform_2(%arg0: i32) -> (i32, i32) {
    %c0_i32 = arith.constant 0 : i32
    %c0_i32_0 = arith.constant 0 : i32
    %c0_i32_1 = arith.constant 0 : i32
    return %c0_i32, %c0_i32_0 : i32, i32
  }
  func.func @transform_3(%arg0: i32) -> (i32, i32, i32) {
    %c0_i32 = arith.constant 0 : i32
    %c0_i32_0 = arith.constant 0 : i32
    %c0_i32_1 = arith.constant 0 : i32
    return %arg0, %c0_i32, %c0_i32_0 : i32, i32, i32
  }
}

module attributes {stable_mosaic.version = 11 : i64} {
  func.func @_linear_kernel(%arg0: i32, %arg1: memref<64x16xf32, #tpu.memory_space<vmem>>, %arg2: memref<16x32xbf16, #tpu.memory_space<vmem>>, %arg3: memref<1x32xf32, #tpu.memory_space<vmem>>, %arg4: memref<64x32xf32, #tpu.memory_space<vmem>>) attributes {dimension_semantics = [#tpu.dimension_semantics<parallel>], iteration_bounds = array<i64: 2>, scalar_prefetch = 0 : i64, scratch_operands = 0 : i64, tpu.core_type = #tpu.core_type<tc>, window_params = [{transform_indices = @transform_0, window_bounds = array<i64: 64, 16>}, {pipeline_mode = #tpu.pipeline_mode<synchronous>, transform_indices = @transform_1, window_bounds = array<i64: 16, 32>}, {pipeline_mode = #tpu.pipeline_mode<synchronous>, transform_indices = @transform_2, window_bounds = array<i64: 1, 32>}, {transform_indices = @transform_3, window_bounds = array<i64: 64, 32>}]} {
    %c0 = arith.constant 0 : index
    %c0_0 = arith.constant 0 : index
    %0 = vector.load %arg1[%c0, %c0_0] : memref<64x16xf32, #tpu.memory_space<vmem>>, vector<64x16xf32>
    %1 = arith.truncf %0 : vector<64x16xf32> to vector<64x16xbf16>
    %c0_1 = arith.constant 0 : index
    %c0_2 = arith.constant 0 : index
    %2 = vector.load %arg2[%c0_1, %c0_2] : memref<16x32xbf16, #tpu.memory_space<vmem>>, vector<16x32xbf16>
    %cst = arith.constant dense<0.000000e+00> : vector<64x32xf32>
    %3 = tpu.matmul %1, %2, %cst {dimension_numbers = #tpu.dot_dimension_numbers<[1], [0], [0], [1], [0, 0, 1, 1], [], []>} : vector<64x16xbf16>, vector<16x32xbf16>, vector<64x32xf32> -> vector<64x32xf32>
    %c0_3 = arith.constant 0 : index
    %c0_4 = arith.constant 0 : index
    %4 = vector.load %arg3[%c0_3, %c0_4] : memref<1x32xf32, #tpu.memory_space<vmem>>, vector<1x32xf32>
    %5 = vector.broadcast %4 : vector<1x32xf32> to vector<64x32xf32>
    %6 = arith.addf %3, %5 : vector<64x32xf32>
    %c0_5 = arith.constant 0 : index
    %c0_6 = arith.constant 0 : index
    %7 = vector.load %arg4[%c0_5, %c0_6] : memref<64x32xf32, #tpu.memory_space<vmem>>, vector<64x32xf32>
    tpu.vector_store %arg4[%c0_5, %c0_6], %6 {strides = array<i32>} : memref<64x32xf32, #tpu.memory_space<vmem>>, vector<64x32xf32>,
    return
  }
  func.func @transform_0(%arg0: i32) -> (i32, i32) {
    %c0_i32 = arith.constant 0 : i32
    %c0_i32_0 = arith.constant 0 : i32
    return %arg0, %c0_i32 : i32, i32
  }
  func.func @transform_1(%arg0: i32) -> (i32, i32) {
    %c0_i32 = arith.constant 0 : i32
    %c0_i32_0 = arith.constant 0 : i32
    %c0_i32_1 = arith.constant 0 : i32
    return %c0_i32, %c0_i32_0 : i32, i32
  }
  func.func @transform_2(%arg0: i32) -> (i32, i32) {
    %c0_i32 = arith.constant 0 : i32
    %c0_i32_0 = arith.constant 0 : i32
    %c0_i32_1 = arith.constant 0 : i32
    return %c0_i32, %c0_i32_0 : i32, i32
  }
  func.func @transform_3(%arg0: i32) -> (i32, i32) {
    %c0_i32 = arith.constant 0 : i32
    %c0_i32_0 = arith.constant 0 : i32
    return %arg0, %c0_i32 : i32, i32
  }
}

module attributes {stable_mosaic.version = 11 : i64} {
  func.func @_conv3x3_kernel(%arg0: i32, %arg1: memref<1x18x72xf32, #tpu.memory_space<vmem>>, %arg2: memref<3x72x128xbf16, #tpu.memory_space<vmem>>, %arg3: memref<1x128xf32, #tpu.memory_space<vmem>>, %arg4: memref<1x16x128xf32, #tpu.memory_space<vmem>>) attributes {dimension_semantics = [#tpu.dimension_semantics<parallel>], iteration_bounds = array<i64: 2>, scalar_prefetch = 0 : i64, scratch_operands = 0 : i64, tpu.core_type = #tpu.core_type<tc>, window_params = [{transform_indices = @transform_0, window_bounds = array<i64: 1, 18, 72>}, {pipeline_mode = #tpu.pipeline_mode<synchronous>, transform_indices = @transform_1, window_bounds = array<i64: 3, 72, 128>}, {pipeline_mode = #tpu.pipeline_mode<synchronous>, transform_indices = @transform_2, window_bounds = array<i64: 1, 128>}, {transform_indices = @transform_3, window_bounds = array<i64: 1, 16, 128>}]} {
    %c0 = arith.constant 0 : index
    %c0_0 = arith.constant 0 : index
    %c0_1 = arith.constant 0 : index
    %0 = vector.load %arg1[%c0, %c0_0, %c0_1] : memref<1x18x72xf32, #tpu.memory_space<vmem>>, vector<1x18x72xf32>
    %1 = vector.shape_cast %0 : vector<1x18x72xf32> to vector<18x72xf32>
    %2 = vector.extract_strided_slice %1 {offsets = [0, 0], sizes = [16, 72], strides = [1, 1]} : vector<18x72xf32> to vector<16x72xf32>
    %3 = arith.truncf %2 : vector<16x72xf32> to vector<16x72xbf16>
    %c0_2 = arith.constant 0 : index
    %c0_3 = arith.constant 0 : index
    %c0_4 = arith.constant 0 : index
    %4 = vector.load %arg2[%c0_2, %c0_3, %c0_4] : memref<3x72x128xbf16, #tpu.memory_space<vmem>>, vector<1x72x128xbf16>
    %5 = vector.shape_cast %4 : vector<1x72x128xbf16> to vector<72x128xbf16>
    %cst = arith.constant dense<0.000000e+00> : vector<16x128xf32>
    %6 = tpu.matmul %3, %5, %cst {dimension_numbers = #tpu.dot_dimension_numbers<[1], [0], [0], [1], [0, 0, 1, 1], [], []>} : vector<16x72xbf16>, vector<72x128xbf16>, vector<16x128xf32> -> vector<16x128xf32>
    %7 = vector.extract_strided_slice %1 {offsets = [1, 0], sizes = [16, 72], strides = [1, 1]} : vector<18x72xf32> to vector<16x72xf32>
    %8 = arith.truncf %7 : vector<16x72xf32> to vector<16x72xbf16>
    %c1 = arith.constant 1 : index
    %c0_5 = arith.constant 0 : index
    %c0_6 = arith.constant 0 : index
    %9 = vector.load %arg2[%c1, %c0_5, %c0_6] : memref<3x72x128xbf16, #tpu.memory_space<vmem>>, vector<1x72x128xbf16>
    %10 = vector.shape_cast %9 : vector<1x72x128xbf16> to vector<72x128xbf16>
    %cst_7 = arith.constant dense<0.000000e+00> : vector<16x128xf32>
    %11 = tpu.matmul %8, %10, %cst_7 {dimension_numbers = #tpu.dot_dimension_numbers<[1], [0], [0], [1], [0, 0, 1, 1], [], []>} : vector<16x72xbf16>, vector<72x128xbf16>, vector<16x128xf32> -> vector<16x128xf32>
    %12 = arith.addf %6, %11 : vector<16x128xf32>
    %13 = vector.extract_strided_slice %1 {offsets = [2, 0], sizes = [16, 72], strides = [1, 1]} : vector<18x72xf32> to vector<16x72xf32>
    %14 = arith.truncf %13 : vector<16x72xf32> to vector<16x72xbf16>
    %c2 = arith.constant 2 : index
    %c0_8 = arith.constant 0 : index
    %c0_9 = arith.constant 0 : index
    %15 = vector.load %arg2[%c2, %c0_8, %c0_9] : memref<3x72x128xbf16, #tpu.memory_space<vmem>>, vector<1x72x128xbf16>
    %16 = vector.shape_cast %15 : vector<1x72x128xbf16> to vector<72x128xbf16>
    %cst_10 = arith.constant dense<0.000000e+00> : vector<16x128xf32>
    %17 = tpu.matmul %14, %16, %cst_10 {dimension_numbers = #tpu.dot_dimension_numbers<[1], [0], [0], [1], [0, 0, 1, 1], [], []>} : vector<16x72xbf16>, vector<72x128xbf16>, vector<16x128xf32> -> vector<16x128xf32>
    %18 = arith.addf %12, %17 : vector<16x128xf32>
    %c0_11 = arith.constant 0 : index
    %c0_12 = arith.constant 0 : index
    %19 = vector.load %arg3[%c0_11, %c0_12] : memref<1x128xf32, #tpu.memory_space<vmem>>, vector<1x128xf32>
    %20 = vector.broadcast %19 : vector<1x128xf32> to vector<16x128xf32>
    %21 = arith.addf %18, %20 : vector<16x128xf32>
    %cst_13 = arith.constant 0.000000e+00 : f32
    %22 = vector.broadcast %cst_13 : f32 to vector<16x128xf32>
    %23 = arith.maximumf %21, %22 : vector<16x128xf32>
    %c0_14 = arith.constant 0 : index
    %c0_15 = arith.constant 0 : index
    %c0_16 = arith.constant 0 : index
    %24 = vector.load %arg4[%c0_14, %c0_15, %c0_16] : memref<1x16x128xf32, #tpu.memory_space<vmem>>, vector<1x16x128xf32>
    %25 = vector.shape_cast %24 : vector<1x16x128xf32> to vector<16x128xf32>
    %26 = vector.shape_cast %23 : vector<16x128xf32> to vector<1x16x128xf32>
    tpu.vector_store %arg4[%c0_14, %c0_15, %c0_16], %26 {strides = array<i32>} : memref<1x16x128xf32, #tpu.memory_space<vmem>>, vector<1x16x128xf32>,
    return
  }
  func.func @transform_0(%arg0: i32) -> (i32, i32, i32) {
    %c0_i32 = arith.constant 0 : i32
    %c0_i32_0 = arith.constant 0 : i32
    %c0_i32_1 = arith.constant 0 : i32
    return %arg0, %c0_i32, %c0_i32_0 : i32, i32, i32
  }
  func.func @transform_1(%arg0: i32) -> (i32, i32, i32) {
    %c0_i32 = arith.constant 0 : i32
    %c0_i32_0 = arith.constant 0 : i32
    %c0_i32_1 = arith.constant 0 : i32
    %c0_i32_2 = arith.constant 0 : i32
    return %c0_i32, %c0_i32_0, %c0_i32_1 : i32, i32, i32
  }
  func.func @transform_2(%arg0: i32) -> (i32, i32) {
    %c0_i32 = arith.constant 0 : i32
    %c0_i32_0 = arith.constant 0 : i32
    %c0_i32_1 = arith.constant 0 : i32
    return %c0_i32, %c0_i32_0 : i32, i32
  }
  func.func @transform_3(%arg0: i32) -> (i32, i32, i32) {
    %c0_i32 = arith.constant 0 : i32
    %c0_i32_0 = arith.constant 0 : i32
    %c0_i32_1 = arith.constant 0 : i32
    return %arg0, %c0_i32, %c0_i32_0 : i32, i32, i32
  }
}

module attributes {stable_mosaic.version = 11 : i64} {
  func.func @_conv3x3_proj_kernel(%arg0: i32, %arg1: memref<1x18x288xf32, #tpu.memory_space<vmem>>, %arg2: memref<3x288x128xbf16, #tpu.memory_space<vmem>>, %arg3: memref<1x128xf32, #tpu.memory_space<vmem>>, %arg4: memref<128x48xbf16, #tpu.memory_space<vmem>>, %arg5: memref<1x48xf32, #tpu.memory_space<vmem>>, %arg6: memref<1x16x48xf32, #tpu.memory_space<vmem>>) attributes {dimension_semantics = [#tpu.dimension_semantics<parallel>], iteration_bounds = array<i64: 2>, scalar_prefetch = 0 : i64, scratch_operands = 0 : i64, tpu.core_type = #tpu.core_type<tc>, window_params = [{transform_indices = @transform_0, window_bounds = array<i64: 1, 18, 288>}, {pipeline_mode = #tpu.pipeline_mode<synchronous>, transform_indices = @transform_1, window_bounds = array<i64: 3, 288, 128>}, {pipeline_mode = #tpu.pipeline_mode<synchronous>, transform_indices = @transform_2, window_bounds = array<i64: 1, 128>}, {pipeline_mode = #tpu.pipeline_mode<synchronous>, transform_indices = @transform_3, window_bounds = array<i64: 128, 48>}, {pipeline_mode = #tpu.pipeline_mode<synchronous>, transform_indices = @transform_4, window_bounds = array<i64: 1, 48>}, {transform_indices = @transform_5, window_bounds = array<i64: 1, 16, 48>}]} {
    %c0 = arith.constant 0 : index
    %c0_0 = arith.constant 0 : index
    %c0_1 = arith.constant 0 : index
    %0 = vector.load %arg1[%c0, %c0_0, %c0_1] : memref<1x18x288xf32, #tpu.memory_space<vmem>>, vector<1x18x288xf32>
    %1 = vector.shape_cast %0 : vector<1x18x288xf32> to vector<18x288xf32>
    %2 = vector.extract_strided_slice %1 {offsets = [0, 0], sizes = [16, 288], strides = [1, 1]} : vector<18x288xf32> to vector<16x288xf32>
    %3 = arith.truncf %2 : vector<16x288xf32> to vector<16x288xbf16>
    %c0_2 = arith.constant 0 : index
    %c0_3 = arith.constant 0 : index
    %c0_4 = arith.constant 0 : index
    %4 = vector.load %arg2[%c0_2, %c0_3, %c0_4] : memref<3x288x128xbf16, #tpu.memory_space<vmem>>, vector<1x288x128xbf16>
    %5 = vector.shape_cast %4 : vector<1x288x128xbf16> to vector<288x128xbf16>
    %cst = arith.constant dense<0.000000e+00> : vector<16x128xf32>
    %6 = tpu.matmul %3, %5, %cst {dimension_numbers = #tpu.dot_dimension_numbers<[1], [0], [0], [1], [0, 0, 1, 1], [], []>} : vector<16x288xbf16>, vector<288x128xbf16>, vector<16x128xf32> -> vector<16x128xf32>
    %7 = vector.extract_strided_slice %1 {offsets = [1, 0], sizes = [16, 288], strides = [1, 1]} : vector<18x288xf32> to vector<16x288xf32>
    %8 = arith.truncf %7 : vector<16x288xf32> to vector<16x288xbf16>
    %c1 = arith.constant 1 : index
    %c0_5 = arith.constant 0 : index
    %c0_6 = arith.constant 0 : index
    %9 = vector.load %arg2[%c1, %c0_5, %c0_6] : memref<3x288x128xbf16, #tpu.memory_space<vmem>>, vector<1x288x128xbf16>
    %10 = vector.shape_cast %9 : vector<1x288x128xbf16> to vector<288x128xbf16>
    %cst_7 = arith.constant dense<0.000000e+00> : vector<16x128xf32>
    %11 = tpu.matmul %8, %10, %cst_7 {dimension_numbers = #tpu.dot_dimension_numbers<[1], [0], [0], [1], [0, 0, 1, 1], [], []>} : vector<16x288xbf16>, vector<288x128xbf16>, vector<16x128xf32> -> vector<16x128xf32>
    %12 = arith.addf %6, %11 : vector<16x128xf32>
    %13 = vector.extract_strided_slice %1 {offsets = [2, 0], sizes = [16, 288], strides = [1, 1]} : vector<18x288xf32> to vector<16x288xf32>
    %14 = arith.truncf %13 : vector<16x288xf32> to vector<16x288xbf16>
    %c2 = arith.constant 2 : index
    %c0_8 = arith.constant 0 : index
    %c0_9 = arith.constant 0 : index
    %15 = vector.load %arg2[%c2, %c0_8, %c0_9] : memref<3x288x128xbf16, #tpu.memory_space<vmem>>, vector<1x288x128xbf16>
    %16 = vector.shape_cast %15 : vector<1x288x128xbf16> to vector<288x128xbf16>
    %cst_10 = arith.constant dense<0.000000e+00> : vector<16x128xf32>
    %17 = tpu.matmul %14, %16, %cst_10 {dimension_numbers = #tpu.dot_dimension_numbers<[1], [0], [0], [1], [0, 0, 1, 1], [], []>} : vector<16x288xbf16>, vector<288x128xbf16>, vector<16x128xf32> -> vector<16x128xf32>
    %18 = arith.addf %12, %17 : vector<16x128xf32>
    %c0_11 = arith.constant 0 : index
    %c0_12 = arith.constant 0 : index
    %19 = vector.load %arg3[%c0_11, %c0_12] : memref<1x128xf32, #tpu.memory_space<vmem>>, vector<1x128xf32>
    %20 = vector.broadcast %19 : vector<1x128xf32> to vector<16x128xf32>
    %21 = arith.addf %18, %20 : vector<16x128xf32>
    %cst_13 = arith.constant 0.000000e+00 : f32
    %22 = vector.broadcast %cst_13 : f32 to vector<16x128xf32>
    %23 = arith.maximumf %21, %22 : vector<16x128xf32>
    %24 = arith.truncf %23 : vector<16x128xf32> to vector<16x128xbf16>
    %c0_14 = arith.constant 0 : index
    %c0_15 = arith.constant 0 : index
    %25 = vector.load %arg4[%c0_14, %c0_15] : memref<128x48xbf16, #tpu.memory_space<vmem>>, vector<128x48xbf16>
    %cst_16 = arith.constant dense<0.000000e+00> : vector<16x48xf32>
    %26 = tpu.matmul %24, %25, %cst_16 {dimension_numbers = #tpu.dot_dimension_numbers<[1], [0], [0], [1], [0, 0, 1, 1], [], []>} : vector<16x128xbf16>, vector<128x48xbf16>, vector<16x48xf32> -> vector<16x48xf32>
    %c0_17 = arith.constant 0 : index
    %c0_18 = arith.constant 0 : index
    %27 = vector.load %arg5[%c0_17, %c0_18] : memref<1x48xf32, #tpu.memory_space<vmem>>, vector<1x48xf32>
    %28 = vector.broadcast %27 : vector<1x48xf32> to vector<16x48xf32>
    %29 = arith.addf %26, %28 : vector<16x48xf32>
    %c0_19 = arith.constant 0 : index
    %c0_20 = arith.constant 0 : index
    %c0_21 = arith.constant 0 : index
    %30 = vector.load %arg6[%c0_19, %c0_20, %c0_21] : memref<1x16x48xf32, #tpu.memory_space<vmem>>, vector<1x16x48xf32>
    %31 = vector.shape_cast %30 : vector<1x16x48xf32> to vector<16x48xf32>
    %32 = vector.shape_cast %29 : vector<16x48xf32> to vector<1x16x48xf32>
    tpu.vector_store %arg6[%c0_19, %c0_20, %c0_21], %32 {strides = array<i32>} : memref<1x16x48xf32, #tpu.memory_space<vmem>>, vector<1x16x48xf32>,
    return
  }
  func.func @transform_0(%arg0: i32) -> (i32, i32, i32) {
    %c0_i32 = arith.constant 0 : i32
    %c0_i32_0 = arith.constant 0 : i32
    %c0_i32_1 = arith.constant 0 : i32
    return %arg0, %c0_i32, %c0_i32_0 : i32, i32, i32
  }
  func.func @transform_1(%arg0: i32) -> (i32, i32, i32) {
    %c0_i32 = arith.constant 0 : i32
    %c0_i32_0 = arith.constant 0 : i32
    %c0_i32_1 = arith.constant 0 : i32
    %c0_i32_2 = arith.constant 0 : i32
    return %c0_i32, %c0_i32_0, %c0_i32_1 : i32, i32, i32
  }
  func.func @transform_2(%arg0: i32) -> (i32, i32) {
    %c0_i32 = arith.constant 0 : i32
    %c0_i32_0 = arith.constant 0 : i32
    %c0_i32_1 = arith.constant 0 : i32
    return %c0_i32, %c0_i32_0 : i32, i32
  }
  func.func @transform_3(%arg0: i32) -> (i32, i32) {
    %c0_i32 = arith.constant 0 : i32
    %c0_i32_0 = arith.constant 0 : i32
    %c0_i32_1 = arith.constant 0 : i32
    return %c0_i32, %c0_i32_0 : i32, i32
  }
  func.func @transform_4(%arg0: i32) -> (i32, i32) {
    %c0_i32 = arith.constant 0 : i32
    %c0_i32_0 = arith.constant 0 : i32
    %c0_i32_1 = arith.constant 0 : i32
    return %c0_i32, %c0_i32_0 : i32, i32
  }
  func.func @transform_5(%arg0: i32) -> (i32, i32, i32) {
    %c0_i32 = arith.constant 0 : i32
    %c0_i32_0 = arith.constant 0 : i32
    %c0_i32_1 = arith.constant 0 : i32
    return %arg0, %c0_i32, %c0_i32_0 : i32, i32, i32
  }
}

</mosaic_0001>

<bundles_post_ra>
// kernel: joint_model_forward.21
= control target key start
LH: loop header
LB: loop body
LE: loop exit
PB: predicated region body
PF: predicated region fallthrough
CT: control target
= control target key end

     0   :  { %s383_s12 = smov 0   ;;  %s415_s0 = inlined_call_operand.vmem [shape: f32[16,64], index: 0, kind: input, shape index: {}]   ;;  %s416_s1 = inlined_call_operand.vmem [shape: bf16[64,32], index: 1, kind: input, shape index: {}]   ;;  %s417_s2 = inlined_call_operand.vmem [shape: f32[1,32], index: 2, kind: input, shape index: {}]   ;;  %s418_s3 = inlined_call_operand.vmem [shape: f32[16,32], index: 3, kind: output, shape index: {}]  }
   0x1 LB: > { %s307_s13 = sadd.s32 4294967295, %s359_s12   ;;  %p311_p0 = scmp.ge.s32.totalorder %s359_s12, 1  ;;  %s359_s12 = sphi %s383_s12, %s13_s12  }
   0x2   : > { %p136_p1 = scmp.lt.s32.totalorder %s359_s12, 3 }
   0x4   : > { %p137_p2 = pnand %p311_p0, %p136_p1 }
   0x5   : > { %p158_p3 = scmp.lt.s32.totalorder (!%p137_p2), %s307_s13, 1 }
   0x6   : > { %140 = sbr.rel (%p137_p2) target bundleno = 227 (0xe3), region = 32 }
   0xb   : > { %v349_v0 = vld [vmem:[%s416_s1 + $0x18] sm:$0xff]   ;;  %v361_v1 = vmov 0.0   ;;  %v350_v2 = vld [vmem:[%s416_s1 + $0x10] sm:$0xff]   ;;  %vm362_vm0 = vmmov 0   ;;  %s420_s13 = smov (!%p158_p3, %s307_s13), 1  ;;  %v351_v3 = vld [vmem:[%s416_s1 + $0x8] sm:$0xff]  }
   0xc   : > { %327 = vmatprep.subr.bf16.mxu0 %v361_v1  ;;  %335 = vmatprep.mubr.msk.bf16.mxu0 %vm362_vm0, %v361_v1  ;;  %s312_s20 = sshll.u32 %s420_s13, 3  ;;  %v352_v4 = vld [vmem:[%s416_s1] sm:$0xff]   ;;  %vm208_vm1 = vcmask 523264   ;;  %vm252_vm2 = vcmask 261120  }
   0xd   : > { %328 = vmatpush3.bf16.msra.mxu0 %v349_v0  ;;  %s161_s23 = scalar_lea.vmem %s415_s0, %s312_s20  ;;  %v314_v7 = vld [vmem:[%s417_s2] ss:$0 sm:$0xff]  ;;  %s165_s30 = scalar_lea.vmem %s418_s3, %s312_s20 }
   0xe   : > { %329 = vmatprep.subr.bf16.mxu0 %v361_v1  ;;  %v167_v5 = vld [vmem:[%s161_s23] sm:$0xff] }
   0xf   : > { %v168_v6 = vpack.c.bf16 %v167_v5, %v167_v5 }
  0x11   : > { %330 = vmatpush3.bf16.msra.mxu0 %v350_v2 }
  0x12   : > { %331 = vmatprep.subr.bf16.mxu0 %v361_v1 }
  0x15   : > { %332 = vmatpush3.bf16.msra.mxu0 %v351_v3 }
  0x16   : > { %333 = vmatprep.subr.bf16.mxu0 %v361_v1 }
  0x19   : > { %334 = vmatpush3.bf16.msra.mxu0 %v352_v4 }
  0x1c   : > { %336 = vmatmul.mubr.msk.bf16.vlgmr.msra.gmra.mxu0 %vm208_vm1, %v168_v6 }
  0xdc   : > { %v246_v8 = vpop.f32.mrf.mxu0 }
  0xdd   : > { %v247_v9 = vadd.f32 %v314_v7, %v246_v8 }
  0xde   : > { %v337_v10 = vpop.f32.mrf.mxu0 }
  0xdf   : > { %253 = vst.msk [vmem:[%s165_s30] sm:$0xff] %vm252_vm2, %v247_v9 }
  0xe0   : > { %v249_v11 = vpop.f32.mrf.mxu0 }
  0xe2   : > { %v338_v12 = vpop.f32.mrf.mxu0 }
  0xe3 PF: > { %s13_s12 = sadd.s32 1, %s359_s12  }
  0xe4   : > { %p10_p4 = scmp.ge.s32.totalorder %s13_s12, 4  }
  0xe6   :  { %12 = sbr.rel (!%p10_p4) target bundleno = 1 (0x1), region = 62 }

// kernel: joint_model_forward.23
= control target key start
LH: loop header
LB: loop body
LE: loop exit
PB: predicated region body
PF: predicated region fallthrough
CT: control target
= control target key end

     0   :  { %s357_s12 = smov 0   ;;  %s383_s0 = inlined_call_operand.vmem [shape: f32[16,32], index: 0, kind: input, shape index: {}]   ;;  %s384_s1 = inlined_call_operand.vmem [shape: bf16[32,16], index: 1, kind: input, shape index: {}]   ;;  %s385_s2 = inlined_call_operand.vmem [shape: f32[1,16], index: 2, kind: input, shape index: {}]   ;;  %s386_s3 = inlined_call_operand.vmem [shape: f32[16,16], index: 3, kind: output, shape index: {}]  }
   0x1 LB: > { %s291_s13 = sadd.s32 4294967295, %s333_s12   ;;  %p295_p0 = scmp.ge.s32.totalorder %s333_s12, 1  ;;  %s333_s12 = sphi %s357_s12, %s13_s12  }
   0x2   : > { %p136_p1 = scmp.lt.s32.totalorder %s333_s12, 3 }
   0x4   : > { %p137_p2 = pnand %p295_p0, %p136_p1 }
   0x5   : > { %p158_p3 = scmp.lt.s32.totalorder (!%p137_p2), %s291_s13, 1 }
   0x6   : > { %140 = sbr.rel (%p137_p2) target bundleno = 219 (0xdb), region = 32 }
   0xb   : > { %v325_v0 = vld [vmem:[%s384_s1 + $0x8] sm:$0xff]   ;;  %v335_v1 = vmov 0.0   ;;  %v326_v2 = vld [vmem:[%s384_s1] sm:$0xff]   ;;  %vm336_vm0 = vmmov 0   ;;  %s388_s13 = smov (!%p158_p3, %s291_s13), 1  ;;  %vm192_vm1 = vcmask 261120  }
   0xc   : > { %307 = vmatprep.subr.bf16.mxu0 %v335_v1  ;;  %311 = vmatprep.mubr.msk.bf16.mxu0 %vm336_vm0, %v335_v1  ;;  %s296_s18 = sshll.u32 %s388_s13, 3  ;;  %v298_v5 = vld [vmem:[%s385_s2] ss:$0 sm:$0xff]  ;;  %vm236_vm2 = vcmask 130048  }
   0xd   : > { %308 = vmatpush3.bf16.msra.mxu0 %v325_v0  ;;  %s161_s21 = scalar_lea.vmem %s383_s0, %s296_s18  ;;  %s165_s26 = scalar_lea.vmem %s386_s3, %s296_s18 }
   0xe   : > { %309 = vmatprep.subr.bf16.mxu0 %v335_v1  ;;  %v167_v3 = vld [vmem:[%s161_s21] sm:$0xff] }
   0xf   : > { %v168_v4 = vpack.c.bf16 %v167_v3, %v167_v3 }
  0x11   : > { %310 = vmatpush3.bf16.msra.mxu0 %v326_v2 }
  0x14   : > { %312 = vmatmul.mubr.msk.bf16.vlgmr.msra.gmra.mxu0 %vm192_vm1, %v168_v4 }
  0xd4   : > { %v230_v6 = vpop.f32.mrf.mxu0 }
  0xd5   : > { %v231_v7 = vadd.f32 %v298_v5, %v230_v6 }
  0xd6   : > { %v313_v8 = vpop.f32.mrf.mxu0 }
  0xd7   : > { %237 = vst.msk [vmem:[%s165_s26] sm:$0xff] %vm236_vm2, %v231_v7 }
  0xd8   : > { %v233_v9 = vpop.f32.mrf.mxu0 }
  0xda   : > { %v314_v10 = vpop.f32.mrf.mxu0 }
  0xdb PF: > { %s13_s12 = sadd.s32 1, %s333_s12  }
  0xdc   : > { %p10_p4 = scmp.ge.s32.totalorder %s13_s12, 4  }
  0xde   :  { %12 = sbr.rel (!%p10_p4) target bundleno = 1 (0x1), region = 62 }

// kernel: joint_model_forward.22
= control target key start
LH: loop header
LB: loop body
LE: loop exit
PB: predicated region body
PF: predicated region fallthrough
CT: control target
= control target key end

     0   :  { %s2750_s0 = inlined_call_operand.vmem [shape: f32[2,8,32], index: 0, kind: input, shape index: {}]   ;;  %s2751_s1 = inlined_call_operand.vmem [shape: f32[4,1,32], index: 1, kind: input, shape index: {}]   ;;  %s2752_s2 = inlined_call_operand.vmem [shape: f32[4,1,32], index: 2, kind: input, shape index: {}]   ;;  %s2753_s3 = inlined_call_operand.vmem [shape: bf16[4,32,96], index: 3, kind: input, shape index: {}]   ;;  %s2754_s4 = inlined_call_operand.vmem [shape: f32[4,1,96], index: 4, kind: input, shape index: {}]   ;;  %s2755_s5 = inlined_call_operand.vmem [shape: bf16[4,32,32], index: 5, kind: input, shape index: {}]   ;;  %s2756_s6 = inlined_call_operand.vmem [shape: f32[4,1,32], index: 6, kind: input, shape index: {}]   ;;  %s2757_s7 = inlined_call_operand.vmem [shape: f32[4,1,32], index: 7, kind: input, shape index: {}]   ;;  %s2758_s8 = inlined_call_operand.vmem [shape: f32[4,1,32], index: 8, kind: input, shape index: {}]   ;;  %s2759_s9 = inlined_call_operand.vmem [shape: bf16[4,32,128], index: 9, kind: input, shape index: {}]   ;;  %s2760_s10 = inlined_call_operand.vmem [shape: f32[4,1,128], index: 10, kind: input, shape index: {}]   ;;  %s2761_s11 = inlined_call_operand.vmem [shape: bf16[4,128,32], index: 11, kind: input, shape index: {}]   ;;  %s2762_s12 = inlined_call_operand.vmem [shape: f32[4,1,32], index: 12, kind: input, shape index: {}]   ;;  %s2763_s13 = inlined_call_operand.vmem [shape: f32[1,32], index: 13, kind: input, shape index: {}]   ;;  %s2764_s14 = inlined_call_operand.vmem [shape: f32[1,32], index: 14, kind: input, shape index: {}]   ;;  %s2765_s15 = inlined_call_operand.hbm [shape: f32[4,2,8,32], index: 15, kind: output, shape index: {0}]   ;;  %s2766_s16 = inlined_call_operand.vmem [shape: f32[2,8,32], index: 16, kind: output, shape index: {1}]  }
   0x1   :  { %2783 = sst [smem:[#allocation19_spill]] %s2750_s0 }
   0x2   :  { %2784 = sst [smem:[#allocation20_spill]] %s2751_s1 }
   0x3   :  { %2785 = sst [smem:[#allocation21_spill]] %s2752_s2 }
   0x4   :  { %2786 = sst [smem:[#allocation22_spill]] %s2753_s3 }
   0x5   :  { %2787 = sst [smem:[#allocation23_spill]] %s2755_s5 }
   0x6   :  { %2788 = sst [smem:[#allocation24_spill]] %s2763_s13 }
   0x7   :  { %2789 = sst [smem:[#allocation25_spill]] %s2764_s14 }
   0x8   :  { %2790 = sst [smem:[#allocation26_spill]] %s2765_s15 }
   0x9   :  { %2791 = sst [smem:[#allocation27_spill]] %s2766_s16 }
   0xa   :  { %22 = vsyncpa [#allocation4], 0 }
   0xb   :  { %24 = vsyncpa [#allocation4 + $0x1], 0  ;;  %s2374_s21 = smov 0   ;;  %s2376_s22 = smov 0  }
   0xc   :  { %s2378_s23 = smov 0   ;;  %s2380_s24 = smov 0  }
   0xd   :  { %s2382_s25 = smov 0   ;;  %s2384_s26 = smov 0  }
   0xe   :  { %s2386_s27 = smov 0   ;;  %s2388_s28 = smov 0  }
   0xf LB: > { %2792 = sst [smem:[#allocation6_spill]] %s2248_s21  ;;  %s1877_s29 = sadd.s32 4294967295, %s2276_s28   ;;  %s2276_s28 = sphi %s2388_s28, %s30_s28   ;;  %s2272_s27 = sphi %s2386_s27, %s2840_s27   ;;  %s2268_s26 = sphi %s2384_s26, %s2839_s26   ;;  %s2264_s25 = sphi %s2382_s25, %s2838_s25   ;;  %s2260_s24 = sphi %s2380_s24, %s2837_s24   ;;  %s2256_s23 = sphi %s2378_s23, %s2836_s23   ;;  %s2252_s22 = sphi %s2376_s22, %s2835_s22   ;;  %s2248_s21 = sphi %s2374_s21, %s2834_s21  }
  0x10   : > { %2793 = sst [smem:[#allocation7_spill]] %s2252_s22  ;;  %s1878_s30 = sadd.s32 4294967294, %s2276_s28  }
  0x11   : > { %2794 = sst [smem:[#allocation8_spill]] %s2256_s23  ;;  %s39_s0 = sadd.s32 1, %s2268_s26 }
  0x12   : > { %2795 = sst [smem:[#allocation9_spill]] %s2260_s24  ;;  %p40_p0 = scmp.ge.s32.totalorder %s39_s0, 4 }
  0x13   : > { %2796 = sst [smem:[#allocation10_spill]] %s2264_s25  ;;  %s42_s17 = sadd.s32 1, %s2272_s27 }
  0x14   : > { %2797 = sst [smem:[#allocation11_spill]] %s2268_s26  ;;  %p441_p1 = scmp.ne.s32.totalorder %s2256_s23, %s2252_s22 }
  0x15   : > { %2798 = sst [smem:[#allocation12_spill]] %s2272_s27  ;;  %p442_p2 = scmp.eq.s32.totalorder %s1877_s29, 7 }
  0x16   : > { %2799 = sst [smem:[#allocation13_spill]] %s2276_s28  ;;  %s2842_s0 = smov (%p40_p0, %s39_s0), 0 }
  0x17   : > { %2800 = sst [smem:[#allocation14_spill]] %s2842_s0  ;;  %s2844_s17 = smov (!%p40_p0, %s42_s17), %s2272_s27 }
  0x18   : > { %s426_s18 = ssub.s32 %s2268_s26, %s2842_s0  ;;  %p2425_p3 = por %p442_p2, %p441_p1 }
  0x19   : > { %p44_p4 = scmp.ge.s32.totalorder %s2844_s17, 2  ;;  %p447_p5 = scmp.ne.s32.totalorder %s2252_s22, %s2248_s21 }
  0x1a   : > { %s2801_s19 = scalar_select %p2425_p3, 1, 0 }
  0x1b   : > { %p448_p6 = scmp.eq.s32.totalorder %s1878_s30, 7  ;;  %p1881_p7 = scmp.ge.s32.totalorder %s2276_s28, 1 }
  0x1c   : > { %2802 = sst [smem:[#allocation15_spill]] %s2801_s19  ;;  %s2846_s17 = smov (%p44_p4, %s2844_s17), 0 }
  0x1d   : > { %2803 = sst [smem:[#allocation16_spill]] %s2846_s17  ;;  %p2434_p8 = por %p448_p6, %p447_p5 }
  0x1e   : > { %p585_p9 = scmp.lt.s32.totalorder %s2276_s28, 9  ;;  %s427_s29 = ssub.s32 %s2272_s27, %s2846_s17 }
  0x1f   : > { %s2804_s20 = scalar_select %p2434_p8, 1, 0 }
  0x20   : > { %s431_s15 = sadd.s32 1, %s2256_s23  ;;  %s428_s14 = sor.u32 %s427_s29, %s426_s18 }
  0x21   : > { %2805 = sst [smem:[#allocation17_spill]] %s2804_s20  ;;  %p586_p10 = pnand %p1881_p7, %p585_p9 }
  0x22   : > { %p429_p11 = scmp.eq.s32.totalorder %s428_s14, 0  ;;  %s2772_s30 = sand.u32 (!%p586_p10), 1, %s2252_s22  }
  0x23   : > { %589 = sbr.rel (%p586_p10) target bundleno = 2907 (0xb5b), region = 80  ;;  %p682_p12 = scmp.lt.s32.totalorder (!%p586_p10), %s2264_s25, 1 }
  0x24   : > { %s2443_s0 = scalar_select %p429_p11, %s2256_s23, %s431_s15  }
  0x25   : > { %s2449_s26 = sshll.u32 (!%p586_p10), %s2772_s30, 3  ;;  %p686_p13 = scmp.lt.s32.totalorder (!%p586_p10), %s2260_s24, 3 }
  0x26   : > { %2806 = sst [smem:[#allocation18_spill]] %s2443_s0 }
  0x27   : > { %s2807_s29 = sld [smem:[#allocation19_spill]] (!%p586_p10) }
  0x28   : > { %s683_s17 = scalar_select %p682_p12, %s2264_s25, 1 }
  0x29   : > { %s2454_s27 = scalar_select %p686_p13, %s2260_s24, 3 }
  0x2a   : > { %s1883_s14 = sshll.u32 %s683_s17, 3  ;;  %s2810_s3 = sld [smem:[#allocation22_spill]] }
  0x2b   : > { %s1935_s22 = sshll.u32 %s2454_s27, 4  ;;  %s2811_s5 = sld [smem:[#allocation23_spill]] }
  0x2c   : > { %s2497_s17 = scalar_lea.vmem %s2759_s9, %s1935_s22  ;;  %s721_s15 = scalar_lea.vmem %s2760_s10, %s2454_s27 }
  0x2d   : > { %s685_s30 = scalar_lea.vmem %s2807_s29, %s1883_s14  ;;  %s729_s21 = scalar_lea.vmem %s2762_s12, %s2454_s27 }
  0x2e   : > { %s2813_s16 = sld [smem:[#allocation9_spill]] }
  0x30   : > { %s2471_s24 = scalar_lea.vmem %s2810_s3, %s1935_s22  ;;  %s2812_s3 = sld [smem:[#allocation27_spill]] }
  0x31   : > { %s2480_s23 = scalar_lea.vmem %s2811_s5, %s1935_s22  ;;  %s1938_s5 = sshll.u32 %s2454_s27, 6 }
  0x32   : > { %s2511_s2 = scalar_lea.vmem %s2761_s11, %s1938_s5  ;;  %s675_s22 = scalar_lea.vmem [#allocation3], %s2449_s26 }
  0x34   : > { %p1893_p0 = scmp.ne.s32.totalorder %s2813_s16, 0 }
  0x36   : > { %s2516_s1 = scalar_lea.vmem %s2812_s3, %s1883_s14  ;;  %738 = sbr.rel (%p1893_p0) target bundleno = 61 (0x3d), region = 84 }
  0x3b   : > { %v739_v0 = vld [vmem:[%s685_s30] sm:$0xff]  ;;  %vm740_vm0 = vcmask 261120  }
  0x3c   : > { %741 = vst.msk [vmem:[#allocation2] sm:$0xff] %vm740_vm0, %v739_v0 }
  0x3d PF: > { %vm745_vm1 = vcmask 261120   ;;  %v2146_v8 = vld [vmem:[%s2471_s24 + $0x8] sm:$0xff]   ;;  %v2278_v9 = vmov 0.0   ;;  %vm2279_vm2 = vmmov 0   ;;  %v2147_v10 = vld [vmem:[%s2471_s24] sm:$0xff]   ;;  %s2814_s30 = sld [smem:[#allocation20_spill]]  ;;  %s2818_s28 = scalar_lea.vmem %s2754_s4, %s2454_s27 }
  0x3e   : > { %1973 = vmatprep.subr.bf16.mxu0 %v2278_v9  ;;  %1977 = vmatprep.mubr.msk.bf16.mxu0 %vm2279_vm2, %v2278_v9  ;;  %s2816_s29 = sld [smem:[#allocation21_spill]]  ;;  %v1896_v21 = vld [vmem:[%s2818_s28] ss:$0 sm:$0xff]  ;;  %s2280_s13 = smov 104   ;;  %vm858_vm3 = vcmask 64512   ;;  %vm1109_vm4 = vcmask 1043456  }
  0x3f   : > { %1974 = vmatpush3.bf16.msra.mxu0 %v2146_v8  ;;  %1993 = vmatprep.subr.bf16.mxu1 %v2278_v9  ;;  %s2281_s25 = smov 120   ;;  %s2282_s16 = smov 112   ;;  %vm1310_vm5 = vcmask 130048   ;;  %vm1312_vm6 = vcmask 195584  }
  0x40   : > { %1975 = vmatprep.subr.bf16.mxu0 %v2278_v9  ;;  %1995 = vmatprep.mubr.msk.bf16.mxu1 %vm2279_vm2, %v2278_v9  ;;  %s2283_s3 = smov 96   ;;  %s2284_s5 = smov 64  }
  0x41   : > { %s2287_s14 = smov 24   ;;  %s2820_s19 = scalar_lea.vmem %s2757_s7, %s2454_s27 }
  0x43   : > { %v2520_v1 = vld [vmem:[#allocation2] sm:$0xff]  ;;  %1976 = vmatpush3.bf16.msra.mxu0 %v2147_v10  ;;  %s2815_s24 = scalar_lea.vmem %s2814_s30, %s2454_s27  ;;  %s2285_s30 = smov 8  }
  0x44   : > { %v746_v2 = vsel %vm745_vm1, %v2520_v1, 0.0  ;;  %1981 = vmatprep.subr.bf16.mxu0 %v2278_v9  ;;  %v1894_v15 = vld [vmem:[%s2815_s24] ss:$0 sm:$0xff]  ;;  %s2817_s20 = scalar_lea.vmem %s2816_s29, %s2454_s27  ;;  %s2286_s24 = smov 16  }
  0x45   : > { %747 = vadd.xlane.f32.xlu0 %v746_v2  ;;  %v1895_v17 = vld [vmem:[%s2817_s20] ss:$0 sm:$0xff]  ;;  %s2819_s29 = scalar_lea.vmem %s2756_s6, %s2454_s27 }
  0xce   : > { %v748_v3 = vpop.xlane.xlu0 %747 }
  0xcf   : > { %v750_v4 = vmul.f32 0.03125, %v748_v3 }
  0xd1   : > { %v751_v5 = vsub.f32 %v2520_v1, %v750_v4 }
  0xd3   : > { %v752_v6 = vmul.f32 %v751_v5, %v751_v5 }
  0xd5   : > { %v753_v7 = vsel %vm745_vm1, %v752_v6, 0.0 }
  0xd6   : > { %754 = vadd.xlane.f32.xlu0 %v753_v7 }
 0x15f   : > { %v755_v11 = vpop.xlane.xlu0 %754 }
 0x160   : > { %v756_v12 = vmul.f32 0.03125, %v755_v11 }
 0x162   : > { %v757_v13 = vadd.f32 1e-05, %v756_v12 }
 0x164   : > { %2160 = vrsqrt.f32 %v757_v13 }
 0x171   : > { %v2161_v14 = vpop.eup %2160 }
 0x172   : > { %v759_v16 = vmul.f32 %v2161_v14, %v751_v5 }
 0x174   : > { %v766_v18 = vmul.f32 %v1894_v15, %v759_v16 }
 0x176   : > { %v773_v19 = vadd.f32 %v1895_v17, %v766_v18 }
 0x178   : > { %v774_v20 = vpack.c.bf16 %v773_v19, %v773_v19 }
 0x17a   : > { %1978 = vmatmul.mubr.msk.bf16.vlgmr.msra.gmra.mxu0 %vm745_vm1, %v774_v20 }
 0x17b   : > { %1983 = vmatprep.mubr.msk.bf16.mxu0 %vm2279_vm2, %v2278_v9 }
 0x23a   : > { %v835_v22 = vpop.f32.mrf.mxu0 }
 0x23b   : > { %v836_v23 = vadd.f32 %v1896_v21, %v835_v22 }
 0x23c   : > { %v1979_v24 = vpop.f32.mrf.mxu0 }
 0x23d   : > { %848 = vrot.lane.b32.xlu0 %v836_v23, %s2280_s13  ;;  %842 = vrot.lane.b32.xlu1 %v836_v23, %s2281_s25  ;;  %v2554_v27 = vpack.c.bf16 %v836_v23, %v836_v23 }
 0x23e   : > { %v838_v25 = vpop.f32.mrf.mxu0 }
 0x240   : > { %v1980_v26 = vpop.f32.mrf.mxu0 }
 0x241   : > { %845 = vrot.lane.b32.xlu1 %v836_v23, %s2282_s16 }
 0x245   : > { %856 = vrot.lane.b32.xlu1 %v2554_v27, %s2283_s3 }
 0x2af   : > { %v843_v28 = vpop.permute.xlu1 %842  ;;  %v849_v32 = vpop.permute.xlu0 %848 }
 0x2b0   : > { %v2557_v29 = vpack.c.bf16 %v843_v28, %v843_v28  ;;  %v2563_v34 = vpack.c.bf16 %v849_v32, %v849_v32 }
 0x2b2   : > { %906 = vrot.lane.b32.xlu1 %v2557_v29, %s2283_s3 }
 0x2b3   : > { %v846_v30 = vpop.permute.xlu1 %845 }
 0x2b4   : > { %v2560_v31 = vpack.c.bf16 %v846_v30, %v846_v30 }
 0x2b6   : > { %955 = vrot.lane.b32.xlu1 %v2560_v31, %s2283_s3 }
 0x2b7   : > { %v857_v33 = vpop.permute.xlu1 %856 }
 0x2b8   : > { %v863_v35 = vsel %vm858_vm3, %v857_v33, 0 }
 0x2b9   : > { %1982 = vmatpush3.bf16.xpose.msra.mxu0 %v863_v35 }
 0x2ba   : > { %1004 = vrot.lane.b32.xlu1 %v2563_v34, %s2283_s3  ;;  %1987 = vmatprep.subr.bf16.mxu0 %v2278_v9  ;;  %s2822_s3 = sld [smem:[#allocation9_spill]] }
 0x2c0   : > { %1984 = vmatmul.mubr.msk.bf16.vlgmr.msra.gmra.mxu0 %vm858_vm3, %v2554_v27  ;;  %p1927_p1 = scmp.ne.s32.totalorder %s2822_s3, 3 }
 0x2c1   : > { %1989 = vmatprep.mubr.msk.bf16.mxu0 %vm2279_vm2, %v2278_v9 }
 0x324   : > { %v907_v36 = vpop.permute.xlu1 %906 }
 0x325   : > { %v912_v37 = vsel %vm858_vm3, %v907_v36, 0 }
 0x326   : > { %1988 = vmatpush3.bf16.xpose.msra.mxu0 %v912_v37 }
 0x327   : > { %1999 = vmatprep.subr.bf16.mxu0 %v2278_v9 }
 0x328   : > { %v956_v38 = vpop.permute.xlu1 %955 }
 0x329   : > { %v961_v39 = vsel %vm858_vm3, %v956_v38, 0 }
 0x32a   : > { %1994 = vmatpush3.bf16.xpose.msra.mxu1 %v961_v39 }
 0x32b   : > { %2005 = vmatprep.subr.bf16.mxu1 %v2278_v9 }
 0x32c   : > { %v1005_v40 = vpop.permute.xlu1 %1004 }
 0x32d   : > { %v1010_v41 = vsel %vm858_vm3, %v1005_v40, 0  ;;  %1990 = vmatmul.mubr.msk.bf16.vlgmr.msra.gmra.mxu0 %vm858_vm3, %v2557_v29 }
 0x32e   : > { %2000 = vmatpush3.bf16.xpose.msra.mxu0 %v1010_v41  ;;  %2001 = vmatprep.mubr.msk.bf16.mxu0 %vm2279_vm2, %v2278_v9 }
 0x32f   : > { %2011 = vmatprep.subr.bf16.mxu0 %v2278_v9 }
 0x331   : > { %1996 = vmatmul.mubr.msk.bf16.vlgmr.msra.gmra.mxu1 %vm858_vm3, %v2560_v31 }
 0x332   : > { %2007 = vmatprep.mubr.msk.bf16.mxu1 %vm2279_vm2, %v2278_v9 }
 0x335   : > { %2002 = vmatmul.mubr.msk.bf16.vlgmr.msra.gmra.mxu0 %vm858_vm3, %v2563_v34 }
 0x336   : > { %2013 = vmatprep.mubr.msk.bf16.mxu0 %vm2279_vm2, %v2278_v9 }
 0x380   : > { %v899_v42 = vpop.f32.mrf.mxu0 }
 0x381   : > { %v1052_v43 = vmul.f32 0.35355338, %v899_v42 }
 0x382   : > { %v1985_v44 = vpop.f32.mrf.mxu0 }
 0x383   : > { %v1056_v45 = vsel %vm858_vm3, %v1052_v43, -inf }
 0x384   : > { %1057 = vmax.xlane.f32.xlu1 %v1056_v45  ;;  %v902_v46 = vpop.f32.mrf.mxu0 }
 0x386   : > { %v1986_v47 = vpop.f32.mrf.mxu0 }
 0x3ed   : > { %v948_v48 = vpop.f32.mrf.mxu0 }
 0x3ee   : > { %v1053_v49 = vmul.f32 0.35355338, %v948_v48 }
 0x3ef   : > { %v1991_v50 = vpop.f32.mrf.mxu0 }
 0x3f0   : > { %v1059_v51 = vsel %vm858_vm3, %v1053_v49, -inf }
 0x3f1   : > { %v997_v52 = vpop.f32.mrf.mxu1  ;;  %1060 = vmax.xlane.f32.xlu0 %v1059_v51  ;;  %v951_v53 = vpop.f32.mrf.mxu0 }
 0x3f2   : > { %v1054_v54 = vmul.f32 0.35355338, %v997_v52  ;;  %v2148_v52 = vld [vmem:[%s2480_s23 + $0x8] sm:$0xff]   ;;  %v2149_v53 = vld [vmem:[%s2480_s23] sm:$0xff]  }
 0x3f3   : > { %v1992_v55 = vpop.f32.mrf.mxu0  ;;  %v1997_v56 = vpop.f32.mrf.mxu1 }
 0x3f4   : > { %v1062_v57 = vsel %vm858_vm3, %v1054_v54, -inf }
 0x3f5   : > { %v1000_v58 = vpop.f32.mrf.mxu1  ;;  %1063 = vmax.xlane.f32.xlu1 %v1062_v57  ;;  %v1046_v59 = vpop.f32.mrf.mxu0 }
 0x3f6   : > { %v1055_v60 = vmul.f32 0.35355338, %v1046_v59 }
 0x3f7   : > { %v1998_v61 = vpop.f32.mrf.mxu1  ;;  %v2003_v62 = vpop.f32.mrf.mxu0 }
 0x3f8   : > { %v1065_v63 = vsel %vm858_vm3, %v1055_v60, -inf }
 0x3f9   : > { %1066 = vmax.xlane.f32.xlu0 %v1065_v63  ;;  %v1049_v0 = vpop.f32.mrf.mxu0 }
 0x3fb   : > { %v2004_v2 = vpop.f32.mrf.mxu0 }
 0x406   : > { %1104 = vrot.lane.b32.xlu1 %v2554_v27, %s2284_s5 }
 0x40d   : > { %v1058_v3 = vpop.xlane.xlu1 %1057 }
 0x40e   : > { %v1068_v4 = vsub.f32 %v1052_v43, %v1058_v3 }
 0x410   : > { %v1072_v5 = vmul.f32 1.442695, %v1068_v4 }
 0x412   : > { %2162 = vpow2.f32 %v1072_v5 }
 0x41f   : > { %v2163_v6 = vpop.eup %2162 }
 0x420   : > { %v1080_v7 = vsel %vm858_vm3, %v2163_v6, 0.0 }
 0x42a   : > { %1081 = vadd.xlane.f32.xlu1 %v1080_v7 }
 0x47a   : > { %v1061_v8 = vpop.xlane.xlu0 %1060 }
 0x47b   : > { %v1069_v10 = vsub.f32 %v1053_v49, %v1061_v8 }
 0x47d   : > { %v1074_v11 = vmul.f32 1.442695, %v1069_v10 }
 0x47e   : > { %v1064_v12 = vpop.xlane.xlu1 %1063 }
 0x47f   : > { %2164 = vpow2.f32 %v1074_v11  ;;  %v1070_v13 = vsub.f32 %v1054_v54, %v1064_v12  ;;  %v1911_v12 = vld [vmem:[%s2819_s29] ss:$0 sm:$0xff] }
 0x481   : > { %v1076_v14 = vmul.f32 1.442695, %v1070_v13 }
 0x482   : > { %v1105_v15 = vpop.permute.xlu1 %1104  ;;  %v1067_v16 = vpop.xlane.xlu0 %1066 }
 0x483   : > { %2166 = vpow2.f32 %v1076_v14  ;;  %v1111_v17 = vsel %vm1109_vm4, %v1105_v15, 0  ;;  %v1071_v18 = vsub.f32 %v1055_v60, %v1067_v16 }
 0x484   : > { %2006 = vmatpush3.bf16.msra.mxu1 %v1111_v17 }
 0x485   : > { %v1078_v19 = vmul.f32 1.442695, %v1071_v18  ;;  %2017 = vmatprep.subr.bf16.mxu1 %v2278_v9 }
 0x487   : > { %2168 = vpow2.f32 %v1078_v19 }
 0x48c   : > { %v2165_v20 = vpop.eup %2164 }
 0x48d   : > { %v1083_v21 = vsel %vm858_vm3, %v2165_v20, 0.0 }
 0x48e   : > { %1084 = vadd.xlane.f32.xlu0 %v1083_v21 }
 0x490   : > { %v2167_v22 = vpop.eup %2166 }
 0x491   : > { %v1086_v23 = vsel %vm858_vm3, %v2167_v22, 0.0 }
 0x492   : > { %1087 = vadd.xlane.f32.xlu1 %v1086_v23 }
 0x494   : > { %v2169_v24 = vpop.eup %2168 }
 0x495   : > { %v1089_v25 = vsel %vm858_vm3, %v2169_v24, 0.0 }
 0x496   : > { %1090 = vadd.xlane.f32.xlu0 %v1089_v25 }
 0x4a3   : > { %1201 = vrot.lane.b32.xlu1 %v2560_v31, %s2284_s5 }
 0x4a7   : > { %1249 = vrot.lane.b32.xlu1 %v2563_v34, %s2284_s5 }
 0x4ac   : > { %1153 = vrot.lane.b32.xlu0 %v2557_v29, %s2284_s5  ;;  %s2823_s5 = sld [smem:[#allocation24_spill]] (!%p1927_p1) }
 0x4b3   : > { %v1082_v26 = vpop.xlane.xlu1 %1081 }
 0x4b4   : > { %2170 = vrcp.f32 %v1082_v26 }
 0x4c1   : > { %v2171_v27 = vpop.eup %2170 }
 0x4c2   : > { %v1093_v28 = vmul.f32 %v2171_v27, %v2163_v6 }
 0x4c4   : > { %v1100_v30 = vpack.c.bf16 %v1093_v28, %v1093_v28 }
 0x4c6   : > { %2008 = vmatmul.mubr.msk.bf16.vlgmr.msra.gmra.mxu1 %vm858_vm3, %v1100_v30  ;;  %v1912_v30 = vld [vmem:[%s2820_s19] ss:$0 sm:$0xff] }
 0x4c7   : > { %2019 = vmatprep.mubr.msk.bf16.mxu1 %vm2279_vm2, %v2278_v9 }
 0x517   : > { %v1085_v32 = vpop.xlane.xlu0 %1084 }
 0x518   : > { %2172 = vrcp.f32 %v1085_v32 }
 0x51b   : > { %v1088_v33 = vpop.xlane.xlu1 %1087 }
 0x51c   : > { %2174 = vrcp.f32 %v1088_v33 }
 0x51f   : > { %v1202_v31 = vpop.permute.xlu1 %1201  ;;  %v1091_v35 = vpop.xlane.xlu0 %1090 }
 0x520   : > { %v1207_v34 = vsel %vm1109_vm4, %v1202_v31, 0  ;;  %2176 = vrcp.f32 %v1091_v35 }
 0x521   : > { %2018 = vmatpush3.bf16.msra.mxu1 %v1207_v34 }
 0x522   : > { %2029 = vmatprep.subr.bf16.mxu1 %v2278_v9 }
 0x523   : > { %v1154_v29 = vpop.permute.xlu0 %1153  ;;  %v1250_v39 = vpop.permute.xlu1 %1249 }
 0x524   : > { %v1159_v36 = vsel %vm1109_vm4, %v1154_v29, 0  ;;  %v1255_v42 = vsel %vm1109_vm4, %v1250_v39, 0  ;;  %v2152_v29 = vld [vmem:[%s2511_s2 + $0x38] sm:$0xff]  }
 0x525   : > { %v2173_v37 = vpop.eup %2172  ;;  %2012 = vmatpush3.bf16.msra.mxu0 %v1159_v36  ;;  %v2153_v36 = vld [vmem:[%s2511_s2 + $0x30] sm:$0xff]   ;;  %v2156_v39 = vld [vmem:[%s2511_s2 + $0x18] sm:$0xff]  }
 0x526   : > { %2023 = vmatprep.subr.bf16.mxu0 %v2278_v9  ;;  %v1095_v38 = vmul.f32 %v2173_v37, %v2165_v20  ;;  %v2154_v37 = vld [vmem:[%s2511_s2 + $0x28] sm:$0xff]  }
 0x528   : > { %v1101_v40 = vpack.c.bf16 %v1095_v38, %v1095_v38  ;;  %v2155_v38 = vld [vmem:[%s2511_s2 + $0x20] sm:$0xff]  }
 0x529   : > { %v2175_v41 = vpop.eup %2174 }
 0x52a   : > { %2014 = vmatmul.mubr.msk.bf16.vlgmr.msra.gmra.mxu0 %vm858_vm3, %v1101_v40  ;;  %v1097_v43 = vmul.f32 %v2175_v41, %v2167_v22  ;;  %v2157_v40 = vld [vmem:[%s2511_s2 + $0x10] sm:$0xff]   ;;  %v2158_v41 = vld [vmem:[%s2511_s2 + $0x8] sm:$0xff]  }
 0x52b   : > { %2024 = vmatpush3.bf16.msra.mxu0 %v1255_v42  ;;  %2025 = vmatprep.mubr.msk.bf16.mxu0 %vm2279_vm2, %v2278_v9  ;;  %v2159_v42 = vld [vmem:[%s2511_s2] sm:$0xff]  }
 0x52c   : > { %v1102_v44 = vpack.c.bf16 %v1097_v43, %v1097_v43  ;;  %2037 = vmatprep.subr.bf16.mxu0 %v2278_v9  ;;  %v1914_v43 = vld [vmem:[%s721_s15] ss:$0 sm:$0xff] }
 0x52d   : > { %v2177_v45 = vpop.eup %2176 }
 0x52e   : > { %2020 = vmatmul.mubr.msk.bf16.vlgmr.msra.gmra.mxu1 %vm858_vm3, %v1102_v44  ;;  %v1099_v46 = vmul.f32 %v2177_v45, %v2169_v24  ;;  %v2151_v24 = vld [vmem:[%s2497_s17] sm:$0xff]  }
 0x52f   : > { %2033 = vmatprep.mubr.msk.bf16.mxu1 %vm2279_vm2, %v2278_v9  ;;  %2030 = vmatpush3.bf16.msra.mxu1 %v2148_v52 }
 0x530   : > { %v1103_v47 = vpack.c.bf16 %v1099_v46, %v1099_v46  ;;  %2031 = vmatprep.subr.bf16.mxu1 %v2278_v9 }
 0x532   : > { %2026 = vmatmul.mubr.msk.bf16.vlgmr.msra.gmra.mxu0 %vm858_vm3, %v1103_v47 }
 0x533   : > { %2041 = vmatprep.mubr.msk.bf16.mxu0 %vm2279_vm2, %v2278_v9  ;;  %2032 = vmatpush3.bf16.msra.mxu1 %v2149_v53 }
 0x534   : > { %2045 = vmatprep.subr.bf16.mxu1 %v2278_v9 }
 0x586   : > { %v1147_v48 = vpop.f32.mrf.mxu1 }
 0x588   : > { %v2009_v49 = vpop.f32.mrf.mxu1 }
 0x58a   : > { %v1150_v50 = vpop.f32.mrf.mxu1 }
 0x58c   : > { %v2010_v51 = vpop.f32.mrf.mxu1 }
 0x5ea   : > { %v1195_v54 = vpop.f32.mrf.mxu0 }
 0x5eb   : > { %1298 = vrot.lane.b32.xlu0 %v1195_v54, %s2285_s30 }
 0x5ec   : > { %v2015_v55 = vpop.f32.mrf.mxu0 }
 0x5ee   : > { %v1198_v56 = vpop.f32.mrf.mxu0  ;;  %v1243_v57 = vpop.f32.mrf.mxu1 }
 0x5ef   : > { %1302 = vrot.lane.b32.xlu1 %v1243_v57, %s2286_s24 }
 0x5f0   : > { %v2016_v58 = vpop.f32.mrf.mxu0  ;;  %v2021_v59 = vpop.f32.mrf.mxu1 }
 0x5f1   : > { %v1926_v59 = vld [vmem:[%s729_s21] ss:$0 sm:$0xff] }
 0x5f2   : > { %v1246_v60 = vpop.f32.mrf.mxu1  ;;  %v1291_v61 = vpop.f32.mrf.mxu0 }
 0x5f3   : > { %1306 = vrot.lane.b32.xlu0 %v1291_v61, %s2287_s14  ;;  %s2824_s14 = sld [smem:[#allocation25_spill]] (!%p1927_p1) }
 0x5f4   : > { %v2022_v62 = vpop.f32.mrf.mxu1  ;;  %v2027_v63 = vpop.f32.mrf.mxu0 }
 0x5f6   : > { %v1294_v0 = vpop.f32.mrf.mxu0 }
 0x5f8   : > { %v2028_v2 = vpop.f32.mrf.mxu0 }
 0x65d   : > { %v1299_v3 = vpop.permute.xlu0 %1298 }
 0x65e   : > { %v1309_v5 = vsel %vm858_vm3, %v1147_v48, %v1299_v3 }
 0x661   : > { %v1303_v4 = vpop.permute.xlu1 %1302 }
 0x662   : > { %v1311_v6 = vsel %vm1310_vm5, %v1309_v5, %v1303_v4 }
 0x665   : > { %v1307_v7 = vpop.permute.xlu0 %1306 }
 0x666   : > { %v1313_v8 = vsel %vm1312_vm6, %v1311_v6, %v1307_v7 }
 0x667   : > { %v1314_v10 = vpack.c.bf16 %v1313_v8, %v1313_v8 }
 0x669   : > { %2034 = vmatmul.mubr.msk.bf16.vlgmr.msra.gmra.mxu1 %vm745_vm1, %v1314_v10 }
 0x66a   : > { %2061 = vmatprep.mubr.msk.bf16.mxu1 %vm2279_vm2, %v2278_v9  ;;  %2046 = vmatpush3.bf16.msra.mxu1 %v2152_v29 }
 0x66b   : > { %2047 = vmatprep.subr.bf16.mxu1 %v2278_v9 }
 0x66e   : > { %2048 = vmatpush3.bf16.msra.mxu1 %v2153_v36 }
 0x66f   : > { %2049 = vmatprep.subr.bf16.mxu1 %v2278_v9 }
 0x672   : > { %2050 = vmatpush3.bf16.msra.mxu1 %v2154_v37 }
 0x673   : > { %2051 = vmatprep.subr.bf16.mxu1 %v2278_v9 }
 0x676   : > { %2052 = vmatpush3.bf16.msra.mxu1 %v2155_v38 }
 0x677   : > { %2053 = vmatprep.subr.bf16.mxu1 %v2278_v9 }
 0x67a   : > { %2054 = vmatpush3.bf16.msra.mxu1 %v2156_v39 }
 0x67b   : > { %2055 = vmatprep.subr.bf16.mxu1 %v2278_v9 }
 0x67e   : > { %2056 = vmatpush3.bf16.msra.mxu1 %v2157_v40 }
 0x67f   : > { %2057 = vmatprep.subr.bf16.mxu1 %v2278_v9 }
 0x682   : > { %2058 = vmatpush3.bf16.msra.mxu1 %v2158_v41 }
 0x683   : > { %2059 = vmatprep.subr.bf16.mxu1 %v2278_v9 }
 0x686   : > { %2060 = vmatpush3.bf16.msra.mxu1 %v2159_v42 }
 0x729   : > { %v1368_v11 = vpop.f32.mrf.mxu1 }
 0x72a   : > { %v1374_v13 = vadd.f32 %v1368_v11, %v2520_v1  ;;  %v2150_v1 = vld [vmem:[%s2497_s17 + $0x8] sm:$0xff]   ;;  %s2821_s17 = scalar_lea.vmem %s2758_s8, %s2454_s27 }
 0x72b   : > { %v2035_v14 = vpop.f32.mrf.mxu1  ;;  %2038 = vmatpush3.bf16.msra.mxu0 %v2150_v1  ;;  %v1913_v33 = vld [vmem:[%s2821_s17] ss:$0 sm:$0xff] }
 0x72c   : > { %v2640_v15 = vadd.f32 %v1911_v12, %v1374_v13  ;;  %2039 = vmatprep.subr.bf16.mxu0 %v2278_v9 }
 0x72d   : > { %v1371_v16 = vpop.f32.mrf.mxu1 }
 0x72e   : > { %v1385_v17 = vsel %vm745_vm1, %v2640_v15, 0.0 }
 0x72f   : > { %1386 = vadd.xlane.f32.xlu1 %v1385_v17  ;;  %v2036_v18 = vpop.f32.mrf.mxu1  ;;  %2040 = vmatpush3.bf16.msra.mxu0 %v2151_v24 }
 0x7b8   : > { %v1387_v19 = vpop.xlane.xlu1 %1386 }
 0x7b9   : > { %v1388_v20 = vmul.f32 0.03125, %v1387_v19 }
 0x7bb   : > { %v1389_v21 = vsub.f32 %v2640_v15, %v1388_v20 }
 0x7bd   : > { %v1390_v22 = vmul.f32 %v1389_v21, %v1389_v21 }
 0x7bf   : > { %v1391_v23 = vsel %vm745_vm1, %v1390_v22, 0.0 }
 0x7c0   : > { %1392 = vadd.xlane.f32.xlu0 %v1391_v23 }
 0x849   : > { %v1393_v25 = vpop.xlane.xlu0 %1392 }
 0x84a   : > { %v1394_v26 = vmul.f32 0.03125, %v1393_v25 }
 0x84c   : > { %v1395_v27 = vadd.f32 1e-05, %v1394_v26 }
 0x84e   : > { %2178 = vrsqrt.f32 %v1395_v27 }
 0x85b   : > { %v2179_v28 = vpop.eup %2178 }
 0x85c   : > { %v1397_v32 = vmul.f32 %v2179_v28, %v1389_v21 }
 0x85e   : > { %v1404_v31 = vmul.f32 %v1912_v30, %v1397_v32 }
 0x860   : > { %v1411_v35 = vadd.f32 %v1913_v33, %v1404_v31 }
 0x862   : > { %v1412_v34 = vpack.c.bf16 %v1411_v35, %v1411_v35 }
 0x864   : > { %2042 = vmatmul.mubr.msk.bf16.vlgmr.msra.gmra.mxu0 %vm745_vm1, %v1412_v34 }
 0x924   : > { %v1473_v44 = vpop.f32.mrf.mxu0 }
 0x925   : > { %v1474_v45 = vadd.f32 %v1914_v43, %v1473_v44 }
 0x926   : > { %v2043_v46 = vpop.f32.mrf.mxu0 }
 0x927   : > { %v1480_v47 = vmul.f32 0.044715, %v1474_v45  ;;  %v1479_v54 = vmul.f32 0.5, %v1474_v45 }
 0x928   : > { %v1476_v48 = vpop.f32.mrf.mxu0 }
 0x929   : > { %v1481_v49 = vmul.f32 %v1480_v47, %v1474_v45 }
 0x92a   : > { %v2044_v50 = vpop.f32.mrf.mxu0 }
 0x92b   : > { %v1482_v51 = vmul.f32 %v1481_v49, %v1474_v45 }
 0x92d   : > { %v1483_v52 = vadd.f32 %v1482_v51, %v1474_v45 }
 0x92f   : > { %v1484_v53 = vmul.f32 0.7978846, %v1483_v52 }
 0x931   : > { %2180 = vtanh.f32 %v1484_v53 }
 0x93e   : > { %v2181_v9 = vpop.eup %2180 }
 0x93f   : > { %v1486_v55 = vadd.f32 1.0, %v2181_v9 }
 0x941   : > { %v1487_v56 = vmul.f32 %v1486_v55, %v1479_v54 }
 0x943   : > { %v1488_v57 = vpack.c.bf16 %v1487_v56, %v1487_v56 }
 0x945   : > { %2062 = vmatmul.mubr.bf16.vlgmr.msra.gmra.mxu1 %v1488_v57 }
 0xa05   : > { %v1587_v58 = vpop.f32.mrf.mxu1 }
 0xa06   : > { %v1593_v60 = vadd.f32 %v1587_v58, %v2640_v15 }
 0xa07   : > { %v2063_v61 = vpop.f32.mrf.mxu1  ;;  %1607 = sbr.rel (%p1927_p1) target bundleno = 2881 (0xb41), region = 88 }
 0xa08   : > { %v1601_v62 = vadd.f32 %v1926_v59, %v1593_v60 }
 0xa09   : > { %v1590_v63 = vpop.f32.mrf.mxu1 }
 0xa0a   : > { %1602 = vst.msk [vmem:[#allocation2] sm:$0xff] %vm745_vm1, %v1601_v62  ;;  %1603 = vst.msk [vmem:[%s675_s22] sm:$0xff] %vm745_vm1, %v1601_v62 }
 0xa0b   : > { %v2064_v0 = vpop.f32.mrf.mxu1 }
 0xa0c   : > { %v1610_v2 = vsel %vm745_vm1, %v1601_v62, 0.0  ;;  %v1928_v13 = vld [vmem:[%s2823_s5] ss:$0 sm:$0xff] }
 0xa0d   : > { %1611 = vadd.xlane.f32.xlu0 %v1610_v2  ;;  %v1929_v15 = vld [vmem:[%s2824_s14] ss:$0 sm:$0xff] }
 0xa96   : > { %v1612_v3 = vpop.xlane.xlu0 %1611 }
 0xa97   : > { %v1613_v4 = vmul.f32 0.03125, %v1612_v3 }
 0xa99   : > { %v1614_v5 = vsub.f32 %v1601_v62, %v1613_v4 }
 0xa9b   : > { %v1615_v6 = vmul.f32 %v1614_v5, %v1614_v5 }
 0xa9d   : > { %v1616_v7 = vsel %vm745_vm1, %v1615_v6, 0.0 }
 0xa9e   : > { %1617 = vadd.xlane.f32.xlu0 %v1616_v7 }
 0xb27   : > { %v1618_v8 = vpop.xlane.xlu0 %1617 }
 0xb28   : > { %v1619_v10 = vmul.f32 0.03125, %v1618_v8 }
 0xb2a   : > { %v1620_v11 = vadd.f32 1e-05, %v1619_v10 }
 0xb2c   : > { %2182 = vrsqrt.f32 %v1620_v11 }
 0xb39   : > { %v2183_v12 = vpop.eup %2182 }
 0xb3a   : > { %v1622_v14 = vmul.f32 %v2183_v12, %v1614_v5 }
 0xb3c   : > { %v1629_v16 = vmul.f32 %v1928_v13, %v1622_v14 }
 0xb3e   : > { %v1636_v17 = vadd.f32 %v1929_v15, %v1629_v16 }
 0xb40   : > { %1637 = vst.msk [vmem:[%s2516_s1] sm:$0xff] %vm745_vm1, %v1636_v17 }
 0xb41 PF: > { %s2825_s23 = sld [smem:[#allocation9_spill]]  ;;  %s1658_s28 = sshll.u32 %s675_s22, 4  ;;  %s1659_s28 = int_to_ptr.vmem [resolvable:$true] %s1658_s28 }
 0xb42   : > { %s2826_s18 = sld [smem:[#allocation10_spill]]  ;;  %s2184_s27 = scalar_lea.vmem %s1659_s28, 128 }
 0xb43   : > { %s2827_s29 = sld [smem:[#allocation7_spill]]  ;;  %p2185_p2 = scmp.ne.s32.totalorder %s1659_s28, %s2184_s27 }
 0xb44   : > { %s2829_s16 = sld [smem:[#allocation26_spill]]  ;;  %s2288_s1 = smov [#allocation3]  }
 0xb45   : > { %p2186_p4 = pnand %p2185_p2, %p2425_p3  ;;  %s2188_s21 = sshll.u32 %s2288_s1, 4  ;;  %s2189_s21 = int_to_ptr.vmem [resolvable:$false] %s2188_s21 }
 0xb46   : > { %s2190_s5 = scalar_lea.vmem %s2189_s21, 256  ;;  %p2191_p6 = scmp.lt.s32.totalorder %s1659_s28, %s2189_s21 }
 0xb47   : > { %s1931_s0 = sshll.u32 %s2825_s23, 1  ;;  %p2187_p5 = pneg %p2186_p4 }
 0xb48   : > { %s1654_s19 = sadd.s32 %s2826_s18, %s1931_s0  ;;  %p2192_p7 = scmp.lt.s32.totalorder %s2190_s5, %s2184_s27 }
 0xb49   : > { %s1932_s13 = sshll.u32 %s1654_s19, 7  ;;  %s2830_s15 = sand.u32 1, %s2827_s29  }
 0xb4a   : > { %s1656_s2 = scalar_lea.hbm %s2829_s16, %s1932_s13  ;;  %s1639_s3 = scalar_lea.sflag [#allocation4], %s2830_s15 }
 0xb4b   : > { %p2193_p9 = por %p2192_p7, %p2191_p6 }
 0xb4d   : > { %p2194_p10 = pnand %p2193_p9, %p2187_p5 }
 0xb4f   : > { %2197 = shalt.err (!%p2194_p10)
}
 0xb50   : > { %s2198_s26 = scalar_lea.hbm %s1656_s2, 128  ;;  %s2202_s24 = scalar_lea.hbm %s2829_s16, 1024 }
 0xb51   : > { %p2199_p11 = scmp.ne.s32.totalorder %s1656_s2, %s2198_s26  ;;  %p2203_p0 = scmp.lt.s32.totalorder %s1656_s2, %s2829_s16 }
 0xb52   : > { %p2204_p1 = scmp.lt.s32.totalorder %s2202_s24, %s2198_s26 }
 0xb53   : > { %p2200_p12 = pnand %p2199_p11, %p2425_p3 }
 0xb54   : > { %p2205_p2 = por %p2204_p1, %p2203_p0 }
 0xb55   : > { %p2201_p13 = pneg %p2200_p12 }
 0xb57   : > { %p2206_p4 = pnand %p2205_p2, %p2201_p13 }
 0xb59   : > { %2209 = shalt.err (!%p2206_p4)
}
 0xb5a   : > { %2065 = dma.vmem_to_hbm [thread:$0]  (%p2425_p3), %s1659_s28, 128, %s1656_s2, %s1639_s3  }
 0xb5b PF: > { %s2831_s18 = sld [smem:[#allocation13_spill]] }
 0xb5c   : > { %s2832_s29 = sld [smem:[#allocation6_spill]] }
 0xb61   : > { %p2071_p5 = scmp.ge.s32.totalorder %s2831_s18, 2 }
 0xb62   : > { %s1673_s19 = sand.u32 1, %s2832_s29  }
 0xb63   : > { %p2068_p6 = pnand %p2071_p5, %p2434_p8  ;;  %s1674_s13 = scalar_lea.sflag [#allocation4], %s1673_s19 }
 0xb65   : > { %p2069_p7 = pneg %p2068_p6 }
 0xb67   : > { %2243 = dma.done.wait (%p2069_p7), %s1674_s13, 128  }
 0xb68   : > { %2245 = vsyncadd (%p2069_p7), %s1674_s13, 4294967168  ;;  %s30_s28 = sadd.s32 1, %s2831_s18   ;;  %s2834_s21 = sld [smem:[#allocation7_spill]] }
 0xb69   : > { %p27_p9 = scmp.ge.s32.totalorder %s30_s28, 10   ;;  %s2835_s22 = sld [smem:[#allocation8_spill]] }
 0xb6a   : > { %s2836_s23 = sld [smem:[#allocation18_spill]] }
 0xb6b   : > { %s2837_s24 = sld [smem:[#allocation11_spill]]  ;;  %29 = sbr.rel (!%p27_p9) target bundleno = 15 (0xf), region = 171 }
 0xb6c   : > { %s2838_s25 = sld [smem:[#allocation12_spill]] }
 0xb6d   : > { %s2839_s26 = sld [smem:[#allocation14_spill]] }
 0xb6e   : > { %s2840_s27 = sld [smem:[#allocation16_spill]] }
 0xb70   :  { %1686 = vsyncpa [#allocation4], 1 }
 0xb71   :  { %1688 = vsyncpa [#allocation4 + $0x1], 1 }

// kernel: joint_model_forward.25
= control target key start
LH: loop header
LB: loop body
LE: loop exit
PB: predicated region body
PF: predicated region fallthrough
CT: control target
= control target key end

     0   :  { %11 = vsyncpa [#allocation3], 0  ;;  %v198_v1 = vmov 0.0   ;;  %vm199_vm0 = vmmov 0   ;;  %vm46_vm1 = vcmask 130048   ;;  %s258_s0 = inlined_call_operand.vmem [shape: f32[16,16], index: 0, kind: input, shape index: {}]   ;;  %s259_s1 = inlined_call_operand.vmem [shape: bf16[16,64], index: 1, kind: input, shape index: {}]   ;;  %s260_s2 = inlined_call_operand.vmem [shape: f32[1,64], index: 2, kind: input, shape index: {}]   ;;  %s261_s3 = inlined_call_operand.vmem [shape: f32[16,64], index: 3, kind: input, shape index: {}]   ;;  %s262_s4 = inlined_call_operand.hbm [shape: f32[16,64], index: 4, kind: output, shape index: {0}]   ;;  %s263_s5 = inlined_call_operand.hbm [shape: f32[1,1], index: 5, kind: output, shape index: {1}]  }
   0x1   :  { %v165_v0 = vld [vmem:[%s259_s1] sm:$0xff]   ;;  %150 = vmatprep.subr.bf16.mxu0 %v198_v1  ;;  %v29_v3 = vld [vmem:[%s258_s0 + $0x8] sm:$0xff]  ;;  %152 = vmatprep.mubr.msk.bf16.mxu0 %vm199_vm0, %v198_v1 }
   0x2   :  { %v28_v2 = vld [vmem:[%s258_s0] sm:$0xff]  ;;  %151 = vmatpush3.bf16.msra.mxu0 %v165_v0 }
   0x3   :  { %v30_v4 = vpack.c.bf16 %v29_v3, %v28_v2 }
   0x4   :  { %12 = vsyncpa [#allocation4], 0  ;;  %v145_v5 = vld [vmem:[%s260_s2] ss:$0 sm:$0xff]  ;;  %vm91_vm2 = vcmask 523264   ;;  %v95_v12 = vld [vmem:[%s261_s3 + $0x8] sm:$0xff] }
   0x5   :  { %153 = vmatmul.mubr.msk.bf16.vlgmr.msra.gmra.mxu0 %vm46_vm1, %v30_v4  ;;  %v94_v7 = vld [vmem:[%s261_s3] sm:$0xff]  ;;  %s200_s2 = smov [#allocation2]  }
   0x6   :  { %s121_s28 = sshll.u32 %s200_s2, 4  ;;  %s122_s28 = int_to_ptr.vmem [resolvable:$true] %s121_s28 }
   0x7   :  { %s166_s29 = scalar_lea.vmem %s122_s28, 256  ;;  %p171_p1 = scmp.lt.s32.totalorder %s122_s28, %s122_s28 }
   0x8   :  { %p167_p0 = scmp.ne.s32.totalorder %s122_s28, %s166_s29  ;;  %p172_p2 = scmp.lt.s32.totalorder %s166_s29, %s166_s29 }
   0xa   :  { %p173_p3 = por %p172_p2, %p171_p1 }
   0xc   :  { %p174_p4 = pnand %p173_p3, %p167_p0 }
  0xc5   :  { %v84_v6 = vpop.f32.mrf.mxu0 }
  0xc6   :  { %v85_v8 = vadd.f32 %v145_v5, %v84_v6 }
  0xc7   :  { %v154_v9 = vpop.f32.mrf.mxu0 }
  0xc8   :  { %92 = vst.msk [vmem:[#allocation2] sm:$0xff] %vm91_vm2, %v85_v8  ;;  %v96_v10 = vsub.f32 %v85_v8, %v94_v7 }
  0xc9   :  { %v87_v11 = vpop.f32.mrf.mxu0 }
  0xca   :  { %v88_v13 = vadd.f32 %v145_v5, %v87_v11  ;;  %v99_v16 = vmul.f32 %v96_v10, %v96_v10 }
  0xcb   :  { %v155_v14 = vpop.f32.mrf.mxu0 }
  0xcc   :  { %93 = vst.msk [vmem:[#allocation2 + $0x8] sm:$0xff] %vm91_vm2, %v88_v13  ;;  %v97_v15 = vsub.f32 %v88_v13, %v95_v12  ;;  %v101_v18 = vsel %vm91_vm2, %v99_v16, 0.0 }
  0xce   :  { %v100_v17 = vmul.f32 %v97_v15, %v97_v15 }
  0xd0   :  { %v102_v19 = vsel %vm91_vm2, %v100_v17, 0.0 }
  0xd1   :  { %v103_v20 = vadd.f32 %v102_v19, %v101_v18 }
  0xd3   :  { %104 = vadd.xlane.f32.xlu0 %v103_v20 }
  0xd4   :  { %177 = shalt.err (!%p174_p4)
}
  0xd5   :  { %s201_s3 = smov 128   ;;  %s202_s30 = smov 8  }
  0xd6   :  { %127 = dma.vmem_to_hbm [thread:$0]  %s122_s28, 256, %s262_s4, [#allocation3], %s201_s3, %s201_s3, %s202_s30  }
  0xd7   :  { %s203_s9 = smov [#allocation5]  }
 0x15c   :  { %v105_v21 = vpop.xlane.xlu0 %104 }
 0x15d   :  { %v106_v22 = vrot.slane %v105_v21, 4 }
 0x15f   :  { %v107_v23 = vadd.f32 %v106_v22, %v105_v21 }
 0x161   :  { %v108_v24 = vrot.slane %v107_v23, 2 }
 0x163   :  { %v109_v25 = vadd.f32 %v108_v24, %v107_v23 }
 0x165   :  { %v110_v26 = vrot.slane %v109_v25, 1 }
 0x167   :  { %v111_v27 = vadd.f32 %v110_v26, %v109_v25 }
 0x169   :  { %156 = vpush %v111_v27 }
 0x19a   :  { %s157_s8 = spop %156 }
 0x19b   :  { %115 = sst [smem:[#allocation5]] %s157_s8 }
 0x19c   :  { %135 = dma.smem_to_hbm %s203_s9, 16, %s263_s5, [#allocation4]  }
 0x19d   :  { %194 = dma.done.wait [#allocation3], 256  }
 0x19e   :  { %195 = vsyncadd [#allocation3], 4294967040 }
 0x19f   :  { %196 = dma.done.wait [#allocation4], 16  }
 0x1a0   :  { %197 = vsyncadd [#allocation4], 4294967280 }
 0x1a1   :  { %142 = sfence }
 0x1a2   :  { %143 = vsyncpa [#allocation3], 1 }
 0x1a3   :  { %144 = vsyncpa [#allocation4], 1 }

// kernel: joint_model_forward.13
= control target key start
LH: loop header
LB: loop body
LE: loop exit
PB: predicated region body
PF: predicated region fallthrough
CT: control target
= control target key end

     0   :  { %s399_s12 = smov 0   ;;  %s431_s0 = inlined_call_operand.vmem [shape: f32[32,64], index: 0, kind: input, shape index: {}]   ;;  %s432_s1 = inlined_call_operand.vmem [shape: bf16[64,32], index: 1, kind: input, shape index: {}]   ;;  %s433_s2 = inlined_call_operand.vmem [shape: f32[1,32], index: 2, kind: input, shape index: {}]   ;;  %s434_s3 = inlined_call_operand.vmem [shape: f32[32,32], index: 3, kind: output, shape index: {}]  }
   0x1 LB: > { %s321_s13 = sadd.s32 4294967295, %s375_s12   ;;  %p325_p0 = scmp.ge.s32.totalorder %s375_s12, 1  ;;  %s375_s12 = sphi %s399_s12, %s13_s12  }
   0x2   : > { %p138_p1 = scmp.lt.s32.totalorder %s375_s12, 3 }
   0x4   : > { %p139_p2 = pnand %p325_p0, %p138_p1 }
   0x5   : > { %s326_s18 = sshll.u32 (!%p139_p2), %s321_s13, 1 }
   0x6   : > { %142 = sbr.rel (%p139_p2) target bundleno = 228 (0xe4), region = 32  ;;  %p163_p3 = scmp.lt.s32.totalorder (!%p139_p2), %s326_s18, 3 }
   0xb   : > { %v365_v0 = vld [vmem:[%s432_s1 + $0x18] sm:$0xff]   ;;  %v377_v1 = vmov 0.0   ;;  %v366_v2 = vld [vmem:[%s432_s1 + $0x10] sm:$0xff]   ;;  %vm378_vm0 = vmmov 0   ;;  %s436_s18 = smov (!%p163_p3, %s326_s18), 3  ;;  %v367_v3 = vld [vmem:[%s432_s1 + $0x8] sm:$0xff]  }
   0xc   : > { %343 = vmatprep.subr.bf16.mxu0 %v377_v1  ;;  %351 = vmatprep.mubr.msk.bf16.mxu0 %vm378_vm0, %v377_v1  ;;  %s327_s21 = sshll.u32 %s436_s18, 3  ;;  %v368_v4 = vld [vmem:[%s432_s1] sm:$0xff]   ;;  %vm217_vm1 = vcmask 523264   ;;  %vm262_vm2 = vcmask 261120  }
   0xd   : > { %344 = vmatpush3.bf16.msra.mxu0 %v365_v0  ;;  %s166_s24 = scalar_lea.vmem %s431_s0, %s327_s21  ;;  %v330_v8 = vld [vmem:[%s433_s2] ss:$0 sm:$0xff]  ;;  %s172_s4 = scalar_lea.vmem %s434_s3, %s327_s21 }
   0xe   : > { %345 = vmatprep.subr.bf16.mxu0 %v377_v1  ;;  %v175_v5 = vld [vmem:[%s166_s24] sm:$0xff]  ;;  %v176_v6 = vld [vmem:[%s166_s24 + $0x8] sm:$0xff] }
   0xf   : > { %v177_v7 = vpack.c.bf16 %v176_v6, %v175_v5 }
  0x11   : > { %346 = vmatpush3.bf16.msra.mxu0 %v366_v2 }
  0x12   : > { %347 = vmatprep.subr.bf16.mxu0 %v377_v1 }
  0x15   : > { %348 = vmatpush3.bf16.msra.mxu0 %v367_v3 }
  0x16   : > { %349 = vmatprep.subr.bf16.mxu0 %v377_v1 }
  0x19   : > { %350 = vmatpush3.bf16.msra.mxu0 %v368_v4 }
  0x1c   : > { %352 = vmatmul.mubr.msk.bf16.vlgmr.msra.gmra.mxu0 %vm217_vm1, %v177_v7 }
  0xdc   : > { %v255_v9 = vpop.f32.mrf.mxu0 }
  0xdd   : > { %v256_v10 = vadd.f32 %v330_v8, %v255_v9 }
  0xde   : > { %v353_v11 = vpop.f32.mrf.mxu0 }
  0xdf   : > { %263 = vst.msk [vmem:[%s172_s4] sm:$0xff] %vm262_vm2, %v256_v10 }
  0xe0   : > { %v258_v12 = vpop.f32.mrf.mxu0 }
  0xe1   : > { %v259_v13 = vadd.f32 %v330_v8, %v258_v12 }
  0xe2   : > { %v354_v14 = vpop.f32.mrf.mxu0 }
  0xe3   : > { %264 = vst.msk [vmem:[%s172_s4 + $0x8] sm:$0xff] %vm262_vm2, %v259_v13 }
  0xe4 PF: > { %s13_s12 = sadd.s32 1, %s375_s12  }
  0xe5   : > { %p10_p4 = scmp.ge.s32.totalorder %s13_s12, 4  }
  0xe7   :  { %12 = sbr.rel (!%p10_p4) target bundleno = 1 (0x1), region = 62 }

// kernel: joint_model_forward.24
= control target key start
LH: loop header
LB: loop body
LE: loop exit
PB: predicated region body
PF: predicated region fallthrough
CT: control target
= control target key end

     0   :  { %s2410_s0 = inlined_call_operand.vmem [shape: f32[2,16,16], index: 0, kind: input, shape index: {}]   ;;  %s2411_s1 = inlined_call_operand.vmem [shape: f32[1,1,16], index: 1, kind: input, shape index: {}]   ;;  %s2412_s2 = inlined_call_operand.vmem [shape: f32[1,1,16], index: 2, kind: input, shape index: {}]   ;;  %s2413_s3 = inlined_call_operand.vmem [shape: bf16[1,16,48], index: 3, kind: input, shape index: {}]   ;;  %s2414_s4 = inlined_call_operand.vmem [shape: f32[1,1,48], index: 4, kind: input, shape index: {}]   ;;  %s2415_s5 = inlined_call_operand.vmem [shape: bf16[1,16,16], index: 5, kind: input, shape index: {}]   ;;  %s2416_s6 = inlined_call_operand.vmem [shape: f32[1,1,16], index: 6, kind: input, shape index: {}]   ;;  %s2417_s7 = inlined_call_operand.vmem [shape: f32[1,1,16], index: 7, kind: input, shape index: {}]   ;;  %s2418_s8 = inlined_call_operand.vmem [shape: f32[1,1,16], index: 8, kind: input, shape index: {}]   ;;  %s2419_s9 = inlined_call_operand.vmem [shape: bf16[1,16,64], index: 9, kind: input, shape index: {}]   ;;  %s2420_s10 = inlined_call_operand.vmem [shape: f32[1,1,64], index: 10, kind: input, shape index: {}]   ;;  %s2421_s11 = inlined_call_operand.vmem [shape: bf16[1,64,16], index: 11, kind: input, shape index: {}]   ;;  %s2422_s12 = inlined_call_operand.vmem [shape: f32[1,1,16], index: 12, kind: input, shape index: {}]   ;;  %s2423_s13 = inlined_call_operand.vmem [shape: f32[1,16], index: 13, kind: input, shape index: {}]   ;;  %s2424_s14 = inlined_call_operand.vmem [shape: f32[1,16], index: 14, kind: input, shape index: {}]   ;;  %s2425_s15 = inlined_call_operand.hbm [shape: f32[1,2,16,16], index: 15, kind: output, shape index: {0}]   ;;  %s2426_s16 = inlined_call_operand.vmem [shape: f32[2,16,16], index: 16, kind: output, shape index: {1}]  }
   0x1   :  { %2431 = sst [smem:[#allocation8_spill]] %s2410_s0 }
   0x2   :  { %2432 = sst [smem:[#allocation9_spill]] %s2411_s1 }
   0x3   :  { %2433 = sst [smem:[#allocation10_spill]] %s2412_s2 }
   0x4   :  { %2434 = sst [smem:[#allocation11_spill]] %s2413_s3 }
   0x5   :  { %2435 = sst [smem:[#allocation12_spill]] %s2414_s4 }
   0x6   :  { %2436 = sst [smem:[#allocation13_spill]] %s2415_s5 }
   0x7   :  { %22 = vsyncpa [#allocation4], 0 }
   0x8   :  { %24 = vsyncpa [#allocation4 + $0x1], 0  ;;  %s2138_s21 = smov 0   ;;  %s2140_s22 = smov 0  }
   0x9   :  { %s2142_s23 = smov 0   ;;  %s2144_s24 = smov 0  }
   0xa   :  { %s2146_s25 = smov 0   ;;  %s2148_s26 = smov 0  }
   0xb LB: > { %2437 = sst [smem:[#allocation6_spill]] %s2039_s25  ;;  %s1728_s27 = sadd.s32 4294967295, %s2043_s26   ;;  %s2043_s26 = sphi %s2148_s26, %s30_s26   ;;  %s2039_s25 = sphi %s2146_s25, %s2450_s25   ;;  %s2035_s24 = sphi %s2144_s24, %s2449_s24   ;;  %s2031_s23 = sphi %s2142_s23, %s2453_s23   ;;  %s2027_s22 = sphi %s2140_s22, %s2452_s22   ;;  %s2023_s21 = sphi %s2138_s21, %s2451_s21  }
   0xc   : > { %s1729_s28 = sadd.s32 4294967294, %s2043_s26   ;;  %s42_s29 = sadd.s32 1, %s2039_s25 }
   0xd   : > { %s431_s30 = sadd.s32 1, %s2031_s23  ;;  %p44_p0 = scmp.ge.s32.totalorder %s42_s29, 2 }
   0xe   : > { %p441_p1 = scmp.ne.s32.totalorder %s2031_s23, %s2027_s22  ;;  %p442_p2 = scmp.eq.s32.totalorder %s1728_s27, 1 }
   0xf   : > { %p447_p3 = scmp.ne.s32.totalorder %s2027_s22, %s2023_s21  ;;  %s2455_s29 = smov (%p44_p0, %s42_s29), 0 }
  0x10   : > { %2438 = sst [smem:[#allocation7_spill]] %s2455_s29  ;;  %p2178_p4 = por %p442_p2, %p441_p1 }
  0x11   : > { %p448_p5 = scmp.eq.s32.totalorder %s1729_s28, 1  ;;  %s427_s17 = ssub.s32 %s2039_s25, %s2455_s29 }
  0x12   : > { %p1744_p6 = scmp.ge.s32.totalorder %s2043_s26, 1  ;;  %p429_p7 = scmp.eq.s32.totalorder %s427_s17, 0 }
  0x13   : > { %p2185_p8 = por %p448_p5, %p447_p3  ;;  %p586_p9 = scmp.lt.s32.totalorder %s2043_s26, 3 }
  0x14   : > { %s2191_s19 = scalar_select %p429_p7, %s2031_s23, %s431_s30  }
  0x15   : > { %p587_p10 = pnand %p1744_p6, %p586_p9 }
  0x16   : > { %p685_p11 = scmp.lt.s32.totalorder (!%p587_p10), %s2035_s24, 1  ;;  %s2441_s29 = sld [smem:[#allocation8_spill]] (!%p587_p10) }
  0x17   : > { %590 = sbr.rel (%p587_p10) target bundleno = 2880 (0xb40), region = 80  ;;  %s2442_s3 = sld [smem:[#allocation11_spill]] (!%p587_p10) }
  0x18   : > { %s2443_s1 = sld [smem:[#allocation9_spill]] (!%p587_p10)  ;;  %s2047_s28 = smov (!%p587_p10), 120  }
  0x19   : > { %s2444_s2 = sld [smem:[#allocation10_spill]] (!%p587_p10)  ;;  %s2048_s17 = smov (!%p587_p10), 112  }
  0x1a   : > { %s2445_s4 = sld [smem:[#allocation12_spill]] (!%p587_p10)  ;;  %s1782_s30 = sshll.u32 (!%p587_p10), %s2035_s24, 8 }
  0x1b   : > { %s2446_s5 = sld [smem:[#allocation13_spill]] (!%p587_p10) }
  0x1c   : > { %s2195_s20 = scalar_select %p685_p11, %s2035_s24, 1  ;;  %vm746_vm0 = vcmask 130048   ;;  %v2045_v17 = vmov 0.0   ;;  %vm2046_vm1 = vmmov 0   ;;  %vm870_vm2 = vcmask 64512  }
  0x1d   : > { %v1928_v16 = vld [vmem:[%s2442_s3] sm:$0xff]   ;;  %1802 = vmatprep.subr.bf16.mxu0 %v2045_v17  ;;  %1804 = vmatprep.mubr.msk.bf16.mxu0 %vm2046_vm1, %v2045_v17  ;;  %vm1341_vm3 = vcmask 523264   ;;  %s2051_s24 = smov [#allocation3]  }
  0x1e   : > { %s2429_s27 = sshll.u32 %s2195_s20, 4  ;;  %1803 = vmatpush3.bf16.msra.mxu0 %v1928_v16  ;;  %1820 = vmatprep.subr.bf16.mxu1 %v2045_v17  ;;  %v1750_v26 = vld [vmem:[%s2443_s1] ss:$0 sm:$0xff]  ;;  %s675_s1 = sand.u32 1, %s2027_s22  }
  0x1f   : > { %s689_s25 = scalar_lea.vmem %s2441_s29, %s2429_s27  ;;  %1808 = vmatprep.subr.bf16.mxu0 %v2045_v17  ;;  %1822 = vmatprep.mubr.msk.bf16.mxu1 %vm2046_vm1, %v2045_v17  ;;  %v1751_v30 = vld [vmem:[%s2444_s2] ss:$0 sm:$0xff]  ;;  %s1745_s2 = sshll.u32 %s675_s1, 4 }
  0x20   : > { %v744_v0 = vld [vmem:[%s689_s25] sm:$0xff]  ;;  %v745_v1 = vld [vmem:[%s689_s25 + $0x8] sm:$0xff]  ;;  %s2049_s25 = smov 96   ;;  %s677_s29 = scalar_lea.vmem [#allocation3], %s1745_s2 }
  0x21   : > { %747 = vst.msk [vmem:[#allocation2] sm:$0xff] %vm746_vm0, %v744_v0  ;;  %748 = vst.msk [vmem:[#allocation2 + $0x8] sm:$0xff] %vm746_vm0, %v745_v1  ;;  %v1752_v36 = vld [vmem:[%s2445_s4] ss:$0 sm:$0xff]  ;;  %s1471_s27 = sshll.u32 %s677_s29, 4  ;;  %s2347_s27 = int_to_ptr.vmem [resolvable:$true] %s1471_s27 }
  0x22   : > { %s1967_s3 = scalar_lea.vmem %s2347_s27, 256 }
  0x23   : > { %p1968_p12 = scmp.ne.s32.totalorder %s2347_s27, %s1967_s3 }
  0x25   : > { %p1969_p13 = pnand %p1968_p12, %p2178_p4 }
  0x27   : > { %p1970_p0 = pneg %p1969_p13 }
  0x28   : > { %v2205_v2 = vld [vmem:[#allocation2] sm:$0xff]  ;;  %v2207_v3 = vld [vmem:[#allocation2 + $0x8] sm:$0xff] }
  0x29   : > { %v754_v4 = vsel %vm746_vm0, %v2205_v2, 0.0  ;;  %v757_v5 = vsel %vm746_vm0, %v2207_v3, 0.0 }
  0x2a   : > { %755 = vadd.xlane.f32.xlu0 %v754_v4 }
  0x2e   : > { %758 = vadd.xlane.f32.xlu0 %v757_v5 }
  0xb3   : > { %v756_v6 = vpop.xlane.xlu0 %755 }
  0xb4   : > { %v761_v7 = vmul.f32 0.0625, %v756_v6 }
  0xb6   : > { %v763_v8 = vsub.f32 %v2205_v2, %v761_v7 }
  0xb7   : > { %v759_v9 = vpop.xlane.xlu0 %758 }
  0xb8   : > { %v762_v10 = vmul.f32 0.0625, %v759_v9  ;;  %v765_v11 = vmul.f32 %v763_v8, %v763_v8 }
  0xba   : > { %v764_v12 = vsub.f32 %v2207_v3, %v762_v10  ;;  %v767_v13 = vsel %vm746_vm0, %v765_v11, 0.0 }
  0xbb   : > { %768 = vadd.xlane.f32.xlu1 %v767_v13 }
  0xbc   : > { %v766_v14 = vmul.f32 %v764_v12, %v764_v12 }
  0xbe   : > { %v770_v15 = vsel %vm746_vm0, %v766_v14, 0.0 }
  0xbf   : > { %771 = vadd.xlane.f32.xlu1 %v770_v15 }
 0x144   : > { %v769_v18 = vpop.xlane.xlu1 %768 }
 0x145   : > { %v773_v19 = vmul.f32 0.0625, %v769_v18 }
 0x147   : > { %v775_v20 = vadd.f32 1e-05, %v773_v19 }
 0x148   : > { %v772_v21 = vpop.xlane.xlu1 %771 }
 0x149   : > { %1935 = vrsqrt.f32 %v775_v20  ;;  %v774_v22 = vmul.f32 0.0625, %v772_v21 }
 0x14b   : > { %v776_v23 = vadd.f32 1e-05, %v774_v22 }
 0x14d   : > { %1937 = vrsqrt.f32 %v776_v23 }
 0x156   : > { %v1936_v24 = vpop.eup %1935 }
 0x157   : > { %v779_v25 = vmul.f32 %v1936_v24, %v763_v8 }
 0x159   : > { %v787_v29 = vmul.f32 %v1750_v26, %v779_v25 }
 0x15a   : > { %v1938_v27 = vpop.eup %1937 }
 0x15b   : > { %v780_v28 = vmul.f32 %v1938_v27, %v764_v12  ;;  %v795_v32 = vadd.f32 %v1751_v30, %v787_v29 }
 0x15d   : > { %v788_v31 = vmul.f32 %v1750_v26, %v780_v28 }
 0x15f   : > { %v796_v33 = vadd.f32 %v1751_v30, %v788_v31 }
 0x161   : > { %v797_v34 = vpack.c.bf16 %v796_v33, %v795_v32 }
 0x163   : > { %1805 = vmatmul.mubr.msk.bf16.vlgmr.msra.gmra.mxu0 %vm746_vm0, %v797_v34 }
 0x164   : > { %1810 = vmatprep.mubr.msk.bf16.mxu0 %vm2046_vm1, %v2045_v17 }
 0x223   : > { %v850_v35 = vpop.f32.mrf.mxu0 }
 0x224   : > { %v851_v39 = vadd.f32 %v1752_v36, %v850_v35 }
 0x225   : > { %v1806_v37 = vpop.f32.mrf.mxu0 }
 0x227   : > { %v853_v38 = vpop.f32.mrf.mxu0 }
 0x228   : > { %v854_v40 = vadd.f32 %v1752_v36, %v853_v38 }
 0x229   : > { %v1807_v41 = vpop.f32.mrf.mxu0 }
 0x22a   : > { %v1918_v42 = vpack.i.bf16 %v854_v40, %v851_v39  ;;  %v2239_v43 = vpack.c.bf16 %v854_v40, %v851_v39 }
 0x22c   : > { %1919 = vrot.lane.b32.xlu0 %v1918_v42, %s2047_s28  ;;  %868 = vrot.lane.b32.xlu1 %v2239_v43, %s2048_s17  ;;  %s2430_s28 = smov 8  }
 0x29e   : > { %v1920_v44 = vpop.permute.xlu0 %1919  ;;  %v869_v45 = vpop.permute.xlu1 %868 }
 0x29f   : > { %v1922_v46 = vunpack.i.h.bf16 %v1920_v44  ;;  %v1921_v47 = vunpack.i.l.bf16 %v1920_v44  ;;  %v875_v48 = vsel %vm870_vm2, %v869_v45, 0 }
 0x2a0   : > { %1809 = vmatpush3.bf16.xpose.msra.mxu0 %v875_v48 }
 0x2a1   : > { %v866_v49 = vpack.c.bf16 %v1922_v46, %v1921_v47  ;;  %1814 = vmatprep.subr.bf16.mxu0 %v2045_v17 }
 0x2a3   : > { %919 = vrot.lane.b32.xlu1 %v866_v49, %s2048_s17  ;;  %s2345_s17 = scalar_lea.hbm %s2425_s15, %s1782_s30 }
 0x2a7   : > { %1811 = vmatmul.mubr.msk.bf16.vlgmr.msra.gmra.mxu0 %vm870_vm2, %v2239_v43 }
 0x2a8   : > { %1816 = vmatprep.mubr.msk.bf16.mxu0 %vm2046_vm1, %v2045_v17 }
 0x315   : > { %v920_v50 = vpop.permute.xlu1 %919 }
 0x316   : > { %v925_v51 = vsel %vm870_vm2, %v920_v50, 0 }
 0x317   : > { %1815 = vmatpush3.bf16.xpose.msra.mxu0 %v925_v51 }
 0x318   : > { %1826 = vmatprep.subr.bf16.mxu0 %v2045_v17 }
 0x31e   : > { %1817 = vmatmul.mubr.msk.bf16.vlgmr.msra.gmra.mxu0 %vm870_vm2, %v866_v49 }
 0x31f   : > { %1828 = vmatprep.mubr.msk.bf16.mxu0 %vm2046_vm1, %v2045_v17 }
 0x367   : > { %v911_v52 = vpop.f32.mrf.mxu0 }
 0x368   : > { %v968_v63 = vmul.f32 0.35355338, %v911_v52 }
 0x369   : > { %v1812_v53 = vpop.f32.mrf.mxu0 }
 0x36a   : > { %v972_v4 = vsel %vm746_vm0, %v968_v63, -inf }
 0x36b   : > { %v914_v54 = vpop.f32.mrf.mxu0 }
 0x36c   : > { %v969_v1 = vmul.f32 0.35355338, %v914_v54 }
 0x36d   : > { %v1813_v55 = vpop.f32.mrf.mxu0 }
 0x36e   : > { %v975_v5 = vsel %vm746_vm0, %v969_v1, -inf }
 0x3de   : > { %v961_v56 = vpop.f32.mrf.mxu0 }
 0x3df   : > { %v970_v57 = vmul.f32 0.35355338, %v961_v56 }
 0x3e0   : > { %v1818_v58 = vpop.f32.mrf.mxu0 }
 0x3e1   : > { %v978_v59 = vsel %vm746_vm0, %v970_v57, -inf }
 0x3e2   : > { %979 = vmax.xlane.f32.xlu1 %v978_v59  ;;  %v964_v60 = vpop.f32.mrf.mxu0 }
 0x3e3   : > { %v971_v61 = vmul.f32 0.35355338, %v964_v60  ;;  %v1761_v60 = vld [vmem:[%s2416_s6] ss:$0 sm:$0xff] }
 0x3e4   : > { %v1819_v62 = vpop.f32.mrf.mxu0 }
 0x3e5   : > { %v981_v0 = vsel %vm746_vm0, %v971_v61, -inf }
 0x3e6   : > { %982 = vmax.xlane.f32.xlu0 %v981_v0 }
 0x3ea   : > { %973 = vmax.xlane.f32.xlu0 %v972_v4 }
 0x3ee   : > { %976 = vmax.xlane.f32.xlu0 %v975_v5 }
 0x46b   : > { %v980_v6 = vpop.xlane.xlu1 %979 }
 0x46c   : > { %v986_v7 = vsub.f32 %v970_v57, %v980_v6 }
 0x46e   : > { %v992_v8 = vmul.f32 1.442695, %v986_v7 }
 0x46f   : > { %v983_v9 = vpop.xlane.xlu0 %982 }
 0x470   : > { %1939 = vpow2.f32 %v992_v8  ;;  %v987_v10 = vsub.f32 %v971_v61, %v983_v9 }
 0x472   : > { %v994_v11 = vmul.f32 1.442695, %v987_v10 }
 0x473   : > { %v974_v12 = vpop.xlane.xlu0 %973 }
 0x474   : > { %1941 = vpow2.f32 %v994_v11  ;;  %v984_v13 = vsub.f32 %v968_v63, %v974_v12 }
 0x476   : > { %v988_v14 = vmul.f32 1.442695, %v984_v13 }
 0x477   : > { %v977_v15 = vpop.xlane.xlu0 %976 }
 0x478   : > { %1943 = vpow2.f32 %v988_v14  ;;  %v985_v16 = vsub.f32 %v969_v1, %v977_v15 }
 0x47a   : > { %v990_v18 = vmul.f32 1.442695, %v985_v16  ;;  %v1930_v16 = vld [vmem:[%s2419_s9] sm:$0xff]  }
 0x47c   : > { %1945 = vpow2.f32 %v990_v18 }
 0x47d   : > { %v1940_v19 = vpop.eup %1939 }
 0x47e   : > { %v1002_v20 = vsel %vm746_vm0, %v1940_v19, 0.0 }
 0x47f   : > { %1003 = vadd.xlane.f32.xlu1 %v1002_v20 }
 0x481   : > { %v1942_v21 = vpop.eup %1941 }
 0x482   : > { %v1005_v22 = vsel %vm746_vm0, %v1942_v21, 0.0 }
 0x483   : > { %1006 = vadd.xlane.f32.xlu0 %v1005_v22 }
 0x485   : > { %v1944_v23 = vpop.eup %1943 }
 0x486   : > { %v996_v24 = vsel %vm746_vm0, %v1944_v23, 0.0 }
 0x487   : > { %997 = vadd.xlane.f32.xlu0 %v996_v24 }
 0x489   : > { %v1946_v25 = vpop.eup %1945 }
 0x48a   : > { %v999_v26 = vsel %vm746_vm0, %v1946_v25, 0.0 }
 0x48b   : > { %1000 = vadd.xlane.f32.xlu0 %v999_v26  ;;  %v1762_v26 = vld [vmem:[%s2417_s7] ss:$0 sm:$0xff] }
 0x490   : > { %1065 = vrot.lane.b32.xlu1 %v866_v49, %s2049_s25 }
 0x4a1   : > { %1018 = vrot.lane.b32.xlu0 %v2239_v43, %s2049_s25  ;;  %v1929_v43 = vld [vmem:[%s2446_s5] sm:$0xff]   ;;  %s2351_s25 = scalar_lea.sflag [#allocation4], %s675_s1 }
 0x508   : > { %v1004_v27 = vpop.xlane.xlu1 %1003 }
 0x509   : > { %1947 = vrcp.f32 %v1004_v27 }
 0x50c   : > { %v1066_v28 = vpop.permute.xlu1 %1065  ;;  %v1007_v29 = vpop.xlane.xlu0 %1006 }
 0x50d   : > { %1949 = vrcp.f32 %v1007_v29  ;;  %1827 = vmatpush3.bf16.msra.mxu0 %v1066_v28 }
 0x50e   : > { %1838 = vmatprep.subr.bf16.mxu0 %v2045_v17 }
 0x510   : > { %v998_v30 = vpop.xlane.xlu0 %997 }
 0x511   : > { %1951 = vrcp.f32 %v998_v30  ;;  %v1763_v30 = vld [vmem:[%s2418_s8] ss:$0 sm:$0xff] }
 0x514   : > { %v1001_v31 = vpop.xlane.xlu0 %1000 }
 0x515   : > { %1953 = vrcp.f32 %v1001_v31 }
 0x516   : > { %v1948_v32 = vpop.eup %1947 }
 0x517   : > { %v1013_v35 = vmul.f32 %v1948_v32, %v1940_v19 }
 0x518   : > { %v1019_v33 = vpop.permute.xlu0 %1018 }
 0x519   : > { %1821 = vmatpush3.bf16.msra.mxu1 %v1019_v33 }
 0x51a   : > { %v1950_v34 = vpop.eup %1949  ;;  %1832 = vmatprep.subr.bf16.mxu1 %v2045_v17 }
 0x51b   : > { %v1015_v36 = vmul.f32 %v1950_v34, %v1942_v21 }
 0x51d   : > { %v1017_v37 = vpack.c.bf16 %v1015_v36, %v1013_v35  ;;  %v1931_v35 = vld [vmem:[%s2421_s11 + $0x18] sm:$0xff]   ;;  %v1932_v36 = vld [vmem:[%s2421_s11 + $0x10] sm:$0xff]  }
 0x51e   : > { %v1952_v38 = vpop.eup %1951 }
 0x51f   : > { %1829 = vmatmul.mubr.msk.bf16.vlgmr.msra.gmra.mxu0 %vm746_vm0, %v1017_v37  ;;  %v1009_v40 = vmul.f32 %v1952_v38, %v1944_v23  ;;  %v1933_v37 = vld [vmem:[%s2421_s11 + $0x8] sm:$0xff]   ;;  %v1934_v38 = vld [vmem:[%s2421_s11] sm:$0xff]  }
 0x520   : > { %1840 = vmatprep.mubr.msk.bf16.mxu0 %vm2046_vm1, %v2045_v17  ;;  %1839 = vmatpush3.bf16.msra.mxu0 %v1930_v16 }
 0x522   : > { %v1954_v39 = vpop.eup %1953 }
 0x523   : > { %v1011_v41 = vmul.f32 %v1954_v39, %v1946_v25  ;;  %v1764_v39 = vld [vmem:[%s2420_s10] ss:$0 sm:$0xff] }
 0x525   : > { %v1016_v42 = vpack.c.bf16 %v1011_v41, %v1009_v40 }
 0x527   : > { %1823 = vmatmul.mubr.msk.bf16.vlgmr.msra.gmra.mxu1 %vm746_vm0, %v1016_v42 }
 0x528   : > { %1834 = vmatprep.mubr.msk.bf16.mxu1 %vm2046_vm1, %v2045_v17  ;;  %1833 = vmatpush3.bf16.msra.mxu1 %v1929_v43 }
 0x529   : > { %1844 = vmatprep.subr.bf16.mxu1 %v2045_v17 }
 0x5df   : > { %v1105_v44 = vpop.f32.mrf.mxu0 }
 0x5e1   : > { %v1830_v45 = vpop.f32.mrf.mxu0 }
 0x5e3   : > { %v1108_v46 = vpop.f32.mrf.mxu0 }
 0x5e4   : > { %v1923_v47 = vpack.i.bf16 %v1108_v46, %v1105_v44 }
 0x5e5   : > { %v1831_v48 = vpop.f32.mrf.mxu0 }
 0x5e6   : > { %1924 = vrot.lane.b32.xlu1 %v1923_v47, %s2430_s28 }
 0x5e7   : > { %v1058_v49 = vpop.f32.mrf.mxu1 }
 0x5e9   : > { %v1824_v50 = vpop.f32.mrf.mxu1 }
 0x5eb   : > { %v1061_v51 = vpop.f32.mrf.mxu1 }
 0x5ed   : > { %v1825_v52 = vpop.f32.mrf.mxu1 }
 0x658   : > { %v1925_v53 = vpop.permute.xlu1 %1924 }
 0x659   : > { %v1927_v54 = vunpack.i.h.bf16 %v1925_v53  ;;  %v1926_v55 = vunpack.i.l.bf16 %v1925_v53 }
 0x65b   : > { %v1121_v56 = vsel %vm870_vm2, %v1061_v51, %v1927_v54  ;;  %v1120_v57 = vsel %vm870_vm2, %v1058_v49, %v1926_v55 }
 0x65c   : > { %v1122_v58 = vpack.c.bf16 %v1121_v56, %v1120_v57 }
 0x65e   : > { %1835 = vmatmul.mubr.msk.bf16.vlgmr.msra.gmra.mxu1 %vm746_vm0, %v1122_v58 }
 0x65f   : > { %1852 = vmatprep.mubr.msk.bf16.mxu1 %vm2046_vm1, %v2045_v17  ;;  %1845 = vmatpush3.bf16.msra.mxu1 %v1931_v35 }
 0x660   : > { %1846 = vmatprep.subr.bf16.mxu1 %v2045_v17 }
 0x663   : > { %1847 = vmatpush3.bf16.msra.mxu1 %v1932_v36 }
 0x664   : > { %1848 = vmatprep.subr.bf16.mxu1 %v2045_v17 }
 0x667   : > { %1849 = vmatpush3.bf16.msra.mxu1 %v1933_v37 }
 0x668   : > { %1850 = vmatprep.subr.bf16.mxu1 %v2045_v17 }
 0x66b   : > { %1851 = vmatpush3.bf16.msra.mxu1 %v1934_v38 }
 0x71e   : > { %v1168_v59 = vpop.f32.mrf.mxu1 }
 0x71f   : > { %v1175_v61 = vadd.f32 %v1168_v59, %v2205_v2 }
 0x720   : > { %v1836_v62 = vpop.f32.mrf.mxu1 }
 0x721   : > { %v2284_v63 = vadd.f32 %v1761_v60, %v1175_v61 }
 0x722   : > { %v1171_v0 = vpop.f32.mrf.mxu1 }
 0x723   : > { %v1176_v1 = vadd.f32 %v1171_v0, %v2207_v3  ;;  %v1188_v4 = vsel %vm746_vm0, %v2284_v63, 0.0 }
 0x724   : > { %1189 = vadd.xlane.f32.xlu1 %v1188_v4  ;;  %v1837_v5 = vpop.f32.mrf.mxu1  ;;  %v1772_v4 = vld [vmem:[%s2422_s12] ss:$0 sm:$0xff] }
 0x725   : > { %v2289_v6 = vadd.f32 %v1761_v60, %v1176_v1 }
 0x727   : > { %v1191_v7 = vsel %vm746_vm0, %v2289_v6, 0.0 }
 0x728   : > { %1192 = vadd.xlane.f32.xlu0 %v1191_v7 }
 0x7ad   : > { %v1190_v8 = vpop.xlane.xlu1 %1189 }
 0x7ae   : > { %v1194_v9 = vmul.f32 0.0625, %v1190_v8 }
 0x7b0   : > { %v1196_v2 = vsub.f32 %v2284_v63, %v1194_v9 }
 0x7b1   : > { %v1193_v10 = vpop.xlane.xlu0 %1192 }
 0x7b2   : > { %v1195_v11 = vmul.f32 0.0625, %v1193_v10  ;;  %v1198_v12 = vmul.f32 %v1196_v2, %v1196_v2 }
 0x7b4   : > { %v1197_v3 = vsub.f32 %v2289_v6, %v1195_v11  ;;  %v1200_v13 = vsel %vm746_vm0, %v1198_v12, 0.0 }
 0x7b5   : > { %1201 = vadd.xlane.f32.xlu1 %v1200_v13 }
 0x7b6   : > { %v1199_v14 = vmul.f32 %v1197_v3, %v1197_v3 }
 0x7b8   : > { %v1203_v15 = vsel %vm746_vm0, %v1199_v14, 0.0 }
 0x7b9   : > { %1204 = vadd.xlane.f32.xlu1 %v1203_v15 }
 0x83e   : > { %v1202_v18 = vpop.xlane.xlu1 %1201 }
 0x83f   : > { %v1206_v19 = vmul.f32 0.0625, %v1202_v18 }
 0x841   : > { %v1208_v20 = vadd.f32 1e-05, %v1206_v19 }
 0x842   : > { %v1205_v21 = vpop.xlane.xlu1 %1204 }
 0x843   : > { %1955 = vrsqrt.f32 %v1208_v20  ;;  %v1207_v22 = vmul.f32 0.0625, %v1205_v21 }
 0x845   : > { %v1209_v23 = vadd.f32 1e-05, %v1207_v22 }
 0x847   : > { %1957 = vrsqrt.f32 %v1209_v23 }
 0x850   : > { %v1956_v24 = vpop.eup %1955 }
 0x851   : > { %v1212_v25 = vmul.f32 %v1956_v24, %v1196_v2 }
 0x853   : > { %v1220_v29 = vmul.f32 %v1762_v26, %v1212_v25 }
 0x854   : > { %v1958_v27 = vpop.eup %1957 }
 0x855   : > { %v1213_v28 = vmul.f32 %v1958_v27, %v1197_v3  ;;  %v1228_v32 = vadd.f32 %v1763_v30, %v1220_v29 }
 0x857   : > { %v1221_v31 = vmul.f32 %v1762_v26, %v1213_v28 }
 0x859   : > { %v1229_v33 = vadd.f32 %v1763_v30, %v1221_v31 }
 0x85b   : > { %v1230_v34 = vpack.c.bf16 %v1229_v33, %v1228_v32 }
 0x85d   : > { %1841 = vmatmul.mubr.msk.bf16.vlgmr.msra.gmra.mxu0 %vm746_vm0, %v1230_v34 }
 0x91d   : > { %v1283_v40 = vpop.f32.mrf.mxu0 }
 0x91e   : > { %v1284_v41 = vadd.f32 %v1764_v39, %v1283_v40 }
 0x91f   : > { %v1842_v42 = vpop.f32.mrf.mxu0 }
 0x920   : > { %v1292_v43 = vmul.f32 0.044715, %v1284_v41  ;;  %v1290_v58 = vmul.f32 0.5, %v1284_v41 }
 0x921   : > { %v1286_v44 = vpop.f32.mrf.mxu0 }
 0x922   : > { %v1294_v45 = vmul.f32 %v1292_v43, %v1284_v41  ;;  %v1287_v46 = vadd.f32 %v1764_v39, %v1286_v44 }
 0x923   : > { %v1843_v47 = vpop.f32.mrf.mxu0 }
 0x924   : > { %v1296_v48 = vmul.f32 %v1294_v45, %v1284_v41  ;;  %v1293_v49 = vmul.f32 0.044715, %v1287_v46  ;;  %v1291_v59 = vmul.f32 0.5, %v1287_v46 }
 0x926   : > { %v1298_v50 = vadd.f32 %v1296_v48, %v1284_v41  ;;  %v1295_v51 = vmul.f32 %v1293_v49, %v1287_v46 }
 0x928   : > { %v1300_v52 = vmul.f32 0.7978846, %v1298_v50  ;;  %v1297_v53 = vmul.f32 %v1295_v51, %v1287_v46 }
 0x92a   : > { %1959 = vtanh.f32 %v1300_v52  ;;  %v1299_v17 = vadd.f32 %v1297_v53, %v1287_v46 }
 0x92c   : > { %v1301_v54 = vmul.f32 0.7978846, %v1299_v17 }
 0x92e   : > { %1961 = vtanh.f32 %v1301_v54 }
 0x937   : > { %v1960_v55 = vpop.eup %1959 }
 0x938   : > { %v1304_v56 = vadd.f32 1.0, %v1960_v55 }
 0x93a   : > { %v1306_v61 = vmul.f32 %v1304_v56, %v1290_v58 }
 0x93b   : > { %v1962_v57 = vpop.eup %1961 }
 0x93c   : > { %v1305_v60 = vadd.f32 1.0, %v1962_v57 }
 0x93e   : > { %v1307_v62 = vmul.f32 %v1305_v60, %v1291_v59 }
 0x940   : > { %v1308_v0 = vpack.c.bf16 %v1307_v62, %v1306_v61 }
 0x942   : > { %1853 = vmatmul.mubr.msk.bf16.vlgmr.msra.gmra.mxu1 %vm1341_vm3, %v1308_v0 }
 0xa02   : > { %v1379_v1 = vpop.f32.mrf.mxu1 }
 0xa03   : > { %v1386_v5 = vadd.f32 %v1379_v1, %v2284_v63 }
 0xa04   : > { %v1854_v7 = vpop.f32.mrf.mxu1 }
 0xa05   : > { %v1395_v8 = vadd.f32 %v1772_v4, %v1386_v5 }
 0xa06   : > { %v1382_v9 = vpop.f32.mrf.mxu1 }
 0xa07   : > { %1397 = vst.msk [vmem:[#allocation2] sm:$0xff] %vm746_vm0, %v1395_v8  ;;  %1399 = vst.msk [vmem:[%s677_s29] sm:$0xff] %vm746_vm0, %v1395_v8  ;;  %v1387_v2 = vadd.f32 %v1382_v9, %v2289_v6  ;;  %v1406_v10 = vsel %vm746_vm0, %v1395_v8, 0.0 }
 0xa08   : > { %1407 = vadd.xlane.f32.xlu0 %v1406_v10  ;;  %v1855_v11 = vpop.f32.mrf.mxu1 }
 0xa09   : > { %v1396_v12 = vadd.f32 %v1772_v4, %v1387_v2 }
 0xa0b   : > { %1398 = vst.msk [vmem:[#allocation2 + $0x8] sm:$0xff] %vm746_vm0, %v1396_v12  ;;  %1400 = vst.msk [vmem:[%s677_s29 + $0x8] sm:$0xff] %vm746_vm0, %v1396_v12  ;;  %v1409_v63 = vsel %vm746_vm0, %v1396_v12, 0.0  ;;  %s1971_s29 = sshll.u32 %s2051_s24, 4  ;;  %s1972_s29 = int_to_ptr.vmem [resolvable:$false] %s1971_s29 }
 0xa0c   : > { %1410 = vadd.xlane.f32.xlu1 %v1409_v63  ;;  %s1973_s4 = scalar_lea.vmem %s1972_s29, 512  ;;  %p1974_p1 = scmp.lt.s32.totalorder %s2347_s27, %s1972_s29 }
 0xa0d   : > { %p1975_p2 = scmp.lt.s32.totalorder %s1973_s4, %s1967_s3 }
 0xa0f   : > { %p1976_p3 = por %p1975_p2, %p1974_p1 }
 0xa11   : > { %p1977_p5 = pnand %p1976_p3, %p1970_p0 }
 0xa91   : > { %v1408_v3 = vpop.xlane.xlu0 %1407 }
 0xa92   : > { %v1412_v13 = vmul.f32 0.0625, %v1408_v3 }
 0xa94   : > { %v1414_v14 = vsub.f32 %v1395_v8, %v1412_v13 }
 0xa95   : > { %v1411_v15 = vpop.xlane.xlu1 %1410 }
 0xa96   : > { %v1413_v6 = vmul.f32 0.0625, %v1411_v15  ;;  %v1416_v16 = vmul.f32 %v1414_v14, %v1414_v14 }
 0xa98   : > { %v1415_v18 = vsub.f32 %v1396_v12, %v1413_v6  ;;  %v1418_v19 = vsel %vm746_vm0, %v1416_v16, 0.0 }
 0xa99   : > { %1419 = vadd.xlane.f32.xlu0 %v1418_v19 }
 0xa9a   : > { %v1417_v20 = vmul.f32 %v1415_v18, %v1415_v18 }
 0xa9c   : > { %v1421_v21 = vsel %vm746_vm0, %v1417_v20, 0.0 }
 0xa9d   : > { %1422 = vadd.xlane.f32.xlu1 %v1421_v21 }
 0xa9e   : > { %1980 = shalt.err (!%p1977_p5)
}
 0xa9f   : > { %s1981_s1 = scalar_lea.hbm %s2345_s17, 256  ;;  %s1985_s2 = scalar_lea.hbm %s2425_s15, 512 }
 0xaa0   : > { %p1982_p6 = scmp.ne.s32.totalorder %s2345_s17, %s1981_s1  ;;  %p1986_p10 = scmp.lt.s32.totalorder %s2345_s17, %s2425_s15 }
 0xaa1   : > { %p1987_p11 = scmp.lt.s32.totalorder %s1985_s2, %s1981_s1 }
 0xaa2   : > { %p1983_p7 = pnand %p1982_p6, %p2178_p4 }
 0xaa3   : > { %p1988_p12 = por %p1987_p11, %p1986_p10 }
 0xaa4   : > { %p1984_p9 = pneg %p1983_p7 }
 0xaa6   : > { %p1989_p13 = pnand %p1988_p12, %p1984_p9 }
 0xaa8   : > { %1992 = shalt.err (!%p1989_p13)
}
 0xaa9   : > { %s2052_s3 = smov 128   ;;  %s2447_s4 = smov 8   ;;  %v1773_v29 = vld [vmem:[%s2423_s13] ss:$0 sm:$0xff] }
 0xaaa   : > { %1856 = dma.vmem_to_hbm [thread:$0]  (%p2178_p4), %s2347_s27, 256, %s2345_s17, %s2351_s25, %s2052_s3, %s2052_s3, %s2447_s4  }
 0xaab   : > { %v1774_v31 = vld [vmem:[%s2424_s14] ss:$0 sm:$0xff]  ;;  %s2448_s27 = sshll.u32 %s2195_s20, 4 }
 0xaac   : > { %s738_s30 = scalar_lea.vmem %s2426_s16, %s2448_s27 }
 0xb22   : > { %v1420_v22 = vpop.xlane.xlu0 %1419 }
 0xb23   : > { %v1424_v23 = vmul.f32 0.0625, %v1420_v22 }
 0xb25   : > { %v1426_v24 = vadd.f32 1e-05, %v1424_v23 }
 0xb26   : > { %v1423_v25 = vpop.xlane.xlu1 %1422 }
 0xb27   : > { %1963 = vrsqrt.f32 %v1426_v24  ;;  %v1425_v26 = vmul.f32 0.0625, %v1423_v25 }
 0xb29   : > { %v1427_v27 = vadd.f32 1e-05, %v1425_v26 }
 0xb2b   : > { %1965 = vrsqrt.f32 %v1427_v27 }
 0xb34   : > { %v1964_v28 = vpop.eup %1963 }
 0xb35   : > { %v1430_v30 = vmul.f32 %v1964_v28, %v1414_v14 }
 0xb37   : > { %v1438_v32 = vmul.f32 %v1773_v29, %v1430_v30 }
 0xb38   : > { %v1966_v33 = vpop.eup %1965 }
 0xb39   : > { %v1446_v34 = vadd.f32 %v1774_v31, %v1438_v32  ;;  %v1431_v35 = vmul.f32 %v1966_v33, %v1415_v18 }
 0xb3b   : > { %1448 = vst.msk [vmem:[%s738_s30] sm:$0xff] %vm746_vm0, %v1446_v34  ;;  %v1439_v36 = vmul.f32 %v1773_v29, %v1431_v35 }
 0xb3d   : > { %v1447_v37 = vadd.f32 %v1774_v31, %v1439_v36 }
 0xb3f   : > { %1449 = vst.msk [vmem:[%s738_s30 + $0x8] sm:$0xff] %vm746_vm0, %v1447_v37 }
 0xb40 PF: > { %p1862_p4 = scmp.ge.s32.totalorder %s2043_s26, 2  ;;  %s1489_s28 = sand.u32 1, %s2023_s21  }
 0xb41   : > { %s1490_s20 = scalar_lea.sflag [#allocation4], %s1489_s28 }
 0xb42   : > { %p1859_p0 = pnand %p1862_p4, %p2185_p8 }
 0xb44   : > { %p1860_p1 = pneg %p1859_p0 }
 0xb46   : > { %2018 = dma.done.wait (%p1860_p1), %s1490_s20, 256  }
 0xb47   : > { %2020 = vsyncadd (%p1860_p1), %s1490_s20, 4294967040  ;;  %s30_s26 = sadd.s32 1, %s2043_s26   ;;  %s2449_s24 = sld [smem:[#allocation6_spill]] }
 0xb48   : > { %p27_p2 = scmp.ge.s32.totalorder %s30_s26, 4   ;;  %s2450_s25 = sld [smem:[#allocation7_spill]] }
 0xb49   : > { %s2451_s21 = smov %s2027_s22  ;;  %s2452_s22 = smov %s2031_s23 }
 0xb4a   : > { %s2453_s23 = smov %s2191_s19  ;;  %29 = sbr.rel (!%p27_p2) target bundleno = 11 (0xb), region = 171 }
 0xb4f   :  { %1503 = vsyncpa [#allocation4], 1 }
 0xb50   :  { %1505 = vsyncpa [#allocation4 + $0x1], 1 }

// kernel: joint_model_forward.16
= control target key start
LH: loop header
LB: loop body
LE: loop exit
PB: predicated region body
PF: predicated region fallthrough
CT: control target
= control target key end

     0   :  { %s373_s12 = smov 0   ;;  %s399_s0 = inlined_call_operand.vmem [shape: f32[32,32], index: 0, kind: input, shape index: {}]   ;;  %s400_s1 = inlined_call_operand.vmem [shape: bf16[32,64], index: 1, kind: input, shape index: {}]   ;;  %s401_s2 = inlined_call_operand.vmem [shape: f32[1,64], index: 2, kind: input, shape index: {}]   ;;  %s402_s3 = inlined_call_operand.vmem [shape: f32[32,64], index: 3, kind: output, shape index: {}]  }
   0x1 LB: > { %s305_s13 = sadd.s32 4294967295, %s349_s12   ;;  %p309_p0 = scmp.ge.s32.totalorder %s349_s12, 1  ;;  %s349_s12 = sphi %s373_s12, %s13_s12  }
   0x2   : > { %p138_p1 = scmp.lt.s32.totalorder %s349_s12, 3 }
   0x4   : > { %p139_p2 = pnand %p309_p0, %p138_p1 }
   0x5   : > { %s310_s18 = sshll.u32 (!%p139_p2), %s305_s13, 1 }
   0x6   : > { %142 = sbr.rel (%p139_p2) target bundleno = 220 (0xdc), region = 32  ;;  %p163_p3 = scmp.lt.s32.totalorder (!%p139_p2), %s310_s18, 3 }
   0xb   : > { %v341_v0 = vld [vmem:[%s400_s1 + $0x8] sm:$0xff]   ;;  %v351_v1 = vmov 0.0   ;;  %v342_v2 = vld [vmem:[%s400_s1] sm:$0xff]   ;;  %vm352_vm0 = vmmov 0   ;;  %s404_s18 = smov (!%p163_p3, %s310_s18), 3  ;;  %vm201_vm1 = vcmask 261120  }
   0xc   : > { %323 = vmatprep.subr.bf16.mxu0 %v351_v1  ;;  %327 = vmatprep.mubr.msk.bf16.mxu0 %vm352_vm0, %v351_v1  ;;  %s311_s19 = sshll.u32 %s404_s18, 3  ;;  %v314_v6 = vld [vmem:[%s401_s2] ss:$0 sm:$0xff]  ;;  %vm246_vm2 = vcmask 523264  }
   0xd   : > { %324 = vmatpush3.bf16.msra.mxu0 %v341_v0  ;;  %s166_s22 = scalar_lea.vmem %s399_s0, %s311_s19  ;;  %s172_s27 = scalar_lea.vmem %s402_s3, %s311_s19 }
   0xe   : > { %325 = vmatprep.subr.bf16.mxu0 %v351_v1  ;;  %v175_v3 = vld [vmem:[%s166_s22] sm:$0xff]  ;;  %v176_v4 = vld [vmem:[%s166_s22 + $0x8] sm:$0xff] }
   0xf   : > { %v177_v5 = vpack.c.bf16 %v176_v4, %v175_v3 }
  0x11   : > { %326 = vmatpush3.bf16.msra.mxu0 %v342_v2 }
  0x14   : > { %328 = vmatmul.mubr.msk.bf16.vlgmr.msra.gmra.mxu0 %vm201_vm1, %v177_v5 }
  0xd4   : > { %v239_v7 = vpop.f32.mrf.mxu0 }
  0xd5   : > { %v240_v8 = vadd.f32 %v314_v6, %v239_v7 }
  0xd6   : > { %v329_v9 = vpop.f32.mrf.mxu0 }
  0xd7   : > { %247 = vst.msk [vmem:[%s172_s27] sm:$0xff] %vm246_vm2, %v240_v8 }
  0xd8   : > { %v242_v10 = vpop.f32.mrf.mxu0 }
  0xd9   : > { %v243_v11 = vadd.f32 %v314_v6, %v242_v10 }
  0xda   : > { %v330_v12 = vpop.f32.mrf.mxu0 }
  0xdb   : > { %248 = vst.msk [vmem:[%s172_s27 + $0x8] sm:$0xff] %vm246_vm2, %v243_v11 }
  0xdc PF: > { %s13_s12 = sadd.s32 1, %s349_s12  }
  0xdd   : > { %p10_p4 = scmp.ge.s32.totalorder %s13_s12, 4  }
  0xdf   :  { %12 = sbr.rel (!%p10_p4) target bundleno = 1 (0x1), region = 62 }

// kernel: joint_model_forward.14
= control target key start
LH: loop header
LB: loop body
LE: loop exit
PB: predicated region body
PF: predicated region fallthrough
CT: control target
= control target key end

     0   :  { %s2500_s21 = smov 0   ;;  %s2502_s22 = smov 0   ;;  %s2828_s0 = inlined_call_operand.vmem [shape: f32[2,16,32], index: 0, kind: input, shape index: {}]   ;;  %s2829_s1 = inlined_call_operand.vmem [shape: f32[4,1,32], index: 1, kind: input, shape index: {}]   ;;  %s2830_s2 = inlined_call_operand.vmem [shape: f32[4,1,32], index: 2, kind: input, shape index: {}]   ;;  %s2831_s3 = inlined_call_operand.vmem [shape: bf16[4,32,96], index: 3, kind: input, shape index: {}]   ;;  %s2832_s4 = inlined_call_operand.vmem [shape: f32[4,1,96], index: 4, kind: input, shape index: {}]   ;;  %s2833_s5 = inlined_call_operand.vmem [shape: bf16[4,32,32], index: 5, kind: input, shape index: {}]   ;;  %s2834_s6 = inlined_call_operand.vmem [shape: f32[4,1,32], index: 6, kind: input, shape index: {}]   ;;  %s2835_s7 = inlined_call_operand.vmem [shape: f32[4,1,32], index: 7, kind: input, shape index: {}]   ;;  %s2836_s8 = inlined_call_operand.vmem [shape: f32[4,1,32], index: 8, kind: input, shape index: {}]   ;;  %s2837_s9 = inlined_call_operand.vmem [shape: bf16[4,32,128], index: 9, kind: input, shape index: {}]   ;;  %s2838_s10 = inlined_call_operand.vmem [shape: f32[4,1,128], index: 10, kind: input, shape index: {}]   ;;  %s2839_s11 = inlined_call_operand.vmem [shape: bf16[4,128,32], index: 11, kind: input, shape index: {}]   ;;  %s2840_s12 = inlined_call_operand.vmem [shape: f32[4,1,32], index: 12, kind: input, shape index: {}]   ;;  %s2841_s13 = inlined_call_operand.vmem [shape: f32[1,32], index: 13, kind: input, shape index: {}]   ;;  %s2842_s14 = inlined_call_operand.vmem [shape: f32[1,32], index: 14, kind: input, shape index: {}]   ;;  %s2843_s15 = inlined_call_operand.vmem [shape: f32[4,2,16,32], index: 15, kind: output, shape index: {0}]   ;;  %s2844_s16 = inlined_call_operand.vmem [shape: f32[2,16,32], index: 16, kind: output, shape index: {1}]  }
   0x1   :  { %2849 = sst [smem:[#allocation9_spill]] %s2828_s0  ;;  %s2504_s23 = smov 0  }
   0x2   :  { %2850 = sst [smem:[#allocation10_spill]] %s2830_s2  ;;  %s2506_s24 = smov 0  }
   0x3   :  { %2851 = sst [smem:[#allocation11_spill]] %s2831_s3  ;;  %s2508_s25 = smov 0  }
   0x4   :  { %2852 = sst [smem:[#allocation12_spill]] %s2833_s5 }
   0x5   :  { %2853 = sst [smem:[#allocation13_spill]] %s2835_s7 }
   0x6   :  { %2854 = sst [smem:[#allocation14_spill]] %s2837_s9 }
   0x7   :  { %2855 = sst [smem:[#allocation15_spill]] %s2838_s10 }
   0x8   :  { %2856 = sst [smem:[#allocation16_spill]] %s2839_s11 }
   0x9   :  { %2857 = sst [smem:[#allocation17_spill]] %s2841_s13 }
   0xa   :  { %2858 = sst [smem:[#allocation18_spill]] %s2842_s14 }
   0xb   :  { %2859 = sst [smem:[#allocation19_spill]] %s2843_s15 }
   0xc   :  { %2860 = sst [smem:[#allocation20_spill]] %s2844_s16 }
   0xd LB: > { %2861 = sst [smem:[#allocation3_spill]] %s2387_s21  ;;  %s36_s26 = sadd.s32 1, %s2395_s23  ;;  %s2403_s25 = sphi %s2508_s25, %s27_s25   ;;  %s2399_s24 = sphi %s2506_s24, %s2895_s24   ;;  %s2395_s23 = sphi %s2504_s23, %s2894_s23   ;;  %s2391_s22 = sphi %s2502_s22, %s2893_s22   ;;  %s2387_s21 = sphi %s2500_s21, %s2892_s21  }
   0xe   : > { %2862 = sst [smem:[#allocation4_spill]] %s2395_s23  ;;  %s39_s27 = sadd.s32 1, %s2399_s24 }
   0xf   : > { %2863 = sst [smem:[#allocation5_spill]] %s2399_s24  ;;  %p37_p0 = scmp.ge.s32.totalorder %s36_s26, 4 }
  0x10   : > { %2864 = sst [smem:[#allocation6_spill]] %s2403_s25  ;;  %p2036_p1 = scmp.ge.s32.totalorder %s2403_s25, 1 }
  0x11   : > { %p583_p2 = scmp.lt.s32.totalorder %s2403_s25, 9  ;;  %s2897_s26 = smov (%p37_p0, %s36_s26), 0 }
  0x12   : > { %2865 = sst [smem:[#allocation7_spill]] %s2897_s26  ;;  %s2899_s27 = smov (!%p37_p0, %s39_s27), %s2399_s24 }
  0x13   : > { %p584_p3 = pnand %p2036_p1, %p583_p2  ;;  %p41_p4 = scmp.ge.s32.totalorder %s2899_s27, 2 }
  0x14   : > { %p686_p5 = scmp.lt.s32.totalorder (!%p584_p3), %s2391_s22, 1  ;;  %p691_p6 = scmp.lt.s32.totalorder (!%p584_p3), %s2387_s21, 3 }
  0x15   : > { %s2901_s27 = smov (%p41_p4, %s2899_s27), 0  ;;  %587 = sbr.rel (%p584_p3) target bundleno = 2909 (0xb5d), region = 80 }
  0x16   : > { %2866 = sst [smem:[#allocation8_spill]] %s2901_s27 }
  0x17   : > { %s2867_s18 = sld [smem:[#allocation9_spill]] (!%p584_p3) }
  0x18   : > { %s2869_s3 = sld [smem:[#allocation11_spill]] (!%p584_p3) }
  0x19   : > { %s2870_s5 = sld [smem:[#allocation12_spill]] (!%p584_p3) }
  0x1a   : > { %s2903_s22 = smov (!%p686_p5, %s2391_s22), 1  ;;  %s2872_s9 = sld [smem:[#allocation14_spill]] }
  0x1b   : > { %s2534_s28 = scalar_select %p691_p6, %s2387_s21, 3 }
  0x1c   : > { %s2091_s29 = sshll.u32 %s2903_s22, 4  ;;  %s2047_s30 = sshll.u32 %s2903_s22, 1 }
  0x1d   : > { %s690_s19 = scalar_lea.vmem %s2867_s18, %s2091_s29  ;;  %s2092_s14 = sshll.u32 %s2534_s28, 4 }
  0x1e   : > { %s2551_s15 = scalar_lea.vmem %s2869_s3, %s2092_s14  ;;  %s734_s23 = scalar_lea.vmem %s2840_s12, %s2534_s28 }
  0x1f   : > { %s2560_s11 = scalar_lea.vmem %s2870_s5, %s2092_s14  ;;  %s2095_s5 = sshll.u32 %s2534_s28, 6 }
  0x20   : > { %s2577_s22 = scalar_lea.vmem %s2872_s9, %s2092_s14  ;;  %s2874_s26 = sld [smem:[#allocation16_spill]] }
  0x21   : > { %s2048_s13 = sshll.u32 %s2534_s28, 2  ;;  %s2875_s14 = sld [smem:[#allocation20_spill]] }
  0x22   : > { %s741_s21 = sadd.s32 %s2048_s13, %s2047_s30  ;;  %s2876_s0 = sld [smem:[#allocation19_spill]] }
  0x23   : > { %s2049_s9 = sshll.u32 %s741_s21, 3  ;;  %s2877_s27 = sld [smem:[#allocation3_spill]] }
  0x26   : > { %s2591_s7 = scalar_lea.vmem %s2874_s26, %s2095_s5 }
  0x27   : > { %s2597_s16 = scalar_lea.vmem %s2875_s14, %s2091_s29 }
  0x28   : > { %s2602_s10 = scalar_lea.vmem %s2876_s0, %s2049_s9 }
  0x29   : > { %p2052_p7 = scmp.ne.s32.totalorder %s2877_s27, 0 }
  0x2b   : > { %753 = sbr.rel (%p2052_p7) target bundleno = 50 (0x32), region = 84 }
  0x30   : > { %v754_v0 = vld [vmem:[%s690_s19] sm:$0xff]  ;;  %vm756_vm0 = vcmask 261120   ;;  %v755_v1 = vld [vmem:[%s690_s19 + $0x8] sm:$0xff] }
  0x31   : > { %757 = vst.msk [vmem:[#allocation2] sm:$0xff] %vm756_vm0, %v754_v0  ;;  %758 = vst.msk [vmem:[#allocation2 + $0x8] sm:$0xff] %vm756_vm0, %v755_v1 }
  0x32 PF: > { %vm763_vm1 = vcmask 261120   ;;  %v2303_v16 = vld [vmem:[%s2551_s15 + $0x8] sm:$0xff]   ;;  %v2405_v17 = vmov 0.0   ;;  %vm2406_vm2 = vmmov 0   ;;  %v2304_v18 = vld [vmem:[%s2551_s15] sm:$0xff]   ;;  %s2878_s9 = scalar_lea.vmem %s2829_s1, %s2534_s28  ;;  %s2879_s29 = sld [smem:[#allocation10_spill]] }
  0x33   : > { %2131 = vmatprep.subr.bf16.mxu0 %v2405_v17  ;;  %2135 = vmatprep.mubr.msk.bf16.mxu0 %vm2406_vm2, %v2405_v17  ;;  %v2053_v27 = vld [vmem:[%s2878_s9] ss:$0 sm:$0xff]  ;;  %s2881_s20 = scalar_lea.vmem %s2832_s4, %s2534_s28  ;;  %s2407_s25 = smov 112   ;;  %vm902_vm3 = vcmask 64512   ;;  %vm1108_vm4 = vcmask 130048   ;;  %vm1417_vm5 = vcmask 195584  }
  0x34   : > { %2132 = vmatpush3.bf16.msra.mxu0 %v2303_v16  ;;  %2151 = vmatprep.subr.bf16.mxu1 %v2405_v17  ;;  %v2055_v37 = vld [vmem:[%s2881_s20] ss:$0 sm:$0xff]  ;;  %s2408_s24 = smov 120   ;;  %s2409_s13 = smov 104  }
  0x35   : > { %2133 = vmatprep.subr.bf16.mxu0 %v2405_v17  ;;  %2153 = vmatprep.mubr.msk.bf16.mxu1 %vm2406_vm2, %v2405_v17  ;;  %s2410_s21 = smov 96   ;;  %s2411_s2 = smov 64  }
  0x36   : > { %s2412_s14 = smov 8   ;;  %s2413_s17 = smov 16  }
  0x37   : > { %s2882_s3 = scalar_lea.vmem %s2834_s6, %s2534_s28  ;;  %s2883_s15 = sld [smem:[#allocation13_spill]] }
  0x38   : > { %v2605_v2 = vld [vmem:[#allocation2] sm:$0xff]  ;;  %v2607_v3 = vld [vmem:[#allocation2 + $0x8] sm:$0xff]  ;;  %2134 = vmatpush3.bf16.msra.mxu0 %v2304_v18  ;;  %s2880_s30 = scalar_lea.vmem %s2879_s29, %s2534_s28  ;;  %s2886_s20 = sld [smem:[#allocation15_spill]] }
  0x39   : > { %v764_v4 = vsel %vm763_vm1, %v2605_v2, 0.0  ;;  %v767_v5 = vsel %vm763_vm1, %v2607_v3, 0.0  ;;  %2139 = vmatprep.subr.bf16.mxu0 %v2405_v17  ;;  %v2054_v31 = vld [vmem:[%s2880_s30] ss:$0 sm:$0xff]  ;;  %s2885_s30 = scalar_lea.vmem %s2836_s8, %s2534_s28 }
  0x3a   : > { %765 = vadd.xlane.f32.xlu0 %v764_v4 }
  0x3e   : > { %768 = vadd.xlane.f32.xlu0 %v767_v5 }
  0xc3   : > { %v766_v6 = vpop.xlane.xlu0 %765 }
  0xc4   : > { %v771_v7 = vmul.f32 0.03125, %v766_v6 }
  0xc6   : > { %v773_v8 = vsub.f32 %v2605_v2, %v771_v7 }
  0xc7   : > { %v769_v9 = vpop.xlane.xlu0 %768 }
  0xc8   : > { %v772_v10 = vmul.f32 0.03125, %v769_v9  ;;  %v775_v11 = vmul.f32 %v773_v8, %v773_v8 }
  0xca   : > { %v774_v12 = vsub.f32 %v2607_v3, %v772_v10  ;;  %v777_v13 = vsel %vm763_vm1, %v775_v11, 0.0 }
  0xcb   : > { %778 = vadd.xlane.f32.xlu1 %v777_v13 }
  0xcc   : > { %v776_v14 = vmul.f32 %v774_v12, %v774_v12 }
  0xce   : > { %v780_v15 = vsel %vm763_vm1, %v776_v14, 0.0 }
  0xcf   : > { %781 = vadd.xlane.f32.xlu1 %v780_v15 }
 0x154   : > { %v779_v19 = vpop.xlane.xlu1 %778 }
 0x155   : > { %v783_v20 = vmul.f32 0.03125, %v779_v19 }
 0x157   : > { %v785_v21 = vadd.f32 1e-05, %v783_v20 }
 0x158   : > { %v782_v22 = vpop.xlane.xlu1 %781 }
 0x159   : > { %2317 = vrsqrt.f32 %v785_v21  ;;  %v784_v23 = vmul.f32 0.03125, %v782_v22 }
 0x15b   : > { %v786_v24 = vadd.f32 1e-05, %v784_v23 }
 0x15d   : > { %2319 = vrsqrt.f32 %v786_v24 }
 0x166   : > { %v2318_v25 = vpop.eup %2317 }
 0x167   : > { %v789_v26 = vmul.f32 %v2318_v25, %v773_v8 }
 0x169   : > { %v797_v30 = vmul.f32 %v2053_v27, %v789_v26 }
 0x16a   : > { %v2320_v28 = vpop.eup %2319 }
 0x16b   : > { %v790_v29 = vmul.f32 %v2320_v28, %v774_v12  ;;  %v805_v33 = vadd.f32 %v2054_v31, %v797_v30 }
 0x16d   : > { %v798_v32 = vmul.f32 %v2053_v27, %v790_v29 }
 0x16f   : > { %v806_v34 = vadd.f32 %v2054_v31, %v798_v32 }
 0x171   : > { %v807_v35 = vpack.c.bf16 %v806_v34, %v805_v33 }
 0x173   : > { %2136 = vmatmul.mubr.msk.bf16.vlgmr.msra.gmra.mxu0 %vm763_vm1, %v807_v35 }
 0x174   : > { %2141 = vmatprep.mubr.msk.bf16.mxu0 %vm2406_vm2, %v2405_v17 }
 0x233   : > { %v868_v36 = vpop.f32.mrf.mxu0 }
 0x234   : > { %v869_v40 = vadd.f32 %v2055_v37, %v868_v36 }
 0x235   : > { %v2137_v38 = vpop.f32.mrf.mxu0 }
 0x237   : > { %v871_v39 = vpop.f32.mrf.mxu0 }
 0x238   : > { %v872_v41 = vadd.f32 %v2055_v37, %v871_v39 }
 0x239   : > { %v2138_v42 = vpop.f32.mrf.mxu0 }
 0x23a   : > { %v2278_v43 = vpack.i.bf16 %v872_v41, %v869_v40  ;;  %v2645_v44 = vpack.c.bf16 %v872_v41, %v869_v40 }
 0x23c   : > { %2279 = vrot.lane.b32.xlu1 %v2278_v43, %s2407_s25  ;;  %2274 = vrot.lane.b32.xlu0 %v2278_v43, %s2408_s24  ;;  %s2887_s25 = scalar_lea.vmem %s2886_s20, %s2534_s28 }
 0x240   : > { %2284 = vrot.lane.b32.xlu1 %v2278_v43, %s2409_s13  ;;  %s2888_s13 = sld [smem:[#allocation3_spill]] }
 0x244   : > { %900 = vrot.lane.b32.xlu1 %v2645_v44, %s2410_s21 }
 0x246   : > { %p2086_p8 = scmp.ne.s32.totalorder %s2888_s13, 3 }
 0x2ae   : > { %v2280_v45 = vpop.permute.xlu1 %2279  ;;  %v2275_v46 = vpop.permute.xlu0 %2274 }
 0x2af   : > { %v2282_v47 = vunpack.i.h.bf16 %v2280_v45  ;;  %v2281_v48 = vunpack.i.l.bf16 %v2280_v45  ;;  %v2277_v49 = vunpack.i.h.bf16 %v2275_v46  ;;  %v2276_v50 = vunpack.i.l.bf16 %v2275_v46 }
 0x2b1   : > { %v2648_v51 = vpack.c.bf16 %v2282_v47, %v2281_v48  ;;  %v2650_v52 = vpack.c.bf16 %v2277_v49, %v2276_v50 }
 0x2b2   : > { %v2285_v53 = vpop.permute.xlu1 %2284 }
 0x2b3   : > { %v2287_v54 = vunpack.i.h.bf16 %v2285_v53  ;;  %v2286_v55 = vunpack.i.l.bf16 %v2285_v53  ;;  %951 = vrot.lane.b32.xlu0 %v2650_v52, %s2410_s21  ;;  %1001 = vrot.lane.b32.xlu1 %v2648_v51, %s2410_s21 }
 0x2b5   : > { %v2654_v56 = vpack.c.bf16 %v2287_v54, %v2286_v55 }
 0x2b6   : > { %v901_v57 = vpop.permute.xlu1 %900 }
 0x2b7   : > { %v907_v58 = vsel %vm902_vm3, %v901_v57, 0  ;;  %1051 = vrot.lane.b32.xlu0 %v2654_v56, %s2410_s21 }
 0x2b8   : > { %2140 = vmatpush3.bf16.xpose.msra.mxu0 %v907_v58 }
 0x2b9   : > { %2145 = vmatprep.subr.bf16.mxu0 %v2405_v17 }
 0x2bf   : > { %2142 = vmatmul.mubr.msk.bf16.vlgmr.msra.gmra.mxu0 %vm902_vm3, %v2645_v44 }
 0x2c0   : > { %2147 = vmatprep.mubr.msk.bf16.mxu0 %vm2406_vm2, %v2405_v17 }
 0x325   : > { %v952_v59 = vpop.permute.xlu0 %951  ;;  %v1002_v60 = vpop.permute.xlu1 %1001 }
 0x326   : > { %v957_v61 = vsel %vm902_vm3, %v952_v59, 0  ;;  %v1007_v62 = vsel %vm902_vm3, %v1002_v60, 0 }
 0x327   : > { %2146 = vmatpush3.bf16.xpose.msra.mxu0 %v957_v61  ;;  %2152 = vmatpush3.bf16.xpose.msra.mxu1 %v1007_v62 }
 0x328   : > { %2157 = vmatprep.subr.bf16.mxu0 %v2405_v17  ;;  %2163 = vmatprep.subr.bf16.mxu1 %v2405_v17 }
 0x329   : > { %v1052_v63 = vpop.permute.xlu0 %1051 }
 0x32a   : > { %v1057_v0 = vsel %vm902_vm3, %v1052_v63, 0 }
 0x32e   : > { %2148 = vmatmul.mubr.msk.bf16.vlgmr.msra.gmra.mxu0 %vm902_vm3, %v2650_v52  ;;  %2154 = vmatmul.mubr.msk.bf16.vlgmr.msra.gmra.mxu1 %vm902_vm3, %v2648_v51 }
 0x32f   : > { %2158 = vmatpush3.bf16.xpose.msra.mxu0 %v1057_v0  ;;  %2159 = vmatprep.mubr.msk.bf16.mxu0 %vm2406_vm2, %v2405_v17 }
 0x330   : > { %2165 = vmatprep.mubr.msk.bf16.mxu1 %vm2406_vm2, %v2405_v17  ;;  %2169 = vmatprep.subr.bf16.mxu0 %v2405_v17 }
 0x336   : > { %2160 = vmatmul.mubr.msk.bf16.vlgmr.msra.gmra.mxu0 %vm902_vm3, %v2654_v56 }
 0x337   : > { %2171 = vmatprep.mubr.msk.bf16.mxu0 %vm2406_vm2, %v2405_v17 }
 0x37f   : > { %v943_v1 = vpop.f32.mrf.mxu0 }
 0x380   : > { %v1100_v4 = vmul.f32 0.35355338, %v943_v1 }
 0x381   : > { %v2143_v5 = vpop.f32.mrf.mxu0 }
 0x382   : > { %v1109_v6 = vsel %vm1108_vm4, %v1100_v4, -inf }
 0x383   : > { %1110 = vmax.xlane.f32.xlu1 %v1109_v6  ;;  %v946_v7 = vpop.f32.mrf.mxu0 }
 0x384   : > { %v1101_v8 = vmul.f32 0.35355338, %v946_v7 }
 0x385   : > { %v2144_v9 = vpop.f32.mrf.mxu0 }
 0x386   : > { %v1112_v10 = vsel %vm1108_vm4, %v1101_v8, -inf }
 0x387   : > { %1113 = vmax.xlane.f32.xlu0 %v1112_v10 }
 0x3ee   : > { %v993_v11 = vpop.f32.mrf.mxu0  ;;  %v1043_v12 = vpop.f32.mrf.mxu1 }
 0x3ef   : > { %v1102_v13 = vmul.f32 0.35355338, %v993_v11  ;;  %v1104_v14 = vmul.f32 0.35355338, %v1043_v12 }
 0x3f0   : > { %v2149_v15 = vpop.f32.mrf.mxu0  ;;  %v2155_v16 = vpop.f32.mrf.mxu1 }
 0x3f1   : > { %v1121_v18 = vsel %vm1108_vm4, %v1104_v14, -inf  ;;  %v1115_v19 = vsel %vm1108_vm4, %v1102_v13, -inf }
 0x3f2   : > { %v1046_v20 = vpop.f32.mrf.mxu1  ;;  %1122 = vmax.xlane.f32.xlu1 %v1121_v18  ;;  %1116 = vmax.xlane.f32.xlu0 %v1115_v19  ;;  %v996_v21 = vpop.f32.mrf.mxu0 }
 0x3f3   : > { %v1103_v22 = vmul.f32 0.35355338, %v996_v21  ;;  %v1105_v25 = vmul.f32 0.35355338, %v1046_v20 }
 0x3f4   : > { %v2150_v23 = vpop.f32.mrf.mxu0  ;;  %v2156_v24 = vpop.f32.mrf.mxu1 }
 0x3f5   : > { %v1118_v26 = vsel %vm1108_vm4, %v1103_v22, -inf  ;;  %v1124_v30 = vsel %vm1108_vm4, %v1105_v25, -inf }
 0x3f6   : > { %1119 = vmax.xlane.f32.xlu0 %v1118_v26  ;;  %v1093_v27 = vpop.f32.mrf.mxu0 }
 0x3f7   : > { %v1106_v28 = vmul.f32 0.35355338, %v1093_v27 }
 0x3f8   : > { %v2161_v29 = vpop.f32.mrf.mxu0 }
 0x3f9   : > { %v1127_v31 = vsel %vm1108_vm4, %v1106_v28, -inf }
 0x3fa   : > { %1125 = vmax.xlane.f32.xlu0 %v1124_v30  ;;  %1128 = vmax.xlane.f32.xlu1 %v1127_v31  ;;  %v1096_v32 = vpop.f32.mrf.mxu0 }
 0x3fb   : > { %v1107_v33 = vmul.f32 0.35355338, %v1096_v32 }
 0x3fc   : > { %v2162_v34 = vpop.f32.mrf.mxu0 }
 0x3fd   : > { %v1130_v35 = vsel %vm1108_vm4, %v1107_v33, -inf }
 0x3fe   : > { %1131 = vmax.xlane.f32.xlu0 %v1130_v35 }
 0x40b   : > { %1201 = vrot.lane.b32.xlu1 %v2645_v44, %s2411_s2 }
 0x40c   : > { %v1111_v38 = vpop.xlane.xlu1 %1110 }
 0x40d   : > { %v1133_v40 = vsub.f32 %v1100_v4, %v1111_v38 }
 0x40f   : > { %v1141_v41 = vmul.f32 1.442695, %v1133_v40 }
 0x410   : > { %v1114_v36 = vpop.xlane.xlu0 %1113 }
 0x411   : > { %v1134_v37 = vsub.f32 %v1101_v8, %v1114_v36 }
 0x413   : > { %v1143_v39 = vmul.f32 1.442695, %v1134_v37 }
 0x415   : > { %2321 = vpow2.f32 %v1143_v39 }
 0x416   : > { %2323 = vpow2.f32 %v1141_v41 }
 0x422   : > { %v2322_v42 = vpop.eup %2321 }
 0x423   : > { %v1160_v43 = vsel %vm1108_vm4, %v2322_v42, 0.0  ;;  %v2324_v45 = vpop.eup %2323 }
 0x424   : > { %1161 = vadd.xlane.f32.xlu0 %v1160_v43  ;;  %v1157_v46 = vsel %vm1108_vm4, %v2324_v45, 0.0 }
 0x42f   : > { %1158 = vadd.xlane.f32.xlu1 %v1157_v46 }
 0x47b   : > { %v1123_v47 = vpop.xlane.xlu1 %1122  ;;  %v1117_v48 = vpop.xlane.xlu0 %1116 }
 0x47c   : > { %v1137_v49 = vsub.f32 %v1104_v14, %v1123_v47  ;;  %v1135_v44 = vsub.f32 %v1102_v13, %v1117_v48 }
 0x47e   : > { %v1145_v50 = vmul.f32 1.442695, %v1135_v44  ;;  %v1149_v53 = vmul.f32 1.442695, %v1137_v49 }
 0x47f   : > { %v1120_v54 = vpop.xlane.xlu0 %1119 }
 0x480   : > { %v1136_v55 = vsub.f32 %v1103_v22, %v1120_v54  ;;  %2325 = vpow2.f32 %v1145_v50 }
 0x481   : > { %2327 = vpow2.f32 %v1149_v53  ;;  %v2305_v53 = vld [vmem:[%s2560_s11 + $0x8] sm:$0xff]  }
 0x482   : > { %v1147_v57 = vmul.f32 1.442695, %v1136_v55 }
 0x483   : > { %v1126_v58 = vpop.xlane.xlu0 %1125  ;;  %v1129_v59 = vpop.xlane.xlu1 %1128 }
 0x484   : > { %2329 = vpow2.f32 %v1147_v57  ;;  %v1138_v60 = vsub.f32 %v1105_v25, %v1126_v58  ;;  %v1139_v61 = vsub.f32 %v1106_v28, %v1129_v59  ;;  %v2306_v57 = vld [vmem:[%s2560_s11] sm:$0xff]   ;;  %s2414_s11 = smov 24  }
 0x486   : > { %v1151_v62 = vmul.f32 1.442695, %v1138_v60  ;;  %v1153_v63 = vmul.f32 1.442695, %v1139_v61 }
 0x487   : > { %v1202_v0 = vpop.permute.xlu1 %1201  ;;  %v1132_v1 = vpop.xlane.xlu0 %1131 }
 0x488   : > { %2331 = vpow2.f32 %v1151_v62  ;;  %v1140_v4 = vsub.f32 %v1107_v33, %v1132_v1  ;;  %2164 = vmatpush3.bf16.msra.mxu1 %v1202_v0 }
 0x489   : > { %2333 = vpow2.f32 %v1153_v63  ;;  %2175 = vmatprep.subr.bf16.mxu1 %v2405_v17 }
 0x48a   : > { %v1155_v5 = vmul.f32 1.442695, %v1140_v4 }
 0x48c   : > { %2335 = vpow2.f32 %v1155_v5 }
 0x48d   : > { %v2326_v6 = vpop.eup %2325 }
 0x48e   : > { %v1163_v7 = vsel %vm1108_vm4, %v2326_v6, 0.0  ;;  %v2328_v8 = vpop.eup %2327 }
 0x48f   : > { %1164 = vadd.xlane.f32.xlu1 %v1163_v7  ;;  %v1169_v11 = vsel %vm1108_vm4, %v2328_v8, 0.0 }
 0x491   : > { %v2330_v9 = vpop.eup %2329 }
 0x492   : > { %v1166_v10 = vsel %vm1108_vm4, %v2330_v9, 0.0 }
 0x493   : > { %1167 = vadd.xlane.f32.xlu0 %v1166_v10  ;;  %1170 = vadd.xlane.f32.xlu1 %v1169_v11 }
 0x495   : > { %v2332_v12 = vpop.eup %2331 }
 0x496   : > { %v2334_v13 = vpop.eup %2333  ;;  %v1172_v14 = vsel %vm1108_vm4, %v2332_v12, 0.0 }
 0x497   : > { %v1175_v15 = vsel %vm1108_vm4, %v2334_v13, 0.0  ;;  %1173 = vadd.xlane.f32.xlu0 %v1172_v14 }
 0x498   : > { %1176 = vadd.xlane.f32.xlu1 %v1175_v15 }
 0x499   : > { %v2336_v16 = vpop.eup %2335 }
 0x49a   : > { %v1178_v18 = vsel %vm1108_vm4, %v2336_v16, 0.0 }
 0x49b   : > { %1179 = vadd.xlane.f32.xlu0 %v1178_v18 }
 0x4a9   : > { %1295 = vrot.lane.b32.xlu1 %v2648_v51, %s2411_s2 }
 0x4ad   : > { %1342 = vrot.lane.b32.xlu1 %v2654_v56, %s2411_s2  ;;  %v1162_v19 = vpop.xlane.xlu0 %1161 }
 0x4ae   : > { %2337 = vrcp.f32 %v1162_v19 }
 0x4b1   : > { %1248 = vrot.lane.b32.xlu0 %v2650_v52, %s2411_s2 }
 0x4b8   : > { %v1159_v20 = vpop.xlane.xlu1 %1158 }
 0x4b9   : > { %2339 = vrcp.f32 %v1159_v20 }
 0x4bb   : > { %v2338_v21 = vpop.eup %2337 }
 0x4bc   : > { %v1184_v24 = vmul.f32 %v2338_v21, %v2322_v42 }
 0x4c6   : > { %v2340_v22 = vpop.eup %2339 }
 0x4c7   : > { %v1182_v23 = vmul.f32 %v2340_v22, %v2324_v45 }
 0x4c9   : > { %v1197_v25 = vpack.c.bf16 %v1184_v24, %v1182_v23 }
 0x4cb   : > { %2166 = vmatmul.mubr.msk.bf16.vlgmr.msra.gmra.mxu1 %vm1108_vm4, %v1197_v25 }
 0x4cc   : > { %2177 = vmatprep.mubr.msk.bf16.mxu1 %vm2406_vm2, %v2405_v17 }
 0x518   : > { %v1165_v51 = vpop.xlane.xlu1 %1164 }
 0x519   : > { %2341 = vrcp.f32 %v1165_v51 }
 0x51c   : > { %v1168_v56 = vpop.xlane.xlu0 %1167  ;;  %v1171_v26 = vpop.xlane.xlu1 %1170 }
 0x51d   : > { %2343 = vrcp.f32 %v1168_v56  ;;  %v2070_v56 = vld [vmem:[%s2882_s3] ss:$0 sm:$0xff] }
 0x51e   : > { %2345 = vrcp.f32 %v1171_v26 }
 0x520   : > { %v1174_v52 = vpop.xlane.xlu0 %1173 }
 0x521   : > { %v1177_v27 = vpop.xlane.xlu1 %1176  ;;  %2347 = vrcp.f32 %v1174_v52 }
 0x522   : > { %2349 = vrcp.f32 %v1177_v27 }
 0x524   : > { %v1180_v28 = vpop.xlane.xlu0 %1179 }
 0x525   : > { %v1296_v29 = vpop.permute.xlu1 %1295  ;;  %2351 = vrcp.f32 %v1180_v28 }
 0x526   : > { %2176 = vmatpush3.bf16.msra.mxu1 %v1296_v29  ;;  %v2342_v30 = vpop.eup %2341 }
 0x527   : > { %2187 = vmatprep.subr.bf16.mxu1 %v2405_v17  ;;  %v1186_v33 = vmul.f32 %v2342_v30, %v2326_v6 }
 0x528   : > { %v1249_v31 = vpop.permute.xlu0 %1248 }
 0x529   : > { %2170 = vmatpush3.bf16.msra.mxu0 %v1249_v31  ;;  %v1343_v38 = vpop.permute.xlu1 %1342 }
 0x52a   : > { %v2344_v32 = vpop.eup %2343  ;;  %2181 = vmatprep.subr.bf16.mxu0 %v2405_v17 }
 0x52b   : > { %v1188_v34 = vmul.f32 %v2344_v32, %v2330_v9  ;;  %v2346_v35 = vpop.eup %2345 }
 0x52c   : > { %v1190_v39 = vmul.f32 %v2346_v35, %v2328_v8 }
 0x52d   : > { %v1198_v36 = vpack.c.bf16 %v1188_v34, %v1186_v33 }
 0x52e   : > { %v2348_v37 = vpop.eup %2347 }
 0x52f   : > { %2172 = vmatmul.mubr.msk.bf16.vlgmr.msra.gmra.mxu0 %vm1108_vm4, %v1198_v36  ;;  %v1192_v40 = vmul.f32 %v2348_v37, %v2332_v12  ;;  %v2350_v41 = vpop.eup %2349 }
 0x530   : > { %2182 = vmatpush3.bf16.msra.mxu0 %v1343_v38  ;;  %2183 = vmatprep.mubr.msk.bf16.mxu0 %vm2406_vm2, %v2405_v17  ;;  %v1194_v45 = vmul.f32 %v2350_v41, %v2334_v13 }
 0x531   : > { %v1199_v42 = vpack.c.bf16 %v1192_v40, %v1190_v39  ;;  %2195 = vmatprep.subr.bf16.mxu0 %v2405_v17 }
 0x532   : > { %v2352_v43 = vpop.eup %2351 }
 0x533   : > { %2178 = vmatmul.mubr.msk.bf16.vlgmr.msra.gmra.mxu1 %vm1108_vm4, %v1199_v42  ;;  %v1196_v46 = vmul.f32 %v2352_v43, %v2336_v16  ;;  %v2307_v42 = vld [vmem:[%s2577_s22 + $0x8] sm:$0xff]   ;;  %v2308_v43 = vld [vmem:[%s2577_s22] sm:$0xff]   ;;  %s2884_s22 = scalar_lea.vmem %s2883_s15, %s2534_s28 }
 0x534   : > { %2191 = vmatprep.mubr.msk.bf16.mxu1 %vm2406_vm2, %v2405_v17  ;;  %2188 = vmatpush3.bf16.msra.mxu1 %v2305_v53 }
 0x535   : > { %v1200_v47 = vpack.c.bf16 %v1196_v46, %v1194_v45  ;;  %2189 = vmatprep.subr.bf16.mxu1 %v2405_v17 }
 0x537   : > { %2184 = vmatmul.mubr.msk.bf16.vlgmr.msra.gmra.mxu0 %vm1108_vm4, %v1200_v47 }
 0x538   : > { %2199 = vmatprep.mubr.msk.bf16.mxu0 %vm2406_vm2, %v2405_v17  ;;  %2190 = vmatpush3.bf16.msra.mxu1 %v2306_v57 }
 0x539   : > { %2203 = vmatprep.subr.bf16.mxu1 %v2405_v17  ;;  %2196 = vmatpush3.bf16.msra.mxu0 %v2307_v42 }
 0x53a   : > { %2197 = vmatprep.subr.bf16.mxu0 %v2405_v17 }
 0x53d   : > { %2198 = vmatpush3.bf16.msra.mxu0 %v2308_v43 }
 0x58b   : > { %v1241_v48 = vpop.f32.mrf.mxu1 }
 0x58d   : > { %v2167_v49 = vpop.f32.mrf.mxu1 }
 0x58f   : > { %v1244_v44 = vpop.f32.mrf.mxu1 }
 0x591   : > { %v2168_v50 = vpop.f32.mrf.mxu1 }
 0x5ef   : > { %v1288_v54 = vpop.f32.mrf.mxu0 }
 0x5f1   : > { %v2173_v55 = vpop.f32.mrf.mxu0 }
 0x5f3   : > { %v1291_v58 = vpop.f32.mrf.mxu0  ;;  %v1335_v59 = vpop.f32.mrf.mxu1 }
 0x5f4   : > { %v2288_v60 = vpack.i.bf16 %v1291_v58, %v1288_v54  ;;  %v2071_v54 = vld [vmem:[%s2884_s22] ss:$0 sm:$0xff] }
 0x5f5   : > { %v2174_v61 = vpop.f32.mrf.mxu0  ;;  %v2179_v62 = vpop.f32.mrf.mxu1 }
 0x5f6   : > { %2289 = vrot.lane.b32.xlu1 %v2288_v60, %s2412_s14  ;;  %s2890_s14 = sld [smem:[#allocation18_spill]] (!%p2086_p8) }
 0x5f7   : > { %v1338_v63 = vpop.f32.mrf.mxu1  ;;  %v1382_v0 = vpop.f32.mrf.mxu0 }
 0x5f8   : > { %v2293_v1 = vpack.i.bf16 %v1338_v63, %v1335_v59  ;;  %v2072_v59 = vld [vmem:[%s2885_s30] ss:$0 sm:$0xff] }
 0x5f9   : > { %v2180_v4 = vpop.f32.mrf.mxu1  ;;  %v2185_v5 = vpop.f32.mrf.mxu0 }
 0x5fa   : > { %2294 = vrot.lane.b32.xlu0 %v2293_v1, %s2413_s17  ;;  %v2310_v1 = vld [vmem:[%s2591_s7 + $0x30] sm:$0xff]   ;;  %v2311_v4 = vld [vmem:[%s2591_s7 + $0x28] sm:$0xff]   ;;  %v2312_v5 = vld [vmem:[%s2591_s7 + $0x20] sm:$0xff]  }
 0x5fb   : > { %v1385_v6 = vpop.f32.mrf.mxu0 }
 0x5fc   : > { %v2298_v7 = vpack.i.bf16 %v1385_v6, %v1382_v0  ;;  %v2309_v0 = vld [vmem:[%s2591_s7 + $0x38] sm:$0xff]  }
 0x5fd   : > { %v2186_v8 = vpop.f32.mrf.mxu0  ;;  %v2313_v6 = vld [vmem:[%s2591_s7 + $0x18] sm:$0xff]  }
 0x5fe   : > { %2299 = vrot.lane.b32.xlu1 %v2298_v7, %s2414_s11  ;;  %v2314_v7 = vld [vmem:[%s2591_s7 + $0x10] sm:$0xff]   ;;  %v2315_v8 = vld [vmem:[%s2591_s7 + $0x8] sm:$0xff]  }
 0x668   : > { %v2290_v9 = vpop.permute.xlu1 %2289 }
 0x669   : > { %v2292_v11 = vunpack.i.h.bf16 %v2290_v9  ;;  %v2291_v12 = vunpack.i.l.bf16 %v2290_v9  ;;  %v2316_v9 = vld [vmem:[%s2591_s7] sm:$0xff]  }
 0x66b   : > { %v1414_v16 = vsel %vm902_vm3, %v1244_v44, %v2292_v11  ;;  %v1413_v18 = vsel %vm902_vm3, %v1241_v48, %v2291_v12 }
 0x66c   : > { %v2295_v10 = vpop.permute.xlu0 %2294 }
 0x66d   : > { %v2297_v13 = vunpack.i.h.bf16 %v2295_v10  ;;  %v2296_v14 = vunpack.i.l.bf16 %v2295_v10  ;;  %v2073_v10 = vld [vmem:[%s2887_s25] ss:$0 sm:$0xff] }
 0x66f   : > { %v1415_v21 = vsel %vm1108_vm4, %v1413_v18, %v2296_v14  ;;  %v1416_v22 = vsel %vm1108_vm4, %v1414_v16, %v2297_v13 }
 0x670   : > { %v2300_v15 = vpop.permute.xlu1 %2299 }
 0x671   : > { %v2302_v19 = vunpack.i.h.bf16 %v2300_v15  ;;  %v2301_v20 = vunpack.i.l.bf16 %v2300_v15 }
 0x673   : > { %v1419_v23 = vsel %vm1417_vm5, %v1416_v22, %v2302_v19  ;;  %v1418_v24 = vsel %vm1417_vm5, %v1415_v21, %v2301_v20 }
 0x674   : > { %v1420_v25 = vpack.c.bf16 %v1419_v23, %v1418_v24 }
 0x676   : > { %2192 = vmatmul.mubr.msk.bf16.vlgmr.msra.gmra.mxu1 %vm763_vm1, %v1420_v25 }
 0x677   : > { %2219 = vmatprep.mubr.msk.bf16.mxu1 %vm2406_vm2, %v2405_v17  ;;  %2204 = vmatpush3.bf16.msra.mxu1 %v2309_v0 }
 0x678   : > { %2205 = vmatprep.subr.bf16.mxu1 %v2405_v17 }
 0x67b   : > { %2206 = vmatpush3.bf16.msra.mxu1 %v2310_v1 }
 0x67c   : > { %2207 = vmatprep.subr.bf16.mxu1 %v2405_v17 }
 0x67f   : > { %2208 = vmatpush3.bf16.msra.mxu1 %v2311_v4 }
 0x680   : > { %2209 = vmatprep.subr.bf16.mxu1 %v2405_v17 }
 0x683   : > { %2210 = vmatpush3.bf16.msra.mxu1 %v2312_v5 }
 0x684   : > { %2211 = vmatprep.subr.bf16.mxu1 %v2405_v17 }
 0x687   : > { %2212 = vmatpush3.bf16.msra.mxu1 %v2313_v6 }
 0x688   : > { %2213 = vmatprep.subr.bf16.mxu1 %v2405_v17 }
 0x68b   : > { %2214 = vmatpush3.bf16.msra.mxu1 %v2314_v7 }
 0x68c   : > { %2215 = vmatprep.subr.bf16.mxu1 %v2405_v17 }
 0x68f   : > { %2216 = vmatpush3.bf16.msra.mxu1 %v2315_v8 }
 0x690   : > { %2217 = vmatprep.subr.bf16.mxu1 %v2405_v17 }
 0x693   : > { %2218 = vmatpush3.bf16.msra.mxu1 %v2316_v9 }
 0x736   : > { %v1474_v51 = vpop.f32.mrf.mxu1 }
 0x737   : > { %v1481_v26 = vadd.f32 %v1474_v51, %v2605_v2 }
 0x738   : > { %v2193_v52 = vpop.f32.mrf.mxu1 }
 0x739   : > { %v2738_v27 = vadd.f32 %v2070_v56, %v1481_v26 }
 0x73a   : > { %v1477_v28 = vpop.f32.mrf.mxu1 }
 0x73b   : > { %v1482_v29 = vadd.f32 %v1477_v28, %v2607_v3  ;;  %v1494_v30 = vsel %vm763_vm1, %v2738_v27, 0.0 }
 0x73c   : > { %1495 = vadd.xlane.f32.xlu0 %v1494_v30  ;;  %v2194_v31 = vpop.f32.mrf.mxu1 }
 0x73d   : > { %v2743_v32 = vadd.f32 %v2070_v56, %v1482_v29 }
 0x73f   : > { %v1497_v33 = vsel %vm763_vm1, %v2743_v32, 0.0 }
 0x740   : > { %1498 = vadd.xlane.f32.xlu1 %v1497_v33 }
 0x7c5   : > { %v1496_v2 = vpop.xlane.xlu0 %1495 }
 0x7c6   : > { %v1500_v34 = vmul.f32 0.03125, %v1496_v2 }
 0x7c8   : > { %v1502_v35 = vsub.f32 %v2738_v27, %v1500_v34 }
 0x7c9   : > { %v1499_v36 = vpop.xlane.xlu1 %1498 }
 0x7ca   : > { %v1501_v37 = vmul.f32 0.03125, %v1499_v36  ;;  %v1504_v3 = vmul.f32 %v1502_v35, %v1502_v35 }
 0x7cc   : > { %v1503_v38 = vsub.f32 %v2743_v32, %v1501_v37  ;;  %v1506_v39 = vsel %vm763_vm1, %v1504_v3, 0.0 }
 0x7cd   : > { %1507 = vadd.xlane.f32.xlu0 %v1506_v39 }
 0x7ce   : > { %v1505_v40 = vmul.f32 %v1503_v38, %v1503_v38 }
 0x7d0   : > { %v1509_v41 = vsel %vm763_vm1, %v1505_v40, 0.0 }
 0x7d1   : > { %1510 = vadd.xlane.f32.xlu0 %v1509_v41 }
 0x856   : > { %v1508_v45 = vpop.xlane.xlu0 %1507 }
 0x857   : > { %v1512_v46 = vmul.f32 0.03125, %v1508_v45 }
 0x859   : > { %v1514_v47 = vadd.f32 1e-05, %v1512_v46 }
 0x85a   : > { %v1511_v48 = vpop.xlane.xlu0 %1510 }
 0x85b   : > { %2353 = vrsqrt.f32 %v1514_v47  ;;  %v1513_v49 = vmul.f32 0.03125, %v1511_v48 }
 0x85d   : > { %v1515_v44 = vadd.f32 1e-05, %v1513_v49 }
 0x85f   : > { %2355 = vrsqrt.f32 %v1515_v44 }
 0x868   : > { %v2354_v50 = vpop.eup %2353 }
 0x869   : > { %v1518_v53 = vmul.f32 %v2354_v50, %v1502_v35  ;;  %v2085_v35 = vld [vmem:[%s734_s23] ss:$0 sm:$0xff]  ;;  %s2889_s23 = sld [smem:[#allocation17_spill]] (!%p2086_p8) }
 0x86b   : > { %v1526_v58 = vmul.f32 %v2071_v54, %v1518_v53 }
 0x86c   : > { %v2356_v55 = vpop.eup %2355 }
 0x86d   : > { %v1519_v57 = vmul.f32 %v2356_v55, %v1503_v38  ;;  %v1534_v61 = vadd.f32 %v2072_v59, %v1526_v58 }
 0x86f   : > { %v1527_v60 = vmul.f32 %v2071_v54, %v1519_v57 }
 0x871   : > { %v1535_v62 = vadd.f32 %v2072_v59, %v1527_v60 }
 0x873   : > { %v1536_v63 = vpack.c.bf16 %v1535_v62, %v1534_v61 }
 0x875   : > { %2200 = vmatmul.mubr.msk.bf16.vlgmr.msra.gmra.mxu0 %vm763_vm1, %v1536_v63 }
 0x935   : > { %v1597_v11 = vpop.f32.mrf.mxu0 }
 0x936   : > { %v1598_v12 = vadd.f32 %v2073_v10, %v1597_v11 }
 0x937   : > { %v2201_v13 = vpop.f32.mrf.mxu0 }
 0x938   : > { %v1606_v14 = vmul.f32 0.044715, %v1598_v12  ;;  %v1604_v28 = vmul.f32 0.5, %v1598_v12 }
 0x939   : > { %v1600_v15 = vpop.f32.mrf.mxu0 }
 0x93a   : > { %v1608_v16 = vmul.f32 %v1606_v14, %v1598_v12  ;;  %v1601_v18 = vadd.f32 %v2073_v10, %v1600_v15 }
 0x93b   : > { %v2202_v19 = vpop.f32.mrf.mxu0 }
 0x93c   : > { %v1610_v20 = vmul.f32 %v1608_v16, %v1598_v12  ;;  %v1607_v21 = vmul.f32 0.044715, %v1601_v18  ;;  %v1605_v29 = vmul.f32 0.5, %v1601_v18 }
 0x93e   : > { %v1612_v22 = vadd.f32 %v1610_v20, %v1598_v12  ;;  %v1609_v23 = vmul.f32 %v1607_v21, %v1601_v18 }
 0x940   : > { %v1614_v24 = vmul.f32 0.7978846, %v1612_v22  ;;  %v1611_v17 = vmul.f32 %v1609_v23, %v1601_v18 }
 0x942   : > { %2357 = vtanh.f32 %v1614_v24  ;;  %v1613_v25 = vadd.f32 %v1611_v17, %v1601_v18 }
 0x944   : > { %v1615_v51 = vmul.f32 0.7978846, %v1613_v25 }
 0x946   : > { %2359 = vtanh.f32 %v1615_v51 }
 0x94f   : > { %v2358_v56 = vpop.eup %2357 }
 0x950   : > { %v1618_v26 = vadd.f32 1.0, %v2358_v56 }
 0x952   : > { %v1620_v31 = vmul.f32 %v1618_v26, %v1604_v28 }
 0x953   : > { %v2360_v52 = vpop.eup %2359 }
 0x954   : > { %v1619_v30 = vadd.f32 1.0, %v2360_v52 }
 0x956   : > { %v1621_v33 = vmul.f32 %v1619_v30, %v1605_v29 }
 0x958   : > { %v1622_v2 = vpack.c.bf16 %v1621_v33, %v1620_v31 }
 0x95a   : > { %2220 = vmatmul.mubr.bf16.vlgmr.msra.gmra.mxu1 %v1622_v2 }
 0xa1a   : > { %v1721_v34 = vpop.f32.mrf.mxu1 }
 0xa1b   : > { %v1728_v36 = vadd.f32 %v1721_v34, %v2738_v27 }
 0xa1c   : > { %v2221_v37 = vpop.f32.mrf.mxu1 }
 0xa1d   : > { %v1737_v3 = vadd.f32 %v2085_v35, %v1728_v36 }
 0xa1e   : > { %v1724_v38 = vpop.f32.mrf.mxu1 }
 0xa1f   : > { %1739 = vst.msk [vmem:[#allocation2] sm:$0xff] %vm763_vm1, %v1737_v3  ;;  %1741 = vst.msk [vmem:[%s2602_s10] sm:$0xff] %vm763_vm1, %v1737_v3  ;;  %v1729_v39 = vadd.f32 %v1724_v38, %v2743_v32  ;;  %1746 = sbr.rel (%p2086_p8) target bundleno = 2909 (0xb5d), region = 88 }
 0xa20   : > { %v2222_v40 = vpop.f32.mrf.mxu1 }
 0xa21   : > { %v1738_v41 = vadd.f32 %v2085_v35, %v1729_v39 }
 0xa23   : > { %1740 = vst.msk [vmem:[#allocation2 + $0x8] sm:$0xff] %vm763_vm1, %v1738_v41  ;;  %1742 = vst.msk [vmem:[%s2602_s10 + $0x8] sm:$0xff] %vm763_vm1, %v1738_v41 }
 0xa24   : > { %v1749_v27 = vsel %vm763_vm1, %v1737_v3, 0.0  ;;  %v1752_v42 = vsel %vm763_vm1, %v1738_v41, 0.0  ;;  %v2087_v62 = vld [vmem:[%s2889_s23] ss:$0 sm:$0xff] }
 0xa25   : > { %1750 = vadd.xlane.f32.xlu0 %v1749_v27  ;;  %v2088_v0 = vld [vmem:[%s2890_s14] ss:$0 sm:$0xff] }
 0xa29   : > { %1753 = vadd.xlane.f32.xlu0 %v1752_v42 }
 0xaae   : > { %v1751_v43 = vpop.xlane.xlu0 %1750 }
 0xaaf   : > { %v1755_v45 = vmul.f32 0.03125, %v1751_v43 }
 0xab1   : > { %v1757_v46 = vsub.f32 %v1737_v3, %v1755_v45 }
 0xab2   : > { %v1754_v47 = vpop.xlane.xlu0 %1753 }
 0xab3   : > { %v1756_v32 = vmul.f32 0.03125, %v1754_v47  ;;  %v1759_v48 = vmul.f32 %v1757_v46, %v1757_v46 }
 0xab5   : > { %v1758_v49 = vsub.f32 %v1738_v41, %v1756_v32  ;;  %v1761_v44 = vsel %vm763_vm1, %v1759_v48, 0.0 }
 0xab6   : > { %1762 = vadd.xlane.f32.xlu1 %v1761_v44 }
 0xab7   : > { %v1760_v50 = vmul.f32 %v1758_v49, %v1758_v49 }
 0xab9   : > { %v1764_v53 = vsel %vm763_vm1, %v1760_v50, 0.0 }
 0xaba   : > { %1765 = vadd.xlane.f32.xlu1 %v1764_v53 }
 0xb3f   : > { %v1763_v54 = vpop.xlane.xlu1 %1762 }
 0xb40   : > { %v1767_v55 = vmul.f32 0.03125, %v1763_v54 }
 0xb42   : > { %v1769_v57 = vadd.f32 1e-05, %v1767_v55 }
 0xb43   : > { %v1766_v58 = vpop.xlane.xlu1 %1765 }
 0xb44   : > { %2361 = vrsqrt.f32 %v1769_v57  ;;  %v1768_v59 = vmul.f32 0.03125, %v1766_v58 }
 0xb46   : > { %v1770_v60 = vadd.f32 1e-05, %v1768_v59 }
 0xb48   : > { %2363 = vrsqrt.f32 %v1770_v60 }
 0xb51   : > { %v2362_v61 = vpop.eup %2361 }
 0xb52   : > { %v1773_v63 = vmul.f32 %v2362_v61, %v1757_v46 }
 0xb54   : > { %v1781_v1 = vmul.f32 %v2087_v62, %v1773_v63 }
 0xb55   : > { %v2364_v4 = vpop.eup %2363 }
 0xb56   : > { %v1789_v5 = vadd.f32 %v2088_v0, %v1781_v1  ;;  %v1774_v6 = vmul.f32 %v2364_v4, %v1758_v49 }
 0xb58   : > { %1791 = vst.msk [vmem:[%s2597_s16] sm:$0xff] %vm763_vm1, %v1789_v5  ;;  %v1782_v7 = vmul.f32 %v2087_v62, %v1774_v6 }
 0xb5a   : > { %v1790_v8 = vadd.f32 %v2088_v0, %v1782_v7 }
 0xb5c   : > { %1792 = vst.msk [vmem:[%s2597_s16 + $0x8] sm:$0xff] %vm763_vm1, %v1790_v8 }
 0xb5d PF: > { %s2891_s17 = sld [smem:[#allocation6_spill]] }
 0xb5e   : > { %s2892_s21 = sld [smem:[#allocation4_spill]] }
 0xb5f   : > { %s2893_s22 = sld [smem:[#allocation5_spill]] }
 0xb60   : > { %s2894_s23 = sld [smem:[#allocation7_spill]] }
 0xb61   : > { %s2895_s24 = sld [smem:[#allocation8_spill]] }
 0xb63   : > { %s27_s25 = sadd.s32 1, %s2891_s17  }
 0xb64   : > { %p24_p9 = scmp.ge.s32.totalorder %s27_s25, 10  }
 0xb66   :  { %26 = sbr.rel (!%p24_p9) target bundleno = 13 (0xd), region = 166 }

// kernel: joint_model_forward.18
= control target key start
LH: loop header
LB: loop body
LE: loop exit
PB: predicated region body
PF: predicated region fallthrough
CT: control target
= control target key end

     0   :  { %s416_s12 = smov 0   ;;  %s447_s0 = inlined_call_operand.vmem [shape: f32[128,16], index: 0, kind: input, shape index: {}]   ;;  %s448_s1 = inlined_call_operand.vmem [shape: bf16[16,32], index: 1, kind: input, shape index: {}]   ;;  %s449_s2 = inlined_call_operand.vmem [shape: f32[1,32], index: 2, kind: input, shape index: {}]   ;;  %s450_s3 = inlined_call_operand.vmem [shape: f32[128,32], index: 3, kind: output, shape index: {}]  }
   0x1 LB: > { %s345_s13 = sadd.s32 4294967295, %s394_s12   ;;  %p349_p0 = scmp.ge.s32.totalorder %s394_s12, 1  ;;  %s394_s12 = sphi %s416_s12, %s13_s12  }
   0x2   : > { %p138_p1 = scmp.lt.s32.totalorder %s394_s12, 3 }
   0x4   : > { %p139_p2 = pnand %p349_p0, %p138_p1 }
   0x5   : > { %s350_s16 = sshll.u32 (!%p139_p2), %s345_s13, 3 }
   0x6   : > { %142 = sbr.rel (%p139_p2) target bundleno = 221 (0xdd), region = 32  ;;  %p163_p3 = scmp.lt.s32.totalorder (!%p139_p2), %s350_s16, 15 }
   0xb   : > { %v387_v0 = vld [vmem:[%s448_s1] sm:$0xff]   ;;  %s452_s16 = smov (!%p163_p3, %s350_s16), 15  ;;  %vm202_vm0 = vcmask 130048   ;;  %vm280_vm1 = vcmask 261120  }
   0xc   : > { %367 = vmatprep.subr.bf16.mxu0 %v387_v0  ;;  %377 = vmatprep.subr.bf16.mxu1 %v387_v0  ;;  %s351_s17 = sshll.u32 %s452_s16, 3  ;;  %v354_v13 = vld [vmem:[%s449_s2] ss:$0 sm:$0xff] }
   0xd   : > { %368 = vmatpush3.bf16.msra.mxu0 %v387_v0  ;;  %378 = vmatpush3.bf16.msra.mxu1 %v387_v0  ;;  %s166_s20 = scalar_lea.vmem %s447_s0, %s351_s17  ;;  %s172_s25 = scalar_lea.vmem %s450_s3, %s351_s17 }
   0xe   : > { %v175_v1 = vld [vmem:[%s166_s20] sm:$0xff]  ;;  %v176_v2 = vld [vmem:[%s166_s20 + $0x8] sm:$0xff]  ;;  %v177_v6 = vld [vmem:[%s166_s20 + $0x10] sm:$0xff] }
   0xf   : > { %v179_v3 = vld [vmem:[%s166_s20 + $0x20] sm:$0xff]  ;;  %v183_v4 = vpack.c.bf16 %v176_v2, %v175_v1  ;;  %v180_v5 = vld [vmem:[%s166_s20 + $0x28] sm:$0xff]  ;;  %v178_v7 = vld [vmem:[%s166_s20 + $0x18] sm:$0xff] }
  0x10   : > { %v185_v8 = vpack.c.bf16 %v180_v5, %v179_v3  ;;  %v184_v9 = vpack.c.bf16 %v178_v7, %v177_v6  ;;  %v181_v10 = vld [vmem:[%s166_s20 + $0x30] sm:$0xff]  ;;  %v182_v11 = vld [vmem:[%s166_s20 + $0x38] sm:$0xff] }
  0x11   : > { %369 = vmatprep.mubr.msk.bf16.mxu0 %vm202_vm0, %v183_v4  ;;  %v186_v12 = vpack.c.bf16 %v182_v11, %v181_v10 }
  0x12   : > { %373 = vmatprep.mubr.msk.bf16.mxu1 %vm202_vm0, %v185_v8  ;;  %370 = vmatmul.mubr.msk.bf16.vlgmr.msra.gmra.mxu0 %vm202_vm0, %v184_v9 }
  0x13   : > { %374 = vmatmul.mubr.msk.bf16.vlgmr.msra.gmra.mxu1 %vm202_vm0, %v186_v12 }
  0xd2   : > { %v371_v14 = vpop.f32.mrf.mxu0 }
  0xd3   : > { %v258_v15 = vadd.f32 %v371_v14, %v354_v13  ;;  %v375_v16 = vpop.f32.mrf.mxu1 }
  0xd4   : > { %v274_v17 = vadd.f32 %v375_v16, %v354_v13  ;;  %v249_v18 = vpop.f32.mrf.mxu0 }
  0xd5   : > { %283 = vst.msk [vmem:[%s172_s25 + $0x10] sm:$0xff] %vm280_vm1, %v258_v15  ;;  %v250_v19 = vadd.f32 %v354_v13, %v249_v18  ;;  %v265_v20 = vpop.f32.mrf.mxu1 }
  0xd6   : > { %287 = vst.msk [vmem:[%s172_s25 + $0x30] sm:$0xff] %vm280_vm1, %v274_v17  ;;  %v266_v21 = vadd.f32 %v354_v13, %v265_v20  ;;  %v372_v22 = vpop.f32.mrf.mxu0 }
  0xd7   : > { %281 = vst.msk [vmem:[%s172_s25] sm:$0xff] %vm280_vm1, %v250_v19  ;;  %v261_v23 = vadd.f32 %v372_v22, %v354_v13  ;;  %v376_v24 = vpop.f32.mrf.mxu1 }
  0xd8   : > { %285 = vst.msk [vmem:[%s172_s25 + $0x20] sm:$0xff] %vm280_vm1, %v266_v21  ;;  %v277_v25 = vadd.f32 %v376_v24, %v354_v13  ;;  %v252_v26 = vpop.f32.mrf.mxu0 }
  0xd9   : > { %284 = vst.msk [vmem:[%s172_s25 + $0x18] sm:$0xff] %vm280_vm1, %v261_v23  ;;  %v253_v27 = vadd.f32 %v354_v13, %v252_v26  ;;  %v268_v28 = vpop.f32.mrf.mxu1 }
  0xda   : > { %288 = vst.msk [vmem:[%s172_s25 + $0x38] sm:$0xff] %vm280_vm1, %v277_v25  ;;  %v269_v29 = vadd.f32 %v354_v13, %v268_v28 }
  0xdb   : > { %282 = vst.msk [vmem:[%s172_s25 + $0x8] sm:$0xff] %vm280_vm1, %v253_v27 }
  0xdc   : > { %286 = vst.msk [vmem:[%s172_s25 + $0x28] sm:$0xff] %vm280_vm1, %v269_v29 }
  0xdd PF: > { %s13_s12 = sadd.s32 1, %s394_s12  }
  0xde   : > { %p10_p4 = scmp.ge.s32.totalorder %s13_s12, 4  }
  0xe0   :  { %12 = sbr.rel (!%p10_p4) target bundleno = 1 (0x1), region = 62 }

// kernel: joint_model_forward.17
= control target key start
LH: loop header
LB: loop body
LE: loop exit
PB: predicated region body
PF: predicated region fallthrough
CT: control target
= control target key end

     0   :  { %s1380_s12 = smov 0   ;;  %s1633_s0 = inlined_call_operand.vmem [shape: f32[2,10,320], index: 0, kind: input, shape index: {}]   ;;  %s1634_s1 = inlined_call_operand.vmem [shape: bf16[3,320,128], index: 1, kind: input, shape index: {}]   ;;  %s1635_s2 = inlined_call_operand.vmem [shape: f32[1,128], index: 2, kind: input, shape index: {}]   ;;  %s1636_s3 = inlined_call_operand.vmem [shape: f32[2,8,128], index: 3, kind: output, shape index: {}]  }
   0x1 LB: > { %s1009_s13 = sadd.s32 4294967295, %s1356_s12   ;;  %p1013_p0 = scmp.ge.s32.totalorder %s1356_s12, 1  ;;  %s1356_s12 = sphi %s1380_s12, %s13_s12  }
   0x2   : > { %p137_p1 = scmp.lt.s32.totalorder %s1356_s12, 3 }
   0x4   : > { %p138_p2 = pnand %p1013_p0, %p137_p1 }
   0x5   : > { %p160_p3 = scmp.lt.s32.totalorder (!%p138_p2), %s1009_s13, 1 }
   0x6   : > { %141 = sbr.rel (%p138_p2) target bundleno = 299 (0x12b), region = 32 }
   0xb   : > { %v1290_v0 = vld [vmem:[%s1634_s1 + $0x118] sm:$0xff]   ;;  %v1358_v1 = vmov 0.0   ;;  %vm1359_vm0 = vmmov 0   ;;  %v1293_v4 = vld [vmem:[%s1634_s1 + $0x110] sm:$0xff]   ;;  %s1638_s13 = smov (!%p160_p3, %s1009_s13), 1  ;;  %v1296_v7 = vld [vmem:[%s1634_s1 + $0x108] sm:$0xff]  }
   0xc   : > { %1243 = vmatprep.subr.bf16.mxu1 %v1358_v1  ;;  %v1291_v2 = vld [vmem:[%s1634_s1 + $0x138] sm:$0xff]   ;;  %1162 = vmatprep.subr.bf16.mxu0 %v1290_v0  ;;  %v1294_v5 = vld [vmem:[%s1634_s1 + $0x130] sm:$0xff]   ;;  %v1297_v8 = vld [vmem:[%s1634_s1 + $0x128] sm:$0xff]   ;;  %s1279_s30 = smul.u32 48, %s1638_s13  ;;  %vm406_vm1 = vcmask 523264   ;;  %s1015_s15 = sshll.u32 %s1638_s13, 3 }
   0xd   : > { %v1292_v3 = vld [vmem:[%s1634_s1 + $0xd8] sm:$0xff]   ;;  %1251 = vmatprep.mubr.msk.bf16.mxu1 %vm1359_vm0, %v1358_v1  ;;  %1244 = vmatpush3.bf16.msra.mxu1 %v1291_v2  ;;  %v1295_v6 = vld [vmem:[%s1634_s1 + $0xd0] sm:$0xff]   ;;  %v1298_v9 = vld [vmem:[%s1634_s1 + $0xc8] sm:$0xff]   ;;  %s168_s19 = scalar_lea.vmem %s1636_s3, %s1015_s15 }
   0xe   : > { %1163 = vmatpush3.bf16.msra.mxu0 %v1292_v3  ;;  %1245 = vmatprep.subr.bf16.mxu1 %v1358_v1  ;;  %v1299_v10 = vld [vmem:[%s1634_s1 + $0x100] sm:$0xff]   ;;  %s1435_s16 = scalar_lea.vmem %s1633_s0, %s1279_s30  ;;  %v1302_v13 = vld [vmem:[%s1634_s1 + $0x78] sm:$0xff]   ;;  %v1307_v21 = vld [vmem:[%s1634_s1 + $0xf0] sm:$0xff]  }
   0xf   : > { %1164 = vmatprep.subr.bf16.mxu0 %v1293_v4  ;;  %v1300_v11 = vld [vmem:[%s1634_s1 + $0x120] sm:$0xff]   ;;  %v1303_v14 = vld [vmem:[%s1634_s1 + $0xf8] sm:$0xff]   ;;  %v1445_v15 = vld [vmem:[%s1435_s16 + $0x10] sm:$0xff] }
  0x10   : > { %v1301_v12 = vld [vmem:[%s1634_s1 + $0xc0] sm:$0xff]   ;;  %v175_v16 = vld [vmem:[%s1435_s16 + $0x28] sm:$0x3]  ;;  %v1305_v18 = vld [vmem:[%s1634_s1 + $0xb8] sm:$0xff]   ;;  %v178_v2 = vpack.c.bf16 %v1445_v15, %v1445_v15 }
  0x11   : > { %1246 = vmatpush3.bf16.msra.mxu1 %v1294_v5  ;;  %v1449_v17 = vpack.c.bf16 %v175_v16, %v1445_v15  ;;  %v1304_v23 = vld [vmem:[%s1634_s1 + $0x38] sm:$0xff]   ;;  %v1309_v24 = vld [vmem:[%s1634_s1 + $0xb0] sm:$0xff]   ;;  %v1311_v27 = vld [vmem:[%s1634_s1 + $0xe8] sm:$0xff]  }
  0x12   : > { %1165 = vmatpush3.bf16.msra.mxu0 %v1295_v6  ;;  %1247 = vmatprep.subr.bf16.mxu1 %v1358_v1  ;;  %v1306_v26 = vld [vmem:[%s1634_s1 + $0x70] sm:$0xff]   ;;  %v1313_v29 = vld [vmem:[%s1634_s1 + $0xa8] sm:$0xff]   ;;  %v1315_v32 = vld [vmem:[%s1634_s1 + $0xe0] sm:$0xff]  }
  0x13   : > { %1166 = vmatprep.subr.bf16.mxu0 %v1296_v7  ;;  %v278_v19 = vshrl.u32 %v1449_v17, 16  ;;  %v280_v20 = vshll.u32 %v1449_v17, 16  ;;  %v1308_v28 = vld [vmem:[%s1634_s1 + $0x30] sm:$0xff]   ;;  %v1310_v30 = vld [vmem:[%s1634_s1 + $0x68] sm:$0xff]   ;;  %v1314_v33 = vld [vmem:[%s1634_s1 + $0x60] sm:$0xff]   ;;  %v739_v16 = vrot.slane %v1449_v17, 1 }
  0x14   : > { %v1312_v31 = vld [vmem:[%s1634_s1 + $0x28] sm:$0xff]   ;;  %v1317_v34 = vld [vmem:[%s1634_s1 + $0xa0] sm:$0xff]   ;;  %v173_v40 = vld [vmem:[%s1435_s16 + $0x18] sm:$0x3] }
  0x15   : > { %1248 = vmatpush3.bf16.msra.mxu1 %v1297_v8  ;;  %v282_v22 = vrot.slane %v280_v20, 1  ;;  %v171_v35 = vld [vmem:[%s1435_s16 + $0x8] sm:$0xff]  ;;  %v174_v36 = vld [vmem:[%s1435_s16 + $0x20] sm:$0x3]  ;;  %v1318_v45 = vld [vmem:[%s1634_s1 + $0x58] sm:$0xff]  }
  0x16   : > { %1167 = vmatpush3.bf16.msra.mxu0 %v1298_v9  ;;  %1249 = vmatprep.subr.bf16.mxu1 %v1358_v1  ;;  %v177_v37 = vpack.c.bf16 %v171_v35, %v171_v35  ;;  %v1495_v38 = vpack.c.bf16 %v174_v36, %v171_v35  ;;  %v170_v39 = vld [vmem:[%s1435_s16] sm:$0xff]  ;;  %v1319_v49 = vld [vmem:[%s1634_s1 + $0x18] sm:$0xff]   ;;  %v1321_v54 = vld [vmem:[%s1634_s1 + $0x50] sm:$0xff]  }
  0x17   : > { %1168 = vmatprep.subr.bf16.mxu0 %v1299_v10  ;;  %v283_v25 = vor.u32 %v282_v22, %v278_v19  ;;  %v1316_v41 = vld [vmem:[%s1634_s1 + $0x20] sm:$0xff]   ;;  %v1502_v42 = vpack.c.bf16 %v173_v40, %v170_v39  ;;  %v1320_v51 = vld [vmem:[%s1634_s1 + $0x98] sm:$0xff]   ;;  %v1322_v55 = vld [vmem:[%s1634_s1 + $0x10] sm:$0xff]   ;;  %v176_v0 = vpack.c.bf16 %v170_v39, %v170_v39 }
  0x18   : > { %v271_v43 = vshrl.u32 %v1495_v38, 16  ;;  %v273_v44 = vshll.u32 %v1495_v38, 16  ;;  %v1323_v56 = vld [vmem:[%s1634_s1 + $0x90] sm:$0xff]   ;;  %v1324_v57 = vld [vmem:[%s1634_s1 + $0x48] sm:$0xff]   ;;  %v1327_v60 = vld [vmem:[%s1634_s1 + $0x40] sm:$0xff]   ;;  %v738_v6 = vrot.slane %v1495_v38, 1 }
  0x19   : > { %1250 = vmatpush3.bf16.msra.mxu1 %v1300_v11  ;;  %v264_v46 = vshrl.u32 %v1502_v42, 16  ;;  %v266_v47 = vshll.u32 %v1502_v42, 16  ;;  %v1325_v58 = vld [vmem:[%s1634_s1 + $0x8] sm:$0xff]   ;;  %v1328_v61 = vld [vmem:[%s1634_s1] sm:$0xff]   ;;  %v1330_v63 = vld [vmem:[%s1634_s1 + $0x1b8] sm:$0xff]  }
  0x1a   : > { %1169 = vmatpush3.bf16.msra.mxu0 %v1301_v12  ;;  %1189 = vmatprep.subr.bf16.mxu1 %v1302_v13  ;;  %v275_v48 = vrot.slane %v273_v44, 1  ;;  %v1326_v59 = vld [vmem:[%s1634_s1 + $0x88] sm:$0xff]   ;;  %v1329_v62 = vld [vmem:[%s1634_s1 + $0x80] sm:$0xff]   ;;  %v1331_v3 = vld [vmem:[%s1634_s1 + $0x178] sm:$0xff]  }
  0x1b   : > { %1170 = vmatprep.subr.bf16.mxu0 %v1303_v14  ;;  %v268_v50 = vrot.slane %v266_v47, 1  ;;  %v1338_v4 = vld [vmem:[%s1634_s1 + $0x1d8] sm:$0xff]   ;;  %v1332_v5 = vld [vmem:[%s1634_s1 + $0x1b0] sm:$0xff]   ;;  %v1334_v9 = vld [vmem:[%s1634_s1 + $0x1a8] sm:$0xff]  }
  0x1c   : > { %1252 = vmatmul.mubr.msk.bf16.vlgmr.msra.gmra.mxu1 %vm406_vm1, %v283_v25  ;;  %v276_v52 = vor.u32 %v275_v48, %v271_v43  ;;  %v1333_v7 = vld [vmem:[%s1634_s1 + $0x170] sm:$0xff]   ;;  %v1335_v10 = vld [vmem:[%s1634_s1 + $0x168] sm:$0xff]   ;;  %v1336_v12 = vld [vmem:[%s1634_s1 + $0x1a0] sm:$0xff]  }
  0x1d   : > { %1190 = vmatpush3.bf16.msra.mxu1 %v1304_v23  ;;  %645 = vmatprep.mubr.bf16.mxu1 %v177_v37  ;;  %v269_v53 = vor.u32 %v268_v50, %v264_v46  ;;  %v1341_v8 = vld [vmem:[%s1634_s1 + $0x1d0] sm:$0xff]   ;;  %v1344_v11 = vld [vmem:[%s1634_s1 + $0x1c8] sm:$0xff]   ;;  %v1337_v13 = vld [vmem:[%s1634_s1 + $0x160] sm:$0xff]   ;;  %v737_v23 = vrot.slane %v1502_v42, 1 }
  0x1e   : > { %1171 = vmatpush3.bf16.msra.mxu0 %v1305_v18  ;;  %1191 = vmatprep.subr.bf16.mxu1 %v1306_v26  ;;  %v1347_v14 = vld [vmem:[%s1634_s1 + $0x1c0] sm:$0xff]   ;;  %v1339_v15 = vld [vmem:[%s1634_s1 + $0x198] sm:$0xff]   ;;  %v1342_v19 = vld [vmem:[%s1634_s1 + $0x190] sm:$0xff]  }
  0x1f   : > { %1172 = vmatprep.subr.bf16.mxu0 %v1307_v21  ;;  %442 = vmatprep.mubr.bf16.mxu0 %v276_v52  ;;  %v1340_v18 = vld [vmem:[%s1634_s1 + $0x158] sm:$0xff]   ;;  %v1345_v17 = vld [vmem:[%s1634_s1 + $0x188] sm:$0xff]   ;;  %v1348_v21 = vld [vmem:[%s1634_s1 + $0x180] sm:$0xff]  }
  0x20   : > { %v1346_v20 = vld [vmem:[%s1634_s1 + $0x148] sm:$0xff]   ;;  %v1349_v22 = vld [vmem:[%s1634_s1 + $0x140] sm:$0xff]  }
  0x21   : > { %1192 = vmatpush3.bf16.msra.mxu1 %v1308_v28 }
  0x22   : > { %1173 = vmatpush3.bf16.msra.mxu0 %v1309_v24  ;;  %1193 = vmatprep.subr.bf16.mxu1 %v1310_v30 }
  0x23   : > { %1174 = vmatprep.subr.bf16.mxu0 %v1311_v27 }
  0x25   : > { %1194 = vmatpush3.bf16.msra.mxu1 %v1312_v31 }
  0x26   : > { %1175 = vmatpush3.bf16.msra.mxu0 %v1313_v29  ;;  %1195 = vmatprep.subr.bf16.mxu1 %v1314_v33 }
  0x27   : > { %1176 = vmatprep.subr.bf16.mxu0 %v1315_v32 }
  0x29   : > { %1196 = vmatpush3.bf16.msra.mxu1 %v1316_v41 }
  0x2a   : > { %1177 = vmatpush3.bf16.msra.mxu0 %v1317_v34  ;;  %1197 = vmatprep.subr.bf16.mxu1 %v1318_v45 }
  0x2b   : > { %1255 = vmatprep.subr.bf16.mxu0 %v1358_v1 }
  0x2d   : > { %443 = vmatmul.mubr.bf16.vlgmr.msra.gmra.mxu0 %v269_v53  ;;  %1198 = vmatpush3.bf16.msra.mxu1 %v1319_v49 }
  0x2e   : > { %1256 = vmatpush3.bf16.msra.mxu0 %v1320_v51  ;;  %1199 = vmatprep.subr.bf16.mxu1 %v1321_v54  ;;  %v1159_v54 = vld [vmem:[%s1635_s2] ss:$0 sm:$0xff] }
  0x2f   : > { %1257 = vmatprep.subr.bf16.mxu0 %v1358_v1  ;;  %1263 = vmatprep.mubr.msk.bf16.mxu0 %vm1359_vm0, %v1358_v1 }
  0x31   : > { %1200 = vmatpush3.bf16.msra.mxu1 %v1322_v55 }
  0x32   : > { %1258 = vmatpush3.bf16.msra.mxu0 %v1323_v56  ;;  %1201 = vmatprep.subr.bf16.mxu1 %v1324_v57 }
  0x33   : > { %1259 = vmatprep.subr.bf16.mxu0 %v1358_v1 }
  0x35   : > { %1202 = vmatpush3.bf16.msra.mxu1 %v1325_v58 }
  0x36   : > { %1260 = vmatpush3.bf16.msra.mxu0 %v1326_v59  ;;  %1203 = vmatprep.subr.bf16.mxu1 %v1327_v60 }
  0x37   : > { %1261 = vmatprep.subr.bf16.mxu0 %v1358_v1 }
  0x39   : > { %1204 = vmatpush3.bf16.msra.mxu1 %v1328_v61 }
  0x3a   : > { %1262 = vmatpush3.bf16.msra.mxu0 %v1329_v62  ;;  %1267 = vmatprep.subr.bf16.mxu1 %v1358_v1 }
  0x3b   : > { %1216 = vmatprep.subr.bf16.mxu0 %v1330_v63 }
  0x3c   : > { %646 = vmatmul.mubr.bf16.vlgmr.msra.gmra.mxu1 %v176_v0 }
  0x3d   : > { %1264 = vmatmul.mubr.msk.bf16.vlgmr.msra.gmra.mxu0 %vm406_vm1, %v178_v2  ;;  %1268 = vmatpush3.bf16.msra.mxu1 %v1338_v4 }
  0x3e   : > { %1217 = vmatpush3.bf16.msra.mxu0 %v1331_v3  ;;  %1269 = vmatprep.subr.bf16.mxu1 %v1358_v1 }
  0x3f   : > { %1218 = vmatprep.subr.bf16.mxu0 %v1332_v5  ;;  %1275 = vmatprep.mubr.msk.bf16.mxu1 %vm1359_vm0, %v1358_v1 }
  0x40   : > { %897 = vmatprep.mubr.bf16.mxu0 %v738_v6 }
  0x41   : > { %1270 = vmatpush3.bf16.msra.mxu1 %v1341_v8 }
  0x42   : > { %1219 = vmatpush3.bf16.msra.mxu0 %v1333_v7  ;;  %1271 = vmatprep.subr.bf16.mxu1 %v1358_v1 }
  0x43   : > { %1220 = vmatprep.subr.bf16.mxu0 %v1334_v9 }
  0x45   : > { %1272 = vmatpush3.bf16.msra.mxu1 %v1344_v11 }
  0x46   : > { %1221 = vmatpush3.bf16.msra.mxu0 %v1335_v10  ;;  %1273 = vmatprep.subr.bf16.mxu1 %v1358_v1  ;;  %v1343_v1 = vld [vmem:[%s1634_s1 + $0x150] sm:$0xff]  }
  0x47   : > { %1222 = vmatprep.subr.bf16.mxu0 %v1336_v12 }
  0x49   : > { %1274 = vmatpush3.bf16.msra.mxu1 %v1347_v14 }
  0x4a   : > { %1223 = vmatpush3.bf16.msra.mxu0 %v1337_v13 }
  0x4b   : > { %1224 = vmatprep.subr.bf16.mxu0 %v1339_v15 }
  0x4c   : > { %1276 = vmatmul.mubr.msk.bf16.vlgmr.msra.gmra.mxu1 %vm406_vm1, %v739_v16 }
  0x4e   : > { %1225 = vmatpush3.bf16.msra.mxu0 %v1340_v18 }
  0x4f   : > { %1226 = vmatprep.subr.bf16.mxu0 %v1342_v19 }
  0x52   : > { %1227 = vmatpush3.bf16.msra.mxu0 %v1343_v1 }
  0x53   : > { %1228 = vmatprep.subr.bf16.mxu0 %v1345_v17 }
  0x56   : > { %1229 = vmatpush3.bf16.msra.mxu0 %v1346_v20 }
  0x57   : > { %1230 = vmatprep.subr.bf16.mxu0 %v1348_v21 }
  0x5a   : > { %1231 = vmatpush3.bf16.msra.mxu0 %v1349_v22 }
  0x5d   : > { %898 = vmatmul.mubr.bf16.vlgmr.msra.gmra.mxu0 %v737_v23 }
  0xdc   : > { %v484_v24 = vpop.f32.mrf.mxu1 }
  0xde   : > { %v1253_v25 = vpop.f32.mrf.mxu1 }
  0xe0   : > { %v487_v26 = vpop.f32.mrf.mxu1 }
  0xe2   : > { %v1254_v27 = vpop.f32.mrf.mxu1 }
  0xed   : > { %v1178_v28 = vpop.f32.mrf.mxu0 }
  0xef   : > { %v1179_v29 = vpop.f32.mrf.mxu0 }
  0xf0   : > { %v1180_v44 = vadd.f32 %v1179_v29, %v1178_v28 }
  0xf1   : > { %v1181_v30 = vpop.f32.mrf.mxu0 }
  0xf2   : > { %v485_v46 = vadd.f32 %v1180_v44, %v484_v24 }
  0xf3   : > { %v1182_v31 = vpop.f32.mrf.mxu0 }
  0xfc   : > { %v1205_v32 = vpop.f32.mrf.mxu1 }
  0xfd   : > { %v687_v33 = vpop.f32.mrf.mxu0 }
  0xfe   : > { %v1206_v34 = vpop.f32.mrf.mxu1 }
  0xff   : > { %v1265_v35 = vpop.f32.mrf.mxu0  ;;  %v1207_v45 = vadd.f32 %v1206_v34, %v1205_v32 }
 0x100   : > { %v1208_v37 = vpop.f32.mrf.mxu1 }
 0x101   : > { %v690_v36 = vpop.f32.mrf.mxu0  ;;  %v648_v48 = vadd.f32 %v1207_v45, %v485_v46 }
 0x102   : > { %v1209_v39 = vpop.f32.mrf.mxu1 }
 0x103   : > { %v1266_v38 = vpop.f32.mrf.mxu0  ;;  %v688_v52 = vadd.f32 %v687_v33, %v648_v48 }
 0x10c   : > { %v939_v40 = vpop.f32.mrf.mxu1 }
 0x10e   : > { %v1277_v41 = vpop.f32.mrf.mxu1 }
 0x110   : > { %v942_v42 = vpop.f32.mrf.mxu1 }
 0x112   : > { %v1278_v43 = vpop.f32.mrf.mxu1 }
 0x11d   : > { %v1232_v47 = vpop.f32.mrf.mxu0 }
 0x11f   : > { %v1233_v49 = vpop.f32.mrf.mxu0 }
 0x120   : > { %v1234_v50 = vadd.f32 %v1233_v49, %v1232_v47 }
 0x121   : > { %v1235_v51 = vpop.f32.mrf.mxu0 }
 0x122   : > { %v940_v53 = vadd.f32 %v1234_v50, %v939_v40 }
 0x123   : > { %v1236_v55 = vpop.f32.mrf.mxu0 }
 0x124   : > { %v945_v56 = vadd.f32 %v940_v53, %v688_v52 }
 0x126   : > { %v953_v57 = vadd.f32 %v1159_v54, %v945_v56 }
 0x128   : > { %v954_v58 = vmax.f32 %v953_v57, 0.0 }
 0x12a   : > { %955 = vst [vmem:[%s168_s19] sm:$0xff] %v954_v58 }
 0x12b PF: > { %s13_s12 = sadd.s32 1, %s1356_s12  }
 0x12c   : > { %p10_p4 = scmp.ge.s32.totalorder %s13_s12, 4  }
 0x12e   :  { %12 = sbr.rel (!%p10_p4) target bundleno = 1 (0x1), region = 64 }

// kernel: joint_model_forward.19
= control target key start
LH: loop header
LB: loop body
LE: loop exit
PB: predicated region body
PF: predicated region fallthrough
CT: control target
= control target key end

     0   :  { %s682_s12 = smov 0   ;;  %s778_s0 = inlined_call_operand.vmem [shape: f32[2,18,72], index: 0, kind: input, shape index: {}]   ;;  %s779_s1 = inlined_call_operand.vmem [shape: bf16[3,72,128], index: 1, kind: input, shape index: {}]   ;;  %s780_s2 = inlined_call_operand.vmem [shape: f32[1,128], index: 2, kind: input, shape index: {}]   ;;  %s781_s3 = inlined_call_operand.vmem [shape: f32[2,16,128], index: 3, kind: output, shape index: {}]  }
   0x1 LB: > { %s518_s13 = sadd.s32 4294967295, %s658_s12   ;;  %p522_p0 = scmp.ge.s32.totalorder %s658_s12, 1  ;;  %s658_s12 = sphi %s682_s12, %s13_s12  }
   0x2   : > { %p137_p1 = scmp.lt.s32.totalorder %s658_s12, 3 }
   0x4   : > { %p138_p2 = pnand %p522_p0, %p137_p1 }
   0x5   : > { %p161_p3 = scmp.lt.s32.totalorder (!%p138_p2), %s518_s13, 1 }
   0x6   : > { %141 = sbr.rel (%p138_p2) target bundleno = 256 (0x100), region = 32 }
   0xb   : > { %v637_v0 = vld [vmem:[%s779_s1 + $0x44] ss:$0 sps:$4 sm:$0xff]   ;;  %vm240_vm0 = vcmask 1043456   ;;  %v660_v1 = vmov 0.0   ;;  %v638_v2 = vld [vmem:[%s779_s1 + $0x20] ss:$0 sps:$4 sm:$0xff]  }
   0xc   : > { %584 = vmatprep.subr.bf16.mxu0 %v660_v1  ;;  %598 = vmatprep.subr.bf16.mxu1 %v660_v1  ;;  %v242_v3 = vsel %vm240_vm0, %v637_v0, 0  ;;  %v315_v4 = vsel %vm240_vm0, %v638_v2, 0  ;;  %v639_v5 = vld [vmem:[%s779_s1 + $0x3c] sm:$0xff]   ;;  %vm661_vm1 = vmmov 0   ;;  %v641_v7 = vld [vmem:[%s779_s1 + $0x34] sm:$0xff]   ;;  %s783_s13 = smov (!%p161_p3, %s518_s13), 1 }
   0xd   : > { %585 = vmatpush3.bf16.msra.mxu0 %v242_v3  ;;  %599 = vmatpush3.bf16.msra.mxu1 %v315_v4  ;;  %v640_v6 = vld [vmem:[%s779_s1 + $0x18] sm:$0xff]   ;;  %v642_v8 = vld [vmem:[%s779_s1 + $0x10] sm:$0xff]   ;;  %s626_s26 = smul.u32 24, %s783_s13  ;;  %v644_v10 = vld [vmem:[%s779_s1 + $0x8] sm:$0xff]   ;;  %vm196_vm2 = vsmask.f32 7424 }
   0xe   : > { %586 = vmatprep.subr.bf16.mxu0 %v660_v1  ;;  %600 = vmatprep.subr.bf16.mxu1 %v660_v1  ;;  %v643_v9 = vld [vmem:[%s779_s1 + $0x2c] sm:$0xff]   ;;  %v645_v16 = vld [vmem:[%s779_s1 + $0x24] sm:$0xff]   ;;  %vm236_vm3 = vcmask 588800   ;;  %v649_v28 = vld [vmem:[%s779_s1 + $0x58] sm:$0xff]   ;;  %vm370_vm4 = vcmask 1046528   ;;  %s565_s25 = sshll.u32 %s783_s13, 4 }
   0xf   : > { %594 = vmatprep.mubr.msk.bf16.mxu0 %vm661_vm1, %v660_v1  ;;  %608 = vmatprep.mubr.msk.bf16.mxu1 %vm661_vm1, %v660_v1  ;;  %s165_s6 = scalar_lea.vmem %s778_s0, %s626_s26  ;;  %v646_v20 = vld [vmem:[%s779_s1] sm:$0xff]   ;;  %v647_v21 = vld [vmem:[%s779_s1 + $0x68] ss:$0 sps:$4 sm:$0xff]   ;;  %v650_v29 = vld [vmem:[%s779_s1 + $0x50] sm:$0xff]   ;;  %s170_s28 = scalar_lea.vmem %s781_s3, %s565_s25 }
  0x10   : > { %v172_v11 = vld [vmem:[%s165_s6] sm:$0xff]  ;;  %v173_v12 = vld [vmem:[%s165_s6 + $0x8] sm:$0xff]  ;;  %v174_v13 = vld [vmem:[%s165_s6 + $0x10] sm:$0x3]  ;;  %v405_v25 = vsel %vm240_vm0, %v647_v21, 0 }
  0x11   : > { %587 = vmatpush3.bf16.msra.mxu0 %v639_v5  ;;  %601 = vmatpush3.bf16.msra.mxu1 %v640_v6  ;;  %v175_v14 = vpack.c.bf16 %v173_v12, %v172_v11  ;;  %v185_v15 = vpack.c.bf16 %v174_v13, %v174_v13  ;;  %v648_v27 = vld [vmem:[%s779_s1 + $0x60] sm:$0xff]   ;;  %v651_v30 = vld [vmem:[%s779_s1 + $0x48] sm:$0xff]  }
  0x12   : > { %588 = vmatprep.subr.bf16.mxu0 %v660_v1  ;;  %602 = vmatprep.subr.bf16.mxu1 %v660_v1  ;;  %v562_v44 = vld [vmem:[%s780_s2] ss:$0 sm:$0xff] }
  0x13   : > { %v198_v17 = vshrl.u32 %v175_v14, 16  ;;  %v200_v18 = vshll.u32 %v175_v14, 16  ;;  %v205_v19 = vshll.u32 %v185_v15, 16  ;;  %v371_v31 = vrot.slane %v175_v14, 1 }
  0x14   : > { %v372_v32 = vrot.slane %v185_v15, 1 }
  0x15   : > { %589 = vmatpush3.bf16.msra.mxu0 %v641_v7  ;;  %603 = vmatpush3.bf16.msra.mxu1 %v642_v8  ;;  %v202_v22 = vrot.slane %v200_v18, 1  ;;  %v207_v23 = vrot.slane %v205_v19, 1 }
  0x16   : > { %590 = vmatprep.subr.bf16.mxu0 %v660_v1  ;;  %604 = vmatprep.subr.bf16.mxu1 %v660_v1  ;;  %v373_v33 = vsel %vm370_vm4, %v371_v31, %v372_v32 }
  0x17   : > { %v203_v24 = vor.u32 %v202_v22, %v198_v17 }
  0x19   : > { %591 = vmatpush3.bf16.msra.mxu0 %v643_v9  ;;  %605 = vmatpush3.bf16.msra.mxu1 %v644_v10  ;;  %v208_v26 = vsel %vm196_vm2, %v203_v24, %v207_v23 }
  0x1a   : > { %592 = vmatprep.subr.bf16.mxu0 %v660_v1  ;;  %606 = vmatprep.subr.bf16.mxu1 %v660_v1 }
  0x1d   : > { %593 = vmatpush3.bf16.msra.mxu0 %v645_v16  ;;  %607 = vmatpush3.bf16.msra.mxu1 %v646_v20 }
  0x1e   : > { %612 = vmatprep.subr.bf16.mxu0 %v660_v1 }
  0x20   : > { %595 = vmatmul.mubr.msk.bf16.vlgmr.msra.gmra.mxu0 %vm236_vm3, %v208_v26  ;;  %609 = vmatmul.mubr.msk.bf16.vlgmr.msra.gmra.mxu1 %vm236_vm3, %v175_v14 }
  0x21   : > { %613 = vmatpush3.bf16.msra.mxu0 %v405_v25  ;;  %622 = vmatprep.mubr.msk.bf16.mxu0 %vm661_vm1, %v660_v1 }
  0x22   : > { %614 = vmatprep.subr.bf16.mxu0 %v660_v1 }
  0x25   : > { %615 = vmatpush3.bf16.msra.mxu0 %v648_v27 }
  0x26   : > { %616 = vmatprep.subr.bf16.mxu0 %v660_v1 }
  0x29   : > { %617 = vmatpush3.bf16.msra.mxu0 %v649_v28 }
  0x2a   : > { %618 = vmatprep.subr.bf16.mxu0 %v660_v1 }
  0x2d   : > { %619 = vmatpush3.bf16.msra.mxu0 %v650_v29 }
  0x2e   : > { %620 = vmatprep.subr.bf16.mxu0 %v660_v1 }
  0x31   : > { %621 = vmatpush3.bf16.msra.mxu0 %v651_v30 }
  0x34   : > { %623 = vmatmul.mubr.msk.bf16.vlgmr.msra.gmra.mxu0 %vm236_vm3, %v373_v33 }
  0xe0   : > { %v278_v34 = vpop.f32.mrf.mxu0  ;;  %v351_v35 = vpop.f32.mrf.mxu1 }
  0xe1   : > { %v352_v42 = vadd.f32 %v351_v35, %v278_v34 }
  0xe2   : > { %v596_v36 = vpop.f32.mrf.mxu0  ;;  %v610_v37 = vpop.f32.mrf.mxu1 }
  0xe4   : > { %v281_v38 = vpop.f32.mrf.mxu0  ;;  %v354_v39 = vpop.f32.mrf.mxu1 }
  0xe5   : > { %v355_v47 = vadd.f32 %v354_v39, %v281_v38 }
  0xe6   : > { %v597_v40 = vpop.f32.mrf.mxu0  ;;  %v611_v41 = vpop.f32.mrf.mxu1 }
  0xf4   : > { %v441_v43 = vpop.f32.mrf.mxu0 }
  0xf5   : > { %v448_v45 = vadd.f32 %v441_v43, %v352_v42 }
  0xf6   : > { %v624_v46 = vpop.f32.mrf.mxu0 }
  0xf7   : > { %v457_v48 = vadd.f32 %v562_v44, %v448_v45 }
  0xf8   : > { %v444_v49 = vpop.f32.mrf.mxu0 }
  0xf9   : > { %v459_v50 = vmax.f32 %v457_v48, 0.0  ;;  %v449_v51 = vadd.f32 %v444_v49, %v355_v47 }
  0xfa   : > { %v625_v52 = vpop.f32.mrf.mxu0 }
  0xfb   : > { %461 = vst [vmem:[%s170_s28] sm:$0xff] %v459_v50  ;;  %v458_v53 = vadd.f32 %v562_v44, %v449_v51 }
  0xfd   : > { %v460_v54 = vmax.f32 %v458_v53, 0.0 }
  0xff   : > { %462 = vst [vmem:[%s170_s28 + $0x8] sm:$0xff] %v460_v54 }
 0x100 PF: > { %s13_s12 = sadd.s32 1, %s658_s12  }
 0x101   : > { %p10_p4 = scmp.ge.s32.totalorder %s13_s12, 4  }
 0x103   :  { %12 = sbr.rel (!%p10_p4) target bundleno = 1 (0x1), region = 64 }

// kernel: joint_model_forward.20
= control target key start
LH: loop header
LB: loop body
LE: loop exit
PB: predicated region body
PF: predicated region fallthrough
CT: control target
= control target key end

     0   :  { %s1562_s18 = smov 0   ;;  %s1837_s0 = inlined_call_operand.vmem [shape: f32[2,18,288], index: 0, kind: input, shape index: {}]   ;;  %s1838_s1 = inlined_call_operand.vmem [shape: bf16[3,288,128], index: 1, kind: input, shape index: {}]   ;;  %s1839_s2 = inlined_call_operand.vmem [shape: f32[1,128], index: 2, kind: input, shape index: {}]   ;;  %s1840_s3 = inlined_call_operand.vmem [shape: bf16[128,48], index: 3, kind: input, shape index: {}]   ;;  %s1841_s4 = inlined_call_operand.vmem [shape: f32[1,48], index: 4, kind: input, shape index: {}]   ;;  %s1842_s5 = inlined_call_operand.vmem [shape: f32[2,16,48], index: 5, kind: output, shape index: {}]  }
   0x1 LB: > { %s1171_s19 = sadd.s32 4294967295, %s1528_s18   ;;  %p1175_p0 = scmp.ge.s32.totalorder %s1528_s18, 1  ;;  %s1528_s18 = sphi %s1562_s18, %s15_s18  }
   0x2   : > { %p187_p1 = scmp.lt.s32.totalorder %s1528_s18, 3 }
   0x4   : > { %p188_p2 = pnand %p1175_p0, %p187_p1 }
   0x5   : > { %p215_p3 = scmp.lt.s32.totalorder (!%p188_p2), %s1171_s19, 1 }
   0x6   : > { %191 = sbr.rel (%p188_p2) target bundleno = 495 (0x1ef), region = 40 }
   0xb   : > { %v1460_v0 = vld [vmem:[%s1838_s1 + $0x108] sm:$0xff]   ;;  %v1530_v2 = vmov 0.0   ;;  %v1462_v3 = vld [vmem:[%s1838_s1 + $0x100] sm:$0xff]   ;;  %vm1531_vm0 = vmmov 0   ;;  %v1464_v5 = vld [vmem:[%s1838_s1 + $0x118] sm:$0xff]   ;;  %s1844_s19 = smov (!%p215_p3, %s1171_s19), 1 }
   0xc   : > { %v1461_v1 = vld [vmem:[%s1838_s1 + $0xc8] sm:$0xff]   ;;  %1405 = vmatprep.subr.bf16.mxu1 %v1530_v2  ;;  %1321 = vmatprep.subr.bf16.mxu0 %v1460_v0  ;;  %v1463_v4 = vld [vmem:[%s1838_s1 + $0xc0] sm:$0xff]   ;;  %v1465_v6 = vld [vmem:[%s1838_s1 + $0xf8] sm:$0xff]   ;;  %s1449_s9 = smul.u32 72, %s1844_s19  ;;  %vm314_vm1 = vsmask.f32 7424 }
   0xd   : > { %1409 = vmatprep.mubr.msk.bf16.mxu1 %vm1531_vm0, %v1530_v2  ;;  %1322 = vmatpush3.bf16.msra.mxu0 %v1461_v1  ;;  %v1466_v7 = vld [vmem:[%s1838_s1 + $0xb8] sm:$0xff]   ;;  %v1467_v8 = vld [vmem:[%s1838_s1 + $0x110] sm:$0xff]   ;;  %v1472_v17 = vld [vmem:[%s1838_s1 + $0xe8] sm:$0xff]   ;;  %vm461_vm2 = vcmask 261120   ;;  %vm782_vm3 = vcmask 1046528   ;;  %vm1113_vm4 = vcmask 392192  }
   0xe   : > { %1323 = vmatprep.subr.bf16.mxu0 %v1462_v3  ;;  %1406 = vmatpush3.bf16.msra.mxu1 %v1464_v5  ;;  %v1468_v9 = vld [vmem:[%s1838_s1 + $0xf0] sm:$0xff]   ;;  %s1607_s16 = scalar_lea.vmem %s1837_s0, %s1449_s9  ;;  %v1470_v11 = vld [vmem:[%s1838_s1 + $0x78] sm:$0xff]   ;;  %v1473_v21 = vld [vmem:[%s1838_s1 + $0xa8] sm:$0xff]  }
   0xf   : > { %1407 = vmatprep.subr.bf16.mxu1 %v1530_v2  ;;  %v1469_v10 = vld [vmem:[%s1838_s1 + $0xb0] sm:$0xff]   ;;  %v231_v13 = vld [vmem:[%s1607_s16 + $0x28] sm:$0xff]  ;;  %v234_v14 = vld [vmem:[%s1607_s16 + $0x40] sm:$0x3] }
  0x10   : > { %v228_v12 = vld [vmem:[%s1607_s16 + $0x10] sm:$0xff]  ;;  %v1620_v16 = vpack.c.bf16 %v234_v14, %v234_v14  ;;  %v1471_v24 = vld [vmem:[%s1838_s1 + $0x38] sm:$0xff]   ;;  %v1476_v27 = vld [vmem:[%s1838_s1 + $0xe0] sm:$0xff]  }
  0x11   : > { %1324 = vmatpush3.bf16.msra.mxu0 %v1463_v4  ;;  %v1618_v15 = vpack.c.bf16 %v231_v13, %v228_v12  ;;  %v1474_v25 = vld [vmem:[%s1838_s1 + $0x70] sm:$0xff]   ;;  %v1477_v28 = vld [vmem:[%s1838_s1 + $0xa0] sm:$0xff]   ;;  %v1478_v31 = vld [vmem:[%s1838_s1 + $0x68] sm:$0xff]  }
  0x12   : > { %1325 = vmatprep.subr.bf16.mxu0 %v1465_v6  ;;  %1408 = vmatpush3.bf16.msra.mxu1 %v1467_v8  ;;  %v347_v20 = vshll.u32 %v1620_v16, 16  ;;  %v1475_v30 = vld [vmem:[%s1838_s1 + $0x30] sm:$0xff]   ;;  %v1480_v32 = vld [vmem:[%s1838_s1 + $0xd8] sm:$0xff]   ;;  %v1479_v34 = vld [vmem:[%s1838_s1 + $0x28] sm:$0xff]  }
  0x13   : > { %1346 = vmatprep.subr.bf16.mxu1 %v1470_v11  ;;  %v340_v18 = vshrl.u32 %v1618_v15, 16  ;;  %v342_v19 = vshll.u32 %v1618_v15, 16  ;;  %v1481_v33 = vld [vmem:[%s1838_s1 + $0x98] sm:$0xff]   ;;  %v1482_v35 = vld [vmem:[%s1838_s1 + $0x60] sm:$0xff]   ;;  %v1484_v36 = vld [vmem:[%s1838_s1 + $0xd0] sm:$0xff]  }
  0x14   : > { %v349_v23 = vrot.slane %v347_v20, 1  ;;  %v1485_v37 = vld [vmem:[%s1838_s1 + $0x90] sm:$0xff]   ;;  %v1483_v38 = vld [vmem:[%s1838_s1 + $0x20] sm:$0xff]   ;;  %v1486_v39 = vld [vmem:[%s1838_s1 + $0x58] sm:$0xff]  }
  0x15   : > { %1326 = vmatpush3.bf16.msra.mxu0 %v1466_v7  ;;  %v344_v22 = vrot.slane %v342_v19, 1  ;;  %v227_v40 = vld [vmem:[%s1607_s16 + $0x8] sm:$0xff]  ;;  %v230_v41 = vld [vmem:[%s1607_s16 + $0x20] sm:$0xff]  ;;  %v233_v42 = vld [vmem:[%s1607_s16 + $0x38] sm:$0x3] }
  0x16   : > { %1327 = vmatprep.subr.bf16.mxu0 %v1468_v9  ;;  %v236_v43 = vpack.c.bf16 %v230_v41, %v227_v40  ;;  %v226_v44 = vld [vmem:[%s1607_s16] sm:$0xff]  ;;  %v229_v45 = vld [vmem:[%s1607_s16 + $0x18] sm:$0xff]  ;;  %v275_v46 = vpack.c.bf16 %v233_v42, %v233_v42  ;;  %v232_v47 = vld [vmem:[%s1607_s16 + $0x30] sm:$0x3]  ;;  %s1320_s16 = sshll.u32 %s1844_s19, 4 }
  0x17   : > { %v345_v26 = vor.u32 %v344_v22, %v340_v18  ;;  %v1681_v48 = vpack.c.bf16 %v229_v45, %v226_v44  ;;  %v1487_v49 = vld [vmem:[%s1838_s1 + $0x18] sm:$0xff]   ;;  %v1686_v52 = vpack.c.bf16 %v232_v47, %v232_v47  ;;  %v1488_v56 = vld [vmem:[%s1838_s1 + $0x50] sm:$0xff]   ;;  %v1489_v0 = vld [vmem:[%s1838_s1 + $0x88] sm:$0xff]   ;;  %s224_s15 = scalar_lea.vmem %s1842_s5, %s1320_s16 }
  0x18   : > { %v328_v50 = vshrl.u32 %v236_v43, 16  ;;  %v330_v51 = vshll.u32 %v236_v43, 16  ;;  %v335_v53 = vshll.u32 %v275_v46, 16  ;;  %v1490_v3 = vld [vmem:[%s1838_s1 + $0x10] sm:$0xff]   ;;  %v1491_v5 = vld [vmem:[%s1838_s1 + $0x48] sm:$0xff]   ;;  %v1492_v6 = vld [vmem:[%s1838_s1 + $0x80] sm:$0xff]  }
  0x19   : > { %1328 = vmatpush3.bf16.msra.mxu0 %v1469_v10  ;;  %v350_v29 = vsel %vm314_vm1, %v345_v26, %v349_v23  ;;  %v316_v54 = vshrl.u32 %v1681_v48, 16  ;;  %v318_v55 = vshll.u32 %v1681_v48, 16  ;;  %v323_v58 = vshll.u32 %v1686_v52, 16  ;;  %v1493_v7 = vld [vmem:[%s1838_s1 + $0x8] sm:$0xff]   ;;  %v1494_v9 = vld [vmem:[%s1838_s1 + $0x198] sm:$0xff]   ;;  %v1495_v11 = vld [vmem:[%s1838_s1 + $0x40] sm:$0xff]  }
  0x1a   : > { %1329 = vmatprep.subr.bf16.mxu0 %v1472_v17  ;;  %1410 = vmatmul.mubr.msk.bf16.vlgmr.msra.gmra.mxu1 %vm461_vm2, %v350_v29  ;;  %v332_v57 = vrot.slane %v330_v51, 1  ;;  %v337_v59 = vrot.slane %v335_v53, 1  ;;  %v786_v8 = vrot.slane %v236_v43, 1  ;;  %v787_v10 = vrot.slane %v275_v46, 1  ;;  %v1496_v12 = vld [vmem:[%s1838_s1 + $0x158] sm:$0xff]   ;;  %v1497_v13 = vld [vmem:[%s1838_s1] sm:$0xff]  }
  0x1b   : > { %1347 = vmatpush3.bf16.msra.mxu1 %v1471_v24  ;;  %689 = vmatprep.mubr.bf16.mxu1 %v236_v43  ;;  %v320_v60 = vrot.slane %v318_v55, 1  ;;  %v325_v62 = vrot.slane %v323_v58, 1  ;;  %v1498_v14 = vld [vmem:[%s1838_s1 + $0x190] sm:$0xff]   ;;  %v1500_v19 = vld [vmem:[%s1838_s1 + $0x188] sm:$0xff]   ;;  %v1502_v22 = vld [vmem:[%s1838_s1 + $0x180] sm:$0xff]   ;;  %v789_v23 = vrot.slane %v1618_v15, 1 }
  0x1c   : > { %1348 = vmatprep.subr.bf16.mxu1 %v1474_v25  ;;  %v333_v61 = vor.u32 %v332_v57, %v328_v50  ;;  %v788_v17 = vsel %vm782_vm3, %v786_v8, %v787_v10  ;;  %v1499_v18 = vld [vmem:[%s1838_s1 + $0x150] sm:$0xff]   ;;  %v1501_v20 = vld [vmem:[%s1838_s1 + $0x148] sm:$0xff]   ;;  %v790_v24 = vrot.slane %v1620_v16, 1  ;;  %v1511_v25 = vld [vmem:[%s1838_s1 + $0x1a0] sm:$0xff]  }
  0x1d   : > { %1330 = vmatpush3.bf16.msra.mxu0 %v1473_v21  ;;  %v321_v63 = vor.u32 %v320_v60, %v316_v54  ;;  %v1508_v21 = vld [vmem:[%s1838_s1 + $0x1a8] sm:$0xff]   ;;  %v1503_v26 = vld [vmem:[%s1838_s1 + $0x140] sm:$0xff]   ;;  %v1507_v29 = vld [vmem:[%s1838_s1 + $0x130] sm:$0xff]  }
  0x1e   : > { %1331 = vmatprep.subr.bf16.mxu0 %v1476_v27  ;;  %v338_v1 = vsel %vm314_vm1, %v333_v61, %v337_v59  ;;  %v1504_v27 = vld [vmem:[%s1838_s1 + $0x178] sm:$0xff]   ;;  %v791_v16 = vsel %vm782_vm3, %v789_v23, %v790_v24  ;;  %v1517_v40 = vld [vmem:[%s1840_s3 + $0x20] sm:$0xff]   ;;  %v1519_v42 = vld [vmem:[%s1840_s3 + $0x10] sm:$0xff]  }
  0x1f   : > { %1349 = vmatpush3.bf16.msra.mxu1 %v1475_v30  ;;  %497 = vmatprep.mubr.bf16.mxu0 %v338_v1  ;;  %v326_v4 = vsel %vm314_vm1, %v321_v63, %v325_v62  ;;  %v1509_v30 = vld [vmem:[%s1838_s1 + $0x168] sm:$0xff]   ;;  %v1518_v41 = vld [vmem:[%s1840_s3 + $0x18] sm:$0xff]   ;;  %v1521_v44 = vld [vmem:[%s1840_s3] sm:$0xff]  }
  0x20   : > { %1350 = vmatprep.subr.bf16.mxu1 %v1478_v31  ;;  %v1510_v31 = vld [vmem:[%s1838_s1 + $0x128] sm:$0xff]  }
  0x21   : > { %1332 = vmatpush3.bf16.msra.mxu0 %v1477_v28  ;;  %v1506_v28 = vld [vmem:[%s1838_s1 + $0x170] sm:$0xff]   ;;  %v1520_v43 = vld [vmem:[%s1840_s3 + $0x8] sm:$0xff]  }
  0x22   : > { %1333 = vmatprep.subr.bf16.mxu0 %v1480_v32  ;;  %v1512_v32 = vld [vmem:[%s1838_s1 + $0x160] sm:$0xff]  }
  0x23   : > { %1351 = vmatpush3.bf16.msra.mxu1 %v1479_v34  ;;  %v783_v34 = vrot.slane %v1681_v48, 1 }
  0x24   : > { %1352 = vmatprep.subr.bf16.mxu1 %v1482_v35  ;;  %v784_v35 = vrot.slane %v1686_v52, 1 }
  0x25   : > { %1334 = vmatpush3.bf16.msra.mxu0 %v1481_v33  ;;  %v1513_v33 = vld [vmem:[%s1838_s1 + $0x120] sm:$0xff]  }
  0x26   : > { %1335 = vmatprep.subr.bf16.mxu0 %v1484_v36  ;;  %v785_v36 = vsel %vm782_vm3, %v783_v34, %v784_v35 }
  0x27   : > { %1353 = vmatpush3.bf16.msra.mxu1 %v1483_v38  ;;  %v1515_v38 = vld [vmem:[%s1840_s3 + $0x30] sm:$0xff]  }
  0x28   : > { %1354 = vmatprep.subr.bf16.mxu1 %v1486_v39  ;;  %v1516_v39 = vld [vmem:[%s1840_s3 + $0x28] sm:$0xff]  }
  0x29   : > { %1336 = vmatpush3.bf16.msra.mxu0 %v1485_v37  ;;  %v1514_v37 = vld [vmem:[%s1840_s3 + $0x38] sm:$0xff]  }
  0x2a   : > { %1413 = vmatprep.subr.bf16.mxu0 %v1530_v2 }
  0x2b   : > { %1355 = vmatpush3.bf16.msra.mxu1 %v1487_v49 }
  0x2c   : > { %1356 = vmatprep.subr.bf16.mxu1 %v1488_v56  ;;  %498 = vmatmul.mubr.bf16.vlgmr.msra.gmra.mxu0 %v326_v4 }
  0x2d   : > { %1414 = vmatpush3.bf16.msra.mxu0 %v1489_v0  ;;  %1417 = vmatprep.mubr.msk.bf16.mxu0 %vm1531_vm0, %v1530_v2 }
  0x2e   : > { %1415 = vmatprep.subr.bf16.mxu0 %v1530_v2 }
  0x2f   : > { %1357 = vmatpush3.bf16.msra.mxu1 %v1490_v3 }
  0x30   : > { %1358 = vmatprep.subr.bf16.mxu1 %v1491_v5 }
  0x31   : > { %1416 = vmatpush3.bf16.msra.mxu0 %v1492_v6 }
  0x32   : > { %1371 = vmatprep.subr.bf16.mxu0 %v1494_v9 }
  0x33   : > { %1359 = vmatpush3.bf16.msra.mxu1 %v1493_v7 }
  0x34   : > { %1360 = vmatprep.subr.bf16.mxu1 %v1495_v11  ;;  %1418 = vmatmul.mubr.msk.bf16.vlgmr.msra.gmra.mxu0 %vm461_vm2, %v1618_v15  ;;  %v1505_v15 = vld [vmem:[%s1838_s1 + $0x138] sm:$0xff]  }
  0x35   : > { %1372 = vmatpush3.bf16.msra.mxu0 %v1496_v12  ;;  %937 = vmatprep.mubr.bf16.mxu0 %v788_v17 }
  0x36   : > { %1373 = vmatprep.subr.bf16.mxu0 %v1498_v14 }
  0x37   : > { %1361 = vmatpush3.bf16.msra.mxu1 %v1497_v13 }
  0x38   : > { %1421 = vmatprep.subr.bf16.mxu1 %v1530_v2 }
  0x39   : > { %1374 = vmatpush3.bf16.msra.mxu0 %v1499_v18 }
  0x3a   : > { %690 = vmatmul.mubr.bf16.vlgmr.msra.gmra.mxu1 %v1681_v48  ;;  %1375 = vmatprep.subr.bf16.mxu0 %v1500_v19 }
  0x3b   : > { %1425 = vmatprep.mubr.msk.bf16.mxu1 %vm1531_vm0, %v1530_v2  ;;  %1422 = vmatpush3.bf16.msra.mxu1 %v1508_v21 }
  0x3c   : > { %1423 = vmatprep.subr.bf16.mxu1 %v1530_v2 }
  0x3d   : > { %1376 = vmatpush3.bf16.msra.mxu0 %v1501_v20  ;;  %v1308_v20 = vld [vmem:[%s1839_s2] ss:$0 sm:$0xff] }
  0x3e   : > { %1377 = vmatprep.subr.bf16.mxu0 %v1502_v22 }
  0x3f   : > { %1424 = vmatpush3.bf16.msra.mxu1 %v1511_v25 }
  0x40   : > { %1429 = vmatprep.subr.bf16.mxu1 %v1530_v2 }
  0x41   : > { %1378 = vmatpush3.bf16.msra.mxu0 %v1503_v26 }
  0x42   : > { %1379 = vmatprep.subr.bf16.mxu0 %v1504_v27  ;;  %1426 = vmatmul.mubr.msk.bf16.vlgmr.msra.gmra.mxu1 %vm461_vm2, %v791_v16  ;;  %v1309_v16 = vld [vmem:[%s1841_s4] ss:$0 sm:$0xff] }
  0x43   : > { %1445 = vmatprep.mubr.msk.bf16.mxu1 %vm1531_vm0, %v1530_v2  ;;  %1430 = vmatpush3.bf16.msra.mxu1 %v1514_v37 }
  0x44   : > { %1431 = vmatprep.subr.bf16.mxu1 %v1530_v2 }
  0x45   : > { %1380 = vmatpush3.bf16.msra.mxu0 %v1505_v15 }
  0x46   : > { %1381 = vmatprep.subr.bf16.mxu0 %v1506_v28 }
  0x47   : > { %1432 = vmatpush3.bf16.msra.mxu1 %v1515_v38 }
  0x48   : > { %1433 = vmatprep.subr.bf16.mxu1 %v1530_v2 }
  0x49   : > { %1382 = vmatpush3.bf16.msra.mxu0 %v1507_v29 }
  0x4a   : > { %1383 = vmatprep.subr.bf16.mxu0 %v1509_v30 }
  0x4b   : > { %1434 = vmatpush3.bf16.msra.mxu1 %v1516_v39 }
  0x4c   : > { %1435 = vmatprep.subr.bf16.mxu1 %v1530_v2 }
  0x4d   : > { %1384 = vmatpush3.bf16.msra.mxu0 %v1510_v31 }
  0x4e   : > { %1385 = vmatprep.subr.bf16.mxu0 %v1512_v32 }
  0x4f   : > { %1436 = vmatpush3.bf16.msra.mxu1 %v1517_v40 }
  0x50   : > { %1437 = vmatprep.subr.bf16.mxu1 %v1530_v2 }
  0x51   : > { %1386 = vmatpush3.bf16.msra.mxu0 %v1513_v33 }
  0x53   : > { %1438 = vmatpush3.bf16.msra.mxu1 %v1518_v41 }
  0x54   : > { %938 = vmatmul.mubr.bf16.vlgmr.msra.gmra.mxu0 %v785_v36  ;;  %1439 = vmatprep.subr.bf16.mxu1 %v1530_v2 }
  0x57   : > { %1440 = vmatpush3.bf16.msra.mxu1 %v1519_v42 }
  0x58   : > { %1441 = vmatprep.subr.bf16.mxu1 %v1530_v2 }
  0x5b   : > { %1442 = vmatpush3.bf16.msra.mxu1 %v1520_v43 }
  0x5c   : > { %1443 = vmatprep.subr.bf16.mxu1 %v1530_v2 }
  0x5f   : > { %1444 = vmatpush3.bf16.msra.mxu1 %v1521_v44 }
  0xda   : > { %v540_v45 = vpop.f32.mrf.mxu1 }
  0xdc   : > { %v1411_v46 = vpop.f32.mrf.mxu1 }
  0xde   : > { %v543_v47 = vpop.f32.mrf.mxu1 }
  0xe0   : > { %v1412_v48 = vpop.f32.mrf.mxu1 }
  0xec   : > { %v1337_v49 = vpop.f32.mrf.mxu0 }
  0xee   : > { %v1338_v50 = vpop.f32.mrf.mxu0 }
  0xef   : > { %v1339_v0 = vadd.f32 %v1338_v50, %v1337_v49 }
  0xf0   : > { %v1340_v51 = vpop.f32.mrf.mxu0 }
  0xf1   : > { %v541_v3 = vadd.f32 %v1339_v0, %v540_v45 }
  0xf2   : > { %v1341_v52 = vpop.f32.mrf.mxu0 }
  0xf3   : > { %v1342_v4 = vadd.f32 %v1341_v52, %v1340_v51 }
  0xf4   : > { %v732_v53 = vpop.f32.mrf.mxu0 }
  0xf5   : > { %v544_v9 = vadd.f32 %v1342_v4, %v543_v47 }
  0xf6   : > { %v1419_v54 = vpop.f32.mrf.mxu0 }
  0xf8   : > { %v735_v55 = vpop.f32.mrf.mxu0 }
  0xfa   : > { %v1362_v56 = vpop.f32.mrf.mxu1  ;;  %v1420_v57 = vpop.f32.mrf.mxu0 }
  0xfc   : > { %v1363_v58 = vpop.f32.mrf.mxu1 }
  0xfd   : > { %v1364_v1 = vadd.f32 %v1363_v58, %v1362_v56 }
  0xfe   : > { %v1365_v2 = vpop.f32.mrf.mxu1 }
  0xff   : > { %v692_v6 = vadd.f32 %v1364_v1, %v541_v3 }
 0x100   : > { %v1366_v59 = vpop.f32.mrf.mxu1 }
 0x101   : > { %v1367_v7 = vadd.f32 %v1366_v59, %v1365_v2  ;;  %v733_v12 = vadd.f32 %v732_v53, %v692_v6 }
 0x102   : > { %v980_v60 = vpop.f32.mrf.mxu1 }
 0x103   : > { %v695_v13 = vadd.f32 %v1367_v7, %v544_v9 }
 0x104   : > { %v1427_v61 = vpop.f32.mrf.mxu1 }
 0x105   : > { %v736_v21 = vadd.f32 %v735_v55, %v695_v13 }
 0x106   : > { %v983_v62 = vpop.f32.mrf.mxu1 }
 0x108   : > { %v1428_v63 = vpop.f32.mrf.mxu1 }
 0x114   : > { %v1387_v5 = vpop.f32.mrf.mxu0 }
 0x116   : > { %v1388_v8 = vpop.f32.mrf.mxu0 }
 0x117   : > { %v1389_v10 = vadd.f32 %v1388_v8, %v1387_v5 }
 0x118   : > { %v1390_v11 = vpop.f32.mrf.mxu0 }
 0x119   : > { %v981_v14 = vadd.f32 %v1389_v10, %v980_v60 }
 0x11a   : > { %v1391_v17 = vpop.f32.mrf.mxu0 }
 0x11b   : > { %v987_v18 = vadd.f32 %v981_v14, %v733_v12  ;;  %v1392_v19 = vadd.f32 %v1391_v17, %v1390_v11 }
 0x11d   : > { %v984_v22 = vadd.f32 %v1392_v19, %v983_v62  ;;  %v996_v23 = vadd.f32 %v1308_v20, %v987_v18 }
 0x11f   : > { %v988_v24 = vadd.f32 %v984_v22, %v736_v21  ;;  %v998_v26 = vmax.f32 %v996_v23, 0.0 }
 0x121   : > { %v997_v25 = vadd.f32 %v1308_v20, %v988_v24 }
 0x123   : > { %v999_v27 = vmax.f32 %v997_v25, 0.0 }
 0x125   : > { %v1000_v15 = vpack.c.bf16 %v999_v27, %v998_v26 }
 0x127   : > { %1446 = vmatmul.mubr.bf16.vlgmr.msra.gmra.mxu1 %v1000_v15 }
 0x1e7   : > { %v1106_v28 = vpop.f32.mrf.mxu1 }
 0x1e8   : > { %v1107_v29 = vadd.f32 %v1309_v16, %v1106_v28 }
 0x1e9   : > { %v1447_v30 = vpop.f32.mrf.mxu1 }
 0x1ea   : > { %1114 = vst.msk [vmem:[%s224_s15] sm:$0xff] %vm1113_vm4, %v1107_v29 }
 0x1eb   : > { %v1109_v31 = vpop.f32.mrf.mxu1 }
 0x1ec   : > { %v1110_v32 = vadd.f32 %v1309_v16, %v1109_v31 }
 0x1ed   : > { %v1448_v33 = vpop.f32.mrf.mxu1 }
 0x1ee   : > { %1115 = vst.msk [vmem:[%s224_s15 + $0x8] sm:$0xff] %vm1113_vm4, %v1110_v32 }
 0x1ef PF: > { %s15_s18 = sadd.s32 1, %s1528_s18  }
 0x1f0   : > { %p12_p4 = scmp.ge.s32.totalorder %s15_s18, 4  }
 0x1f2   :  { %14 = sbr.rel (!%p12_p4) target bundleno = 1 (0x1), region = 72 }

</bundles_post_ra>
